<compile_context>
chip_gen: v6e
topology: v6e:2x2x1
jax: 0.10.0
libtpu: 0.0.40
codegen_flags: <defaults>
</compile_context>

<pallas_src>
import numpy as np

import jax
import jax.numpy as jnp
from jax.experimental import pallas as pl
from jax.experimental.pallas import tpu as pltpu

NEG_SLOPE = 0.2
BN_EPS = 1e-5
LANE = 128


def _leaky_relu(x):
    return jnp.where(x >= 0, x, NEG_SLOPE * x)


def _round_up(v, m):
    return ((v + m - 1) // m) * m


# ----------------------------------------------------------------------------
# Fused Pallas kernel: conv1 + LReLU -> conv2 + BN + LReLU -> fc1 + LReLU ->
# fc2 + sigmoid, everything VMEM-resident, fc1 weight DMA overlapped.
# ----------------------------------------------------------------------------
def _make_fused_kernel(N, S, Cp, OFF, R, deltas):
    M1 = N * S  # number of conv output voxels (rows), ordered (d, h, w, n)

    def kernel(p1_ref, w1_ref, b1_ref, mask_ref, w2_ref, gamma_ref, beta_ref,
               wf1_hbm, bfc1_ref, wfc2_ref, bfc2_ref, o_ref,
               h1pad_ref, act_ref, flat_ref, wf1_vmem, sem):
        # Kick off the fc1 weight fetch immediately: it is the largest operand
        # (~1 MB bf16) and is not needed until after conv2 + BN, so its DMA
        # overlaps all of the convolution compute below.
        wf1_cp = pltpu.make_async_copy(wf1_hbm, wf1_vmem, sem.at[0])
        wf1_cp.start()

        # ---- conv1 (bf16 matmul on prebuilt patches) + bias + LeakyReLU ----
        h1 = jnp.dot(p1_ref[...], w1_ref[...], preferred_element_type=jnp.float32)
        h1 = _leaky_relu(h1 + b1_ref[...])

        # Stage conv1 activations (bf16) into a row-padded VMEM scratch so
        # conv2's im2col becomes 27 static row-shifted slices.  Only the halo
        # rows need zeroing (the interior is fully overwritten by h1); the
        # halos MUST be zero so garbage cannot survive the mask multiply.
        h1pad_ref[0:OFF, :] = jnp.zeros((OFF, Cp), jnp.bfloat16)
        h1pad_ref[OFF + M1:R, :] = jnp.zeros((R - OFF - M1, Cp), jnp.bfloat16)
        h1pad_ref[OFF:OFF + M1, :] = h1.astype(jnp.bfloat16)

        # ---- conv2 as 27 masked shift-and-matmul taps, vreg accumulator ----
        # Conv2 bias is intentionally dropped: training-mode BN cancels it.
        acc = jnp.zeros((M1, Cp), jnp.float32)
        for idx, delta in enumerate(deltas):
            xs = h1pad_ref[OFF + delta:OFF + delta + M1, :]   # (M1, Cp) bf16
            m = mask_ref[:, idx:idx + 1]                      # (M1, 1) validity
            acc = acc + m * jnp.dot(xs, w2_ref[idx],
                                    preferred_element_type=jnp.float32)

        # ---- BatchNorm3d (training-mode batch stats) + LeakyReLU(0.2) ----
        mean = jnp.mean(acc, axis=0, keepdims=True)
        var = jnp.mean((acc - mean) ** 2, axis=0, keepdims=True)  # biased (PyTorch train)
        h2 = (acc - mean) * jax.lax.rsqrt(var + BN_EPS)
        h2 = _leaky_relu(h2 * gamma_ref[...] + beta_ref[...])
        act_ref[...] = h2.astype(jnp.bfloat16)

        # ---- flatten to (N, S*Cp), channel-minor; fc1 weights were permuted
        #      outside so no activation transpose is ever materialized ----
        for s in range(S):
            flat_ref[:, s * Cp:(s + 1) * Cp] = act_ref[s * N:(s + 1) * N, :]

        # ---- fc1 + LeakyReLU(0.2): wait for the overlapped weight DMA ----
        wf1_cp.wait()
        hfc = jnp.dot(flat_ref[...], wf1_vmem[...],
                      preferred_element_type=jnp.float32)
        hfc = _leaky_relu(hfc + bfc1_ref[...])

        # ---- fc2 (128 -> 1) on VPU + exact sigmoid ----
        logit = jnp.sum(hfc * wfc2_ref[...], axis=1, keepdims=True) + bfc2_ref[...]
        o_ref[...] = 1.0 / (1.0 + jnp.exp(-logit))

    return kernel


# ----------------------------------------------------------------------------
# Trace-time glue
# ----------------------------------------------------------------------------
def _im2col_conv1(x, ksize=3, stride=2, pad=1):
    # x: (N, C, D, H, W) -> patches (Do*Ho*Wo*N, C*27);
    # rows ordered (d, h, w, n), columns ordered (c_in, kd, kh, kw).
    N, C, D, H, W = x.shape
    xp = jnp.pad(x, ((0, 0), (0, 0), (pad, pad), (pad, pad), (pad, pad)))
    Do = (D + 2 * pad - ksize) // stride + 1
    Ho = (H + 2 * pad - ksize) // stride + 1
    Wo = (W + 2 * pad - ksize) // stride + 1
    cols = []
    for kd in range(ksize):
        for kh in range(ksize):
            for kw in range(ksize):
                cols.append(xp[:, :,
                               kd:kd + stride * Do:stride,
                               kh:kh + stride * Ho:stride,
                               kw:kw + stride * Wo:stride])  # (N, C, Do, Ho, Wo)
    p = jnp.stack(cols, axis=2)            # (N, C, 27, Do, Ho, Wo)
    p = p.transpose(3, 4, 5, 0, 1, 2)      # (Do, Ho, Wo, N, C, 27)
    p = p.reshape(Do * Ho * Wo * N, C * ksize ** 3)
    return p, (Do, Ho, Wo)


def _conv2_masks(N, Do, Ho, Wo):
    # masks[row, tap] = 1 if the (kd, kh, kw)-shifted neighbour of that output
    # voxel is inside the volume (pad=1, stride=1 conv), else 0.  Constant.
    S = Do * Ho * Wo
    s = np.arange(S * N) // N
    d = s // (Ho * Wo)
    h = (s // Wo) % Ho
    w = s % Wo
    masks = np.zeros((S * N, 27), np.float32)
    idx = 0
    for kd in range(3):
        for kh in range(3):
            for kw in range(3):
                dd, hh, ww = d + kd - 1, h + kh - 1, w + kw - 1
                valid = (dd >= 0) & (dd < Do) & (hh >= 0) & (hh < Ho) & (ww >= 0) & (ww < Wo)
                masks[:, idx] = valid.astype(np.float32)
                idx += 1
    return masks


# ----------------------------------------------------------------------------
# One-time weight preparation (hoisted out of the per-call jit, cached)
# ----------------------------------------------------------------------------
def prepare_params(params, x_shape):
    W1, b1, W2, b2, gamma, beta, fcW1, fcb1, fcW2, fcb2 = params
    # Conv2 bias is exactly cancelled by training-mode BatchNorm (batch mean).
    del b2

    N, Cin, D, H, W = x_shape
    F = W1.shape[0]
    J = fcW1.shape[0]
    Cout = fcW2.shape[0]
    f32, bf16 = jnp.float32, jnp.bfloat16

    Do = (D + 2 - 3) // 2 + 1
    Ho = (H + 2 - 3) // 2 + 1
    Wo = (W + 2 - 3) // 2 + 1
    S = Do * Ho * Wo
    K1 = Cin * 27
    Kp = _round_up(K1, LANE)
    Cp = _round_up(F, LANE)

    # Weight slabs: permute + zero-pad to lane-dense shapes once, cast to bf16
    # for the MXU (f32 accumulation happens in-kernel).
    w1p = jnp.zeros((Kp, Cp), f32).at[:K1, :F].set(W1.reshape(F, K1).T).astype(bf16)
    b1p = jnp.zeros((1, Cp), f32).at[0, :F].set(b1)
    w2p = jnp.zeros((27, Cp, Cp), f32).at[:, :F, :F].set(
        W2.transpose(2, 3, 4, 1, 0).reshape(27, F, F)).astype(bf16)
    gammap = jnp.zeros((1, Cp), f32).at[0, :F].set(gamma)
    betap = jnp.zeros((1, Cp), f32).at[0, :F].set(beta)
    # fc1: PyTorch flatten order is (c, d, h, w); our in-kernel flat layout is
    # (d, h, w, c-padded) -> permute/pad the weight columns once.
    wf1 = fcW1.reshape(J, F, S).transpose(2, 1, 0)                  # (S, F, J)
    wf1p = jnp.zeros((S, Cp, J), f32).at[:, :F, :].set(wf1).reshape(S * Cp, J).astype(bf16)
    bf1 = fcb1.reshape(1, J).astype(f32)
    wf2 = fcW2.reshape(Cout, J).astype(f32)
    bf2 = fcb2.reshape(1, Cout).astype(f32)
    masks = jnp.asarray(_conv2_masks(N, Do, Ho, Wo))

    return (w1p, b1p, masks, w2p, gammap, betap, wf1p, bf1, wf2, bf2)


# ----------------------------------------------------------------------------
# Discriminator forward (single fused pallas_call)
# ----------------------------------------------------------------------------
@jax.jit
def discriminator_forward(x, prep):
    w1p, b1p, masks, w2p, gammap, betap, wf1p, bf1, wf2, bf2 = prep
    N = x.shape[0]
    Cp = w1p.shape[1]
    J = wf1p.shape[1]
    Cout = wf2.shape[0]
    f32 = jnp.float32

    p1, (Do, Ho, Wo) = _im2col_conv1(x)
    S = Do * Ho * Wo
    M1 = N * S
    K1 = p1.shape[1]
    Kp = w1p.shape[0]
    p1p = jnp.pad(p1, ((0, 0), (0, Kp - K1))).astype(jnp.bfloat16)

    # Row-shift bookkeeping for the in-kernel conv2 im2col (rows = (d,h,w,n)).
    max_shift = (Ho * Wo + Wo + 1) * N
    OFF = _round_up(max_shift, 16)                 # 16: bf16 sublane tile
    R = _round_up(OFF + M1 + max_shift, 16)
    deltas = tuple(((kd - 1) * Ho * Wo + (kh - 1) * Wo + (kw - 1)) * N
                   for kd in range(3) for kh in range(3) for kw in range(3))

    kernel = _make_fused_kernel(N, S, Cp, OFF, R, deltas)
    vmem = pl.BlockSpec(memory_space=pltpu.MemorySpace.VMEM)
    hbm = pl.BlockSpec(memory_space=pl.ANY)        # fc1 weights: manual DMA

    out = pl.pallas_call(
        kernel,
        out_shape=jax.ShapeDtypeStruct((N, Cout), f32),
        in_specs=[vmem, vmem, vmem, vmem, vmem, vmem, vmem, hbm, vmem, vmem, vmem],
        out_specs=vmem,
        scratch_shapes=[
            pltpu.VMEM((R, Cp), jnp.bfloat16),       # row-padded conv1 activations
            pltpu.VMEM((M1, Cp), jnp.bfloat16),      # post-BN activations (flatten staging)
            pltpu.VMEM((N, S * Cp), jnp.bfloat16),   # lane-dense flattened fc1 LHS
            pltpu.VMEM((S * Cp, J), jnp.bfloat16),   # fc1 weights (overlapped DMA target)
            pltpu.SemaphoreType.DMA((1,)),
        ],
    )(p1p, w1p, b1p, masks, w2p, gammap, betap, wf1p, bf1, wf2, bf2)
    return out


# ----------------------------------------------------------------------------
# Pure-JAX reference (for correctness check)
# ----------------------------------------------------------------------------
def reference_forward(x, params):
    W1, b1, W2, b2, gamma, beta, fcW1, fcb1, fcW2, fcb2 = params

    def conv3d(inp, w, b, stride):
        dn = jax.lax.conv_dimension_numbers(inp.shape, w.shape, ("NCDHW", "OIDHW", "NCDHW"))
        y = jax.lax.conv_general_dilated(inp, w, (stride,) * 3, [(1, 1)] * 3,
                                         dimension_numbers=dn)
        return y + b.reshape(1, -1, 1, 1, 1)

    y = conv3d(x, W1, b1, 2)
    y = jnp.where(y >= 0, y, NEG_SLOPE * y)
    z = conv3d(y, W2, b2, 1)
    mean = z.mean(axis=(0, 2, 3, 4), keepdims=True)
    var = ((z - mean) ** 2).mean(axis=(0, 2, 3, 4), keepdims=True)
    z = (z - mean) / jnp.sqrt(var + BN_EPS)
    z = z * gamma.reshape(1, -1, 1, 1, 1) + beta.reshape(1, -1, 1, 1, 1)
    z = jnp.where(z >= 0, z, NEG_SLOPE * z)
    flat = z.reshape(z.shape[0], -1)
    h = flat @ fcW1.T + fcb1
    h = jnp.where(h >= 0, h, NEG_SLOPE * h)
    o = h @ fcW2.T + fcb2
    return jax.nn.sigmoid(o)


# ----------------------------------------------------------------------------
# Deterministic parameter init + run
# ----------------------------------------------------------------------------
def init_params(key, inchannels=2, outchannels=1, filters=48):
    ks = jax.random.split(key, 10)
    fc_in = filters * 4 * 8  # 1536
    W1 = 0.05 * jax.random.normal(ks[0], (filters, inchannels, 3, 3, 3), jnp.float32)
    b1 = 0.05 * jax.random.normal(ks[1], (filters,), jnp.float32)
    W2 = 0.05 * jax.random.normal(ks[2], (filters, filters, 3, 3, 3), jnp.float32)
    b2 = 0.05 * jax.random.normal(ks[3], (filters,), jnp.float32)
    gamma = 1.0 + 0.05 * jax.random.normal(ks[4], (filters,), jnp.float32)
    beta = 0.05 * jax.random.normal(ks[5], (filters,), jnp.float32)
    fcW1 = 0.05 * jax.random.normal(ks[6], (128, fc_in), jnp.float32)
    fcb1 = 0.05 * jax.random.normal(ks[7], (128,), jnp.float32)
    fcW2 = 0.05 * jax.random.normal(ks[8], (outchannels, 128), jnp.float32)
    fcb2 = 0.05 * jax.random.normal(ks[9], (outchannels,), jnp.float32)
    return (W1, b1, W2, b2, gamma, beta, fcW1, fcb1, fcW2, fcb2)


if __name__ == "__main__":
    key = jax.random.PRNGKey(0)
    k_x, k_p = jax.random.split(key)

    # Input spatial (4, 8, 8): after the stride-2 conv -> (2, 4, 4), so the
    # flattened feature size is 48 * 2 * 4 * 4 = 48 * 4 * 8 = 1536 (fc1 input).
    N, C_in, D, H, W = 2, 2, 4, 8, 8
    x = jax.random.normal(k_x, (N, C_in, D, H, W), jnp.float32)
    params = init_params(k_p)

    # One-time weight prep (would be cached / reused across forward calls).
    prep = jax.tree_util.tree_map(jax.block_until_ready,
                                  prepare_params(params, x.shape))

    out = jax.block_until_ready(discriminator_forward(x, prep))
    ref = jax.block_until_ready(reference_forward(x, params))

    assert out.shape == (N, 1)
    # Tolerance accommodates bf16 MXU inputs (f32 accumulation) vs f32 reference.
    assert jnp.allclose(out, ref, atol=5e-3, rtol=5e-3), (out, ref)

    print("KERNEL_OK")
</pallas_src>

<mosaic_0001>
module attributes {stable_mosaic.version = 11 : i64} {
  func.func @kernel(%arg0: memref<64x128xbf16, #tpu.memory_space<vmem>>, %arg1: memref<128x128xbf16, #tpu.memory_space<vmem>>, %arg2: memref<1x128xf32, #tpu.memory_space<vmem>>, %arg3: memref<64x27xf32, #tpu.memory_space<vmem>>, %arg4: memref<27x128x128xbf16, #tpu.memory_space<vmem>>, %arg5: memref<1x128xf32, #tpu.memory_space<vmem>>, %arg6: memref<1x128xf32, #tpu.memory_space<vmem>>, %arg7: memref<4096x128xbf16, #tpu.memory_space<any>>, %arg8: memref<1x128xf32, #tpu.memory_space<vmem>>, %arg9: memref<1x128xf32, #tpu.memory_space<vmem>>, %arg10: memref<1x1xf32, #tpu.memory_space<vmem>>, %arg11: memref<2x1xf32, #tpu.memory_space<vmem>>, %arg12: memref<160x128xbf16, #tpu.memory_space<vmem>>, %arg13: memref<64x128xbf16, #tpu.memory_space<vmem>>, %arg14: memref<2x4096xbf16, #tpu.memory_space<vmem>>, %arg15: memref<4096x128xbf16, #tpu.memory_space<vmem>>, %arg16: memref<1x!tpu.dma_semaphore, #tpu.memory_space<semaphore_mem>>) attributes {dimension_semantics = [], scalar_prefetch = 0 : i64, scratch_operands = 5 : i64, tpu.core_type = #tpu.core_type<tc>} {
    %c0_i32 = arith.constant 0 : i32
    %0 = tpu.memref_slice %arg16[%c0_i32] : memref<1x!tpu.dma_semaphore, #tpu.memory_space<semaphore_mem>> -> memref<1x!tpu.dma_semaphore, #tpu.memory_space<semaphore_mem>>
    %1 = tpu.memref_squeeze %0 : memref<1x!tpu.dma_semaphore, #tpu.memory_space<semaphore_mem>> -> memref<!tpu.dma_semaphore, #tpu.memory_space<semaphore_mem>>
    tpu.enqueue_dma source(%arg7 : memref<4096x128xbf16, #tpu.memory_space<any>>) target(%arg15 : memref<4096x128xbf16, #tpu.memory_space<vmem>>) target_semaphore(%1 : memref<!tpu.dma_semaphore, #tpu.memory_space<semaphore_mem>>)
    %c0 = arith.constant 0 : index
    %c0_0 = arith.constant 0 : index
    %2 = vector.load %arg0[%c0, %c0_0] : memref<64x128xbf16, #tpu.memory_space<vmem>>, vector<64x128xbf16>
    %c0_1 = arith.constant 0 : index
    %c0_2 = arith.constant 0 : index
    %3 = vector.load %arg1[%c0_1, %c0_2] : memref<128x128xbf16, #tpu.memory_space<vmem>>, vector<128x128xbf16>
    %cst = arith.constant dense<0.000000e+00> : vector<64x128xf32>
    %4 = tpu.matmul %2, %3, %cst {dimension_numbers = #tpu.dot_dimension_numbers<[1], [0], [0], [1], [0, 0, 1, 1], [], []>} : vector<64x128xbf16>, vector<128x128xbf16>, vector<64x128xf32> -> vector<64x128xf32>
    %c0_3 = arith.constant 0 : index
    %c0_4 = arith.constant 0 : index
    %5 = vector.load %arg2[%c0_3, %c0_4] : memref<1x128xf32, #tpu.memory_space<vmem>>, vector<1x128xf32>
    %6 = vector.broadcast %5 : vector<1x128xf32> to vector<64x128xf32>
    %7 = arith.addf %4, %6 : vector<64x128xf32>
    %cst_5 = arith.constant 0.000000e+00 : f32
    %8 = vector.broadcast %cst_5 : f32 to vector<64x128xf32>
    %9 = arith.cmpf oge, %7, %8 : vector<64x128xf32>
    %cst_6 = arith.constant 2.000000e-01 : f32
    %10 = vector.broadcast %cst_6 : f32 to vector<64x128xf32>
    %11 = arith.mulf %10, %7 : vector<64x128xf32>
    %12 = arith.select %9, %7, %11 : vector<64x128xi1>, vector<64x128xf32>
    %cst_7 = arith.constant 0.000000e+00 : bf16
    %13 = vector.broadcast %cst_7 : bf16 to vector<48x128xbf16>
    %c0_8 = arith.constant 0 : index
    %c0_9 = arith.constant 0 : index
    %14 = vector.load %arg12[%c0_8, %c0_9] : memref<160x128xbf16, #tpu.memory_space<vmem>>, vector<48x128xbf16>
    tpu.vector_store %arg12[%c0_8, %c0_9], %13 {strides = array<i32>} : memref<160x128xbf16, #tpu.memory_space<vmem>>, vector<48x128xbf16>,
    %cst_10 = arith.constant 0.000000e+00 : bf16
    %15 = vector.broadcast %cst_10 : bf16 to vector<48x128xbf16>
    %c112 = arith.constant 112 : index
    %c0_11 = arith.constant 0 : index
    %16 = vector.load %arg12[%c112, %c0_11] : memref<160x128xbf16, #tpu.memory_space<vmem>>, vector<48x128xbf16>
    tpu.vector_store %arg12[%c112, %c0_11], %15 {strides = array<i32>} : memref<160x128xbf16, #tpu.memory_space<vmem>>, vector<48x128xbf16>,
    %17 = arith.truncf %12 : vector<64x128xf32> to vector<64x128xbf16>
    %c48 = arith.constant 48 : index
    %c0_12 = arith.constant 0 : index
    %18 = vector.load %arg12[%c48, %c0_12] : memref<160x128xbf16, #tpu.memory_space<vmem>>, vector<64x128xbf16>
    tpu.vector_store %arg12[%c48, %c0_12], %17 {strides = array<i32>} : memref<160x128xbf16, #tpu.memory_space<vmem>>, vector<64x128xbf16>,
    %cst_13 = arith.constant 0.000000e+00 : f32
    %19 = vector.broadcast %cst_13 : f32 to vector<64x128xf32>
    %c6 = arith.constant 6 : index
    %c0_14 = arith.constant 0 : index
    %20 = vector.load %arg12[%c6, %c0_14] : memref<160x128xbf16, #tpu.memory_space<vmem>>, vector<64x128xbf16>
    %c0_15 = arith.constant 0 : index
    %c0_16 = arith.constant 0 : index
    %21 = vector.load %arg3[%c0_15, %c0_16] : memref<64x27xf32, #tpu.memory_space<vmem>>, vector<64x1xf32>
    %c0_17 = arith.constant 0 : index
    %c0_18 = arith.constant 0 : index
    %c0_19 = arith.constant 0 : index
    %22 = vector.load %arg4[%c0_17, %c0_18, %c0_19] : memref<27x128x128xbf16, #tpu.memory_space<vmem>>, vector<1x128x128xbf16>
    %23 = vector.shape_cast %22 : vector<1x128x128xbf16> to vector<128x128xbf16>
    %cst_20 = arith.constant dense<0.000000e+00> : vector<64x128xf32>
    %24 = tpu.matmul %20, %23, %cst_20 {dimension_numbers = #tpu.dot_dimension_numbers<[1], [0], [0], [1], [0, 0, 1, 1], [], []>} : vector<64x128xbf16>, vector<128x128xbf16>, vector<64x128xf32> -> vector<64x128xf32>
    %25 = vector.broadcast %21 : vector<64x1xf32> to vector<64x128xf32>
    %26 = arith.mulf %25, %24 : vector<64x128xf32>
    %27 = arith.addf %19, %26 : vector<64x128xf32>
    %c8 = arith.constant 8 : index
    %c0_21 = arith.constant 0 : index
    %28 = vector.load %arg12[%c8, %c0_21] : memref<160x128xbf16, #tpu.memory_space<vmem>>, vector<64x128xbf16>
    %c0_22 = arith.constant 0 : index
    %c1 = arith.constant 1 : index
    %29 = vector.load %arg3[%c0_22, %c1] : memref<64x27xf32, #tpu.memory_space<vmem>>, vector<64x1xf32>
    %c1_23 = arith.constant 1 : index
    %c0_24 = arith.constant 0 : index
    %c0_25 = arith.constant 0 : index
    %30 = vector.load %arg4[%c1_23, %c0_24, %c0_25] : memref<27x128x128xbf16, #tpu.memory_space<vmem>>, vector<1x128x128xbf16>
    %31 = vector.shape_cast %30 : vector<1x128x128xbf16> to vector<128x128xbf16>
    %cst_26 = arith.constant dense<0.000000e+00> : vector<64x128xf32>
    %32 = tpu.matmul %28, %31, %cst_26 {dimension_numbers = #tpu.dot_dimension_numbers<[1], [0], [0], [1], [0, 0, 1, 1], [], []>} : vector<64x128xbf16>, vector<128x128xbf16>, vector<64x128xf32> -> vector<64x128xf32>
    %33 = vector.broadcast %29 : vector<64x1xf32> to vector<64x128xf32>
    %34 = arith.mulf %33, %32 : vector<64x128xf32>
    %35 = arith.addf %27, %34 : vector<64x128xf32>
    %c10 = arith.constant 10 : index
    %c0_27 = arith.constant 0 : index
    %36 = vector.load %arg12[%c10, %c0_27] : memref<160x128xbf16, #tpu.memory_space<vmem>>, vector<64x128xbf16>
    %c0_28 = arith.constant 0 : index
    %c2 = arith.constant 2 : index
    %37 = vector.load %arg3[%c0_28, %c2] : memref<64x27xf32, #tpu.memory_space<vmem>>, vector<64x1xf32>
    %c2_29 = arith.constant 2 : index
    %c0_30 = arith.constant 0 : index
    %c0_31 = arith.constant 0 : index
    %38 = vector.load %arg4[%c2_29, %c0_30, %c0_31] : memref<27x128x128xbf16, #tpu.memory_space<vmem>>, vector<1x128x128xbf16>
    %39 = vector.shape_cast %38 : vector<1x128x128xbf16> to vector<128x128xbf16>
    %cst_32 = arith.constant dense<0.000000e+00> : vector<64x128xf32>
    %40 = tpu.matmul %36, %39, %cst_32 {dimension_numbers = #tpu.dot_dimension_numbers<[1], [0], [0], [1], [0, 0, 1, 1], [], []>} : vector<64x128xbf16>, vector<128x128xbf16>, vector<64x128xf32> -> vector<64x128xf32>
    %41 = vector.broadcast %37 : vector<64x1xf32> to vector<64x128xf32>
    %42 = arith.mulf %41, %40 : vector<64x128xf32>
    %43 = arith.addf %35, %42 : vector<64x128xf32>
    %c14 = arith.constant 14 : index
    %c0_33 = arith.constant 0 : index
    %44 = vector.load %arg12[%c14, %c0_33] : memref<160x128xbf16, #tpu.memory_space<vmem>>, vector<64x128xbf16>
    %c0_34 = arith.constant 0 : index
    %c3 = arith.constant 3 : index
    %45 = vector.load %arg3[%c0_34, %c3] : memref<64x27xf32, #tpu.memory_space<vmem>>, vector<64x1xf32>
    %c3_35 = arith.constant 3 : index
    %c0_36 = arith.constant 0 : index
    %c0_37 = arith.constant 0 : index
    %46 = vector.load %arg4[%c3_35, %c0_36, %c0_37] : memref<27x128x128xbf16, #tpu.memory_space<vmem>>, vector<1x128x128xbf16>
    %47 = vector.shape_cast %46 : vector<1x128x128xbf16> to vector<128x128xbf16>
    %cst_38 = arith.constant dense<0.000000e+00> : vector<64x128xf32>
    %48 = tpu.matmul %44, %47, %cst_38 {dimension_numbers = #tpu.dot_dimension_numbers<[1], [0], [0], [1], [0, 0, 1, 1], [], []>} : vector<64x128xbf16>, vector<128x128xbf16>, vector<64x128xf32> -> vector<64x128xf32>
    %49 = vector.broadcast %45 : vector<64x1xf32> to vector<64x128xf32>
    %50 = arith.mulf %49, %48 : vector<64x128xf32>
    %51 = arith.addf %43, %50 : vector<64x128xf32>
    %c16 = arith.constant 16 : index
    %c0_39 = arith.constant 0 : index
    %52 = vector.load %arg12[%c16, %c0_39] : memref<160x128xbf16, #tpu.memory_space<vmem>>, vector<64x128xbf16>
    %c0_40 = arith.constant 0 : index
    %c4 = arith.constant 4 : index
    %53 = vector.load %arg3[%c0_40, %c4] : memref<64x27xf32, #tpu.memory_space<vmem>>, vector<64x1xf32>
    %c4_41 = arith.constant 4 : index
    %c0_42 = arith.constant 0 : index
    %c0_43 = arith.constant 0 : index
    %54 = vector.load %arg4[%c4_41, %c0_42, %c0_43] : memref<27x128x128xbf16, #tpu.memory_space<vmem>>, vector<1x128x128xbf16>
    %55 = vector.shape_cast %54 : vector<1x128x128xbf16> to vector<128x128xbf16>
    %cst_44 = arith.constant dense<0.000000e+00> : vector<64x128xf32>
    %56 = tpu.matmul %52, %55, %cst_44 {dimension_numbers = #tpu.dot_dimension_numbers<[1], [0], [0], [1], [0, 0, 1, 1], [], []>} : vector<64x128xbf16>, vector<128x128xbf16>, vector<64x128xf32> -> vector<64x128xf32>
    %57 = vector.broadcast %53 : vector<64x1xf32> to vector<64x128xf32>
    %58 = arith.mulf %57, %56 : vector<64x128xf32>
    %59 = arith.addf %51, %58 : vector<64x128xf32>
    %c18 = arith.constant 18 : index
    %c0_45 = arith.constant 0 : index
    %60 = vector.load %arg12[%c18, %c0_45] : memref<160x128xbf16, #tpu.memory_space<vmem>>, vector<64x128xbf16>
    %c0_46 = arith.constant 0 : index
    %c5 = arith.constant 5 : index
    %61 = vector.load %arg3[%c0_46, %c5] : memref<64x27xf32, #tpu.memory_space<vmem>>, vector<64x1xf32>
    %c5_47 = arith.constant 5 : index
    %c0_48 = arith.constant 0 : index
    %c0_49 = arith.constant 0 : index
    %62 = vector.load %arg4[%c5_47, %c0_48, %c0_49] : memref<27x128x128xbf16, #tpu.memory_space<vmem>>, vector<1x128x128xbf16>
    %63 = vector.shape_cast %62 : vector<1x128x128xbf16> to vector<128x128xbf16>
    %cst_50 = arith.constant dense<0.000000e+00> : vector<64x128xf32>
    %64 = tpu.matmul %60, %63, %cst_50 {dimension_numbers = #tpu.dot_dimension_numbers<[1], [0], [0], [1], [0, 0, 1, 1], [], []>} : vector<64x128xbf16>, vector<128x128xbf16>, vector<64x128xf32> -> vector<64x128xf32>
    %65 = vector.broadcast %61 : vector<64x1xf32> to vector<64x128xf32>
    %66 = arith.mulf %65, %64 : vector<64x128xf32>
    %67 = arith.addf %59, %66 : vector<64x128xf32>
    %c22 = arith.constant 22 : index
    %c0_51 = arith.constant 0 : index
    %68 = vector.load %arg12[%c22, %c0_51] : memref<160x128xbf16, #tpu.memory_space<vmem>>, vector<64x128xbf16>
    %c0_52 = arith.constant 0 : index
    %c6_53 = arith.constant 6 : index
    %69 = vector.load %arg3[%c0_52, %c6_53] : memref<64x27xf32, #tpu.memory_space<vmem>>, vector<64x1xf32>
    %c6_54 = arith.constant 6 : index
    %c0_55 = arith.constant 0 : index
    %c0_56 = arith.constant 0 : index
    %70 = vector.load %arg4[%c6_54, %c0_55, %c0_56] : memref<27x128x128xbf16, #tpu.memory_space<vmem>>, vector<1x128x128xbf16>
    %71 = vector.shape_cast %70 : vector<1x128x128xbf16> to vector<128x128xbf16>
    %cst_57 = arith.constant dense<0.000000e+00> : vector<64x128xf32>
    %72 = tpu.matmul %68, %71, %cst_57 {dimension_numbers = #tpu.dot_dimension_numbers<[1], [0], [0], [1], [0, 0, 1, 1], [], []>} : vector<64x128xbf16>, vector<128x128xbf16>, vector<64x128xf32> -> vector<64x128xf32>
    %73 = vector.broadcast %69 : vector<64x1xf32> to vector<64x128xf32>
    %74 = arith.mulf %73, %72 : vector<64x128xf32>
    %75 = arith.addf %67, %74 : vector<64x128xf32>
    %c24 = arith.constant 24 : index
    %c0_58 = arith.constant 0 : index
    %76 = vector.load %arg12[%c24, %c0_58] : memref<160x128xbf16, #tpu.memory_space<vmem>>, vector<64x128xbf16>
    %c0_59 = arith.constant 0 : index
    %c7 = arith.constant 7 : index
    %77 = vector.load %arg3[%c0_59, %c7] : memref<64x27xf32, #tpu.memory_space<vmem>>, vector<64x1xf32>
    %c7_60 = arith.constant 7 : index
    %c0_61 = arith.constant 0 : index
    %c0_62 = arith.constant 0 : index
    %78 = vector.load %arg4[%c7_60, %c0_61, %c0_62] : memref<27x128x128xbf16, #tpu.memory_space<vmem>>, vector<1x128x128xbf16>
    %79 = vector.shape_cast %78 : vector<1x128x128xbf16> to vector<128x128xbf16>
    %cst_63 = arith.constant dense<0.000000e+00> : vector<64x128xf32>
    %80 = tpu.matmul %76, %79, %cst_63 {dimension_numbers = #tpu.dot_dimension_numbers<[1], [0], [0], [1], [0, 0, 1, 1], [], []>} : vector<64x128xbf16>, vector<128x128xbf16>, vector<64x128xf32> -> vector<64x128xf32>
    %81 = vector.broadcast %77 : vector<64x1xf32> to vector<64x128xf32>
    %82 = arith.mulf %81, %80 : vector<64x128xf32>
    %83 = arith.addf %75, %82 : vector<64x128xf32>
    %c26 = arith.constant 26 : index
    %c0_64 = arith.constant 0 : index
    %84 = vector.load %arg12[%c26, %c0_64] : memref<160x128xbf16, #tpu.memory_space<vmem>>, vector<64x128xbf16>
    %c0_65 = arith.constant 0 : index
    %c8_66 = arith.constant 8 : index
    %85 = vector.load %arg3[%c0_65, %c8_66] : memref<64x27xf32, #tpu.memory_space<vmem>>, vector<64x1xf32>
    %c8_67 = arith.constant 8 : index
    %c0_68 = arith.constant 0 : index
    %c0_69 = arith.constant 0 : index
    %86 = vector.load %arg4[%c8_67, %c0_68, %c0_69] : memref<27x128x128xbf16, #tpu.memory_space<vmem>>, vector<1x128x128xbf16>
    %87 = vector.shape_cast %86 : vector<1x128x128xbf16> to vector<128x128xbf16>
    %cst_70 = arith.constant dense<0.000000e+00> : vector<64x128xf32>
    %88 = tpu.matmul %84, %87, %cst_70 {dimension_numbers = #tpu.dot_dimension_numbers<[1], [0], [0], [1], [0, 0, 1, 1], [], []>} : vector<64x128xbf16>, vector<128x128xbf16>, vector<64x128xf32> -> vector<64x128xf32>
    %89 = vector.broadcast %85 : vector<64x1xf32> to vector<64x128xf32>
    %90 = arith.mulf %89, %88 : vector<64x128xf32>
    %91 = arith.addf %83, %90 : vector<64x128xf32>
    %c38 = arith.constant 38 : index
    %c0_71 = arith.constant 0 : index
    %92 = vector.load %arg12[%c38, %c0_71] : memref<160x128xbf16, #tpu.memory_space<vmem>>, vector<64x128xbf16>
    %c0_72 = arith.constant 0 : index
    %c9 = arith.constant 9 : index
    %93 = vector.load %arg3[%c0_72, %c9] : memref<64x27xf32, #tpu.memory_space<vmem>>, vector<64x1xf32>
    %c9_73 = arith.constant 9 : index
    %c0_74 = arith.constant 0 : index
    %c0_75 = arith.constant 0 : index
    %94 = vector.load %arg4[%c9_73, %c0_74, %c0_75] : memref<27x128x128xbf16, #tpu.memory_space<vmem>>, vector<1x128x128xbf16>
    %95 = vector.shape_cast %94 : vector<1x128x128xbf16> to vector<128x128xbf16>
    %cst_76 = arith.constant dense<0.000000e+00> : vector<64x128xf32>
    %96 = tpu.matmul %92, %95, %cst_76 {dimension_numbers = #tpu.dot_dimension_numbers<[1], [0], [0], [1], [0, 0, 1, 1], [], []>} : vector<64x128xbf16>, vector<128x128xbf16>, vector<64x128xf32> -> vector<64x128xf32>
    %97 = vector.broadcast %93 : vector<64x1xf32> to vector<64x128xf32>
    %98 = arith.mulf %97, %96 : vector<64x128xf32>
    %99 = arith.addf %91, %98 : vector<64x128xf32>
    %c40 = arith.constant 40 : index
    %c0_77 = arith.constant 0 : index
    %100 = vector.load %arg12[%c40, %c0_77] : memref<160x128xbf16, #tpu.memory_space<vmem>>, vector<64x128xbf16>
    %c0_78 = arith.constant 0 : index
    %c10_79 = arith.constant 10 : index
    %101 = vector.load %arg3[%c0_78, %c10_79] : memref<64x27xf32, #tpu.memory_space<vmem>>, vector<64x1xf32>
    %c10_80 = arith.constant 10 : index
    %c0_81 = arith.constant 0 : index
    %c0_82 = arith.constant 0 : index
    %102 = vector.load %arg4[%c10_80, %c0_81, %c0_82] : memref<27x128x128xbf16, #tpu.memory_space<vmem>>, vector<1x128x128xbf16>
    %103 = vector.shape_cast %102 : vector<1x128x128xbf16> to vector<128x128xbf16>
    %cst_83 = arith.constant dense<0.000000e+00> : vector<64x128xf32>
    %104 = tpu.matmul %100, %103, %cst_83 {dimension_numbers = #tpu.dot_dimension_numbers<[1], [0], [0], [1], [0, 0, 1, 1], [], []>} : vector<64x128xbf16>, vector<128x128xbf16>, vector<64x128xf32> -> vector<64x128xf32>
    %105 = vector.broadcast %101 : vector<64x1xf32> to vector<64x128xf32>
    %106 = arith.mulf %105, %104 : vector<64x128xf32>
    %107 = arith.addf %99, %106 : vector<64x128xf32>
    %c42 = arith.constant 42 : index
    %c0_84 = arith.constant 0 : index
    %108 = vector.load %arg12[%c42, %c0_84] : memref<160x128xbf16, #tpu.memory_space<vmem>>, vector<64x128xbf16>
    %c0_85 = arith.constant 0 : index
    %c11 = arith.constant 11 : index
    %109 = vector.load %arg3[%c0_85, %c11] : memref<64x27xf32, #tpu.memory_space<vmem>>, vector<64x1xf32>
    %c11_86 = arith.constant 11 : index
    %c0_87 = arith.constant 0 : index
    %c0_88 = arith.constant 0 : index
    %110 = vector.load %arg4[%c11_86, %c0_87, %c0_88] : memref<27x128x128xbf16, #tpu.memory_space<vmem>>, vector<1x128x128xbf16>
    %111 = vector.shape_cast %110 : vector<1x128x128xbf16> to vector<128x128xbf16>
    %cst_89 = arith.constant dense<0.000000e+00> : vector<64x128xf32>
    %112 = tpu.matmul %108, %111, %cst_89 {dimension_numbers = #tpu.dot_dimension_numbers<[1], [0], [0], [1], [0, 0, 1, 1], [], []>} : vector<64x128xbf16>, vector<128x128xbf16>, vector<64x128xf32> -> vector<64x128xf32>
    %113 = vector.broadcast %109 : vector<64x1xf32> to vector<64x128xf32>
    %114 = arith.mulf %113, %112 : vector<64x128xf32>
    %115 = arith.addf %107, %114 : vector<64x128xf32>
    %c46 = arith.constant 46 : index
    %c0_90 = arith.constant 0 : index
    %116 = vector.load %arg12[%c46, %c0_90] : memref<160x128xbf16, #tpu.memory_space<vmem>>, vector<64x128xbf16>
    %c0_91 = arith.constant 0 : index
    %c12 = arith.constant 12 : index
    %117 = vector.load %arg3[%c0_91, %c12] : memref<64x27xf32, #tpu.memory_space<vmem>>, vector<64x1xf32>
    %c12_92 = arith.constant 12 : index
    %c0_93 = arith.constant 0 : index
    %c0_94 = arith.constant 0 : index
    %118 = vector.load %arg4[%c12_92, %c0_93, %c0_94] : memref<27x128x128xbf16, #tpu.memory_space<vmem>>, vector<1x128x128xbf16>
    %119 = vector.shape_cast %118 : vector<1x128x128xbf16> to vector<128x128xbf16>
    %cst_95 = arith.constant dense<0.000000e+00> : vector<64x128xf32>
    %120 = tpu.matmul %116, %119, %cst_95 {dimension_numbers = #tpu.dot_dimension_numbers<[1], [0], [0], [1], [0, 0, 1, 1], [], []>} : vector<64x128xbf16>, vector<128x128xbf16>, vector<64x128xf32> -> vector<64x128xf32>
    %121 = vector.broadcast %117 : vector<64x1xf32> to vector<64x128xf32>
    %122 = arith.mulf %121, %120 : vector<64x128xf32>
    %123 = arith.addf %115, %122 : vector<64x128xf32>
    %c48_96 = arith.constant 48 : index
    %c0_97 = arith.constant 0 : index
    %124 = vector.load %arg12[%c48_96, %c0_97] : memref<160x128xbf16, #tpu.memory_space<vmem>>, vector<64x128xbf16>
    %c0_98 = arith.constant 0 : index
    %c13 = arith.constant 13 : index
    %125 = vector.load %arg3[%c0_98, %c13] : memref<64x27xf32, #tpu.memory_space<vmem>>, vector<64x1xf32>
    %c13_99 = arith.constant 13 : index
    %c0_100 = arith.constant 0 : index
    %c0_101 = arith.constant 0 : index
    %126 = vector.load %arg4[%c13_99, %c0_100, %c0_101] : memref<27x128x128xbf16, #tpu.memory_space<vmem>>, vector<1x128x128xbf16>
    %127 = vector.shape_cast %126 : vector<1x128x128xbf16> to vector<128x128xbf16>
    %cst_102 = arith.constant dense<0.000000e+00> : vector<64x128xf32>
    %128 = tpu.matmul %124, %127, %cst_102 {dimension_numbers = #tpu.dot_dimension_numbers<[1], [0], [0], [1], [0, 0, 1, 1], [], []>} : vector<64x128xbf16>, vector<128x128xbf16>, vector<64x128xf32> -> vector<64x128xf32>
    %129 = vector.broadcast %125 : vector<64x1xf32> to vector<64x128xf32>
    %130 = arith.mulf %129, %128 : vector<64x128xf32>
    %131 = arith.addf %123, %130 : vector<64x128xf32>
    %c50 = arith.constant 50 : index
    %c0_103 = arith.constant 0 : index
    %132 = vector.load %arg12[%c50, %c0_103] : memref<160x128xbf16, #tpu.memory_space<vmem>>, vector<64x128xbf16>
    %c0_104 = arith.constant 0 : index
    %c14_105 = arith.constant 14 : index
    %133 = vector.load %arg3[%c0_104, %c14_105] : memref<64x27xf32, #tpu.memory_space<vmem>>, vector<64x1xf32>
    %c14_106 = arith.constant 14 : index
    %c0_107 = arith.constant 0 : index
    %c0_108 = arith.constant 0 : index
    %134 = vector.load %arg4[%c14_106, %c0_107, %c0_108] : memref<27x128x128xbf16, #tpu.memory_space<vmem>>, vector<1x128x128xbf16>
    %135 = vector.shape_cast %134 : vector<1x128x128xbf16> to vector<128x128xbf16>
    %cst_109 = arith.constant dense<0.000000e+00> : vector<64x128xf32>
    %136 = tpu.matmul %132, %135, %cst_109 {dimension_numbers = #tpu.dot_dimension_numbers<[1], [0], [0], [1], [0, 0, 1, 1], [], []>} : vector<64x128xbf16>, vector<128x128xbf16>, vector<64x128xf32> -> vector<64x128xf32>
    %137 = vector.broadcast %133 : vector<64x1xf32> to vector<64x128xf32>
    %138 = arith.mulf %137, %136 : vector<64x128xf32>
    %139 = arith.addf %131, %138 : vector<64x128xf32>
    %c54 = arith.constant 54 : index
    %c0_110 = arith.constant 0 : index
    %140 = vector.load %arg12[%c54, %c0_110] : memref<160x128xbf16, #tpu.memory_space<vmem>>, vector<64x128xbf16>
    %c0_111 = arith.constant 0 : index
    %c15 = arith.constant 15 : index
    %141 = vector.load %arg3[%c0_111, %c15] : memref<64x27xf32, #tpu.memory_space<vmem>>, vector<64x1xf32>
    %c15_112 = arith.constant 15 : index
    %c0_113 = arith.constant 0 : index
    %c0_114 = arith.constant 0 : index
    %142 = vector.load %arg4[%c15_112, %c0_113, %c0_114] : memref<27x128x128xbf16, #tpu.memory_space<vmem>>, vector<1x128x128xbf16>
    %143 = vector.shape_cast %142 : vector<1x128x128xbf16> to vector<128x128xbf16>
    %cst_115 = arith.constant dense<0.000000e+00> : vector<64x128xf32>
    %144 = tpu.matmul %140, %143, %cst_115 {dimension_numbers = #tpu.dot_dimension_numbers<[1], [0], [0], [1], [0, 0, 1, 1], [], []>} : vector<64x128xbf16>, vector<128x128xbf16>, vector<64x128xf32> -> vector<64x128xf32>
    %145 = vector.broadcast %141 : vector<64x1xf32> to vector<64x128xf32>
    %146 = arith.mulf %145, %144 : vector<64x128xf32>
    %147 = arith.addf %139, %146 : vector<64x128xf32>
    %c56 = arith.constant 56 : index
    %c0_116 = arith.constant 0 : index
    %148 = vector.load %arg12[%c56, %c0_116] : memref<160x128xbf16, #tpu.memory_space<vmem>>, vector<64x128xbf16>
    %c0_117 = arith.constant 0 : index
    %c16_118 = arith.constant 16 : index
    %149 = vector.load %arg3[%c0_117, %c16_118] : memref<64x27xf32, #tpu.memory_space<vmem>>, vector<64x1xf32>
    %c16_119 = arith.constant 16 : index
    %c0_120 = arith.constant 0 : index
    %c0_121 = arith.constant 0 : index
    %150 = vector.load %arg4[%c16_119, %c0_120, %c0_121] : memref<27x128x128xbf16, #tpu.memory_space<vmem>>, vector<1x128x128xbf16>
    %151 = vector.shape_cast %150 : vector<1x128x128xbf16> to vector<128x128xbf16>
    %cst_122 = arith.constant dense<0.000000e+00> : vector<64x128xf32>
    %152 = tpu.matmul %148, %151, %cst_122 {dimension_numbers = #tpu.dot_dimension_numbers<[1], [0], [0], [1], [0, 0, 1, 1], [], []>} : vector<64x128xbf16>, vector<128x128xbf16>, vector<64x128xf32> -> vector<64x128xf32>
    %153 = vector.broadcast %149 : vector<64x1xf32> to vector<64x128xf32>
    %154 = arith.mulf %153, %152 : vector<64x128xf32>
    %155 = arith.addf %147, %154 : vector<64x128xf32>
    %c58 = arith.constant 58 : index
    %c0_123 = arith.constant 0 : index
    %156 = vector.load %arg12[%c58, %c0_123] : memref<160x128xbf16, #tpu.memory_space<vmem>>, vector<64x128xbf16>
    %c0_124 = arith.constant 0 : index
    %c17 = arith.constant 17 : index
    %157 = vector.load %arg3[%c0_124, %c17] : memref<64x27xf32, #tpu.memory_space<vmem>>, vector<64x1xf32>
    %c17_125 = arith.constant 17 : index
    %c0_126 = arith.constant 0 : index
    %c0_127 = arith.constant 0 : index
    %158 = vector.load %arg4[%c17_125, %c0_126, %c0_127] : memref<27x128x128xbf16, #tpu.memory_space<vmem>>, vector<1x128x128xbf16>
    %159 = vector.shape_cast %158 : vector<1x128x128xbf16> to vector<128x128xbf16>
    %cst_128 = arith.constant dense<0.000000e+00> : vector<64x128xf32>
    %160 = tpu.matmul %156, %159, %cst_128 {dimension_numbers = #tpu.dot_dimension_numbers<[1], [0], [0], [1], [0, 0, 1, 1], [], []>} : vector<64x128xbf16>, vector<128x128xbf16>, vector<64x128xf32> -> vector<64x128xf32>
    %161 = vector.broadcast %157 : vector<64x1xf32> to vector<64x128xf32>
    %162 = arith.mulf %161, %160 : vector<64x128xf32>
    %163 = arith.addf %155, %162 : vector<64x128xf32>
    %c70 = arith.constant 70 : index
    %c0_129 = arith.constant 0 : index
    %164 = vector.load %arg12[%c70, %c0_129] : memref<160x128xbf16, #tpu.memory_space<vmem>>, vector<64x128xbf16>
    %c0_130 = arith.constant 0 : index
    %c18_131 = arith.constant 18 : index
    %165 = vector.load %arg3[%c0_130, %c18_131] : memref<64x27xf32, #tpu.memory_space<vmem>>, vector<64x1xf32>
    %c18_132 = arith.constant 18 : index
    %c0_133 = arith.constant 0 : index
    %c0_134 = arith.constant 0 : index
    %166 = vector.load %arg4[%c18_132, %c0_133, %c0_134] : memref<27x128x128xbf16, #tpu.memory_space<vmem>>, vector<1x128x128xbf16>
    %167 = vector.shape_cast %166 : vector<1x128x128xbf16> to vector<128x128xbf16>
    %cst_135 = arith.constant dense<0.000000e+00> : vector<64x128xf32>
    %168 = tpu.matmul %164, %167, %cst_135 {dimension_numbers = #tpu.dot_dimension_numbers<[1], [0], [0], [1], [0, 0, 1, 1], [], []>} : vector<64x128xbf16>, vector<128x128xbf16>, vector<64x128xf32> -> vector<64x128xf32>
    %169 = vector.broadcast %165 : vector<64x1xf32> to vector<64x128xf32>
    %170 = arith.mulf %169, %168 : vector<64x128xf32>
    %171 = arith.addf %163, %170 : vector<64x128xf32>
    %c72 = arith.constant 72 : index
    %c0_136 = arith.constant 0 : index
    %172 = vector.load %arg12[%c72, %c0_136] : memref<160x128xbf16, #tpu.memory_space<vmem>>, vector<64x128xbf16>
    %c0_137 = arith.constant 0 : index
    %c19 = arith.constant 19 : index
    %173 = vector.load %arg3[%c0_137, %c19] : memref<64x27xf32, #tpu.memory_space<vmem>>, vector<64x1xf32>
    %c19_138 = arith.constant 19 : index
    %c0_139 = arith.constant 0 : index
    %c0_140 = arith.constant 0 : index
    %174 = vector.load %arg4[%c19_138, %c0_139, %c0_140] : memref<27x128x128xbf16, #tpu.memory_space<vmem>>, vector<1x128x128xbf16>
    %175 = vector.shape_cast %174 : vector<1x128x128xbf16> to vector<128x128xbf16>
    %cst_141 = arith.constant dense<0.000000e+00> : vector<64x128xf32>
    %176 = tpu.matmul %172, %175, %cst_141 {dimension_numbers = #tpu.dot_dimension_numbers<[1], [0], [0], [1], [0, 0, 1, 1], [], []>} : vector<64x128xbf16>, vector<128x128xbf16>, vector<64x128xf32> -> vector<64x128xf32>
    %177 = vector.broadcast %173 : vector<64x1xf32> to vector<64x128xf32>
    %178 = arith.mulf %177, %176 : vector<64x128xf32>
    %179 = arith.addf %171, %178 : vector<64x128xf32>
    %c74 = arith.constant 74 : index
    %c0_142 = arith.constant 0 : index
    %180 = vector.load %arg12[%c74, %c0_142] : memref<160x128xbf16, #tpu.memory_space<vmem>>, vector<64x128xbf16>
    %c0_143 = arith.constant 0 : index
    %c20 = arith.constant 20 : index
    %181 = vector.load %arg3[%c0_143, %c20] : memref<64x27xf32, #tpu.memory_space<vmem>>, vector<64x1xf32>
    %c20_144 = arith.constant 20 : index
    %c0_145 = arith.constant 0 : index
    %c0_146 = arith.constant 0 : index
    %182 = vector.load %arg4[%c20_144, %c0_145, %c0_146] : memref<27x128x128xbf16, #tpu.memory_space<vmem>>, vector<1x128x128xbf16>
    %183 = vector.shape_cast %182 : vector<1x128x128xbf16> to vector<128x128xbf16>
    %cst_147 = arith.constant dense<0.000000e+00> : vector<64x128xf32>
    %184 = tpu.matmul %180, %183, %cst_147 {dimension_numbers = #tpu.dot_dimension_numbers<[1], [0], [0], [1], [0, 0, 1, 1], [], []>} : vector<64x128xbf16>, vector<128x128xbf16>, vector<64x128xf32> -> vector<64x128xf32>
    %185 = vector.broadcast %181 : vector<64x1xf32> to vector<64x128xf32>
    %186 = arith.mulf %185, %184 : vector<64x128xf32>
    %187 = arith.addf %179, %186 : vector<64x128xf32>
    %c78 = arith.constant 78 : index
    %c0_148 = arith.constant 0 : index
    %188 = vector.load %arg12[%c78, %c0_148] : memref<160x128xbf16, #tpu.memory_space<vmem>>, vector<64x128xbf16>
    %c0_149 = arith.constant 0 : index
    %c21 = arith.constant 21 : index
    %189 = vector.load %arg3[%c0_149, %c21] : memref<64x27xf32, #tpu.memory_space<vmem>>, vector<64x1xf32>
    %c21_150 = arith.constant 21 : index
    %c0_151 = arith.constant 0 : index
    %c0_152 = arith.constant 0 : index
    %190 = vector.load %arg4[%c21_150, %c0_151, %c0_152] : memref<27x128x128xbf16, #tpu.memory_space<vmem>>, vector<1x128x128xbf16>
    %191 = vector.shape_cast %190 : vector<1x128x128xbf16> to vector<128x128xbf16>
    %cst_153 = arith.constant dense<0.000000e+00> : vector<64x128xf32>
    %192 = tpu.matmul %188, %191, %cst_153 {dimension_numbers = #tpu.dot_dimension_numbers<[1], [0], [0], [1], [0, 0, 1, 1], [], []>} : vector<64x128xbf16>, vector<128x128xbf16>, vector<64x128xf32> -> vector<64x128xf32>
    %193 = vector.broadcast %189 : vector<64x1xf32> to vector<64x128xf32>
    %194 = arith.mulf %193, %192 : vector<64x128xf32>
    %195 = arith.addf %187, %194 : vector<64x128xf32>
    %c80 = arith.constant 80 : index
    %c0_154 = arith.constant 0 : index
    %196 = vector.load %arg12[%c80, %c0_154] : memref<160x128xbf16, #tpu.memory_space<vmem>>, vector<64x128xbf16>
    %c0_155 = arith.constant 0 : index
    %c22_156 = arith.constant 22 : index
    %197 = vector.load %arg3[%c0_155, %c22_156] : memref<64x27xf32, #tpu.memory_space<vmem>>, vector<64x1xf32>
    %c22_157 = arith.constant 22 : index
    %c0_158 = arith.constant 0 : index
    %c0_159 = arith.constant 0 : index
    %198 = vector.load %arg4[%c22_157, %c0_158, %c0_159] : memref<27x128x128xbf16, #tpu.memory_space<vmem>>, vector<1x128x128xbf16>
    %199 = vector.shape_cast %198 : vector<1x128x128xbf16> to vector<128x128xbf16>
    %cst_160 = arith.constant dense<0.000000e+00> : vector<64x128xf32>
    %200 = tpu.matmul %196, %199, %cst_160 {dimension_numbers = #tpu.dot_dimension_numbers<[1], [0], [0], [1], [0, 0, 1, 1], [], []>} : vector<64x128xbf16>, vector<128x128xbf16>, vector<64x128xf32> -> vector<64x128xf32>
    %201 = vector.broadcast %197 : vector<64x1xf32> to vector<64x128xf32>
    %202 = arith.mulf %201, %200 : vector<64x128xf32>
    %203 = arith.addf %195, %202 : vector<64x128xf32>
    %c82 = arith.constant 82 : index
    %c0_161 = arith.constant 0 : index
    %204 = vector.load %arg12[%c82, %c0_161] : memref<160x128xbf16, #tpu.memory_space<vmem>>, vector<64x128xbf16>
    %c0_162 = arith.constant 0 : index
    %c23 = arith.constant 23 : index
    %205 = vector.load %arg3[%c0_162, %c23] : memref<64x27xf32, #tpu.memory_space<vmem>>, vector<64x1xf32>
    %c23_163 = arith.constant 23 : index
    %c0_164 = arith.constant 0 : index
    %c0_165 = arith.constant 0 : index
    %206 = vector.load %arg4[%c23_163, %c0_164, %c0_165] : memref<27x128x128xbf16, #tpu.memory_space<vmem>>, vector<1x128x128xbf16>
    %207 = vector.shape_cast %206 : vector<1x128x128xbf16> to vector<128x128xbf16>
    %cst_166 = arith.constant dense<0.000000e+00> : vector<64x128xf32>
    %208 = tpu.matmul %204, %207, %cst_166 {dimension_numbers = #tpu.dot_dimension_numbers<[1], [0], [0], [1], [0, 0, 1, 1], [], []>} : vector<64x128xbf16>, vector<128x128xbf16>, vector<64x128xf32> -> vector<64x128xf32>
    %209 = vector.broadcast %205 : vector<64x1xf32> to vector<64x128xf32>
    %210 = arith.mulf %209, %208 : vector<64x128xf32>
    %211 = arith.addf %203, %210 : vector<64x128xf32>
    %c86 = arith.constant 86 : index
    %c0_167 = arith.constant 0 : index
    %212 = vector.load %arg12[%c86, %c0_167] : memref<160x128xbf16, #tpu.memory_space<vmem>>, vector<64x128xbf16>
    %c0_168 = arith.constant 0 : index
    %c24_169 = arith.constant 24 : index
    %213 = vector.load %arg3[%c0_168, %c24_169] : memref<64x27xf32, #tpu.memory_space<vmem>>, vector<64x1xf32>
    %c24_170 = arith.constant 24 : index
    %c0_171 = arith.constant 0 : index
    %c0_172 = arith.constant 0 : index
    %214 = vector.load %arg4[%c24_170, %c0_171, %c0_172] : memref<27x128x128xbf16, #tpu.memory_space<vmem>>, vector<1x128x128xbf16>
    %215 = vector.shape_cast %214 : vector<1x128x128xbf16> to vector<128x128xbf16>
    %cst_173 = arith.constant dense<0.000000e+00> : vector<64x128xf32>
    %216 = tpu.matmul %212, %215, %cst_173 {dimension_numbers = #tpu.dot_dimension_numbers<[1], [0], [0], [1], [0, 0, 1, 1], [], []>} : vector<64x128xbf16>, vector<128x128xbf16>, vector<64x128xf32> -> vector<64x128xf32>
    %217 = vector.broadcast %213 : vector<64x1xf32> to vector<64x128xf32>
    %218 = arith.mulf %217, %216 : vector<64x128xf32>
    %219 = arith.addf %211, %218 : vector<64x128xf32>
    %c88 = arith.constant 88 : index
    %c0_174 = arith.constant 0 : index
    %220 = vector.load %arg12[%c88, %c0_174] : memref<160x128xbf16, #tpu.memory_space<vmem>>, vector<64x128xbf16>
    %c0_175 = arith.constant 0 : index
    %c25 = arith.constant 25 : index
    %221 = vector.load %arg3[%c0_175, %c25] : memref<64x27xf32, #tpu.memory_space<vmem>>, vector<64x1xf32>
    %c25_176 = arith.constant 25 : index
    %c0_177 = arith.constant 0 : index
    %c0_178 = arith.constant 0 : index
    %222 = vector.load %arg4[%c25_176, %c0_177, %c0_178] : memref<27x128x128xbf16, #tpu.memory_space<vmem>>, vector<1x128x128xbf16>
    %223 = vector.shape_cast %222 : vector<1x128x128xbf16> to vector<128x128xbf16>
    %cst_179 = arith.constant dense<0.000000e+00> : vector<64x128xf32>
    %224 = tpu.matmul %220, %223, %cst_179 {dimension_numbers = #tpu.dot_dimension_numbers<[1], [0], [0], [1], [0, 0, 1, 1], [], []>} : vector<64x128xbf16>, vector<128x128xbf16>, vector<64x128xf32> -> vector<64x128xf32>
    %225 = vector.broadcast %221 : vector<64x1xf32> to vector<64x128xf32>
    %226 = arith.mulf %225, %224 : vector<64x128xf32>
    %227 = arith.addf %219, %226 : vector<64x128xf32>
    %c90 = arith.constant 90 : index
    %c0_180 = arith.constant 0 : index
    %228 = vector.load %arg12[%c90, %c0_180] : memref<160x128xbf16, #tpu.memory_space<vmem>>, vector<64x128xbf16>
    %c0_181 = arith.constant 0 : index
    %c26_182 = arith.constant 26 : index
    %229 = vector.load %arg3[%c0_181, %c26_182] : memref<64x27xf32, #tpu.memory_space<vmem>>, vector<64x1xf32>
    %c26_183 = arith.constant 26 : index
    %c0_184 = arith.constant 0 : index
    %c0_185 = arith.constant 0 : index
    %230 = vector.load %arg4[%c26_183, %c0_184, %c0_185] : memref<27x128x128xbf16, #tpu.memory_space<vmem>>, vector<1x128x128xbf16>
    %231 = vector.shape_cast %230 : vector<1x128x128xbf16> to vector<128x128xbf16>
    %cst_186 = arith.constant dense<0.000000e+00> : vector<64x128xf32>
    %232 = tpu.matmul %228, %231, %cst_186 {dimension_numbers = #tpu.dot_dimension_numbers<[1], [0], [0], [1], [0, 0, 1, 1], [], []>} : vector<64x128xbf16>, vector<128x128xbf16>, vector<64x128xf32> -> vector<64x128xf32>
    %233 = vector.broadcast %229 : vector<64x1xf32> to vector<64x128xf32>
    %234 = arith.mulf %233, %232 : vector<64x128xf32>
    %235 = arith.addf %227, %234 : vector<64x128xf32>
    %cst_187 = arith.constant dense<0.000000e+00> : vector<128xf32>
    %236 = vector.multi_reduction <add>, %235, %cst_187 [0] : vector<64x128xf32> to vector<128xf32>
    %237 = vector.shape_cast %236 : vector<128xf32> to vector<1x128xf32>
    %cst_188 = arith.constant 6.400000e+01 : f32
    %238 = vector.broadcast %cst_188 : f32 to vector<1x128xf32>
    %239 = arith.divf %237, %238 : vector<1x128xf32>
    %240 = vector.broadcast %239 : vector<1x128xf32> to vector<64x128xf32>
    %241 = arith.subf %235, %240 : vector<64x128xf32>
    %242 = arith.mulf %241, %241 : vector<64x128xf32>
    %cst_189 = arith.constant dense<0.000000e+00> : vector<128xf32>
    %243 = vector.multi_reduction <add>, %242, %cst_189 [0] : vector<64x128xf32> to vector<128xf32>
    %244 = vector.shape_cast %243 : vector<128xf32> to vector<1x128xf32>
    %cst_190 = arith.constant 6.400000e+01 : f32
    %245 = vector.broadcast %cst_190 : f32 to vector<1x128xf32>
    %246 = arith.divf %244, %245 : vector<1x128xf32>
    %247 = vector.broadcast %239 : vector<1x128xf32> to vector<64x128xf32>
    %248 = arith.subf %235, %247 : vector<64x128xf32>
    %cst_191 = arith.constant 9.99999974E-6 : f32
    %249 = vector.broadcast %cst_191 : f32 to vector<1x128xf32>
    %250 = arith.addf %246, %249 : vector<1x128xf32>
    %251 = math.rsqrt %250 : vector<1x128xf32>
    %252 = vector.broadcast %251 : vector<1x128xf32> to vector<64x128xf32>
    %253 = arith.mulf %248, %252 : vector<64x128xf32>
    %c0_192 = arith.constant 0 : index
    %c0_193 = arith.constant 0 : index
    %254 = vector.load %arg5[%c0_192, %c0_193] : memref<1x128xf32, #tpu.memory_space<vmem>>, vector<1x128xf32>
    %255 = vector.broadcast %254 : vector<1x128xf32> to vector<64x128xf32>
    %256 = arith.mulf %253, %255 : vector<64x128xf32>
    %c0_194 = arith.constant 0 : index
    %c0_195 = arith.constant 0 : index
    %257 = vector.load %arg6[%c0_194, %c0_195] : memref<1x128xf32, #tpu.memory_space<vmem>>, vector<1x128xf32>
    %258 = vector.broadcast %257 : vector<1x128xf32> to vector<64x128xf32>
    %259 = arith.addf %256, %258 : vector<64x128xf32>
    %cst_196 = arith.constant 0.000000e+00 : f32
    %260 = vector.broadcast %cst_196 : f32 to vector<64x128xf32>
    %261 = arith.cmpf oge, %259, %260 : vector<64x128xf32>
    %cst_197 = arith.constant 2.000000e-01 : f32
    %262 = vector.broadcast %cst_197 : f32 to vector<64x128xf32>
    %263 = arith.mulf %262, %259 : vector<64x128xf32>
    %264 = arith.select %261, %259, %263 : vector<64x128xi1>, vector<64x128xf32>
    %265 = arith.truncf %264 : vector<64x128xf32> to vector<64x128xbf16>
    %c0_198 = arith.constant 0 : index
    %c0_199 = arith.constant 0 : index
    %266 = vector.load %arg13[%c0_198, %c0_199] : memref<64x128xbf16, #tpu.memory_space<vmem>>, vector<64x128xbf16>
    tpu.vector_store %arg13[%c0_198, %c0_199], %265 {strides = array<i32>} : memref<64x128xbf16, #tpu.memory_space<vmem>>, vector<64x128xbf16>,
    %c0_200 = arith.constant 0 : index
    %c0_201 = arith.constant 0 : index
    %267 = vector.load %arg13[%c0_200, %c0_201] : memref<64x128xbf16, #tpu.memory_space<vmem>>, vector<2x128xbf16>
    %c0_202 = arith.constant 0 : index
    %c0_203 = arith.constant 0 : index
    %268 = vector.load %arg14[%c0_202, %c0_203] : memref<2x4096xbf16, #tpu.memory_space<vmem>>, vector<2x128xbf16>
    tpu.vector_store %arg14[%c0_202, %c0_203], %267 {strides = array<i32>} : memref<2x4096xbf16, #tpu.memory_space<vmem>>, vector<2x128xbf16>,
    %c2_204 = arith.constant 2 : index
    %c0_205 = arith.constant 0 : index
    %269 = vector.load %arg13[%c2_204, %c0_205] : memref<64x128xbf16, #tpu.memory_space<vmem>>, vector<2x128xbf16>
    %c0_206 = arith.constant 0 : index
    %c128 = arith.constant 128 : index
    %270 = vector.load %arg14[%c0_206, %c128] : memref<2x4096xbf16, #tpu.memory_space<vmem>>, vector<2x128xbf16>
    tpu.vector_store %arg14[%c0_206, %c128], %269 {strides = array<i32>} : memref<2x4096xbf16, #tpu.memory_space<vmem>>, vector<2x128xbf16>,
    %c4_207 = arith.constant 4 : index
    %c0_208 = arith.constant 0 : index
    %271 = vector.load %arg13[%c4_207, %c0_208] : memref<64x128xbf16, #tpu.memory_space<vmem>>, vector<2x128xbf16>
    %c0_209 = arith.constant 0 : index
    %c256 = arith.constant 256 : index
    %272 = vector.load %arg14[%c0_209, %c256] : memref<2x4096xbf16, #tpu.memory_space<vmem>>, vector<2x128xbf16>
    tpu.vector_store %arg14[%c0_209, %c256], %271 {strides = array<i32>} : memref<2x4096xbf16, #tpu.memory_space<vmem>>, vector<2x128xbf16>,
    %c6_210 = arith.constant 6 : index
    %c0_211 = arith.constant 0 : index
    %273 = vector.load %arg13[%c6_210, %c0_211] : memref<64x128xbf16, #tpu.memory_space<vmem>>, vector<2x128xbf16>
    %c0_212 = arith.constant 0 : index
    %c384 = arith.constant 384 : index
    %274 = vector.load %arg14[%c0_212, %c384] : memref<2x4096xbf16, #tpu.memory_space<vmem>>, vector<2x128xbf16>
    tpu.vector_store %arg14[%c0_212, %c384], %273 {strides = array<i32>} : memref<2x4096xbf16, #tpu.memory_space<vmem>>, vector<2x128xbf16>,
    %c8_213 = arith.constant 8 : index
    %c0_214 = arith.constant 0 : index
    %275 = vector.load %arg13[%c8_213, %c0_214] : memref<64x128xbf16, #tpu.memory_space<vmem>>, vector<2x128xbf16>
    %c0_215 = arith.constant 0 : index
    %c512 = arith.constant 512 : index
    %276 = vector.load %arg14[%c0_215, %c512] : memref<2x4096xbf16, #tpu.memory_space<vmem>>, vector<2x128xbf16>
    tpu.vector_store %arg14[%c0_215, %c512], %275 {strides = array<i32>} : memref<2x4096xbf16, #tpu.memory_space<vmem>>, vector<2x128xbf16>,
    %c10_216 = arith.constant 10 : index
    %c0_217 = arith.constant 0 : index
    %277 = vector.load %arg13[%c10_216, %c0_217] : memref<64x128xbf16, #tpu.memory_space<vmem>>, vector<2x128xbf16>
    %c0_218 = arith.constant 0 : index
    %c640 = arith.constant 640 : index
    %278 = vector.load %arg14[%c0_218, %c640] : memref<2x4096xbf16, #tpu.memory_space<vmem>>, vector<2x128xbf16>
    tpu.vector_store %arg14[%c0_218, %c640], %277 {strides = array<i32>} : memref<2x4096xbf16, #tpu.memory_space<vmem>>, vector<2x128xbf16>,
    %c12_219 = arith.constant 12 : index
    %c0_220 = arith.constant 0 : index
    %279 = vector.load %arg13[%c12_219, %c0_220] : memref<64x128xbf16, #tpu.memory_space<vmem>>, vector<2x128xbf16>
    %c0_221 = arith.constant 0 : index
    %c768 = arith.constant 768 : index
    %280 = vector.load %arg14[%c0_221, %c768] : memref<2x4096xbf16, #tpu.memory_space<vmem>>, vector<2x128xbf16>
    tpu.vector_store %arg14[%c0_221, %c768], %279 {strides = array<i32>} : memref<2x4096xbf16, #tpu.memory_space<vmem>>, vector<2x128xbf16>,
    %c14_222 = arith.constant 14 : index
    %c0_223 = arith.constant 0 : index
    %281 = vector.load %arg13[%c14_222, %c0_223] : memref<64x128xbf16, #tpu.memory_space<vmem>>, vector<2x128xbf16>
    %c0_224 = arith.constant 0 : index
    %c896 = arith.constant 896 : index
    %282 = vector.load %arg14[%c0_224, %c896] : memref<2x4096xbf16, #tpu.memory_space<vmem>>, vector<2x128xbf16>
    tpu.vector_store %arg14[%c0_224, %c896], %281 {strides = array<i32>} : memref<2x4096xbf16, #tpu.memory_space<vmem>>, vector<2x128xbf16>,
    %c16_225 = arith.constant 16 : index
    %c0_226 = arith.constant 0 : index
    %283 = vector.load %arg13[%c16_225, %c0_226] : memref<64x128xbf16, #tpu.memory_space<vmem>>, vector<2x128xbf16>
    %c0_227 = arith.constant 0 : index
    %c1024 = arith.constant 1024 : index
    %284 = vector.load %arg14[%c0_227, %c1024] : memref<2x4096xbf16, #tpu.memory_space<vmem>>, vector<2x128xbf16>
    tpu.vector_store %arg14[%c0_227, %c1024], %283 {strides = array<i32>} : memref<2x4096xbf16, #tpu.memory_space<vmem>>, vector<2x128xbf16>,
    %c18_228 = arith.constant 18 : index
    %c0_229 = arith.constant 0 : index
    %285 = vector.load %arg13[%c18_228, %c0_229] : memref<64x128xbf16, #tpu.memory_space<vmem>>, vector<2x128xbf16>
    %c0_230 = arith.constant 0 : index
    %c1152 = arith.constant 1152 : index
    %286 = vector.load %arg14[%c0_230, %c1152] : memref<2x4096xbf16, #tpu.memory_space<vmem>>, vector<2x128xbf16>
    tpu.vector_store %arg14[%c0_230, %c1152], %285 {strides = array<i32>} : memref<2x4096xbf16, #tpu.memory_space<vmem>>, vector<2x128xbf16>,
    %c20_231 = arith.constant 20 : index
    %c0_232 = arith.constant 0 : index
    %287 = vector.load %arg13[%c20_231, %c0_232] : memref<64x128xbf16, #tpu.memory_space<vmem>>, vector<2x128xbf16>
    %c0_233 = arith.constant 0 : index
    %c1280 = arith.constant 1280 : index
    %288 = vector.load %arg14[%c0_233, %c1280] : memref<2x4096xbf16, #tpu.memory_space<vmem>>, vector<2x128xbf16>
    tpu.vector_store %arg14[%c0_233, %c1280], %287 {strides = array<i32>} : memref<2x4096xbf16, #tpu.memory_space<vmem>>, vector<2x128xbf16>,
    %c22_234 = arith.constant 22 : index
    %c0_235 = arith.constant 0 : index
    %289 = vector.load %arg13[%c22_234, %c0_235] : memref<64x128xbf16, #tpu.memory_space<vmem>>, vector<2x128xbf16>
    %c0_236 = arith.constant 0 : index
    %c1408 = arith.constant 1408 : index
    %290 = vector.load %arg14[%c0_236, %c1408] : memref<2x4096xbf16, #tpu.memory_space<vmem>>, vector<2x128xbf16>
    tpu.vector_store %arg14[%c0_236, %c1408], %289 {strides = array<i32>} : memref<2x4096xbf16, #tpu.memory_space<vmem>>, vector<2x128xbf16>,
    %c24_237 = arith.constant 24 : index
    %c0_238 = arith.constant 0 : index
    %291 = vector.load %arg13[%c24_237, %c0_238] : memref<64x128xbf16, #tpu.memory_space<vmem>>, vector<2x128xbf16>
    %c0_239 = arith.constant 0 : index
    %c1536 = arith.constant 1536 : index
    %292 = vector.load %arg14[%c0_239, %c1536] : memref<2x4096xbf16, #tpu.memory_space<vmem>>, vector<2x128xbf16>
    tpu.vector_store %arg14[%c0_239, %c1536], %291 {strides = array<i32>} : memref<2x4096xbf16, #tpu.memory_space<vmem>>, vector<2x128xbf16>,
    %c26_240 = arith.constant 26 : index
    %c0_241 = arith.constant 0 : index
    %293 = vector.load %arg13[%c26_240, %c0_241] : memref<64x128xbf16, #tpu.memory_space<vmem>>, vector<2x128xbf16>
    %c0_242 = arith.constant 0 : index
    %c1664 = arith.constant 1664 : index
    %294 = vector.load %arg14[%c0_242, %c1664] : memref<2x4096xbf16, #tpu.memory_space<vmem>>, vector<2x128xbf16>
    tpu.vector_store %arg14[%c0_242, %c1664], %293 {strides = array<i32>} : memref<2x4096xbf16, #tpu.memory_space<vmem>>, vector<2x128xbf16>,
    %c28 = arith.constant 28 : index
    %c0_243 = arith.constant 0 : index
    %295 = vector.load %arg13[%c28, %c0_243] : memref<64x128xbf16, #tpu.memory_space<vmem>>, vector<2x128xbf16>
    %c0_244 = arith.constant 0 : index
    %c1792 = arith.constant 1792 : index
    %296 = vector.load %arg14[%c0_244, %c1792] : memref<2x4096xbf16, #tpu.memory_space<vmem>>, vector<2x128xbf16>
    tpu.vector_store %arg14[%c0_244, %c1792], %295 {strides = array<i32>} : memref<2x4096xbf16, #tpu.memory_space<vmem>>, vector<2x128xbf16>,
    %c30 = arith.constant 30 : index
    %c0_245 = arith.constant 0 : index
    %297 = vector.load %arg13[%c30, %c0_245] : memref<64x128xbf16, #tpu.memory_space<vmem>>, vector<2x128xbf16>
    %c0_246 = arith.constant 0 : index
    %c1920 = arith.constant 1920 : index
    %298 = vector.load %arg14[%c0_246, %c1920] : memref<2x4096xbf16, #tpu.memory_space<vmem>>, vector<2x128xbf16>
    tpu.vector_store %arg14[%c0_246, %c1920], %297 {strides = array<i32>} : memref<2x4096xbf16, #tpu.memory_space<vmem>>, vector<2x128xbf16>,
    %c32 = arith.constant 32 : index
    %c0_247 = arith.constant 0 : index
    %299 = vector.load %arg13[%c32, %c0_247] : memref<64x128xbf16, #tpu.memory_space<vmem>>, vector<2x128xbf16>
    %c0_248 = arith.constant 0 : index
    %c2048 = arith.constant 2048 : index
    %300 = vector.load %arg14[%c0_248, %c2048] : memref<2x4096xbf16, #tpu.memory_space<vmem>>, vector<2x128xbf16>
    tpu.vector_store %arg14[%c0_248, %c2048], %299 {strides = array<i32>} : memref<2x4096xbf16, #tpu.memory_space<vmem>>, vector<2x128xbf16>,
    %c34 = arith.constant 34 : index
    %c0_249 = arith.constant 0 : index
    %301 = vector.load %arg13[%c34, %c0_249] : memref<64x128xbf16, #tpu.memory_space<vmem>>, vector<2x128xbf16>
    %c0_250 = arith.constant 0 : index
    %c2176 = arith.constant 2176 : index
    %302 = vector.load %arg14[%c0_250, %c2176] : memref<2x4096xbf16, #tpu.memory_space<vmem>>, vector<2x128xbf16>
    tpu.vector_store %arg14[%c0_250, %c2176], %301 {strides = array<i32>} : memref<2x4096xbf16, #tpu.memory_space<vmem>>, vector<2x128xbf16>,
    %c36 = arith.constant 36 : index
    %c0_251 = arith.constant 0 : index
    %303 = vector.load %arg13[%c36, %c0_251] : memref<64x128xbf16, #tpu.memory_space<vmem>>, vector<2x128xbf16>
    %c0_252 = arith.constant 0 : index
    %c2304 = arith.constant 2304 : index
    %304 = vector.load %arg14[%c0_252, %c2304] : memref<2x4096xbf16, #tpu.memory_space<vmem>>, vector<2x128xbf16>
    tpu.vector_store %arg14[%c0_252, %c2304], %303 {strides = array<i32>} : memref<2x4096xbf16, #tpu.memory_space<vmem>>, vector<2x128xbf16>,
    %c38_253 = arith.constant 38 : index
    %c0_254 = arith.constant 0 : index
    %305 = vector.load %arg13[%c38_253, %c0_254] : memref<64x128xbf16, #tpu.memory_space<vmem>>, vector<2x128xbf16>
    %c0_255 = arith.constant 0 : index
    %c2432 = arith.constant 2432 : index
    %306 = vector.load %arg14[%c0_255, %c2432] : memref<2x4096xbf16, #tpu.memory_space<vmem>>, vector<2x128xbf16>
    tpu.vector_store %arg14[%c0_255, %c2432], %305 {strides = array<i32>} : memref<2x4096xbf16, #tpu.memory_space<vmem>>, vector<2x128xbf16>,
    %c40_256 = arith.constant 40 : index
    %c0_257 = arith.constant 0 : index
    %307 = vector.load %arg13[%c40_256, %c0_257] : memref<64x128xbf16, #tpu.memory_space<vmem>>, vector<2x128xbf16>
    %c0_258 = arith.constant 0 : index
    %c2560 = arith.constant 2560 : index
    %308 = vector.load %arg14[%c0_258, %c2560] : memref<2x4096xbf16, #tpu.memory_space<vmem>>, vector<2x128xbf16>
    tpu.vector_store %arg14[%c0_258, %c2560], %307 {strides = array<i32>} : memref<2x4096xbf16, #tpu.memory_space<vmem>>, vector<2x128xbf16>,
    %c42_259 = arith.constant 42 : index
    %c0_260 = arith.constant 0 : index
    %309 = vector.load %arg13[%c42_259, %c0_260] : memref<64x128xbf16, #tpu.memory_space<vmem>>, vector<2x128xbf16>
    %c0_261 = arith.constant 0 : index
    %c2688 = arith.constant 2688 : index
    %310 = vector.load %arg14[%c0_261, %c2688] : memref<2x4096xbf16, #tpu.memory_space<vmem>>, vector<2x128xbf16>
    tpu.vector_store %arg14[%c0_261, %c2688], %309 {strides = array<i32>} : memref<2x4096xbf16, #tpu.memory_space<vmem>>, vector<2x128xbf16>,
    %c44 = arith.constant 44 : index
    %c0_262 = arith.constant 0 : index
    %311 = vector.load %arg13[%c44, %c0_262] : memref<64x128xbf16, #tpu.memory_space<vmem>>, vector<2x128xbf16>
    %c0_263 = arith.constant 0 : index
    %c2816 = arith.constant 2816 : index
    %312 = vector.load %arg14[%c0_263, %c2816] : memref<2x4096xbf16, #tpu.memory_space<vmem>>, vector<2x128xbf16>
    tpu.vector_store %arg14[%c0_263, %c2816], %311 {strides = array<i32>} : memref<2x4096xbf16, #tpu.memory_space<vmem>>, vector<2x128xbf16>,
    %c46_264 = arith.constant 46 : index
    %c0_265 = arith.constant 0 : index
    %313 = vector.load %arg13[%c46_264, %c0_265] : memref<64x128xbf16, #tpu.memory_space<vmem>>, vector<2x128xbf16>
    %c0_266 = arith.constant 0 : index
    %c2944 = arith.constant 2944 : index
    %314 = vector.load %arg14[%c0_266, %c2944] : memref<2x4096xbf16, #tpu.memory_space<vmem>>, vector<2x128xbf16>
    tpu.vector_store %arg14[%c0_266, %c2944], %313 {strides = array<i32>} : memref<2x4096xbf16, #tpu.memory_space<vmem>>, vector<2x128xbf16>,
    %c48_267 = arith.constant 48 : index
    %c0_268 = arith.constant 0 : index
    %315 = vector.load %arg13[%c48_267, %c0_268] : memref<64x128xbf16, #tpu.memory_space<vmem>>, vector<2x128xbf16>
    %c0_269 = arith.constant 0 : index
    %c3072 = arith.constant 3072 : index
    %316 = vector.load %arg14[%c0_269, %c3072] : memref<2x4096xbf16, #tpu.memory_space<vmem>>, vector<2x128xbf16>
    tpu.vector_store %arg14[%c0_269, %c3072], %315 {strides = array<i32>} : memref<2x4096xbf16, #tpu.memory_space<vmem>>, vector<2x128xbf16>,
    %c50_270 = arith.constant 50 : index
    %c0_271 = arith.constant 0 : index
    %317 = vector.load %arg13[%c50_270, %c0_271] : memref<64x128xbf16, #tpu.memory_space<vmem>>, vector<2x128xbf16>
    %c0_272 = arith.constant 0 : index
    %c3200 = arith.constant 3200 : index
    %318 = vector.load %arg14[%c0_272, %c3200] : memref<2x4096xbf16, #tpu.memory_space<vmem>>, vector<2x128xbf16>
    tpu.vector_store %arg14[%c0_272, %c3200], %317 {strides = array<i32>} : memref<2x4096xbf16, #tpu.memory_space<vmem>>, vector<2x128xbf16>,
    %c52 = arith.constant 52 : index
    %c0_273 = arith.constant 0 : index
    %319 = vector.load %arg13[%c52, %c0_273] : memref<64x128xbf16, #tpu.memory_space<vmem>>, vector<2x128xbf16>
    %c0_274 = arith.constant 0 : index
    %c3328 = arith.constant 3328 : index
    %320 = vector.load %arg14[%c0_274, %c3328] : memref<2x4096xbf16, #tpu.memory_space<vmem>>, vector<2x128xbf16>
    tpu.vector_store %arg14[%c0_274, %c3328], %319 {strides = array<i32>} : memref<2x4096xbf16, #tpu.memory_space<vmem>>, vector<2x128xbf16>,
    %c54_275 = arith.constant 54 : index
    %c0_276 = arith.constant 0 : index
    %321 = vector.load %arg13[%c54_275, %c0_276] : memref<64x128xbf16, #tpu.memory_space<vmem>>, vector<2x128xbf16>
    %c0_277 = arith.constant 0 : index
    %c3456 = arith.constant 3456 : index
    %322 = vector.load %arg14[%c0_277, %c3456] : memref<2x4096xbf16, #tpu.memory_space<vmem>>, vector<2x128xbf16>
    tpu.vector_store %arg14[%c0_277, %c3456], %321 {strides = array<i32>} : memref<2x4096xbf16, #tpu.memory_space<vmem>>, vector<2x128xbf16>,
    %c56_278 = arith.constant 56 : index
    %c0_279 = arith.constant 0 : index
    %323 = vector.load %arg13[%c56_278, %c0_279] : memref<64x128xbf16, #tpu.memory_space<vmem>>, vector<2x128xbf16>
    %c0_280 = arith.constant 0 : index
    %c3584 = arith.constant 3584 : index
    %324 = vector.load %arg14[%c0_280, %c3584] : memref<2x4096xbf16, #tpu.memory_space<vmem>>, vector<2x128xbf16>
    tpu.vector_store %arg14[%c0_280, %c3584], %323 {strides = array<i32>} : memref<2x4096xbf16, #tpu.memory_space<vmem>>, vector<2x128xbf16>,
    %c58_281 = arith.constant 58 : index
    %c0_282 = arith.constant 0 : index
    %325 = vector.load %arg13[%c58_281, %c0_282] : memref<64x128xbf16, #tpu.memory_space<vmem>>, vector<2x128xbf16>
    %c0_283 = arith.constant 0 : index
    %c3712 = arith.constant 3712 : index
    %326 = vector.load %arg14[%c0_283, %c3712] : memref<2x4096xbf16, #tpu.memory_space<vmem>>, vector<2x128xbf16>
    tpu.vector_store %arg14[%c0_283, %c3712], %325 {strides = array<i32>} : memref<2x4096xbf16, #tpu.memory_space<vmem>>, vector<2x128xbf16>,
    %c60 = arith.constant 60 : index
    %c0_284 = arith.constant 0 : index
    %327 = vector.load %arg13[%c60, %c0_284] : memref<64x128xbf16, #tpu.memory_space<vmem>>, vector<2x128xbf16>
    %c0_285 = arith.constant 0 : index
    %c3840 = arith.constant 3840 : index
    %328 = vector.load %arg14[%c0_285, %c3840] : memref<2x4096xbf16, #tpu.memory_space<vmem>>, vector<2x128xbf16>
    tpu.vector_store %arg14[%c0_285, %c3840], %327 {strides = array<i32>} : memref<2x4096xbf16, #tpu.memory_space<vmem>>, vector<2x128xbf16>,
    %c62 = arith.constant 62 : index
    %c0_286 = arith.constant 0 : index
    %329 = vector.load %arg13[%c62, %c0_286] : memref<64x128xbf16, #tpu.memory_space<vmem>>, vector<2x128xbf16>
    %c0_287 = arith.constant 0 : index
    %c3968 = arith.constant 3968 : index
    %330 = vector.load %arg14[%c0_287, %c3968] : memref<2x4096xbf16, #tpu.memory_space<vmem>>, vector<2x128xbf16>
    tpu.vector_store %arg14[%c0_287, %c3968], %329 {strides = array<i32>} : memref<2x4096xbf16, #tpu.memory_space<vmem>>, vector<2x128xbf16>,
    %c0_i32_288 = arith.constant 0 : i32
    %331 = tpu.memref_slice %arg16[%c0_i32_288] : memref<1x!tpu.dma_semaphore, #tpu.memory_space<semaphore_mem>> -> memref<1x!tpu.dma_semaphore, #tpu.memory_space<semaphore_mem>>
    %332 = tpu.memref_squeeze %331 : memref<1x!tpu.dma_semaphore, #tpu.memory_space<semaphore_mem>> -> memref<!tpu.dma_semaphore, #tpu.memory_space<semaphore_mem>>
    tpu.wait_dma2 semaphore(%332 : memref<!tpu.dma_semaphore, #tpu.memory_space<semaphore_mem>>) src(%arg7 : memref<4096x128xbf16, #tpu.memory_space<any>>) dst(%arg15 : memref<4096x128xbf16, #tpu.memory_space<vmem>>)
    %c0_289 = arith.constant 0 : index
    %c0_290 = arith.constant 0 : index
    %333 = vector.load %arg14[%c0_289, %c0_290] : memref<2x4096xbf16, #tpu.memory_space<vmem>>, vector<2x4096xbf16>
    %c0_291 = arith.constant 0 : index
    %c0_292 = arith.constant 0 : index
    %334 = vector.load %arg15[%c0_291, %c0_292] : memref<4096x128xbf16, #tpu.memory_space<vmem>>, vector<4096x128xbf16>
    %cst_293 = arith.constant dense<0.000000e+00> : vector<2x128xf32>
    %335 = tpu.matmul %333, %334, %cst_293 {dimension_numbers = #tpu.dot_dimension_numbers<[1], [0], [0], [1], [0, 0, 1, 1], [], []>} : vector<2x4096xbf16>, vector<4096x128xbf16>, vector<2x128xf32> -> vector<2x128xf32>
    %c0_294 = arith.constant 0 : index
    %c0_295 = arith.constant 0 : index
    %336 = vector.load %arg8[%c0_294, %c0_295] : memref<1x128xf32, #tpu.memory_space<vmem>>, vector<1x128xf32>
    %337 = vector.broadcast %336 : vector<1x128xf32> to vector<2x128xf32>
    %338 = arith.addf %335, %337 : vector<2x128xf32>
    %cst_296 = arith.constant 0.000000e+00 : f32
    %339 = vector.broadcast %cst_296 : f32 to vector<2x128xf32>
    %340 = arith.cmpf oge, %338, %339 : vector<2x128xf32>
    %cst_297 = arith.constant 2.000000e-01 : f32
    %341 = vector.broadcast %cst_297 : f32 to vector<2x128xf32>
    %342 = arith.mulf %341, %338 : vector<2x128xf32>
    %343 = arith.select %340, %338, %342 : vector<2x128xi1>, vector<2x128xf32>
    %c0_298 = arith.constant 0 : index
    %c0_299 = arith.constant 0 : index
    %344 = vector.load %arg9[%c0_298, %c0_299] : memref<1x128xf32, #tpu.memory_space<vmem>>, vector<1x128xf32>
    %345 = vector.broadcast %344 : vector<1x128xf32> to vector<2x128xf32>
    %346 = arith.mulf %343, %345 : vector<2x128xf32>
    %cst_300 = arith.constant dense<0.000000e+00> : vector<2xf32>
    %347 = vector.multi_reduction <add>, %346, %cst_300 [1] : vector<2x128xf32> to vector<2xf32>
    %348 = vector.shape_cast %347 : vector<2xf32> to vector<2x1xf32>
    %c0_301 = arith.constant 0 : index
    %c0_302 = arith.constant 0 : index
    %349 = vector.load %arg10[%c0_301, %c0_302] : memref<1x1xf32, #tpu.memory_space<vmem>>, vector<1x1xf32>
    %350 = vector.broadcast %349 : vector<1x1xf32> to vector<2x1xf32>
    %351 = arith.addf %348, %350 : vector<2x1xf32>
    %cst_303 = arith.constant 0.000000e+00 : f32
    %352 = vector.broadcast %cst_303 : f32 to vector<2x1xf32>
    %353 = arith.subf %352, %351 : vector<2x1xf32>
    %354 = math.exp %353 : vector<2x1xf32>
    %cst_304 = arith.constant 1.000000e+00 : f32
    %355 = vector.broadcast %cst_304 : f32 to vector<2x1xf32>
    %356 = arith.addf %355, %354 : vector<2x1xf32>
    %cst_305 = arith.constant 1.000000e+00 : f32
    %357 = vector.broadcast %cst_305 : f32 to vector<2x1xf32>
    %358 = arith.divf %357, %356 : vector<2x1xf32>
    %c0_306 = arith.constant 0 : index
    %c0_307 = arith.constant 0 : index
    %359 = vector.load %arg11[%c0_306, %c0_307] : memref<2x1xf32, #tpu.memory_space<vmem>>, vector<2x1xf32>
    tpu.vector_store %arg11[%c0_306, %c0_307], %358 {strides = array<i32>} : memref<2x1xf32, #tpu.memory_space<vmem>>, vector<2x1xf32>,
    return
  }
}

</mosaic_0001>

<bundles_post_ra>
// kernel: discriminator_forward.1
= control target key start
LH: loop header
LB: loop body
LE: loop exit
PB: predicated region body
PF: predicated region fallthrough
CT: control target
= control target key end

     0   :  { %s16757_s0 = inlined_call_operand.vmem [shape: bf16[64,128], index: 0, kind: input, shape index: {}]   ;;  %s16758_s1 = inlined_call_operand.vmem [shape: bf16[128,128], index: 1, kind: input, shape index: {}]   ;;  %s16759_s2 = inlined_call_operand.vmem [shape: f32[1,128], index: 2, kind: input, shape index: {}]   ;;  %s16760_s3 = inlined_call_operand.vmem [shape: f32[64,27], index: 3, kind: input, shape index: {}]   ;;  %s16761_s4 = inlined_call_operand.vmem [shape: bf16[27,128,128], index: 4, kind: input, shape index: {}]   ;;  %s16762_s5 = inlined_call_operand.vmem [shape: f32[1,128], index: 5, kind: input, shape index: {}]   ;;  %s16763_s6 = inlined_call_operand.vmem [shape: f32[1,128], index: 6, kind: input, shape index: {}]   ;;  %s16764_s8 = inlined_call_operand.vmem [shape: f32[1,128], index: 8, kind: input, shape index: {}]   ;;  %s16765_s9 = inlined_call_operand.vmem [shape: f32[1,128], index: 9, kind: input, shape index: {}]   ;;  %s16766_s10 = inlined_call_operand.<no memory space> [shape: f32[1,1], index: 10, kind: input, shape index: {}]   ;;  %s16767_s11 = inlined_call_operand.vmem [shape: f32[2,1], index: 11, kind: output, shape index: {}]   ;;  %s16768_s7 = inlined_call_operand.vmem [shape: bf16[4096,128], index: 7, kind: input, shape index: {}]  }
   0x1   :  { %v16_v0 = vstv %s16766_s10  ;;  %v72_v1 = vld [vmem:[%s16768_s7] sm:$0xff]  ;;  %v74_v2 = vld [vmem:[%s16768_s7 + $0x8] sm:$0xff]  ;;  %v76_v3 = vld [vmem:[%s16768_s7 + $0x10] sm:$0xff] }
   0x2   :  { %17 = vst [vmem:[#allocation7] sm:$0x1] %v16_v0  ;;  %73 = vst [vmem:[#allocation5] sm:$0xff] %v72_v1  ;;  %v78_v4 = vld [vmem:[%s16768_s7 + $0x18] sm:$0xff]  ;;  %v80_v5 = vld [vmem:[%s16768_s7 + $0x20] sm:$0xff] }
   0x3   :  { %75 = vst [vmem:[#allocation5 + $0x8] sm:$0xff] %v74_v2  ;;  %77 = vst [vmem:[#allocation5 + $0x10] sm:$0xff] %v76_v3  ;;  %v82_v6 = vld [vmem:[%s16768_s7 + $0x28] sm:$0xff]  ;;  %v84_v7 = vld [vmem:[%s16768_s7 + $0x30] sm:$0xff] }
   0x4   :  { %79 = vst [vmem:[#allocation5 + $0x18] sm:$0xff] %v78_v4  ;;  %81 = vst [vmem:[#allocation5 + $0x20] sm:$0xff] %v80_v5  ;;  %v86_v8 = vld [vmem:[%s16768_s7 + $0x38] sm:$0xff]  ;;  %v88_v9 = vld [vmem:[%s16768_s7 + $0x40] sm:$0xff] }
   0x5   :  { %83 = vst [vmem:[#allocation5 + $0x28] sm:$0xff] %v82_v6  ;;  %85 = vst [vmem:[#allocation5 + $0x30] sm:$0xff] %v84_v7  ;;  %v90_v10 = vld [vmem:[%s16768_s7 + $0x48] sm:$0xff]  ;;  %v92_v11 = vld [vmem:[%s16768_s7 + $0x50] sm:$0xff] }
   0x6   :  { %87 = vst [vmem:[#allocation5 + $0x38] sm:$0xff] %v86_v8  ;;  %89 = vst [vmem:[#allocation5 + $0x40] sm:$0xff] %v88_v9  ;;  %v94_v12 = vld [vmem:[%s16768_s7 + $0x58] sm:$0xff]  ;;  %v96_v13 = vld [vmem:[%s16768_s7 + $0x60] sm:$0xff] }
   0x7   :  { %91 = vst [vmem:[#allocation5 + $0x48] sm:$0xff] %v90_v10  ;;  %93 = vst [vmem:[#allocation5 + $0x50] sm:$0xff] %v92_v11  ;;  %v98_v14 = vld [vmem:[%s16768_s7 + $0x68] sm:$0xff]  ;;  %v100_v15 = vld [vmem:[%s16768_s7 + $0x70] sm:$0xff] }
   0x8   :  { %95 = vst [vmem:[#allocation5 + $0x58] sm:$0xff] %v94_v12  ;;  %97 = vst [vmem:[#allocation5 + $0x60] sm:$0xff] %v96_v13  ;;  %v102_v16 = vld [vmem:[%s16768_s7 + $0x78] sm:$0xff]  ;;  %v104_v17 = vld [vmem:[%s16768_s7 + $0x80] sm:$0xff] }
   0x9   :  { %99 = vst [vmem:[#allocation5 + $0x68] sm:$0xff] %v98_v14  ;;  %101 = vst [vmem:[#allocation5 + $0x70] sm:$0xff] %v100_v15  ;;  %v106_v18 = vld [vmem:[%s16768_s7 + $0x88] sm:$0xff]  ;;  %v108_v19 = vld [vmem:[%s16768_s7 + $0x90] sm:$0xff] }
   0xa   :  { %103 = vst [vmem:[#allocation5 + $0x78] sm:$0xff] %v102_v16  ;;  %105 = vst [vmem:[#allocation5 + $0x80] sm:$0xff] %v104_v17  ;;  %v110_v20 = vld [vmem:[%s16768_s7 + $0x98] sm:$0xff]  ;;  %v112_v21 = vld [vmem:[%s16768_s7 + $0xa0] sm:$0xff] }
   0xb   :  { %107 = vst [vmem:[#allocation5 + $0x88] sm:$0xff] %v106_v18  ;;  %109 = vst [vmem:[#allocation5 + $0x90] sm:$0xff] %v108_v19  ;;  %v114_v22 = vld [vmem:[%s16768_s7 + $0xa8] sm:$0xff]  ;;  %v116_v23 = vld [vmem:[%s16768_s7 + $0xb0] sm:$0xff] }
   0xc   :  { %111 = vst [vmem:[#allocation5 + $0x98] sm:$0xff] %v110_v20  ;;  %113 = vst [vmem:[#allocation5 + $0xa0] sm:$0xff] %v112_v21  ;;  %v118_v24 = vld [vmem:[%s16768_s7 + $0xb8] sm:$0xff]  ;;  %v120_v25 = vld [vmem:[%s16768_s7 + $0xc0] sm:$0xff] }
   0xd   :  { %115 = vst [vmem:[#allocation5 + $0xa8] sm:$0xff] %v114_v22  ;;  %117 = vst [vmem:[#allocation5 + $0xb0] sm:$0xff] %v116_v23  ;;  %v122_v26 = vld [vmem:[%s16768_s7 + $0xc8] sm:$0xff]  ;;  %v124_v27 = vld [vmem:[%s16768_s7 + $0xd0] sm:$0xff] }
   0xe   :  { %119 = vst [vmem:[#allocation5 + $0xb8] sm:$0xff] %v118_v24  ;;  %121 = vst [vmem:[#allocation5 + $0xc0] sm:$0xff] %v120_v25  ;;  %v126_v28 = vld [vmem:[%s16768_s7 + $0xd8] sm:$0xff]  ;;  %v128_v29 = vld [vmem:[%s16768_s7 + $0xe0] sm:$0xff] }
   0xf   :  { %123 = vst [vmem:[#allocation5 + $0xc8] sm:$0xff] %v122_v26  ;;  %125 = vst [vmem:[#allocation5 + $0xd0] sm:$0xff] %v124_v27  ;;  %v130_v30 = vld [vmem:[%s16768_s7 + $0xe8] sm:$0xff]  ;;  %v132_v31 = vld [vmem:[%s16768_s7 + $0xf0] sm:$0xff] }
  0x10   :  { %127 = vst [vmem:[#allocation5 + $0xd8] sm:$0xff] %v126_v28  ;;  %129 = vst [vmem:[#allocation5 + $0xe0] sm:$0xff] %v128_v29  ;;  %v134_v32 = vld [vmem:[%s16768_s7 + $0xf8] sm:$0xff]  ;;  %v136_v33 = vld [vmem:[%s16768_s7 + $0x100] sm:$0xff] }
  0x11   :  { %131 = vst [vmem:[#allocation5 + $0xe8] sm:$0xff] %v130_v30  ;;  %133 = vst [vmem:[#allocation5 + $0xf0] sm:$0xff] %v132_v31  ;;  %v138_v34 = vld [vmem:[%s16768_s7 + $0x108] sm:$0xff]  ;;  %v140_v35 = vld [vmem:[%s16768_s7 + $0x110] sm:$0xff] }
  0x12   :  { %135 = vst [vmem:[#allocation5 + $0xf8] sm:$0xff] %v134_v32  ;;  %137 = vst [vmem:[#allocation5 + $0x100] sm:$0xff] %v136_v33  ;;  %v142_v36 = vld [vmem:[%s16768_s7 + $0x118] sm:$0xff]  ;;  %v144_v37 = vld [vmem:[%s16768_s7 + $0x120] sm:$0xff] }
  0x13   :  { %139 = vst [vmem:[#allocation5 + $0x108] sm:$0xff] %v138_v34  ;;  %141 = vst [vmem:[#allocation5 + $0x110] sm:$0xff] %v140_v35  ;;  %v146_v38 = vld [vmem:[%s16768_s7 + $0x128] sm:$0xff]  ;;  %v148_v39 = vld [vmem:[%s16768_s7 + $0x130] sm:$0xff] }
  0x14   :  { %143 = vst [vmem:[#allocation5 + $0x118] sm:$0xff] %v142_v36  ;;  %145 = vst [vmem:[#allocation5 + $0x120] sm:$0xff] %v144_v37  ;;  %v150_v40 = vld [vmem:[%s16768_s7 + $0x138] sm:$0xff]  ;;  %v152_v41 = vld [vmem:[%s16768_s7 + $0x140] sm:$0xff] }
  0x15   :  { %147 = vst [vmem:[#allocation5 + $0x128] sm:$0xff] %v146_v38  ;;  %149 = vst [vmem:[#allocation5 + $0x130] sm:$0xff] %v148_v39  ;;  %v154_v42 = vld [vmem:[%s16768_s7 + $0x148] sm:$0xff]  ;;  %v156_v43 = vld [vmem:[%s16768_s7 + $0x150] sm:$0xff] }
  0x16   :  { %151 = vst [vmem:[#allocation5 + $0x138] sm:$0xff] %v150_v40  ;;  %153 = vst [vmem:[#allocation5 + $0x140] sm:$0xff] %v152_v41  ;;  %v158_v44 = vld [vmem:[%s16768_s7 + $0x158] sm:$0xff]  ;;  %v160_v45 = vld [vmem:[%s16768_s7 + $0x160] sm:$0xff] }
  0x17   :  { %155 = vst [vmem:[#allocation5 + $0x148] sm:$0xff] %v154_v42  ;;  %157 = vst [vmem:[#allocation5 + $0x150] sm:$0xff] %v156_v43  ;;  %v162_v46 = vld [vmem:[%s16768_s7 + $0x168] sm:$0xff]  ;;  %v164_v47 = vld [vmem:[%s16768_s7 + $0x170] sm:$0xff] }
  0x18   :  { %159 = vst [vmem:[#allocation5 + $0x158] sm:$0xff] %v158_v44  ;;  %161 = vst [vmem:[#allocation5 + $0x160] sm:$0xff] %v160_v45  ;;  %v166_v48 = vld [vmem:[%s16768_s7 + $0x178] sm:$0xff]  ;;  %v168_v49 = vld [vmem:[%s16768_s7 + $0x180] sm:$0xff] }
  0x19   :  { %163 = vst [vmem:[#allocation5 + $0x168] sm:$0xff] %v162_v46  ;;  %165 = vst [vmem:[#allocation5 + $0x170] sm:$0xff] %v164_v47  ;;  %v170_v50 = vld [vmem:[%s16768_s7 + $0x188] sm:$0xff]  ;;  %v172_v51 = vld [vmem:[%s16768_s7 + $0x190] sm:$0xff] }
  0x1a   :  { %167 = vst [vmem:[#allocation5 + $0x178] sm:$0xff] %v166_v48  ;;  %169 = vst [vmem:[#allocation5 + $0x180] sm:$0xff] %v168_v49  ;;  %v174_v52 = vld [vmem:[%s16768_s7 + $0x198] sm:$0xff]  ;;  %v176_v53 = vld [vmem:[%s16768_s7 + $0x1a0] sm:$0xff] }
  0x1b   :  { %171 = vst [vmem:[#allocation5 + $0x188] sm:$0xff] %v170_v50  ;;  %173 = vst [vmem:[#allocation5 + $0x190] sm:$0xff] %v172_v51  ;;  %v178_v54 = vld [vmem:[%s16768_s7 + $0x1a8] sm:$0xff]  ;;  %v180_v55 = vld [vmem:[%s16768_s7 + $0x1b0] sm:$0xff] }
  0x1c   :  { %175 = vst [vmem:[#allocation5 + $0x198] sm:$0xff] %v174_v52  ;;  %177 = vst [vmem:[#allocation5 + $0x1a0] sm:$0xff] %v176_v53  ;;  %v182_v56 = vld [vmem:[%s16768_s7 + $0x1b8] sm:$0xff]  ;;  %v184_v57 = vld [vmem:[%s16768_s7 + $0x1c0] sm:$0xff] }
  0x1d   :  { %179 = vst [vmem:[#allocation5 + $0x1a8] sm:$0xff] %v178_v54  ;;  %181 = vst [vmem:[#allocation5 + $0x1b0] sm:$0xff] %v180_v55  ;;  %v186_v58 = vld [vmem:[%s16768_s7 + $0x1c8] sm:$0xff]  ;;  %v188_v59 = vld [vmem:[%s16768_s7 + $0x1d0] sm:$0xff] }
  0x1e   :  { %183 = vst [vmem:[#allocation5 + $0x1b8] sm:$0xff] %v182_v56  ;;  %185 = vst [vmem:[#allocation5 + $0x1c0] sm:$0xff] %v184_v57  ;;  %v190_v60 = vld [vmem:[%s16768_s7 + $0x1d8] sm:$0xff]  ;;  %v192_v61 = vld [vmem:[%s16768_s7 + $0x1e0] sm:$0xff] }
  0x1f   :  { %187 = vst [vmem:[#allocation5 + $0x1c8] sm:$0xff] %v186_v58  ;;  %189 = vst [vmem:[#allocation5 + $0x1d0] sm:$0xff] %v188_v59  ;;  %v194_v62 = vld [vmem:[%s16768_s7 + $0x1e8] sm:$0xff]  ;;  %v196_v63 = vld [vmem:[%s16768_s7 + $0x1f0] sm:$0xff] }
  0x20   :  { %191 = vst [vmem:[#allocation5 + $0x1d8] sm:$0xff] %v190_v60  ;;  %193 = vst [vmem:[#allocation5 + $0x1e0] sm:$0xff] %v192_v61  ;;  %v198_v0 = vld [vmem:[%s16768_s7 + $0x1f8] sm:$0xff]  ;;  %v200_v1 = vld [vmem:[%s16768_s7 + $0x200] sm:$0xff] }
  0x21   :  { %195 = vst [vmem:[#allocation5 + $0x1e8] sm:$0xff] %v194_v62  ;;  %197 = vst [vmem:[#allocation5 + $0x1f0] sm:$0xff] %v196_v63  ;;  %v202_v2 = vld [vmem:[%s16768_s7 + $0x208] sm:$0xff]  ;;  %v204_v3 = vld [vmem:[%s16768_s7 + $0x210] sm:$0xff] }
  0x22   :  { %199 = vst [vmem:[#allocation5 + $0x1f8] sm:$0xff] %v198_v0  ;;  %201 = vst [vmem:[#allocation5 + $0x200] sm:$0xff] %v200_v1  ;;  %v206_v4 = vld [vmem:[%s16768_s7 + $0x218] sm:$0xff]  ;;  %v208_v5 = vld [vmem:[%s16768_s7 + $0x220] sm:$0xff] }
  0x23   :  { %203 = vst [vmem:[#allocation5 + $0x208] sm:$0xff] %v202_v2  ;;  %205 = vst [vmem:[#allocation5 + $0x210] sm:$0xff] %v204_v3  ;;  %v210_v6 = vld [vmem:[%s16768_s7 + $0x228] sm:$0xff]  ;;  %v212_v7 = vld [vmem:[%s16768_s7 + $0x230] sm:$0xff] }
  0x24   :  { %207 = vst [vmem:[#allocation5 + $0x218] sm:$0xff] %v206_v4  ;;  %209 = vst [vmem:[#allocation5 + $0x220] sm:$0xff] %v208_v5  ;;  %v214_v8 = vld [vmem:[%s16768_s7 + $0x238] sm:$0xff]  ;;  %v216_v9 = vld [vmem:[%s16768_s7 + $0x240] sm:$0xff] }
  0x25   :  { %211 = vst [vmem:[#allocation5 + $0x228] sm:$0xff] %v210_v6  ;;  %213 = vst [vmem:[#allocation5 + $0x230] sm:$0xff] %v212_v7  ;;  %v218_v10 = vld [vmem:[%s16768_s7 + $0x248] sm:$0xff]  ;;  %v220_v11 = vld [vmem:[%s16768_s7 + $0x250] sm:$0xff] }
  0x26   :  { %215 = vst [vmem:[#allocation5 + $0x238] sm:$0xff] %v214_v8  ;;  %217 = vst [vmem:[#allocation5 + $0x240] sm:$0xff] %v216_v9  ;;  %v222_v12 = vld [vmem:[%s16768_s7 + $0x258] sm:$0xff]  ;;  %v224_v13 = vld [vmem:[%s16768_s7 + $0x260] sm:$0xff] }
  0x27   :  { %219 = vst [vmem:[#allocation5 + $0x248] sm:$0xff] %v218_v10  ;;  %221 = vst [vmem:[#allocation5 + $0x250] sm:$0xff] %v220_v11  ;;  %v226_v14 = vld [vmem:[%s16768_s7 + $0x268] sm:$0xff]  ;;  %v228_v15 = vld [vmem:[%s16768_s7 + $0x270] sm:$0xff] }
  0x28   :  { %223 = vst [vmem:[#allocation5 + $0x258] sm:$0xff] %v222_v12  ;;  %225 = vst [vmem:[#allocation5 + $0x260] sm:$0xff] %v224_v13  ;;  %v230_v16 = vld [vmem:[%s16768_s7 + $0x278] sm:$0xff]  ;;  %v232_v17 = vld [vmem:[%s16768_s7 + $0x280] sm:$0xff] }
  0x29   :  { %227 = vst [vmem:[#allocation5 + $0x268] sm:$0xff] %v226_v14  ;;  %229 = vst [vmem:[#allocation5 + $0x270] sm:$0xff] %v228_v15  ;;  %v234_v18 = vld [vmem:[%s16768_s7 + $0x288] sm:$0xff]  ;;  %v236_v19 = vld [vmem:[%s16768_s7 + $0x290] sm:$0xff] }
  0x2a   :  { %231 = vst [vmem:[#allocation5 + $0x278] sm:$0xff] %v230_v16  ;;  %233 = vst [vmem:[#allocation5 + $0x280] sm:$0xff] %v232_v17  ;;  %v238_v20 = vld [vmem:[%s16768_s7 + $0x298] sm:$0xff]  ;;  %v240_v21 = vld [vmem:[%s16768_s7 + $0x2a0] sm:$0xff] }
  0x2b   :  { %235 = vst [vmem:[#allocation5 + $0x288] sm:$0xff] %v234_v18  ;;  %237 = vst [vmem:[#allocation5 + $0x290] sm:$0xff] %v236_v19  ;;  %v242_v22 = vld [vmem:[%s16768_s7 + $0x2a8] sm:$0xff]  ;;  %v244_v23 = vld [vmem:[%s16768_s7 + $0x2b0] sm:$0xff] }
  0x2c   :  { %239 = vst [vmem:[#allocation5 + $0x298] sm:$0xff] %v238_v20  ;;  %241 = vst [vmem:[#allocation5 + $0x2a0] sm:$0xff] %v240_v21  ;;  %v246_v24 = vld [vmem:[%s16768_s7 + $0x2b8] sm:$0xff]  ;;  %v248_v25 = vld [vmem:[%s16768_s7 + $0x2c0] sm:$0xff] }
  0x2d   :  { %243 = vst [vmem:[#allocation5 + $0x2a8] sm:$0xff] %v242_v22  ;;  %245 = vst [vmem:[#allocation5 + $0x2b0] sm:$0xff] %v244_v23  ;;  %v250_v26 = vld [vmem:[%s16768_s7 + $0x2c8] sm:$0xff]  ;;  %v252_v27 = vld [vmem:[%s16768_s7 + $0x2d0] sm:$0xff] }
  0x2e   :  { %247 = vst [vmem:[#allocation5 + $0x2b8] sm:$0xff] %v246_v24  ;;  %249 = vst [vmem:[#allocation5 + $0x2c0] sm:$0xff] %v248_v25  ;;  %v254_v28 = vld [vmem:[%s16768_s7 + $0x2d8] sm:$0xff]  ;;  %v256_v29 = vld [vmem:[%s16768_s7 + $0x2e0] sm:$0xff] }
  0x2f   :  { %251 = vst [vmem:[#allocation5 + $0x2c8] sm:$0xff] %v250_v26  ;;  %253 = vst [vmem:[#allocation5 + $0x2d0] sm:$0xff] %v252_v27  ;;  %v258_v30 = vld [vmem:[%s16768_s7 + $0x2e8] sm:$0xff]  ;;  %v260_v31 = vld [vmem:[%s16768_s7 + $0x2f0] sm:$0xff] }
  0x30   :  { %255 = vst [vmem:[#allocation5 + $0x2d8] sm:$0xff] %v254_v28  ;;  %257 = vst [vmem:[#allocation5 + $0x2e0] sm:$0xff] %v256_v29  ;;  %v262_v32 = vld [vmem:[%s16768_s7 + $0x2f8] sm:$0xff]  ;;  %v264_v33 = vld [vmem:[%s16768_s7 + $0x300] sm:$0xff] }
  0x31   :  { %259 = vst [vmem:[#allocation5 + $0x2e8] sm:$0xff] %v258_v30  ;;  %261 = vst [vmem:[#allocation5 + $0x2f0] sm:$0xff] %v260_v31  ;;  %v266_v34 = vld [vmem:[%s16768_s7 + $0x308] sm:$0xff]  ;;  %v268_v35 = vld [vmem:[%s16768_s7 + $0x310] sm:$0xff] }
  0x32   :  { %263 = vst [vmem:[#allocation5 + $0x2f8] sm:$0xff] %v262_v32  ;;  %265 = vst [vmem:[#allocation5 + $0x300] sm:$0xff] %v264_v33  ;;  %v270_v36 = vld [vmem:[%s16768_s7 + $0x318] sm:$0xff]  ;;  %v272_v37 = vld [vmem:[%s16768_s7 + $0x320] sm:$0xff] }
  0x33   :  { %267 = vst [vmem:[#allocation5 + $0x308] sm:$0xff] %v266_v34  ;;  %269 = vst [vmem:[#allocation5 + $0x310] sm:$0xff] %v268_v35  ;;  %v274_v38 = vld [vmem:[%s16768_s7 + $0x328] sm:$0xff]  ;;  %v276_v39 = vld [vmem:[%s16768_s7 + $0x330] sm:$0xff] }
  0x34   :  { %271 = vst [vmem:[#allocation5 + $0x318] sm:$0xff] %v270_v36  ;;  %273 = vst [vmem:[#allocation5 + $0x320] sm:$0xff] %v272_v37  ;;  %v278_v40 = vld [vmem:[%s16768_s7 + $0x338] sm:$0xff]  ;;  %v280_v41 = vld [vmem:[%s16768_s7 + $0x340] sm:$0xff] }
  0x35   :  { %275 = vst [vmem:[#allocation5 + $0x328] sm:$0xff] %v274_v38  ;;  %277 = vst [vmem:[#allocation5 + $0x330] sm:$0xff] %v276_v39  ;;  %v282_v42 = vld [vmem:[%s16768_s7 + $0x348] sm:$0xff]  ;;  %v284_v43 = vld [vmem:[%s16768_s7 + $0x350] sm:$0xff] }
  0x36   :  { %279 = vst [vmem:[#allocation5 + $0x338] sm:$0xff] %v278_v40  ;;  %281 = vst [vmem:[#allocation5 + $0x340] sm:$0xff] %v280_v41  ;;  %v286_v44 = vld [vmem:[%s16768_s7 + $0x358] sm:$0xff]  ;;  %v288_v45 = vld [vmem:[%s16768_s7 + $0x360] sm:$0xff] }
  0x37   :  { %283 = vst [vmem:[#allocation5 + $0x348] sm:$0xff] %v282_v42  ;;  %285 = vst [vmem:[#allocation5 + $0x350] sm:$0xff] %v284_v43  ;;  %v290_v46 = vld [vmem:[%s16768_s7 + $0x368] sm:$0xff]  ;;  %v292_v47 = vld [vmem:[%s16768_s7 + $0x370] sm:$0xff] }
  0x38   :  { %287 = vst [vmem:[#allocation5 + $0x358] sm:$0xff] %v286_v44  ;;  %289 = vst [vmem:[#allocation5 + $0x360] sm:$0xff] %v288_v45  ;;  %v294_v48 = vld [vmem:[%s16768_s7 + $0x378] sm:$0xff]  ;;  %v296_v49 = vld [vmem:[%s16768_s7 + $0x380] sm:$0xff] }
  0x39   :  { %291 = vst [vmem:[#allocation5 + $0x368] sm:$0xff] %v290_v46  ;;  %293 = vst [vmem:[#allocation5 + $0x370] sm:$0xff] %v292_v47  ;;  %v298_v50 = vld [vmem:[%s16768_s7 + $0x388] sm:$0xff]  ;;  %v300_v51 = vld [vmem:[%s16768_s7 + $0x390] sm:$0xff] }
  0x3a   :  { %295 = vst [vmem:[#allocation5 + $0x378] sm:$0xff] %v294_v48  ;;  %297 = vst [vmem:[#allocation5 + $0x380] sm:$0xff] %v296_v49  ;;  %v302_v52 = vld [vmem:[%s16768_s7 + $0x398] sm:$0xff]  ;;  %v304_v53 = vld [vmem:[%s16768_s7 + $0x3a0] sm:$0xff] }
  0x3b   :  { %299 = vst [vmem:[#allocation5 + $0x388] sm:$0xff] %v298_v50  ;;  %301 = vst [vmem:[#allocation5 + $0x390] sm:$0xff] %v300_v51  ;;  %v306_v54 = vld [vmem:[%s16768_s7 + $0x3a8] sm:$0xff]  ;;  %v308_v55 = vld [vmem:[%s16768_s7 + $0x3b0] sm:$0xff] }
  0x3c   :  { %303 = vst [vmem:[#allocation5 + $0x398] sm:$0xff] %v302_v52  ;;  %305 = vst [vmem:[#allocation5 + $0x3a0] sm:$0xff] %v304_v53  ;;  %v310_v56 = vld [vmem:[%s16768_s7 + $0x3b8] sm:$0xff]  ;;  %v312_v57 = vld [vmem:[%s16768_s7 + $0x3c0] sm:$0xff] }
  0x3d   :  { %307 = vst [vmem:[#allocation5 + $0x3a8] sm:$0xff] %v306_v54  ;;  %309 = vst [vmem:[#allocation5 + $0x3b0] sm:$0xff] %v308_v55  ;;  %v314_v58 = vld [vmem:[%s16768_s7 + $0x3c8] sm:$0xff]  ;;  %v316_v59 = vld [vmem:[%s16768_s7 + $0x3d0] sm:$0xff] }
  0x3e   :  { %311 = vst [vmem:[#allocation5 + $0x3b8] sm:$0xff] %v310_v56  ;;  %313 = vst [vmem:[#allocation5 + $0x3c0] sm:$0xff] %v312_v57  ;;  %v318_v60 = vld [vmem:[%s16768_s7 + $0x3d8] sm:$0xff]  ;;  %v320_v61 = vld [vmem:[%s16768_s7 + $0x3e0] sm:$0xff] }
  0x3f   :  { %315 = vst [vmem:[#allocation5 + $0x3c8] sm:$0xff] %v314_v58  ;;  %317 = vst [vmem:[#allocation5 + $0x3d0] sm:$0xff] %v316_v59  ;;  %v322_v62 = vld [vmem:[%s16768_s7 + $0x3e8] sm:$0xff]  ;;  %v324_v63 = vld [vmem:[%s16768_s7 + $0x3f0] sm:$0xff] }
  0x40   :  { %319 = vst [vmem:[#allocation5 + $0x3d8] sm:$0xff] %v318_v60  ;;  %321 = vst [vmem:[#allocation5 + $0x3e0] sm:$0xff] %v320_v61  ;;  %v326_v0 = vld [vmem:[%s16768_s7 + $0x3f8] sm:$0xff]  ;;  %v328_v1 = vld [vmem:[%s16768_s7 + $0x400] sm:$0xff] }
  0x41   :  { %323 = vst [vmem:[#allocation5 + $0x3e8] sm:$0xff] %v322_v62  ;;  %325 = vst [vmem:[#allocation5 + $0x3f0] sm:$0xff] %v324_v63  ;;  %v330_v2 = vld [vmem:[%s16768_s7 + $0x408] sm:$0xff]  ;;  %v332_v3 = vld [vmem:[%s16768_s7 + $0x410] sm:$0xff] }
  0x42   :  { %327 = vst [vmem:[#allocation5 + $0x3f8] sm:$0xff] %v326_v0  ;;  %329 = vst [vmem:[#allocation5 + $0x400] sm:$0xff] %v328_v1  ;;  %v334_v4 = vld [vmem:[%s16768_s7 + $0x418] sm:$0xff]  ;;  %v336_v5 = vld [vmem:[%s16768_s7 + $0x420] sm:$0xff] }
  0x43   :  { %331 = vst [vmem:[#allocation5 + $0x408] sm:$0xff] %v330_v2  ;;  %333 = vst [vmem:[#allocation5 + $0x410] sm:$0xff] %v332_v3  ;;  %v338_v6 = vld [vmem:[%s16768_s7 + $0x428] sm:$0xff]  ;;  %v340_v7 = vld [vmem:[%s16768_s7 + $0x430] sm:$0xff] }
  0x44   :  { %335 = vst [vmem:[#allocation5 + $0x418] sm:$0xff] %v334_v4  ;;  %337 = vst [vmem:[#allocation5 + $0x420] sm:$0xff] %v336_v5  ;;  %v342_v8 = vld [vmem:[%s16768_s7 + $0x438] sm:$0xff]  ;;  %v344_v9 = vld [vmem:[%s16768_s7 + $0x440] sm:$0xff] }
  0x45   :  { %339 = vst [vmem:[#allocation5 + $0x428] sm:$0xff] %v338_v6  ;;  %341 = vst [vmem:[#allocation5 + $0x430] sm:$0xff] %v340_v7  ;;  %v346_v10 = vld [vmem:[%s16768_s7 + $0x448] sm:$0xff]  ;;  %v348_v11 = vld [vmem:[%s16768_s7 + $0x450] sm:$0xff] }
  0x46   :  { %343 = vst [vmem:[#allocation5 + $0x438] sm:$0xff] %v342_v8  ;;  %345 = vst [vmem:[#allocation5 + $0x440] sm:$0xff] %v344_v9  ;;  %v350_v12 = vld [vmem:[%s16768_s7 + $0x458] sm:$0xff]  ;;  %v352_v13 = vld [vmem:[%s16768_s7 + $0x460] sm:$0xff] }
  0x47   :  { %347 = vst [vmem:[#allocation5 + $0x448] sm:$0xff] %v346_v10  ;;  %349 = vst [vmem:[#allocation5 + $0x450] sm:$0xff] %v348_v11  ;;  %v354_v14 = vld [vmem:[%s16768_s7 + $0x468] sm:$0xff]  ;;  %v356_v15 = vld [vmem:[%s16768_s7 + $0x470] sm:$0xff] }
  0x48   :  { %351 = vst [vmem:[#allocation5 + $0x458] sm:$0xff] %v350_v12  ;;  %353 = vst [vmem:[#allocation5 + $0x460] sm:$0xff] %v352_v13  ;;  %v358_v16 = vld [vmem:[%s16768_s7 + $0x478] sm:$0xff]  ;;  %v360_v17 = vld [vmem:[%s16768_s7 + $0x480] sm:$0xff] }
  0x49   :  { %355 = vst [vmem:[#allocation5 + $0x468] sm:$0xff] %v354_v14  ;;  %357 = vst [vmem:[#allocation5 + $0x470] sm:$0xff] %v356_v15  ;;  %v362_v18 = vld [vmem:[%s16768_s7 + $0x488] sm:$0xff]  ;;  %v364_v19 = vld [vmem:[%s16768_s7 + $0x490] sm:$0xff] }
  0x4a   :  { %359 = vst [vmem:[#allocation5 + $0x478] sm:$0xff] %v358_v16  ;;  %361 = vst [vmem:[#allocation5 + $0x480] sm:$0xff] %v360_v17  ;;  %v366_v20 = vld [vmem:[%s16768_s7 + $0x498] sm:$0xff]  ;;  %v368_v21 = vld [vmem:[%s16768_s7 + $0x4a0] sm:$0xff] }
  0x4b   :  { %363 = vst [vmem:[#allocation5 + $0x488] sm:$0xff] %v362_v18  ;;  %365 = vst [vmem:[#allocation5 + $0x490] sm:$0xff] %v364_v19  ;;  %v370_v22 = vld [vmem:[%s16768_s7 + $0x4a8] sm:$0xff]  ;;  %v372_v23 = vld [vmem:[%s16768_s7 + $0x4b0] sm:$0xff] }
  0x4c   :  { %367 = vst [vmem:[#allocation5 + $0x498] sm:$0xff] %v366_v20  ;;  %369 = vst [vmem:[#allocation5 + $0x4a0] sm:$0xff] %v368_v21  ;;  %v374_v24 = vld [vmem:[%s16768_s7 + $0x4b8] sm:$0xff]  ;;  %v376_v25 = vld [vmem:[%s16768_s7 + $0x4c0] sm:$0xff] }
  0x4d   :  { %371 = vst [vmem:[#allocation5 + $0x4a8] sm:$0xff] %v370_v22  ;;  %373 = vst [vmem:[#allocation5 + $0x4b0] sm:$0xff] %v372_v23  ;;  %v378_v26 = vld [vmem:[%s16768_s7 + $0x4c8] sm:$0xff]  ;;  %v380_v27 = vld [vmem:[%s16768_s7 + $0x4d0] sm:$0xff] }
  0x4e   :  { %375 = vst [vmem:[#allocation5 + $0x4b8] sm:$0xff] %v374_v24  ;;  %377 = vst [vmem:[#allocation5 + $0x4c0] sm:$0xff] %v376_v25  ;;  %v382_v28 = vld [vmem:[%s16768_s7 + $0x4d8] sm:$0xff]  ;;  %v384_v29 = vld [vmem:[%s16768_s7 + $0x4e0] sm:$0xff] }
  0x4f   :  { %379 = vst [vmem:[#allocation5 + $0x4c8] sm:$0xff] %v378_v26  ;;  %381 = vst [vmem:[#allocation5 + $0x4d0] sm:$0xff] %v380_v27  ;;  %v386_v30 = vld [vmem:[%s16768_s7 + $0x4e8] sm:$0xff]  ;;  %v388_v31 = vld [vmem:[%s16768_s7 + $0x4f0] sm:$0xff] }
  0x50   :  { %383 = vst [vmem:[#allocation5 + $0x4d8] sm:$0xff] %v382_v28  ;;  %385 = vst [vmem:[#allocation5 + $0x4e0] sm:$0xff] %v384_v29  ;;  %v390_v32 = vld [vmem:[%s16768_s7 + $0x4f8] sm:$0xff]  ;;  %v392_v33 = vld [vmem:[%s16768_s7 + $0x500] sm:$0xff] }
  0x51   :  { %387 = vst [vmem:[#allocation5 + $0x4e8] sm:$0xff] %v386_v30  ;;  %389 = vst [vmem:[#allocation5 + $0x4f0] sm:$0xff] %v388_v31  ;;  %v394_v34 = vld [vmem:[%s16768_s7 + $0x508] sm:$0xff]  ;;  %v396_v35 = vld [vmem:[%s16768_s7 + $0x510] sm:$0xff] }
  0x52   :  { %391 = vst [vmem:[#allocation5 + $0x4f8] sm:$0xff] %v390_v32  ;;  %393 = vst [vmem:[#allocation5 + $0x500] sm:$0xff] %v392_v33  ;;  %v398_v36 = vld [vmem:[%s16768_s7 + $0x518] sm:$0xff]  ;;  %v400_v37 = vld [vmem:[%s16768_s7 + $0x520] sm:$0xff] }
  0x53   :  { %395 = vst [vmem:[#allocation5 + $0x508] sm:$0xff] %v394_v34  ;;  %397 = vst [vmem:[#allocation5 + $0x510] sm:$0xff] %v396_v35  ;;  %v402_v38 = vld [vmem:[%s16768_s7 + $0x528] sm:$0xff]  ;;  %v404_v39 = vld [vmem:[%s16768_s7 + $0x530] sm:$0xff] }
  0x54   :  { %399 = vst [vmem:[#allocation5 + $0x518] sm:$0xff] %v398_v36  ;;  %401 = vst [vmem:[#allocation5 + $0x520] sm:$0xff] %v400_v37  ;;  %v406_v40 = vld [vmem:[%s16768_s7 + $0x538] sm:$0xff]  ;;  %v408_v41 = vld [vmem:[%s16768_s7 + $0x540] sm:$0xff] }
  0x55   :  { %403 = vst [vmem:[#allocation5 + $0x528] sm:$0xff] %v402_v38  ;;  %405 = vst [vmem:[#allocation5 + $0x530] sm:$0xff] %v404_v39  ;;  %v410_v42 = vld [vmem:[%s16768_s7 + $0x548] sm:$0xff]  ;;  %v412_v43 = vld [vmem:[%s16768_s7 + $0x550] sm:$0xff] }
  0x56   :  { %407 = vst [vmem:[#allocation5 + $0x538] sm:$0xff] %v406_v40  ;;  %409 = vst [vmem:[#allocation5 + $0x540] sm:$0xff] %v408_v41  ;;  %v414_v44 = vld [vmem:[%s16768_s7 + $0x558] sm:$0xff]  ;;  %v416_v45 = vld [vmem:[%s16768_s7 + $0x560] sm:$0xff] }
  0x57   :  { %411 = vst [vmem:[#allocation5 + $0x548] sm:$0xff] %v410_v42  ;;  %413 = vst [vmem:[#allocation5 + $0x550] sm:$0xff] %v412_v43  ;;  %v418_v46 = vld [vmem:[%s16768_s7 + $0x568] sm:$0xff]  ;;  %v420_v47 = vld [vmem:[%s16768_s7 + $0x570] sm:$0xff] }
  0x58   :  { %415 = vst [vmem:[#allocation5 + $0x558] sm:$0xff] %v414_v44  ;;  %417 = vst [vmem:[#allocation5 + $0x560] sm:$0xff] %v416_v45  ;;  %v422_v48 = vld [vmem:[%s16768_s7 + $0x578] sm:$0xff]  ;;  %v424_v49 = vld [vmem:[%s16768_s7 + $0x580] sm:$0xff] }
  0x59   :  { %419 = vst [vmem:[#allocation5 + $0x568] sm:$0xff] %v418_v46  ;;  %421 = vst [vmem:[#allocation5 + $0x570] sm:$0xff] %v420_v47  ;;  %v426_v50 = vld [vmem:[%s16768_s7 + $0x588] sm:$0xff]  ;;  %v428_v51 = vld [vmem:[%s16768_s7 + $0x590] sm:$0xff] }
  0x5a   :  { %423 = vst [vmem:[#allocation5 + $0x578] sm:$0xff] %v422_v48  ;;  %425 = vst [vmem:[#allocation5 + $0x580] sm:$0xff] %v424_v49  ;;  %v430_v52 = vld [vmem:[%s16768_s7 + $0x598] sm:$0xff]  ;;  %v432_v53 = vld [vmem:[%s16768_s7 + $0x5a0] sm:$0xff] }
  0x5b   :  { %427 = vst [vmem:[#allocation5 + $0x588] sm:$0xff] %v426_v50  ;;  %429 = vst [vmem:[#allocation5 + $0x590] sm:$0xff] %v428_v51  ;;  %v434_v54 = vld [vmem:[%s16768_s7 + $0x5a8] sm:$0xff]  ;;  %v436_v55 = vld [vmem:[%s16768_s7 + $0x5b0] sm:$0xff] }
  0x5c   :  { %431 = vst [vmem:[#allocation5 + $0x598] sm:$0xff] %v430_v52  ;;  %433 = vst [vmem:[#allocation5 + $0x5a0] sm:$0xff] %v432_v53  ;;  %v438_v56 = vld [vmem:[%s16768_s7 + $0x5b8] sm:$0xff]  ;;  %v440_v57 = vld [vmem:[%s16768_s7 + $0x5c0] sm:$0xff] }
  0x5d   :  { %435 = vst [vmem:[#allocation5 + $0x5a8] sm:$0xff] %v434_v54  ;;  %437 = vst [vmem:[#allocation5 + $0x5b0] sm:$0xff] %v436_v55  ;;  %v442_v58 = vld [vmem:[%s16768_s7 + $0x5c8] sm:$0xff]  ;;  %v444_v59 = vld [vmem:[%s16768_s7 + $0x5d0] sm:$0xff] }
  0x5e   :  { %439 = vst [vmem:[#allocation5 + $0x5b8] sm:$0xff] %v438_v56  ;;  %441 = vst [vmem:[#allocation5 + $0x5c0] sm:$0xff] %v440_v57  ;;  %v446_v60 = vld [vmem:[%s16768_s7 + $0x5d8] sm:$0xff]  ;;  %v448_v61 = vld [vmem:[%s16768_s7 + $0x5e0] sm:$0xff] }
  0x5f   :  { %443 = vst [vmem:[#allocation5 + $0x5c8] sm:$0xff] %v442_v58  ;;  %445 = vst [vmem:[#allocation5 + $0x5d0] sm:$0xff] %v444_v59  ;;  %v450_v62 = vld [vmem:[%s16768_s7 + $0x5e8] sm:$0xff]  ;;  %v452_v63 = vld [vmem:[%s16768_s7 + $0x5f0] sm:$0xff] }
  0x60   :  { %447 = vst [vmem:[#allocation5 + $0x5d8] sm:$0xff] %v446_v60  ;;  %449 = vst [vmem:[#allocation5 + $0x5e0] sm:$0xff] %v448_v61  ;;  %v454_v0 = vld [vmem:[%s16768_s7 + $0x5f8] sm:$0xff]  ;;  %v456_v1 = vld [vmem:[%s16768_s7 + $0x600] sm:$0xff] }
  0x61   :  { %451 = vst [vmem:[#allocation5 + $0x5e8] sm:$0xff] %v450_v62  ;;  %453 = vst [vmem:[#allocation5 + $0x5f0] sm:$0xff] %v452_v63  ;;  %v458_v2 = vld [vmem:[%s16768_s7 + $0x608] sm:$0xff]  ;;  %v460_v3 = vld [vmem:[%s16768_s7 + $0x610] sm:$0xff] }
  0x62   :  { %455 = vst [vmem:[#allocation5 + $0x5f8] sm:$0xff] %v454_v0  ;;  %457 = vst [vmem:[#allocation5 + $0x600] sm:$0xff] %v456_v1  ;;  %v462_v4 = vld [vmem:[%s16768_s7 + $0x618] sm:$0xff]  ;;  %v464_v5 = vld [vmem:[%s16768_s7 + $0x620] sm:$0xff] }
  0x63   :  { %459 = vst [vmem:[#allocation5 + $0x608] sm:$0xff] %v458_v2  ;;  %461 = vst [vmem:[#allocation5 + $0x610] sm:$0xff] %v460_v3  ;;  %v466_v6 = vld [vmem:[%s16768_s7 + $0x628] sm:$0xff]  ;;  %v468_v7 = vld [vmem:[%s16768_s7 + $0x630] sm:$0xff] }
  0x64   :  { %463 = vst [vmem:[#allocation5 + $0x618] sm:$0xff] %v462_v4  ;;  %465 = vst [vmem:[#allocation5 + $0x620] sm:$0xff] %v464_v5  ;;  %v470_v8 = vld [vmem:[%s16768_s7 + $0x638] sm:$0xff]  ;;  %v472_v9 = vld [vmem:[%s16768_s7 + $0x640] sm:$0xff] }
  0x65   :  { %467 = vst [vmem:[#allocation5 + $0x628] sm:$0xff] %v466_v6  ;;  %469 = vst [vmem:[#allocation5 + $0x630] sm:$0xff] %v468_v7  ;;  %v474_v10 = vld [vmem:[%s16768_s7 + $0x648] sm:$0xff]  ;;  %v476_v11 = vld [vmem:[%s16768_s7 + $0x650] sm:$0xff] }
  0x66   :  { %471 = vst [vmem:[#allocation5 + $0x638] sm:$0xff] %v470_v8  ;;  %473 = vst [vmem:[#allocation5 + $0x640] sm:$0xff] %v472_v9  ;;  %v478_v12 = vld [vmem:[%s16768_s7 + $0x658] sm:$0xff]  ;;  %v480_v13 = vld [vmem:[%s16768_s7 + $0x660] sm:$0xff] }
  0x67   :  { %475 = vst [vmem:[#allocation5 + $0x648] sm:$0xff] %v474_v10  ;;  %477 = vst [vmem:[#allocation5 + $0x650] sm:$0xff] %v476_v11  ;;  %v482_v14 = vld [vmem:[%s16768_s7 + $0x668] sm:$0xff]  ;;  %v484_v15 = vld [vmem:[%s16768_s7 + $0x670] sm:$0xff] }
  0x68   :  { %479 = vst [vmem:[#allocation5 + $0x658] sm:$0xff] %v478_v12  ;;  %481 = vst [vmem:[#allocation5 + $0x660] sm:$0xff] %v480_v13  ;;  %v486_v16 = vld [vmem:[%s16768_s7 + $0x678] sm:$0xff]  ;;  %v488_v17 = vld [vmem:[%s16768_s7 + $0x680] sm:$0xff] }
  0x69   :  { %483 = vst [vmem:[#allocation5 + $0x668] sm:$0xff] %v482_v14  ;;  %485 = vst [vmem:[#allocation5 + $0x670] sm:$0xff] %v484_v15  ;;  %v490_v18 = vld [vmem:[%s16768_s7 + $0x688] sm:$0xff]  ;;  %v492_v19 = vld [vmem:[%s16768_s7 + $0x690] sm:$0xff] }
  0x6a   :  { %487 = vst [vmem:[#allocation5 + $0x678] sm:$0xff] %v486_v16  ;;  %489 = vst [vmem:[#allocation5 + $0x680] sm:$0xff] %v488_v17  ;;  %v494_v20 = vld [vmem:[%s16768_s7 + $0x698] sm:$0xff]  ;;  %v496_v21 = vld [vmem:[%s16768_s7 + $0x6a0] sm:$0xff] }
  0x6b   :  { %491 = vst [vmem:[#allocation5 + $0x688] sm:$0xff] %v490_v18  ;;  %493 = vst [vmem:[#allocation5 + $0x690] sm:$0xff] %v492_v19  ;;  %v498_v22 = vld [vmem:[%s16768_s7 + $0x6a8] sm:$0xff]  ;;  %v500_v23 = vld [vmem:[%s16768_s7 + $0x6b0] sm:$0xff] }
  0x6c   :  { %495 = vst [vmem:[#allocation5 + $0x698] sm:$0xff] %v494_v20  ;;  %497 = vst [vmem:[#allocation5 + $0x6a0] sm:$0xff] %v496_v21  ;;  %v502_v24 = vld [vmem:[%s16768_s7 + $0x6b8] sm:$0xff]  ;;  %v504_v25 = vld [vmem:[%s16768_s7 + $0x6c0] sm:$0xff] }
  0x6d   :  { %499 = vst [vmem:[#allocation5 + $0x6a8] sm:$0xff] %v498_v22  ;;  %501 = vst [vmem:[#allocation5 + $0x6b0] sm:$0xff] %v500_v23  ;;  %v506_v26 = vld [vmem:[%s16768_s7 + $0x6c8] sm:$0xff]  ;;  %v508_v27 = vld [vmem:[%s16768_s7 + $0x6d0] sm:$0xff] }
  0x6e   :  { %503 = vst [vmem:[#allocation5 + $0x6b8] sm:$0xff] %v502_v24  ;;  %505 = vst [vmem:[#allocation5 + $0x6c0] sm:$0xff] %v504_v25  ;;  %v510_v28 = vld [vmem:[%s16768_s7 + $0x6d8] sm:$0xff]  ;;  %v512_v29 = vld [vmem:[%s16768_s7 + $0x6e0] sm:$0xff] }
  0x6f   :  { %507 = vst [vmem:[#allocation5 + $0x6c8] sm:$0xff] %v506_v26  ;;  %509 = vst [vmem:[#allocation5 + $0x6d0] sm:$0xff] %v508_v27  ;;  %v514_v30 = vld [vmem:[%s16768_s7 + $0x6e8] sm:$0xff]  ;;  %v516_v31 = vld [vmem:[%s16768_s7 + $0x6f0] sm:$0xff] }
  0x70   :  { %511 = vst [vmem:[#allocation5 + $0x6d8] sm:$0xff] %v510_v28  ;;  %513 = vst [vmem:[#allocation5 + $0x6e0] sm:$0xff] %v512_v29  ;;  %v518_v32 = vld [vmem:[%s16768_s7 + $0x6f8] sm:$0xff]  ;;  %v520_v33 = vld [vmem:[%s16768_s7 + $0x700] sm:$0xff] }
  0x71   :  { %515 = vst [vmem:[#allocation5 + $0x6e8] sm:$0xff] %v514_v30  ;;  %517 = vst [vmem:[#allocation5 + $0x6f0] sm:$0xff] %v516_v31  ;;  %v522_v34 = vld [vmem:[%s16768_s7 + $0x708] sm:$0xff]  ;;  %v524_v35 = vld [vmem:[%s16768_s7 + $0x710] sm:$0xff] }
  0x72   :  { %519 = vst [vmem:[#allocation5 + $0x6f8] sm:$0xff] %v518_v32  ;;  %521 = vst [vmem:[#allocation5 + $0x700] sm:$0xff] %v520_v33  ;;  %v526_v36 = vld [vmem:[%s16768_s7 + $0x718] sm:$0xff]  ;;  %v528_v37 = vld [vmem:[%s16768_s7 + $0x720] sm:$0xff] }
  0x73   :  { %523 = vst [vmem:[#allocation5 + $0x708] sm:$0xff] %v522_v34  ;;  %525 = vst [vmem:[#allocation5 + $0x710] sm:$0xff] %v524_v35  ;;  %v530_v38 = vld [vmem:[%s16768_s7 + $0x728] sm:$0xff]  ;;  %v532_v39 = vld [vmem:[%s16768_s7 + $0x730] sm:$0xff] }
  0x74   :  { %527 = vst [vmem:[#allocation5 + $0x718] sm:$0xff] %v526_v36  ;;  %529 = vst [vmem:[#allocation5 + $0x720] sm:$0xff] %v528_v37  ;;  %v534_v40 = vld [vmem:[%s16768_s7 + $0x738] sm:$0xff]  ;;  %v536_v41 = vld [vmem:[%s16768_s7 + $0x740] sm:$0xff] }
  0x75   :  { %531 = vst [vmem:[#allocation5 + $0x728] sm:$0xff] %v530_v38  ;;  %533 = vst [vmem:[#allocation5 + $0x730] sm:$0xff] %v532_v39  ;;  %v538_v42 = vld [vmem:[%s16768_s7 + $0x748] sm:$0xff]  ;;  %v540_v43 = vld [vmem:[%s16768_s7 + $0x750] sm:$0xff] }
  0x76   :  { %535 = vst [vmem:[#allocation5 + $0x738] sm:$0xff] %v534_v40  ;;  %537 = vst [vmem:[#allocation5 + $0x740] sm:$0xff] %v536_v41  ;;  %v542_v44 = vld [vmem:[%s16768_s7 + $0x758] sm:$0xff]  ;;  %v544_v45 = vld [vmem:[%s16768_s7 + $0x760] sm:$0xff] }
  0x77   :  { %539 = vst [vmem:[#allocation5 + $0x748] sm:$0xff] %v538_v42  ;;  %541 = vst [vmem:[#allocation5 + $0x750] sm:$0xff] %v540_v43  ;;  %v546_v46 = vld [vmem:[%s16768_s7 + $0x768] sm:$0xff]  ;;  %v548_v47 = vld [vmem:[%s16768_s7 + $0x770] sm:$0xff] }
  0x78   :  { %543 = vst [vmem:[#allocation5 + $0x758] sm:$0xff] %v542_v44  ;;  %545 = vst [vmem:[#allocation5 + $0x760] sm:$0xff] %v544_v45  ;;  %v550_v48 = vld [vmem:[%s16768_s7 + $0x778] sm:$0xff]  ;;  %v552_v49 = vld [vmem:[%s16768_s7 + $0x780] sm:$0xff] }
  0x79   :  { %547 = vst [vmem:[#allocation5 + $0x768] sm:$0xff] %v546_v46  ;;  %549 = vst [vmem:[#allocation5 + $0x770] sm:$0xff] %v548_v47  ;;  %v554_v50 = vld [vmem:[%s16768_s7 + $0x788] sm:$0xff]  ;;  %v556_v51 = vld [vmem:[%s16768_s7 + $0x790] sm:$0xff] }
  0x7a   :  { %551 = vst [vmem:[#allocation5 + $0x778] sm:$0xff] %v550_v48  ;;  %553 = vst [vmem:[#allocation5 + $0x780] sm:$0xff] %v552_v49  ;;  %v558_v52 = vld [vmem:[%s16768_s7 + $0x798] sm:$0xff]  ;;  %v560_v53 = vld [vmem:[%s16768_s7 + $0x7a0] sm:$0xff] }
  0x7b   :  { %555 = vst [vmem:[#allocation5 + $0x788] sm:$0xff] %v554_v50  ;;  %557 = vst [vmem:[#allocation5 + $0x790] sm:$0xff] %v556_v51  ;;  %v562_v54 = vld [vmem:[%s16768_s7 + $0x7a8] sm:$0xff]  ;;  %v564_v55 = vld [vmem:[%s16768_s7 + $0x7b0] sm:$0xff] }
  0x7c   :  { %559 = vst [vmem:[#allocation5 + $0x798] sm:$0xff] %v558_v52  ;;  %561 = vst [vmem:[#allocation5 + $0x7a0] sm:$0xff] %v560_v53  ;;  %v566_v56 = vld [vmem:[%s16768_s7 + $0x7b8] sm:$0xff]  ;;  %v568_v57 = vld [vmem:[%s16768_s7 + $0x7c0] sm:$0xff] }
  0x7d   :  { %563 = vst [vmem:[#allocation5 + $0x7a8] sm:$0xff] %v562_v54  ;;  %565 = vst [vmem:[#allocation5 + $0x7b0] sm:$0xff] %v564_v55  ;;  %v570_v58 = vld [vmem:[%s16768_s7 + $0x7c8] sm:$0xff]  ;;  %v572_v59 = vld [vmem:[%s16768_s7 + $0x7d0] sm:$0xff] }
  0x7e   :  { %567 = vst [vmem:[#allocation5 + $0x7b8] sm:$0xff] %v566_v56  ;;  %569 = vst [vmem:[#allocation5 + $0x7c0] sm:$0xff] %v568_v57  ;;  %v574_v60 = vld [vmem:[%s16768_s7 + $0x7d8] sm:$0xff]  ;;  %v576_v61 = vld [vmem:[%s16768_s7 + $0x7e0] sm:$0xff] }
  0x7f   :  { %571 = vst [vmem:[#allocation5 + $0x7c8] sm:$0xff] %v570_v58  ;;  %573 = vst [vmem:[#allocation5 + $0x7d0] sm:$0xff] %v572_v59  ;;  %v578_v62 = vld [vmem:[%s16768_s7 + $0x7e8] sm:$0xff]  ;;  %v580_v63 = vld [vmem:[%s16768_s7 + $0x7f0] sm:$0xff] }
  0x80   :  { %575 = vst [vmem:[#allocation5 + $0x7d8] sm:$0xff] %v574_v60  ;;  %577 = vst [vmem:[#allocation5 + $0x7e0] sm:$0xff] %v576_v61  ;;  %v582_v0 = vld [vmem:[%s16768_s7 + $0x7f8] sm:$0xff] }
  0x81   :  { %579 = vst [vmem:[#allocation5 + $0x7e8] sm:$0xff] %v578_v62  ;;  %581 = vst [vmem:[#allocation5 + $0x7f0] sm:$0xff] %v580_v63 }
  0x82   :  { %583 = vst [vmem:[#allocation5 + $0x7f8] sm:$0xff] %v582_v0 }
  0x83   :  { %591 = vsyncadd [#allocation6], 32768  ;;  %v12627_v1 = vld [vmem:[%s16758_s1 + $0x38] sm:$0xff]   ;;  %v12628_v2 = vld [vmem:[%s16758_s1 + $0x30] sm:$0xff]   ;;  %v13258_v3 = vmov 0   ;;  %vm892_vm0 = vcmask 1044480  }
  0x84   :  { %784 = vst [vmem:[#allocation2] sm:$0xf] %v13258_v3  ;;  %785 = vst [vmem:[#allocation2 + $0x4] sm:$0xf] %v13258_v3  ;;  %12552 = vset.pattern.permute.xlu1 %v13258_v3  ;;  %12551 = vset.pattern.permute.xlu0 %v13258_v3  ;;  %v12629_v4 = vld [vmem:[%s16758_s1 + $0x28] sm:$0xff]   ;;  %v12630_v5 = vld [vmem:[%s16758_s1 + $0x20] sm:$0xff]  }
  0x85   :  { %786 = vst [vmem:[#allocation2 + $0x8] sm:$0xf] %v13258_v3  ;;  %787 = vst [vmem:[#allocation2 + $0xc] sm:$0xf] %v13258_v3  ;;  %11851 = vmatprep.subr.bf16.mxu0 %v12627_v1  ;;  %v12635_v6 = vld [vmem:[%s16757_s0] sm:$0xff]   ;;  %v12631_v7 = vld [vmem:[%s16758_s1 + $0x18] sm:$0xff]  }
  0x86   :  { %788 = vst [vmem:[#allocation2 + $0x10] sm:$0xf] %v13258_v3  ;;  %789 = vst [vmem:[#allocation2 + $0x14] sm:$0xf] %v13258_v3  ;;  %11852 = vmatpush3.bf16.msra.mxu0 %v12627_v1  ;;  %11867 = vmatprep.mubr.bf16.mxu0 %v12635_v6  ;;  %v12639_v8 = vld [vmem:[%s16761_s4 + $0x38] sm:$0xff]   ;;  %v12641_v9 = vld [vmem:[%s16761_s4 + $0x30] sm:$0xff]  }
  0x87   :  { %790 = vst [vmem:[#allocation2 + $0x38] sm:$0xf] %v13258_v3  ;;  %791 = vst [vmem:[#allocation2 + $0x3c] sm:$0xf] %v13258_v3  ;;  %11853 = vmatprep.subr.bf16.mxu0 %v12628_v2  ;;  %11875 = vmatprep.subr.bf16.mxu1 %v12639_v8  ;;  %v12632_v10 = vld [vmem:[%s16758_s1 + $0x10] sm:$0xff]   ;;  %v12643_v11 = vld [vmem:[%s16761_s4 + $0x28] sm:$0xff]  }
  0x88   :  { %792 = vst [vmem:[#allocation2 + $0x40] sm:$0xf] %v13258_v3  ;;  %793 = vst [vmem:[#allocation2 + $0x44] sm:$0xf] %v13258_v3  ;;  %11876 = vmatpush3.bf16.msra.mxu1 %v12639_v8  ;;  %v12633_v12 = vld [vmem:[%s16758_s1 + $0x8] sm:$0xff]   ;;  %v12645_v13 = vld [vmem:[%s16761_s4 + $0x20] sm:$0xff]  }
  0x89   :  { %794 = vst [vmem:[#allocation2 + $0x48] sm:$0xf] %v13258_v3  ;;  %795 = vst [vmem:[#allocation2 + $0x4c] sm:$0xf] %v13258_v3  ;;  %11877 = vmatprep.subr.bf16.mxu1 %v12641_v9  ;;  %v12634_v14 = vld [vmem:[%s16758_s1] sm:$0xff]   ;;  %v12647_v15 = vld [vmem:[%s16761_s4 + $0x18] sm:$0xff]  }
  0x8a   :  { %11854 = vmatpush3.bf16.msra.mxu0 %v12628_v2  ;;  %v12640_v16 = vld [vmem:[%s16761_s4 + $0x78] sm:$0xff]   ;;  %v12649_v17 = vld [vmem:[%s16761_s4 + $0x10] sm:$0xff]   ;;  %v12636_v27 = vld [vmem:[%s16757_s0 + $0x8] sm:$0xff]   ;;  %v13259_v51 = vmov 1   ;;  %v13260_v55 = vmov 2   ;;  %v13261_v56 = vmov 3  }
  0x8b   :  { %11855 = vmatprep.subr.bf16.mxu0 %v12629_v4  ;;  %v836_v18 = vld [vmem:[#allocation2] sm:$0x8]  ;;  %v837_v19 = vld [vmem:[#allocation2 + $0x4] sm:$0xf]  ;;  %v14173_v26 = vld [vmem:[%s16760_s3 + $0x10] sm:$0xff]  ;;  %v13262_v58 = vmov 4  }
  0x8c   :  { %11878 = vmatpush3.bf16.msra.mxu1 %v12641_v9  ;;  %v838_v20 = vld [vmem:[#allocation2 + $0x8] sm:$0xf]  ;;  %v14165_v21 = vld [vmem:[#allocation2 + $0xc] sm:$0xf]  ;;  %v10058_v23 = vcombine.low %v836_v18, %v837_v19  ;;  %v12637_v28 = vld [vmem:[%s16757_s0 + $0x10] sm:$0xff]   ;;  %1031 = vperm.xlu1 %12552, %v14173_v26   ;;  %vm1313_vm9 = vcmask 1046528  }
  0x8d   :  { %11879 = vmatprep.subr.bf16.mxu1 %v12643_v11  ;;  %v14167_v22 = vld [vmem:[#allocation2 + $0x10] sm:$0xf]  ;;  %v10059_v24 = vcombine.low %v838_v20, %v14165_v21  ;;  %v841_v25 = vld [vmem:[#allocation2 + $0x14] sm:$0xf]  ;;  %v12651_v32 = vld [vmem:[%s16761_s4 + $0x8] sm:$0xff]   ;;  %v10087_v44 = vcombine.low %v837_v19, %v838_v20 }
  0x8e   :  { %11856 = vmatpush3.bf16.msra.mxu0 %v12629_v4  ;;  %v893_v29 = vrot.slane %v10058_v23, 3  ;;  %v10060_v30 = vcombine.low %v14167_v22, %v841_v25  ;;  %v12642_v31 = vld [vmem:[%s16761_s4 + $0x70] sm:$0xff]   ;;  %v14192_v34 = vld [vmem:[%s16760_s3] sm:$0xff]  ;;  %v14199_v36 = vld [vmem:[%s16760_s3 + $0x18] sm:$0xff]  ;;  %v10088_v54 = vcombine.low %v14165_v21, %v14167_v22  ;;  %v13263_v4 = vmov 5  }
  0x8f   :  { %11857 = vmatprep.subr.bf16.mxu0 %v12630_v5  ;;  %v894_v33 = vrot.slane %v10059_v24, 3  ;;  %1021 = vperm.xlu0 %12551, %v14192_v34   ;;  %v12644_v38 = vld [vmem:[%s16761_s4 + $0x68] sm:$0xff]   ;;  %v12653_v39 = vld [vmem:[%s16761_s4] sm:$0xff]   ;;  %v12638_v41 = vld [vmem:[%s16757_s0 + $0x18] sm:$0xff]   ;;  %v13267_v25 = vmov 9  }
  0x90   :  { %11880 = vmatpush3.bf16.msra.mxu1 %v12643_v11  ;;  %v14194_v35 = vrot.slane %v10060_v30, 3  ;;  %v14212_v40 = vld [vmem:[%s16760_s3 + $0x8] sm:$0xff]  ;;  %1036 = vperm.xlu1 %12552, %v14199_v36   ;;  %v12646_v43 = vld [vmem:[%s16761_s4 + $0x60] sm:$0xff]   ;;  %v14235_v46 = vld [vmem:[%s16760_s3 + $0x38] sm:$0xff] }
  0x91   :  { %11881 = vmatprep.subr.bf16.mxu1 %v12645_v13  ;;  %v895_v37 = vsel %vm892_vm0, %v893_v29, %v894_v33  ;;  %v14220_v42 = vld [vmem:[%s16760_s3 + $0x28] sm:$0xff]  ;;  %v14230_v45 = vld [vmem:[%s16760_s3 + $0x20] sm:$0xff]  ;;  %v12648_v47 = vld [vmem:[%s16761_s4 + $0x58] sm:$0xff]  }
  0x92   :  { %11858 = vmatpush3.bf16.msra.mxu0 %v12630_v5  ;;  %11891 = vmatprep.mubr.bf16.mxu1 %v895_v37  ;;  %v14245_v48 = vld [vmem:[%s16760_s3 + $0x30] sm:$0xff]  ;;  %v897_v49 = vsel %vm892_vm0, %v894_v33, %v14194_v35  ;;  %v12652_v52 = vld [vmem:[%s16761_s4 + $0x48] sm:$0xff]   ;;  %v12654_v53 = vld [vmem:[%s16761_s4 + $0x40] sm:$0xff]  }
  0x93   :  { %11859 = vmatprep.subr.bf16.mxu0 %v12631_v7  ;;  %1026 = vperm.xlu0 %12551, %v14212_v40   ;;  %v12650_v50 = vld [vmem:[%s16761_s4 + $0x50] sm:$0xff]   ;;  %v12659_v57 = vld [vmem:[%s16761_s4 + $0xf8] sm:$0xff]   ;;  %v12663_v62 = vld [vmem:[%s16761_s4 + $0xe8] sm:$0xff]  }
  0x94   :  { %11882 = vmatpush3.bf16.msra.mxu1 %v12645_v13  ;;  %1046 = vperm.xlu1 %12552, %v14220_v42   ;;  %v12660_v59 = vld [vmem:[%s16761_s4 + $0xb8] sm:$0xff]   ;;  %v12661_v60 = vld [vmem:[%s16761_s4 + $0xf0] sm:$0xff]   ;;  %v12664_v63 = vld [vmem:[%s16761_s4 + $0xa8] sm:$0xff]   ;;  %v13264_v13 = vmov 6  }
  0x95   :  { %11883 = vmatprep.subr.bf16.mxu1 %v12647_v15  ;;  %v12662_v61 = vld [vmem:[%s16761_s4 + $0xb0] sm:$0xff]   ;;  %v12665_v0 = vld [vmem:[%s16761_s4 + $0xe0] sm:$0xff]   ;;  %v12667_v2 = vld [vmem:[%s16761_s4 + $0xd8] sm:$0xff]  }
  0x96   :  { %11860 = vmatpush3.bf16.msra.mxu0 %v12631_v7  ;;  %v12666_v1 = vld [vmem:[%s16761_s4 + $0xa0] sm:$0xff]   ;;  %v12668_v3 = vld [vmem:[%s16761_s4 + $0x98] sm:$0xff]   ;;  %v12669_v5 = vld [vmem:[%s16761_s4 + $0xd0] sm:$0xff]  }
  0x97   :  { %11861 = vmatprep.subr.bf16.mxu0 %v12632_v10  ;;  %1041 = vperm.xlu0 %12551, %v14230_v45   ;;  %v12670_v6 = vld [vmem:[%s16761_s4 + $0x90] sm:$0xff]   ;;  %v12671_v7 = vld [vmem:[%s16761_s4 + $0xc8] sm:$0xff]   ;;  %v12676_v9 = vld [vmem:[%s16761_s4 + $0xc0] sm:$0xff]  }
  0x98   :  { %11884 = vmatpush3.bf16.msra.mxu1 %v12647_v15  ;;  %1056 = vperm.xlu1 %12552, %v14235_v46   ;;  %v12674_v8 = vld [vmem:[%s16761_s4 + $0x88] sm:$0xff]   ;;  %v14349_v11 = vld [vmem:[%s16761_s4 + $0x178] sm:$0xff]   ;;  %v14402_v22 = vld [vmem:[%s16760_s3] sm:$0xff] }
  0x99   :  { %11885 = vmatprep.subr.bf16.mxu1 %v12649_v17  ;;  %v14388_v19 = vld [vmem:[%s16760_s3 + $0x8] sm:$0xff]  ;;  %v14411_v24 = vld [vmem:[%s16760_s3 + $0x18] sm:$0xff]  ;;  %v14455_v37 = vld [vmem:[%s16760_s3 + $0x30] sm:$0xff] }
  0x9a   :  { %11862 = vmatpush3.bf16.msra.mxu0 %v12632_v10  ;;  %v12677_v10 = vld [vmem:[%s16761_s4 + $0x80] sm:$0xff]   ;;  %v14429_v29 = vld [vmem:[%s16760_s3 + $0x38] sm:$0xff] }
  0x9b   :  { %11863 = vmatprep.subr.bf16.mxu0 %v12633_v12  ;;  %1051 = vperm.xlu0 %12551, %v14245_v48  }
  0x9c   :  { %11886 = vmatpush3.bf16.msra.mxu1 %v12649_v17  ;;  %12554 = vset.pattern.permute.xlu1 %v13259_v51  ;;  %v13266_v17 = vmov 8  }
  0x9d   :  { %11887 = vmatprep.subr.bf16.mxu1 %v12651_v32  ;;  %1221 = vperm.xlu1 %12554, %v14212_v40  }
  0x9e   :  { %11864 = vmatpush3.bf16.msra.mxu0 %v12633_v12  ;;  %v14357_v12 = vld [vmem:[%s16761_s4 + $0x138] sm:$0xff]  }
  0x9f   :  { %11865 = vmatprep.subr.bf16.mxu0 %v12634_v14  ;;  %12553 = vset.pattern.permute.xlu0 %v13259_v51 }
  0xa0   :  { %11888 = vmatpush3.bf16.msra.mxu1 %v12651_v32  ;;  %1217 = vperm.xlu0 %12553, %v14192_v34   ;;  %v13268_v32 = vmov 10  }
  0xa1   :  { %11889 = vmatprep.subr.bf16.mxu1 %v12653_v39  ;;  %1225 = vperm.xlu1 %12554, %v14173_v26  }
  0xa2   :  { %11866 = vmatpush3.bf16.msra.mxu0 %v12634_v14  ;;  %v13265_v14 = vmov 7  }
  0xa3   :  { %11899 = vmatprep.subr.bf16.mxu0 %v12640_v16 }
  0xa4   :  { %11890 = vmatpush3.bf16.msra.mxu1 %v12653_v39  ;;  %1229 = vperm.xlu0 %12553, %v14199_v36  }
  0xa5   :  { %11868 = vmatmul.mubr.bf16.vlgmr.msra.gmra.mxu0 %v12636_v27  ;;  %1233 = vperm.xlu1 %12554, %v14230_v45   ;;  %v14420_v27 = vld [vmem:[%s16760_s3 + $0x28] sm:$0xff] }
  0xa6   :  { %11871 = vmatprep.mubr.bf16.mxu0 %v12637_v28  ;;  %11900 = vmatpush3.bf16.msra.mxu0 %v12640_v16  ;;  %v14380_v16 = vld [vmem:[%s16760_s3 + $0x10] sm:$0xff] }
  0xa7   :  { %11901 = vmatprep.subr.bf16.mxu0 %v12642_v31  ;;  %11892 = vmatmul.mubr.bf16.vlgmr.msra.gmra.mxu1 %v897_v49 }
  0xa8   :  { %1237 = vperm.xlu0 %12553, %v14220_v42   ;;  %11923 = vmatprep.subr.bf16.mxu1 %v12660_v59 }
  0xa9   :  { %1241 = vperm.xlu1 %12554, %v14245_v48   ;;  %11924 = vmatpush3.bf16.msra.mxu1 %v12660_v59 }
  0xaa   :  { %11902 = vmatpush3.bf16.msra.mxu0 %v12642_v31  ;;  %11925 = vmatprep.subr.bf16.mxu1 %v12662_v61 }
  0xab   :  { %11903 = vmatprep.subr.bf16.mxu0 %v12644_v38 }
  0xac   :  { %1245 = vperm.xlu0 %12553, %v14235_v46  }
  0xad   :  { %11872 = vmatmul.mubr.bf16.gmra.mxu0 %v12638_v41  ;;  %12555 = vset.pattern.permute.xlu1 %v13260_v55 }
  0xae   :  { %11904 = vmatpush3.bf16.msra.mxu0 %v12644_v38  ;;  %11915 = vmatprep.mubr.bf16.mxu0 %v10087_v44 }
  0xaf   :  { %11905 = vmatprep.subr.bf16.mxu0 %v12646_v43  ;;  %1441 = vperm.xlu1 %12555, %v14192_v34  }
  0xb0   :  { %12556 = vset.pattern.permute.xlu0 %v13260_v55  ;;  %11926 = vmatpush3.bf16.msra.mxu1 %v12662_v61 }
  0xb1   :  { %1445 = vperm.xlu0 %12556, %v14212_v40   ;;  %11927 = vmatprep.subr.bf16.mxu1 %v12664_v63 }
  0xb2   :  { %11906 = vmatpush3.bf16.msra.mxu0 %v12646_v43 }
  0xb3   :  { %11907 = vmatprep.subr.bf16.mxu0 %v12648_v47  ;;  %1449 = vperm.xlu1 %12555, %v14173_v26  }
  0xb4   :  { %11928 = vmatpush3.bf16.msra.mxu1 %v12664_v63 }
  0xb5   :  { %1457 = vperm.xlu0 %12556, %v14230_v45   ;;  %11929 = vmatprep.subr.bf16.mxu1 %v12666_v1 }
  0xb6   :  { %11908 = vmatpush3.bf16.msra.mxu0 %v12648_v47 }
  0xb7   :  { %11909 = vmatprep.subr.bf16.mxu0 %v12650_v50  ;;  %1453 = vperm.xlu1 %12555, %v14199_v36  }
  0xb8   :  { %11930 = vmatpush3.bf16.msra.mxu1 %v12666_v1 }
  0xb9   :  { %1465 = vperm.xlu0 %12556, %v14245_v48   ;;  %11931 = vmatprep.subr.bf16.mxu1 %v12668_v3 }
  0xba   :  { %11910 = vmatpush3.bf16.msra.mxu0 %v12650_v50 }
  0xbb   :  { %11911 = vmatprep.subr.bf16.mxu0 %v12652_v52  ;;  %1461 = vperm.xlu1 %12555, %v14220_v42  }
  0xbc   :  { %11932 = vmatpush3.bf16.msra.mxu1 %v12668_v3 }
  0xbd   :  { %12557 = vset.pattern.permute.xlu0 %v13261_v56  ;;  %11933 = vmatprep.subr.bf16.mxu1 %v12670_v6 }
  0xbe   :  { %11912 = vmatpush3.bf16.msra.mxu0 %v12652_v52  ;;  %1640 = vperm.xlu0 %12557, %v14192_v34  }
  0xbf   :  { %11913 = vmatprep.subr.bf16.mxu0 %v12654_v53  ;;  %1469 = vperm.xlu1 %12555, %v14235_v46  }
  0xc0   :  { %11934 = vmatpush3.bf16.msra.mxu1 %v12670_v6  ;;  %v1488_v6 = vld [vmem:[#allocation2 + $0x4] sm:$0x8] }
  0xc1   :  { %11935 = vmatprep.subr.bf16.mxu1 %v12674_v8 }
  0xc2   :  { %11914 = vmatpush3.bf16.msra.mxu0 %v12654_v53  ;;  %1652 = vperm.xlu0 %12557, %v14199_v36  }
  0xc3   :  { %12558 = vset.pattern.permute.xlu1 %v13261_v56  ;;  %11947 = vmatprep.subr.bf16.mxu0 %v12659_v57 }
  0xc4   :  { %1644 = vperm.xlu1 %12558, %v14212_v40   ;;  %11936 = vmatpush3.bf16.msra.mxu1 %v12674_v8 }
  0xc5   :  { %11916 = vmatmul.mubr.bf16.vlgmr.msra.gmra.mxu0 %v10088_v54  ;;  %11937 = vmatprep.subr.bf16.mxu1 %v12677_v10 }
  0xc6   :  { %1660 = vperm.xlu0 %12557, %v14220_v42   ;;  %11948 = vmatpush3.bf16.msra.mxu0 %v12659_v57 }
  0xc7   :  { %11949 = vmatprep.subr.bf16.mxu0 %v12661_v60 }
  0xc8   :  { %1648 = vperm.xlu1 %12558, %v14173_v26   ;;  %11938 = vmatpush3.bf16.msra.mxu1 %v12677_v10 }
  0xc9   :  { %11971 = vmatprep.subr.bf16.mxu1 %v14357_v12 }
  0xca   :  { %1668 = vperm.xlu0 %12557, %v14235_v46   ;;  %11950 = vmatpush3.bf16.msra.mxu0 %v12661_v60 }
  0xcb   :  { %11951 = vmatprep.subr.bf16.mxu0 %v12663_v62 }
  0xcc   :  { %1656 = vperm.xlu1 %12558, %v14230_v45  }
  0xce   :  { %12560 = vset.pattern.permute.xlu0 %v13262_v58  ;;  %11952 = vmatpush3.bf16.msra.mxu0 %v12663_v62 }
  0xcf   :  { %1833 = vperm.xlu0 %12560, %v14212_v40   ;;  %11953 = vmatprep.subr.bf16.mxu0 %v12665_v0 }
  0xd0   :  { %1664 = vperm.xlu1 %12558, %v14245_v48  }
  0xd2   :  { %11954 = vmatpush3.bf16.msra.mxu0 %v12665_v0 }
  0xd3   :  { %1845 = vperm.xlu0 %12560, %v14230_v45   ;;  %11955 = vmatprep.subr.bf16.mxu0 %v12667_v2 }
  0xd4   :  { %12559 = vset.pattern.permute.xlu1 %v13262_v58 }
  0xd5   :  { %1829 = vperm.xlu1 %12559, %v14192_v34  }
  0xd6   :  { %11956 = vmatpush3.bf16.msra.mxu0 %v12667_v2 }
  0xd7   :  { %1853 = vperm.xlu0 %12560, %v14245_v48   ;;  %11957 = vmatprep.subr.bf16.mxu0 %v12669_v5 }
  0xd9   :  { %1837 = vperm.xlu1 %12559, %v14173_v26  }
  0xda   :  { %11958 = vmatpush3.bf16.msra.mxu0 %v12669_v5  ;;  %v14483_v5 = vld [vmem:[#allocation2 + $0x8] sm:$0xf] }
  0xdb   :  { %12561 = vset.pattern.permute.xlu0 %v13263_v4  ;;  %11959 = vmatprep.subr.bf16.mxu0 %v12671_v7 }
  0xdc   :  { %2052 = vperm.xlu0 %12561, %v14192_v34  }
  0xdd   :  { %1841 = vperm.xlu1 %12559, %v14199_v36  }
  0xde   :  { %11960 = vmatpush3.bf16.msra.mxu0 %v12671_v7 }
  0xdf   :  { %11961 = vmatprep.subr.bf16.mxu0 %v12676_v9 }
  0xe0   :  { %2064 = vperm.xlu0 %12561, %v14199_v36  }
  0xe1   :  { %1849 = vperm.xlu1 %12559, %v14220_v42  }
  0xe2   :  { %11962 = vmatpush3.bf16.msra.mxu0 %v12676_v9 }
  0xe3   :  { %11995 = vmatprep.subr.bf16.mxu0 %v14349_v11 }
  0xe4   :  { %2072 = vperm.xlu0 %12561, %v14220_v42  }
  0xe5   :  { %1857 = vperm.xlu1 %12559, %v14235_v46  }
  0xe8   :  { %2080 = vperm.xlu0 %12561, %v14235_v46  }
  0xe9   :  { %12562 = vset.pattern.permute.xlu1 %v13263_v4 }
  0xea   :  { %2056 = vperm.xlu1 %12562, %v14212_v40  }
  0xec   :  { %12564 = vset.pattern.permute.xlu0 %v13264_v13 }
  0xed   :  { %2255 = vperm.xlu0 %12564, %v14212_v40  }
  0xee   :  { %2060 = vperm.xlu1 %12562, %v14173_v26  }
  0xf1   :  { %2267 = vperm.xlu0 %12564, %v14230_v45  }
  0xf2   :  { %2068 = vperm.xlu1 %12562, %v14230_v45  }
  0xf5   :  { %2275 = vperm.xlu0 %12564, %v14245_v48  }
  0xf6   :  { %2076 = vperm.xlu1 %12562, %v14245_v48  }
  0xf9   :  { %12565 = vset.pattern.permute.xlu0 %v13265_v14 }
  0xfa   :  { %12563 = vset.pattern.permute.xlu1 %v13264_v13  ;;  %2440 = vperm.xlu0 %12565, %v14192_v34  }
  0xfb   :  { %2251 = vperm.xlu1 %12563, %v14192_v34   ;;  %v14446_v34 = vld [vmem:[%s16760_s3 + $0x20] sm:$0xff] }
  0xfe   :  { %2452 = vperm.xlu0 %12565, %v14199_v36  }
  0xff   :  { %2259 = vperm.xlu1 %12563, %v14173_v26  }
 0x102   :  { %2460 = vperm.xlu0 %12565, %v14220_v42  }
 0x103   :  { %2263 = vperm.xlu1 %12563, %v14199_v36  }
 0x106   :  { %2468 = vperm.xlu0 %12565, %v14235_v46  }
 0x107   :  { %2271 = vperm.xlu1 %12563, %v14220_v42   ;;  %v14375_v15 = vpop.permute.xlu1 %1031 }
 0x10a   :  { %12568 = vset.pattern.permute.xlu0 %v13266_v17  ;;  %v14471_v47 = vpop.permute.xlu0 %1021 }
 0x10b   :  { %2279 = vperm.xlu1 %12563, %v14235_v46   ;;  %v14383_v18 = vpop.permute.xlu1 %1036  ;;  %2667 = vperm.xlu0 %12568, %v14388_v19  }
 0x10e   :  { %v14480_v62 = vpop.permute.xlu0 %1026 }
 0x10f   :  { %12566 = vset.pattern.permute.xlu1 %v13265_v14  ;;  %v14392_v20 = vpop.permute.xlu1 %1046  ;;  %2679 = vperm.xlu0 %12568, %v14230_v45   ;;  %v14488_v14 = vld [vmem:[#allocation2 + $0xc] sm:$0xf] }
 0x110   :  { %2444 = vperm.xlu1 %12566, %v14212_v40   ;;  %v10037_v40 = vld [vmem:[%s16759_s2] ss:$0 sm:$0xff] }
 0x113   :  { %2687 = vperm.xlu0 %12568, %v14245_v48   ;;  %v14397_v21 = vpop.permute.xlu1 %1056 }
 0x114   :  { %2448 = vperm.xlu1 %12566, %v14380_v16  }
 0x117   :  { %12569 = vset.pattern.permute.xlu0 %v13267_v25 }
 0x118   :  { %2456 = vperm.xlu1 %12566, %v14230_v45   ;;  %v14406_v23 = vpop.permute.xlu1 %1221  ;;  %2886 = vperm.xlu0 %12569, %v14402_v22   ;;  %v13269_v45 = vmov 11  }
 0x11c   :  { %2464 = vperm.xlu1 %12566, %v14245_v48   ;;  %v14415_v26 = vpop.permute.xlu1 %1225  ;;  %2898 = vperm.xlu0 %12569, %v14411_v24  }
 0x120   :  { %12567 = vset.pattern.permute.xlu1 %v13266_v17  ;;  %v14424_v28 = vpop.permute.xlu1 %1233  ;;  %2906 = vperm.xlu0 %12569, %v14420_v27   ;;  %v14490_v17 = vld [vmem:[#allocation2 + $0x10] sm:$0xf] }
 0x121   :  { %2663 = vperm.xlu1 %12567, %v14402_v22  }
 0x124   :  { %v14433_v30 = vpop.permute.xlu1 %1241  ;;  %2914 = vperm.xlu0 %12569, %v14429_v29  }
 0x125   :  { %2671 = vperm.xlu1 %12567, %v14380_v16  }
 0x128   :  { %12572 = vset.pattern.permute.xlu0 %v13268_v32 }
 0x129   :  { %2675 = vperm.xlu1 %12567, %v14411_v24   ;;  %3079 = vperm.xlu0 %12572, %v14388_v19  }
 0x12a   :  { %v14437_v31 = vpop.permute.xlu1 %1441 }
 0x12d   :  { %2683 = vperm.xlu1 %12567, %v14420_v27   ;;  %3091 = vperm.xlu0 %12572, %v14446_v34  }
 0x12e   :  { %v14440_v33 = vpop.permute.xlu1 %1449 }
 0x131   :  { %2691 = vperm.xlu1 %12567, %v14429_v29   ;;  %3099 = vperm.xlu0 %12572, %v14455_v37  }
 0x132   :  { %v14449_v36 = vpop.permute.xlu1 %1453 }
 0x135   :  { %12570 = vset.pattern.permute.xlu1 %v13267_v25  ;;  %12573 = vset.pattern.permute.xlu0 %v13269_v45 }
 0x136   :  { %2890 = vperm.xlu1 %12570, %v14388_v19   ;;  %v14458_v38 = vpop.permute.xlu1 %1461  ;;  %3298 = vperm.xlu0 %12573, %v14402_v22  }
 0x13a   :  { %2894 = vperm.xlu1 %12570, %v14380_v16   ;;  %v14462_v39 = vpop.permute.xlu1 %1469  ;;  %3310 = vperm.xlu0 %12573, %v14411_v24  }
 0x13e   :  { %2902 = vperm.xlu1 %12570, %v14446_v34   ;;  %3318 = vperm.xlu0 %12573, %v14420_v27  }
 0x13f   :  { %v14468_v41 = vpop.permute.xlu1 %1644 }
 0x142   :  { %2910 = vperm.xlu1 %12570, %v14455_v37   ;;  %3326 = vperm.xlu0 %12573, %v14429_v29  }
 0x143   :  { %v14474_v50 = vpop.permute.xlu1 %1648 }
 0x146   :  { %12571 = vset.pattern.permute.xlu1 %v13268_v32  ;;  %v10144_v32 = vcombine.low %v1488_v6, %v14483_v5 }
 0x147   :  { %3075 = vperm.xlu1 %12571, %v14402_v22   ;;  %v14478_v58 = vpop.permute.xlu1 %1656 }
 0x14b   :  { %3083 = vperm.xlu1 %12571, %v14380_v16   ;;  %v14486_v9 = vpop.permute.xlu1 %1664 }
 0x14f   :  { %3087 = vperm.xlu1 %12571, %v14411_v24  }
 0x153   :  { %3095 = vperm.xlu1 %12571, %v14420_v27  }
 0x157   :  { %3103 = vperm.xlu1 %12571, %v14429_v29  }
 0x15b   :  { %12574 = vset.pattern.permute.xlu1 %v13269_v45  ;;  %v14501_v45 = vpop.permute.xlu1 %1829 }
 0x15c   :  { %3302 = vperm.xlu1 %12574, %v14388_v19   ;;  %16789 = vst [vmem:[#allocation10_spill] sm:$0xff] %v14501_v45 }
 0x160   :  { %3306 = vperm.xlu1 %12574, %v14380_v16  }
 0x164   :  { %3314 = vperm.xlu1 %12574, %v14446_v34  }
 0x165   :  { %v11869_v42 = vpop.f32.mrf.mxu0 }
 0x166   :  { %v738_v43 = vadd.f32 %v11869_v42, %v10037_v40 }
 0x167   :  { %v729_v44 = vpop.f32.mrf.mxu0 }
 0x168   :  { %v730_v46 = vadd.f32 %v10037_v40, %v729_v44  ;;  %v770_v48 = vmul.f32 0.2, %v738_v43  ;;  %vm762_vm1 = vcmp.ge.f32.partialorder %v738_v43, 0.0  ;;  %3322 = vperm.xlu1 %12574, %v14455_v37  }
 0x169   :  { %v11870_v49 = vpop.f32.mrf.mxu0 }
 0x16a   :  { %v741_v51 = vadd.f32 %v11870_v49, %v10037_v40  ;;  %v768_v53 = vmul.f32 0.2, %v730_v46  ;;  %v778_v56 = vsel %vm762_vm1, %v738_v43, %v770_v48  ;;  %vm760_vm3 = vcmp.ge.f32.partialorder %v730_v46, 0.0  ;;  %v14494_v48 = vpop.permute.xlu0 %1041 }
 0x16b   :  { %v732_v52 = vpop.f32.mrf.mxu0  ;;  %v14499_v49 = vcombine.low %v14488_v14, %v14490_v17 }
 0x16c   :  { %vm763_vm2 = vcmp.ge.f32.partialorder %v741_v51, 0.0  ;;  %v771_v54 = vmul.f32 0.2, %v741_v51  ;;  %v733_v55 = vadd.f32 %v10037_v40, %v732_v52  ;;  %v776_v1 = vsel %vm760_vm3, %v730_v46, %v768_v53  ;;  %v1264_v46 = vld [vmem:[#allocation2 + $0x4] sm:$0xe] }
 0x16d   :  { %v11873_v57 = vpop.f32.mrf.mxu0 }
 0x16e   :  { %v779_v59 = vsel %vm763_vm2, %v741_v51, %v771_v54  ;;  %vm761_vm4 = vcmp.ge.f32.partialorder %v733_v55, 0.0  ;;  %v769_v60 = vmul.f32 0.2, %v733_v55  ;;  %v754_v61 = vadd.f32 %v11873_v57, %v10037_v40  ;;  %v14505_v57 = vld [vmem:[#allocation2 + $0x14] sm:$0xf]  ;;  %v14513_v6 = vpop.permute.xlu0 %1051 }
 0x16f   :  { %v11124_v63 = vpack.c.bf16 %v779_v59, %v778_v56  ;;  %v745_v0 = vpop.f32.mrf.mxu0  ;;  %v1513_v59 = vrot.slane %v10144_v32, 3 }
 0x170   :  { %v777_v2 = vsel %vm761_vm4, %v733_v55, %v769_v60  ;;  %v774_v3 = vmul.f32 0.2, %v754_v61  ;;  %v746_v4 = vadd.f32 %v10037_v40, %v745_v0  ;;  %vm766_vm5 = vcmp.ge.f32.partialorder %v754_v61, 0.0 }
 0x171   :  { %11157 = vst [vmem:[#allocation2 + $0x20] sm:$0xff] %v11124_v63   ;;  %v11119_v7 = vpack.c.bf16 %v777_v2, %v776_v1  ;;  %v11874_v8 = vpop.f32.mrf.mxu0  ;;  %v10115_v55 = vcombine.low %v1264_v46, %v14483_v5  ;;  %v13270_v60 = vmov 12   ;;  %v1514_v0 = vrot.slane %v14499_v49, 3  ;;  %v14508_v1 = vpop.permute.xlu1 %1837 }
 0x172   :  { %v772_v10 = vmul.f32 0.2, %v746_v4  ;;  %v757_v13 = vadd.f32 %v11874_v8, %v10037_v40  ;;  %vm764_vm6 = vcmp.ge.f32.partialorder %v746_v4, 0.0  ;;  %v782_v42 = vsel %vm766_vm5, %v754_v61, %v774_v3  ;;  %12576 = vset.pattern.permute.xlu0 %v13270_v60  ;;  %16790 = vst [vmem:[#allocation11_spill] sm:$0xff] %v14508_v1  ;;  %12575 = vset.pattern.permute.xlu1 %v13270_v60 }
 0x173   :  { %11156 = vst [vmem:[#allocation2 + $0x18] sm:$0xff] %v11119_v7   ;;  %v748_v25 = vpop.f32.mrf.mxu0  ;;  %3501 = vperm.xlu0 %12576, %v14388_v19   ;;  %v12971_v7 = vld [vmem:[#allocation2 + $0x14] sm:$0xf]  ;;  %v1314_v32 = vrot.slane %v10115_v55, 1  ;;  %3497 = vperm.xlu1 %12575, %v14402_v22  }
 0x174   :  { %vm767_vm7 = vcmp.ge.f32.partialorder %v757_v13, 0.0  ;;  %v775_v43 = vmul.f32 0.2, %v757_v13  ;;  %v749_v44 = vadd.f32 %v10037_v40, %v748_v25  ;;  %v780_v51 = vsel %vm764_vm6, %v746_v4, %v772_v10 }
 0x176   :  { %v783_v52 = vsel %vm767_vm7, %v757_v13, %v775_v43  ;;  %vm765_vm8 = vcmp.ge.f32.partialorder %v749_v44, 0.0  ;;  %v773_v53 = vmul.f32 0.2, %v749_v44  ;;  %v11893_v43 = vpop.f32.mrf.mxu1 }
 0x177   :  { %v11134_v54 = vpack.c.bf16 %v783_v52, %v782_v42  ;;  %v1515_v42 = vsel %vm892_vm0, %v1513_v59, %v1514_v0  ;;  %3513 = vperm.xlu0 %12576, %v14446_v34   ;;  %3505 = vperm.xlu1 %12575, %v14380_v16  }
 0x178   :  { %v781_v40 = vsel %vm765_vm8, %v749_v44, %v773_v53  ;;  %v1075_v56 = vld [vmem:[#allocation2 + $0x20] sm:$0xf]  ;;  %v1315_v53 = vrot.slane %v14499_v49, 1  ;;  %v1876_v49 = vld [vmem:[#allocation2 + $0x8] sm:$0xe] }
 0x179   :  { %11159 = vst [vmem:[#allocation2 + $0x30] sm:$0xff] %v11134_v54   ;;  %v11129_v61 = vpack.c.bf16 %v781_v40, %v780_v51  ;;  %v12675_v63 = vld [vmem:[#allocation2 + $0x20] ss:$0 sps:$4 sm:$0x77]   ;;  %v14524_v54 = vpop.permute.xlu1 %1841 }
 0x17a   :  { %v842_v2 = vld [vmem:[#allocation2 + $0x18] sm:$0xf]  ;;  %v843_v3 = vld [vmem:[#allocation2 + $0x1c] sm:$0xf]  ;;  %v900_v46 = vrot.slane %v12675_v63, 3  ;;  %16791 = vst [vmem:[#allocation12_spill] sm:$0xff] %v14524_v54  ;;  %v1316_v59 = vsel %vm1313_vm9, %v1314_v32, %v1315_v53  ;;  %v988_v63 = vpop.f32.mrf.mxu1 }
 0x17b   :  { %v14511_v4 = vld [vmem:[#allocation2 + $0x18] sm:$0xf]  ;;  %11158 = vst [vmem:[#allocation2 + $0x28] sm:$0xff] %v11129_v61   ;;  %v10089_v8 = vcombine.low %v12971_v7, %v842_v2  ;;  %v10061_v10 = vcombine.low %v842_v2, %v843_v3  ;;  %v10090_v13 = vcombine.low %v843_v3, %v1075_v56  ;;  %v14515_v25 = vld [vmem:[#allocation2 + $0x1c] sm:$0xf]  ;;  %v1218_v61 = vpop.permute.xlu0 %1217  ;;  %3521 = vperm.xlu0 %12576, %v14455_v37  }
 0x17c   :  { %v10117_v51 = vcombine.low %v14505_v57, %v14511_v4  ;;  %v14521_v52 = vld [vmem:[#allocation2 + $0x20] sm:$0xf]  ;;  %v14547_v32 = vld [vmem:[#allocation2 + $0x14] sm:$0xf]  ;;  %3509 = vperm.xlu1 %12575, %v14411_v24  }
 0x17d   :  { %11919 = vmatprep.mubr.bf16.mxu0 %v10089_v8  ;;  %v898_v44 = vrot.slane %v10061_v10, 3  ;;  %v14529_v55 = vcombine.low %v14515_v25, %v14521_v52  ;;  %v14536_v3 = vpop.permute.xlu1 %1849  ;;  %v14539_v8 = vld [vmem:[#allocation2 + $0xc] sm:$0xf] }
 0x17e   :  { %11920 = vmatmul.mubr.bf16.gmra.mxu0 %v10090_v13  ;;  %v1516_v2 = vrot.slane %v10117_v51, 3  ;;  %16792 = vst [vmem:[#allocation13_spill] sm:$0xff] %v14536_v3  ;;  %v1317_v10 = vrot.slane %v10117_v51, 1  ;;  %v12686_v13 = vld [vmem:[%s16761_s4 + $0x170] sm:$0xff]   ;;  %v10198_v60 = vcombine.low %v1876_v49, %v14539_v8  ;;  %v1059_v3 = vmul.f32 %v14471_v47, %v988_v63 }
 0x17f   :  { %v899_v40 = vsel %vm892_vm0, %v14194_v35, %v898_v44  ;;  %v901_v56 = vsel %vm892_vm0, %v898_v44, %v900_v46  ;;  %11963 = vmatprep.mubr.bf16.mxu0 %v1515_v42  ;;  %v1518_v7 = vrot.slane %v14529_v55, 3  ;;  %v14541_v35 = vld [vmem:[#allocation2 + $0x10] sm:$0xf]  ;;  %v1061_v42 = vmul.f32 %v11893_v43, %v14375_v15  ;;  %v11894_v44 = vpop.f32.mrf.mxu1  ;;  %v1230_v45 = vpop.permute.xlu0 %1229 }
 0x180   :  { %11895 = vmatprep.mubr.bf16.mxu1 %v899_v40  ;;  %v1517_v46 = vsel %vm892_vm0, %v1514_v0, %v1516_v2  ;;  %v1319_v40 = vrot.slane %v14529_v55, 1  ;;  %v12687_v15 = vld [vmem:[%s16761_s4 + $0x130] sm:$0xff]   ;;  %v14563_v0 = vcombine.low %v14541_v35, %v14547_v32  ;;  %v1062_v55 = vmul.f32 %v11894_v44, %v14383_v18  ;;  %v12691_v18 = vld [vmem:[#allocation2 + $0x24] ss:$0 sps:$4 sm:$0x11]   ;;  %3517 = vperm.xlu1 %12575, %v14420_v27  }
 0x181   :  { %11896 = vmatmul.mubr.bf16.gmra.mxu1 %v901_v56  ;;  %v12689_v56 = vld [vmem:[#allocation2 + $0x24] ss:$0 sps:$4 sm:$0x77]   ;;  %v1519_v51 = vsel %vm892_vm0, %v1516_v2, %v1518_v7  ;;  %v14566_v49 = vpop.permute.xlu1 %1857  ;;  %v1318_v47 = vsel %vm1313_vm9, %v1315_v53, %v1317_v10  ;;  %v12786_v1 = vld [vmem:[#allocation2 + $0x34] ss:$0 sps:$4 sm:$0x11]  }
 0x182   :  { %11939 = vmatprep.mubr.bf16.mxu1 %v1316_v59  ;;  %16793 = vst [vmem:[#allocation14_spill] sm:$0xff] %v14566_v49  ;;  %v1320_v2 = vsel %vm1313_vm9, %v1317_v10, %v1319_v40 }
 0x184   :  { %3525 = vperm.xlu1 %12575, %v14429_v29  }
 0x185   :  { %v11917_v59 = vpop.f32.mrf.mxu0 }
 0x186   :  { %11964 = vmatmul.mubr.bf16.vlgmr.msra.gmra.mxu0 %v1517_v46  ;;  %v1250_v54 = vmul.f32 %v11917_v59, %v14415_v26  ;;  %v1925_v46 = vrot.slane %v10198_v60, 1  ;;  %v10170_v60 = vcombine.low %v14483_v5, %v14488_v14  ;;  %v12695_v5 = vld [vmem:[%s16761_s4 + $0x118] sm:$0xff]  }
 0x187   :  { %11996 = vmatpush3.bf16.msra.mxu0 %v14349_v11  ;;  %11967 = vmatprep.mubr.bf16.mxu0 %v1519_v51  ;;  %v1185_v43 = vpop.f32.mrf.mxu0  ;;  %v12688_v11 = vld [vmem:[%s16761_s4 + $0x168] sm:$0xff]   ;;  %v1520_v51 = vrot.slane %v12689_v56, 3  ;;  %v1321_v56 = vrot.slane %v12691_v18, 1 }
 0x188   :  { %11997 = vmatprep.subr.bf16.mxu0 %v12686_v13  ;;  %v1248_v26 = vmul.f32 %v1218_v61, %v1185_v43  ;;  %v14572_v63 = vadd.f32 %v1250_v54, %v1061_v42  ;;  %v12690_v54 = vld [vmem:[%s16761_s4 + $0x128] sm:$0xff]   ;;  %v1926_v61 = vrot.slane %v14563_v0, 1  ;;  %v14583_v42 = vpop.permute.xlu1 %2056 }
 0x189   :  { %11940 = vmatmul.mubr.bf16.vlgmr.msra.gmra.mxu1 %v1318_v47  ;;  %v11918_v59 = vpop.f32.mrf.mxu0  ;;  %16794 = vst [vmem:[#allocation15_spill] sm:$0xff] %v14583_v42  ;;  %v12697_v47 = vld [vmem:[%s16761_s4 + $0x110] sm:$0xff]  }
 0x18a   :  { %11972 = vmatpush3.bf16.msra.mxu1 %v14357_v12  ;;  %11943 = vmatprep.mubr.bf16.mxu1 %v1320_v2  ;;  %v14577_v53 = vadd.f32 %v1248_v26, %v1059_v3  ;;  %v1251_v44 = vmul.f32 %v11918_v59, %v1230_v45  ;;  %v12692_v12 = vld [vmem:[%s16761_s4 + $0x160] sm:$0xff]   ;;  %v1521_v45 = vsel %vm892_vm0, %v1518_v7, %v1520_v51  ;;  %v12698_v26 = vld [vmem:[%s16761_s4 + $0x148] sm:$0xff]   ;;  %v14626_v2 = vld [vmem:[#allocation2 + $0x18] sm:$0xf] }
 0x18b   :  { %11998 = vmatpush3.bf16.msra.mxu0 %v12686_v13  ;;  %11973 = vmatprep.subr.bf16.mxu1 %v12687_v15  ;;  %v1927_v3 = vsel %vm1313_vm9, %v1925_v46, %v1926_v61  ;;  %v13271_v13 = vmov 13   ;;  %v12693_v7 = vld [vmem:[%s16761_s4 + $0x120] sm:$0xff]   ;;  %v14628_v46 = vld [vmem:[#allocation2 + $0x1c] sm:$0xf]  ;;  %v12699_v59 = vld [vmem:[%s16761_s4 + $0x108] sm:$0xff]  }
 0x18c   :  { %11999 = vmatprep.subr.bf16.mxu0 %v12688_v11  ;;  %v14588_v10 = vadd.f32 %v1251_v44, %v1062_v55  ;;  %12577 = vset.pattern.permute.xlu0 %v13271_v13  ;;  %v14600_v43 = vpop.permute.xlu1 %2060  ;;  %v1322_v55 = vsel %vm1313_vm9, %v1319_v40, %v1321_v56  ;;  %v12696_v40 = vld [vmem:[%s16761_s4 + $0x150] sm:$0xff]   ;;  %v12700_v44 = vld [vmem:[%s16761_s4 + $0x140] sm:$0xff]   ;;  %v14641_v51 = vcombine.low %v14626_v2, %v14628_v46 }
 0x18d   :  { %16795 = vst [vmem:[#allocation16_spill] sm:$0xff] %v14600_v43  ;;  %3686 = vperm.xlu0 %12577, %v14402_v22   ;;  %12578 = vset.pattern.permute.xlu1 %v13271_v13  ;;  %v12784_v43 = vld [vmem:[%s16761_s4 + $0x370] sm:$0xff]  }
 0x18e   :  { %11974 = vmatpush3.bf16.msra.mxu1 %v12687_v15  ;;  %11968 = vmatmul.mubr.bf16.gmra.mxu0 %v1521_v45  ;;  %v12694_v15 = vld [vmem:[%s16761_s4 + $0x158] sm:$0xff]   ;;  %v12701_v45 = vld [vmem:[%s16761_s4 + $0x100] sm:$0xff]  }
 0x18f   :  { %12000 = vmatpush3.bf16.msra.mxu0 %v12688_v11  ;;  %11975 = vmatprep.subr.bf16.mxu1 %v12690_v54 }
 0x190   :  { %12001 = vmatprep.subr.bf16.mxu0 %v12692_v12  ;;  %12011 = vmatprep.mubr.bf16.mxu0 %v1927_v3  ;;  %v14610_v14 = vpop.permute.xlu1 %2068  ;;  %v12706_v3 = vld [vmem:[%s16761_s4 + $0x1f8] sm:$0xff]  }
 0x191   :  { %11944 = vmatmul.mubr.bf16.gmra.mxu1 %v1322_v55  ;;  %16796 = vst [vmem:[#allocation17_spill] sm:$0xff] %v14610_v14  ;;  %3698 = vperm.xlu0 %12577, %v14411_v24   ;;  %v12709_v55 = vld [vmem:[%s16761_s4 + $0x1b8] sm:$0xff]  }
 0x192   :  { %11976 = vmatpush3.bf16.msra.mxu1 %v12690_v54  ;;  %11987 = vmatprep.mubr.bf16.mxu1 %v10170_v60  ;;  %v14643_v54 = vld [vmem:[#allocation2 + $0x20] sm:$0xf]  ;;  %v1928_v60 = vrot.slane %v14641_v51, 1 }
 0x193   :  { %12002 = vmatpush3.bf16.msra.mxu0 %v12692_v12  ;;  %11977 = vmatprep.subr.bf16.mxu1 %v12693_v7  ;;  %v14645_v12 = vld [vmem:[#allocation2 + $0x24] sm:$0xf] }
 0x194   :  { %12003 = vmatprep.subr.bf16.mxu0 %v12694_v15  ;;  %v14620_v11 = vpop.permute.xlu1 %2076  ;;  %3690 = vperm.xlu1 %12578, %v14388_v19   ;;  %v14657_v13 = vcombine.low %v14643_v54, %v14645_v12 }
 0x195   :  { %16797 = vst [vmem:[#allocation18_spill] sm:$0xff] %v14620_v11  ;;  %3706 = vperm.xlu0 %12577, %v14420_v27  }
 0x196   :  { %11978 = vmatpush3.bf16.msra.mxu1 %v12693_v7  ;;  %v1930_v7 = vrot.slane %v14657_v13, 1 }
 0x197   :  { %12004 = vmatpush3.bf16.msra.mxu0 %v12694_v15  ;;  %11979 = vmatprep.subr.bf16.mxu1 %v12695_v5  ;;  %v12711_v15 = vld [vmem:[%s16761_s4 + $0x1f0] sm:$0xff]  }
 0x198   :  { %12005 = vmatprep.subr.bf16.mxu0 %v12696_v40  ;;  %v14634_v18 = vpop.permute.xlu1 %2251  ;;  %3694 = vperm.xlu1 %12578, %v14380_v16  }
 0x199   :  { %16798 = vst [vmem:[#allocation19_spill] sm:$0xff] %v14634_v18  ;;  %3714 = vperm.xlu0 %12577, %v14429_v29  }
 0x19a   :  { %11980 = vmatpush3.bf16.msra.mxu1 %v12695_v5  ;;  %v2099_v5 = vld [vmem:[#allocation2 + $0x8] sm:$0x8] }
 0x19b   :  { %12006 = vmatpush3.bf16.msra.mxu0 %v12696_v40  ;;  %11981 = vmatprep.subr.bf16.mxu1 %v12697_v47  ;;  %v10171_v40 = vcombine.low %v14490_v17, %v14505_v57  ;;  %v10227_v17 = vcombine.low %v2099_v5, %v14539_v8  ;;  %v10172_v57 = vcombine.low %v14511_v4, %v14515_v25  ;;  %v1687_v4 = vld [vmem:[#allocation2 + $0x24] sm:$0xf] }
 0x19c   :  { %12007 = vmatprep.subr.bf16.mxu0 %v12698_v26  ;;  %v14659_v56 = vpop.permute.xlu1 %2259  ;;  %3702 = vperm.xlu1 %12578, %v14446_v34   ;;  %v12717_v25 = vld [vmem:[%s16761_s4 + $0x1e0] sm:$0xff]   ;;  %v10253_v5 = vcombine.low %v14539_v8, %v14541_v35  ;;  %v12719_v35 = vld [vmem:[%s16761_s4 + $0x1d8] sm:$0xff]  }
 0x19d   :  { %16799 = vst [vmem:[#allocation20_spill] sm:$0xff] %v14659_v56  ;;  %v12712_v56 = vld [vmem:[%s16761_s4 + $0x1b0] sm:$0xff]  }
 0x19e   :  { %11982 = vmatpush3.bf16.msra.mxu1 %v12697_v47  ;;  %v1929_v47 = vsel %vm1313_vm9, %v1926_v61, %v1928_v60  ;;  %v12714_v61 = vld [vmem:[%s16761_s4 + $0x1e8] sm:$0xff]  }
 0x19f   :  { %12008 = vmatpush3.bf16.msra.mxu0 %v12698_v26  ;;  %11983 = vmatprep.subr.bf16.mxu1 %v12699_v59  ;;  %v12713_v26 = vld [vmem:[#allocation2 + $0x28] ss:$0 sps:$4 sm:$0x11]  }
 0x1a0   :  { %12009 = vmatprep.subr.bf16.mxu0 %v12700_v44  ;;  %v14677_v18 = vpop.permute.xlu1 %2263  ;;  %3710 = vperm.xlu1 %12578, %v14455_v37  }
 0x1a1   :  { %16800 = vst [vmem:[#allocation21_spill] sm:$0xff] %v14677_v18 }
 0x1a2   :  { %11984 = vmatpush3.bf16.msra.mxu1 %v12699_v59  ;;  %v13272_v59 = vmov 14  }
 0x1a3   :  { %12010 = vmatpush3.bf16.msra.mxu0 %v12700_v44  ;;  %11985 = vmatprep.subr.bf16.mxu1 %v12701_v45  ;;  %v1931_v44 = vsel %vm1313_vm9, %v1928_v60, %v1930_v7  ;;  %v2124_v60 = vrot.slane %v10227_v17, 3  ;;  %v12723_v17 = vld [vmem:[%s16761_s4 + $0x1c8] sm:$0xff]  }
 0x1a4   :  { %12043 = vmatprep.subr.bf16.mxu0 %v12706_v3  ;;  %12580 = vset.pattern.permute.xlu0 %v13272_v59 }
 0x1a5   :  { %3913 = vperm.xlu0 %12580, %v14388_v19   ;;  %12579 = vset.pattern.permute.xlu1 %v13272_v59 }
 0x1a6   :  { %11986 = vmatpush3.bf16.msra.mxu1 %v12701_v45  ;;  %12012 = vmatmul.mubr.bf16.vlgmr.msra.gmra.mxu0 %v1929_v47  ;;  %v1932_v45 = vrot.slane %v12713_v26, 1  ;;  %v10173_v47 = vcombine.low %v14521_v52, %v1687_v4  ;;  %v12718_v26 = vld [vmem:[%s16761_s4 + $0x1a0] sm:$0xff]   ;;  %v2710_v4 = vld [vmem:[#allocation2 + $0x10] sm:$0x8] }
 0x1a7   :  { %12015 = vmatprep.mubr.bf16.mxu0 %v1931_v44  ;;  %12044 = vmatpush3.bf16.msra.mxu0 %v12706_v3  ;;  %v12716_v3 = vld [vmem:[%s16761_s4 + $0x1a8] sm:$0xff]   ;;  %v12722_v44 = vld [vmem:[%s16761_s4 + $0x190] sm:$0xff]  }
 0x1a8   :  { %12019 = vmatprep.subr.bf16.mxu1 %v12709_v55  ;;  %12045 = vmatprep.subr.bf16.mxu0 %v12711_v15 }
 0x1a9   :  { %11988 = vmatmul.mubr.bf16.vlgmr.msra.gmra.mxu1 %v10171_v40  ;;  %v14697_v40 = vpop.permute.xlu1 %2271  ;;  %3909 = vperm.xlu1 %12579, %v14402_v22  }
 0x1aa   :  { %11991 = vmatprep.mubr.bf16.mxu1 %v10172_v57  ;;  %12020 = vmatpush3.bf16.msra.mxu1 %v12709_v55  ;;  %16801 = vst [vmem:[#allocation22_spill] sm:$0xff] %v14697_v40  ;;  %v1933_v55 = vsel %vm1313_vm9, %v1930_v7, %v1932_v45  ;;  %v12721_v7 = vld [vmem:[%s16761_s4 + $0x1d0] sm:$0xff]   ;;  %v12725_v57 = vld [vmem:[%s16761_s4 + $0x1c0] sm:$0xff]   ;;  %v13273_v45 = vmov 15   ;;  %v14899_v40 = vld [vmem:[#allocation2 + $0x18] sm:$0xf] }
 0x1ab   :  { %12046 = vmatpush3.bf16.msra.mxu0 %v12711_v15  ;;  %12021 = vmatprep.subr.bf16.mxu1 %v12712_v56  ;;  %v2125_v15 = vrot.slane %v14563_v0, 3 }
 0x1ac   :  { %12047 = vmatprep.subr.bf16.mxu0 %v12714_v61  ;;  %3925 = vperm.xlu0 %12580, %v14446_v34  }
 0x1ad   :  { %v2126_v8 = vsel %vm892_vm0, %v2124_v60, %v2125_v15  ;;  %v14713_v52 = vpop.permute.xlu1 %2279  ;;  %3917 = vperm.xlu1 %12579, %v14380_v16   ;;  %v12724_v16 = vld [vmem:[%s16761_s4 + $0x188] sm:$0xff]   ;;  %v12728_v60 = vld [vmem:[%s16761_s4 + $0x278] sm:$0xff]  }
 0x1ae   :  { %12016 = vmatmul.mubr.bf16.gmra.mxu0 %v1933_v55  ;;  %12022 = vmatpush3.bf16.msra.mxu1 %v12712_v56  ;;  %16802 = vst [vmem:[#allocation23_spill] sm:$0xff] %v14713_v52  ;;  %v12720_v56 = vld [vmem:[%s16761_s4 + $0x198] sm:$0xff]  }
 0x1af   :  { %12048 = vmatpush3.bf16.msra.mxu0 %v12714_v61  ;;  %12023 = vmatprep.subr.bf16.mxu1 %v12716_v3  ;;  %v14757_v55 = vld [vmem:[#allocation2 + $0x1c] sm:$0xf] }
 0x1b0   :  { %12049 = vmatprep.subr.bf16.mxu0 %v12717_v25  ;;  %12059 = vmatprep.mubr.bf16.mxu0 %v10253_v5  ;;  %v14755_v5 = vld [vmem:[#allocation2 + $0x18] sm:$0xf] }
 0x1b1   :  { %11992 = vmatmul.mubr.bf16.gmra.mxu1 %v10173_v47  ;;  %v14723_v59 = vpop.permute.xlu1 %2444  ;;  %3933 = vperm.xlu0 %12580, %v14455_v37   ;;  %v10254_v47 = vcombine.low %v14547_v32, %v14626_v2  ;;  %v10311_v2 = vcombine.low %v14755_v5, %v14757_v55 }
 0x1b2   :  { %12024 = vmatpush3.bf16.msra.mxu1 %v12716_v3  ;;  %12035 = vmatprep.mubr.bf16.mxu1 %v2126_v8  ;;  %16803 = vst [vmem:[#allocation24_spill] sm:$0xff] %v14723_v59  ;;  %v12726_v3 = vld [vmem:[%s16761_s4 + $0x180] sm:$0xff]   ;;  %v12732_v8 = vld [vmem:[%s16761_s4 + $0x270] sm:$0xff]  }
 0x1b3   :  { %12050 = vmatpush3.bf16.msra.mxu0 %v12717_v25  ;;  %12025 = vmatprep.subr.bf16.mxu1 %v12718_v26 }
 0x1b4   :  { %12051 = vmatprep.subr.bf16.mxu0 %v12719_v35  ;;  %3921 = vperm.xlu1 %12579, %v14411_v24  }
 0x1b5   :  { %v14739_v61 = vpop.permute.xlu1 %2448  ;;  %12581 = vset.pattern.permute.xlu0 %v13273_v45 }
 0x1b6   :  { %12026 = vmatpush3.bf16.msra.mxu1 %v12718_v26  ;;  %16804 = vst [vmem:[#allocation25_spill] sm:$0xff] %v14739_v61  ;;  %4108 = vperm.xlu0 %12581, %v14402_v22   ;;  %v14753_v22 = vld [vmem:[#allocation2 + $0x14] sm:$0xf]  ;;  %v2127_v26 = vrot.slane %v14641_v51, 3  ;;  %v2129_v51 = vrot.slane %v14657_v13, 3 }
 0x1b7   :  { %12052 = vmatpush3.bf16.msra.mxu0 %v12719_v35  ;;  %12027 = vmatprep.subr.bf16.mxu1 %v12720_v56  ;;  %v10255_v35 = vcombine.low %v14628_v46, %v14643_v54  ;;  %v10310_v32 = vcombine.low %v2710_v4, %v14753_v22  ;;  %v12733_v46 = vld [vmem:[%s16761_s4 + $0x230] sm:$0xff]   ;;  %v12740_v4 = vld [vmem:[%s16761_s4 + $0x228] sm:$0xff]  }
 0x1b8   :  { %12053 = vmatprep.subr.bf16.mxu0 %v12721_v7  ;;  %3929 = vperm.xlu1 %12579, %v14420_v27   ;;  %v2128_v54 = vsel %vm892_vm0, %v2125_v15, %v2127_v26  ;;  %v2130_v13 = vsel %vm892_vm0, %v2127_v26, %v2129_v51  ;;  %v14792_v15 = vrot.slane %v10311_v2, 3 }
 0x1b9   :  { %v14751_v25 = vpop.permute.xlu1 %2456  ;;  %v2759_v0 = vrot.slane %v10310_v32, 3  ;;  %v12745_v32 = vld [vmem:[%s16761_s4 + $0x258] sm:$0xff]  }
 0x1ba   :  { %12028 = vmatpush3.bf16.msra.mxu1 %v12720_v56  ;;  %4120 = vperm.xlu0 %12581, %v14411_v24   ;;  %16805 = vst [vmem:[#allocation26_spill] sm:$0xff] %v14751_v25  ;;  %v12731_v24 = vld [vmem:[%s16761_s4 + $0x238] sm:$0xff]   ;;  %v14770_v56 = vpop.permute.xlu0 %1237  ;;  %v12761_v25 = vld [vmem:[#allocation2 + $0x30] ss:$0 sps:$4 sm:$0x77]  }
 0x1bb   :  { %12054 = vmatpush3.bf16.msra.mxu0 %v12721_v7  ;;  %12029 = vmatprep.subr.bf16.mxu1 %v12722_v44  ;;  %v12739_v7 = vld [vmem:[#allocation2 + $0x28] ss:$0 sps:$4 sm:$0x77]  }
 0x1bc   :  { %12055 = vmatprep.subr.bf16.mxu0 %v12723_v17  ;;  %3937 = vperm.xlu1 %12579, %v14429_v29  }
 0x1be   :  { %12030 = vmatpush3.bf16.msra.mxu1 %v12722_v44  ;;  %4128 = vperm.xlu0 %12581, %v14420_v27   ;;  %v12735_v27 = vld [vmem:[%s16761_s4 + $0x268] sm:$0xff]   ;;  %v14786_v44 = vpop.permute.xlu1 %2464 }
 0x1bf   :  { %12056 = vmatpush3.bf16.msra.mxu0 %v12723_v17  ;;  %12031 = vmatprep.subr.bf16.mxu1 %v12724_v16  ;;  %16806 = vst [vmem:[#allocation27_spill] sm:$0xff] %v14786_v44  ;;  %v2298_v17 = vld [vmem:[#allocation2 + $0x28] sm:$0xf]  ;;  %v14915_v44 = vld [vmem:[#allocation2 + $0x20] sm:$0xf] }
 0x1c0   :  { %12057 = vmatprep.subr.bf16.mxu0 %v12725_v57  ;;  %12582 = vset.pattern.permute.xlu1 %v13273_v45  ;;  %v14794_v45 = vpop.permute.xlu0 %1245 }
 0x1c1   :  { %4112 = vperm.xlu1 %12582, %v14388_v19   ;;  %v12743_v19 = vld [vmem:[%s16761_s4 + $0x260] sm:$0xff]  }
 0x1c2   :  { %12032 = vmatpush3.bf16.msra.mxu1 %v12724_v16  ;;  %v12741_v16 = vld [vmem:[#allocation2 + $0xc] sm:$0xfe]   ;;  %4136 = vperm.xlu0 %12581, %v14429_v29   ;;  %v12744_v29 = vld [vmem:[%s16761_s4 + $0x220] sm:$0xff]  }
 0x1c3   :  { %12058 = vmatpush3.bf16.msra.mxu0 %v12725_v57  ;;  %12033 = vmatprep.subr.bf16.mxu1 %v12726_v3  ;;  %v14789_v57 = vld [vmem:[#allocation2 + $0x14] sm:$0xff]  }
 0x1c4   :  { %12091 = vmatprep.subr.bf16.mxu0 %v12728_v60  ;;  %v16769_v26 = vrot.slane %v14789_v57, 1 }
 0x1c6   :  { %12034 = vmatpush3.bf16.msra.mxu1 %v12726_v3  ;;  %12060 = vmatmul.mubr.bf16.vlgmr.msra.gmra.mxu0 %v10254_v47  ;;  %v10256_v3 = vcombine.low %v14645_v12, %v2298_v17  ;;  %v2536_v47 = vrot.slane %v12741_v16, 1  ;;  %v2761_v12 = vsel %vm892_vm0, %v2759_v0, %v14792_v15  ;;  %v12748_v17 = vld [vmem:[%s16761_s4 + $0x210] sm:$0xff]   ;;  %v12749_v0 = vld [vmem:[%s16761_s4 + $0x248] sm:$0xff]  }
 0x1c7   :  { %12063 = vmatprep.mubr.bf16.mxu0 %v10255_v35  ;;  %12092 = vmatpush3.bf16.msra.mxu0 %v12728_v60  ;;  %v2131_v60 = vrot.slane %v12739_v7, 3  ;;  %v13274_v7 = vmov 16  }
 0x1c8   :  { %12067 = vmatprep.subr.bf16.mxu1 %v12731_v24  ;;  %12093 = vmatprep.subr.bf16.mxu0 %v12732_v8  ;;  %v2538_v2 = vsel %vm1313_vm9, %v2536_v47, %v16769_v26  ;;  %v14865_v47 = vld [vmem:[#allocation2 + $0x2c] sm:$0xf]  ;;  %v16770_v26 = vmov 17  }
 0x1c9   :  { %12036 = vmatmul.mubr.bf16.vlgmr.msra.gmra.mxu1 %v2128_v54  ;;  %v2132_v35 = vsel %vm892_vm0, %v2129_v51, %v2131_v60  ;;  %v12746_v51 = vld [vmem:[%s16761_s4 + $0x218] sm:$0xff]   ;;  %v12747_v54 = vld [vmem:[%s16761_s4 + $0x250] sm:$0xff]   ;;  %12584 = vset.pattern.permute.xlu0 %v13274_v7 }
 0x1ca   :  { %12039 = vmatprep.mubr.bf16.mxu1 %v2130_v13  ;;  %12068 = vmatpush3.bf16.msra.mxu1 %v12731_v24  ;;  %v14808_v24 = vld [vmem:[%s16760_s3 + $0x10] sm:$0xff]  ;;  %v14840_v13 = vld [vmem:[%s16760_s3 + $0x8] sm:$0xff] }
 0x1cb   :  { %12094 = vmatpush3.bf16.msra.mxu0 %v12732_v8  ;;  %12069 = vmatprep.subr.bf16.mxu1 %v12733_v46  ;;  %v14813_v8 = vpop.permute.xlu1 %2663 }
 0x1cc   :  { %12095 = vmatprep.subr.bf16.mxu0 %v12735_v27  ;;  %4116 = vperm.xlu1 %12582, %v14808_v24   ;;  %16807 = vst [vmem:[#allocation28_spill] sm:$0xff] %v14813_v8  ;;  %v14896_v8 = vld [vmem:[%s16760_s3 + $0x18] sm:$0xff] }
 0x1ce   :  { %12064 = vmatmul.mubr.bf16.gmra.mxu0 %v10256_v3  ;;  %12070 = vmatpush3.bf16.msra.mxu1 %v12733_v46  ;;  %v14825_v46 = vpop.permute.xlu0 %1445  ;;  %v14855_v3 = vld [vmem:[%s16760_s3] sm:$0xff] }
 0x1cf   :  { %12096 = vmatpush3.bf16.msra.mxu0 %v12735_v27  ;;  %12107 = vmatprep.mubr.bf16.mxu0 %v2761_v12  ;;  %v14834_v27 = vpop.permute.xlu1 %2671  ;;  %v12751_v12 = vld [vmem:[%s16761_s4 + $0x240] sm:$0xff]  }
 0x1d0   :  { %12071 = vmatprep.subr.bf16.mxu1 %v12740_v4  ;;  %12097 = vmatprep.subr.bf16.mxu0 %v12743_v19  ;;  %16808 = vst [vmem:[#allocation29_spill] sm:$0xff] %v14834_v27 }
 0x1d1   :  { %12040 = vmatmul.mubr.bf16.gmra.mxu1 %v2132_v35  ;;  %4124 = vperm.xlu1 %12582, %v14446_v34  }
 0x1d2   :  { %12072 = vmatpush3.bf16.msra.mxu1 %v12740_v4  ;;  %12083 = vmatprep.mubr.bf16.mxu1 %v2538_v2  ;;  %v14846_v16 = vpop.permute.xlu0 %1457  ;;  %v12750_v4 = vld [vmem:[%s16761_s4 + $0x208] sm:$0xff]   ;;  %v12752_v2 = vld [vmem:[%s16761_s4 + $0x200] sm:$0xff]  }
 0x1d3   :  { %12098 = vmatpush3.bf16.msra.mxu0 %v12743_v19  ;;  %12073 = vmatprep.subr.bf16.mxu1 %v12744_v29  ;;  %v14858_v60 = vpop.permute.xlu1 %2675  ;;  %v14863_v19 = vld [vmem:[#allocation2 + $0x28] sm:$0xf] }
 0x1d4   :  { %12099 = vmatprep.subr.bf16.mxu0 %v12745_v32  ;;  %4301 = vperm.xlu0 %12584, %v14840_v13   ;;  %16809 = vst [vmem:[#allocation30_spill] sm:$0xff] %v14858_v60  ;;  %v3122_v60 = vld [vmem:[#allocation2 + $0x14] sm:$0xe] }
 0x1d5   :  { %4132 = vperm.xlu1 %12582, %v14455_v37   ;;  %v10367_v59 = vcombine.low %v3122_v60, %v14899_v40  ;;  %v12766_v60 = vld [vmem:[#allocation2 + $0x2c] ss:$0 sps:$4 sm:$0x11]  }
 0x1d6   :  { %12074 = vmatpush3.bf16.msra.mxu1 %v12744_v29  ;;  %v14872_v29 = vld [vmem:[#allocation2 + $0x24] sm:$0xf]  ;;  %v14874_v35 = vpop.permute.xlu0 %1465 }
 0x1d7   :  { %12100 = vmatpush3.bf16.msra.mxu0 %v12745_v32  ;;  %12075 = vmatprep.subr.bf16.mxu1 %v12746_v51  ;;  %v10313_v32 = vcombine.low %v14863_v19, %v14865_v47 }
 0x1d8   :  { %12101 = vmatprep.subr.bf16.mxu0 %v12747_v54  ;;  %4313 = vperm.xlu0 %12584, %v14446_v34   ;;  %v14867_v34 = vld [vmem:[#allocation2 + $0x20] sm:$0xf] }
 0x1d9   :  { %12583 = vset.pattern.permute.xlu1 %v13274_v7  ;;  %v14888_v7 = vpop.permute.xlu1 %2683 }
 0x1da   :  { %12076 = vmatpush3.bf16.msra.mxu1 %v12746_v51  ;;  %4297 = vperm.xlu1 %12583, %v14855_v3   ;;  %v10312_v51 = vcombine.low %v14867_v34, %v14872_v29  ;;  %16810 = vst [vmem:[#allocation31_spill] sm:$0xff] %v14888_v7  ;;  %v14901_v7 = vld [vmem:[#allocation2 + $0x1c] sm:$0xf] }
 0x1db   :  { %12102 = vmatpush3.bf16.msra.mxu0 %v12747_v54  ;;  %12077 = vmatprep.subr.bf16.mxu1 %v12748_v17  ;;  %v12756_v54 = vld [vmem:[#allocation2 + $0x1c] sm:$0xff]   ;;  %v14921_v18 = vcombine.low %v14901_v7, %v14915_v44 }
 0x1dc   :  { %12103 = vmatprep.subr.bf16.mxu0 %v12749_v0  ;;  %4321 = vperm.xlu0 %12584, %v14455_v37   ;;  %v12754_v37 = vld [vmem:[%s16761_s4 + $0x2f8] sm:$0xff]   ;;  %v2762_v27 = vrot.slane %v10312_v51, 3  ;;  %v2539_v52 = vrot.slane %v12756_v54, 1 }
 0x1dd   :  { %v14923_v61 = vpop.permute.xlu1 %2691 }
 0x1de   :  { %12078 = vmatpush3.bf16.msra.mxu1 %v12748_v17  ;;  %4305 = vperm.xlu1 %12583, %v14808_v24   ;;  %v14890_v17 = vld [vmem:[#allocation2 + $0x24] sm:$0xff]   ;;  %16811 = vst [vmem:[#allocation32_spill] sm:$0xff] %v14923_v61 }
 0x1df   :  { %12104 = vmatpush3.bf16.msra.mxu0 %v12749_v0  ;;  %12079 = vmatprep.subr.bf16.mxu1 %v12750_v4  ;;  %v2764_v0 = vrot.slane %v10313_v32, 3  ;;  %v12759_v32 = vld [vmem:[%s16761_s4 + $0x2f0] sm:$0xff]   ;;  %v2541_v51 = vrot.slane %v14890_v17, 1  ;;  %v16812_v17 = vrot.slane %v14789_v57, 1  ;;  %v3171_v57 = vrot.slane %v10367_v59, 1 }
 0x1e0   :  { %12105 = vmatprep.subr.bf16.mxu0 %v12751_v12  ;;  %12585 = vset.pattern.permute.xlu0 %v16770_v26  ;;  %v14909_v26 = vpop.permute.xlu0 %1640 }
 0x1e1   :  { %4520 = vperm.xlu0 %12585, %v14855_v3   ;;  %v2765_v54 = vsel %vm892_vm0, %v2762_v27, %v2764_v0  ;;  %v14942_v61 = vpop.permute.xlu1 %2890 }
 0x1e2   :  { %12080 = vmatpush3.bf16.msra.mxu1 %v12750_v4  ;;  %4309 = vperm.xlu1 %12583, %v14896_v8   ;;  %v12757_v4 = vld [vmem:[%s16761_s4 + $0x2b8] sm:$0xff]   ;;  %16813 = vst [vmem:[#allocation33_spill] sm:$0xff] %v14942_v61 }
 0x1e3   :  { %12106 = vmatpush3.bf16.msra.mxu0 %v12751_v12  ;;  %12081 = vmatprep.subr.bf16.mxu1 %v12752_v2  ;;  %v2763_v12 = vsel %vm892_vm0, %v14792_v15, %v2762_v27  ;;  %v12760_v15 = vld [vmem:[%s16761_s4 + $0x2b0] sm:$0xff]   ;;  %v12762_v27 = vld [vmem:[%s16761_s4 + $0x2e8] sm:$0xff]  }
 0x1e4   :  { %12139 = vmatprep.subr.bf16.mxu0 %v12754_v37  ;;  %v14950_v49 = vpop.permute.xlu0 %1652 }
 0x1e5   :  { %4532 = vperm.xlu0 %12585, %v14896_v8  }
 0x1e6   :  { %12082 = vmatpush3.bf16.msra.mxu1 %v12752_v2  ;;  %12108 = vmatmul.mubr.bf16.vlgmr.msra.gmra.mxu0 %v2763_v12  ;;  %v2540_v2 = vsel %vm1313_vm9, %v16812_v17, %v2539_v52  ;;  %v2542_v12 = vsel %vm1313_vm9, %v2539_v52, %v2541_v51  ;;  %v16771_v17 = vrot.slane %v14921_v18, 1  ;;  %v12767_v52 = vld [vmem:[%s16761_s4 + $0x2a8] sm:$0xff]  }
 0x1e7   :  { %12111 = vmatprep.mubr.bf16.mxu0 %v2765_v54  ;;  %12140 = vmatpush3.bf16.msra.mxu0 %v12754_v37  ;;  %v2766_v54 = vrot.slane %v12761_v25, 3  ;;  %v14938_v37 = vld [vmem:[%s16760_s3 + $0x28] sm:$0xff]  ;;  %v12769_v25 = vld [vmem:[%s16761_s4 + $0x2e0] sm:$0xff]  }
 0x1e8   :  { %12115 = vmatprep.subr.bf16.mxu1 %v12757_v4  ;;  %12141 = vmatprep.subr.bf16.mxu0 %v12759_v32 }
 0x1e9   :  { %12084 = vmatmul.mubr.bf16.vlgmr.msra.gmra.mxu1 %v2540_v2  ;;  %4317 = vperm.xlu1 %12583, %v14938_v37   ;;  %v2543_v2 = vrot.slane %v12766_v60, 1  ;;  %v2767_v59 = vsel %vm892_vm0, %v2764_v0, %v2766_v54  ;;  %v12770_v60 = vld [vmem:[%s16761_s4 + $0x2a0] sm:$0xff]   ;;  %v14972_v54 = vpop.permute.xlu1 %2894 }
 0x1ea   :  { %12087 = vmatprep.mubr.bf16.mxu1 %v2542_v12  ;;  %12116 = vmatpush3.bf16.msra.mxu1 %v12757_v4  ;;  %v14957_v4 = vld [vmem:[%s16760_s3 + $0x38] sm:$0xff]  ;;  %v10339_v12 = vcombine.low %v14753_v22, %v14755_v5  ;;  %16814 = vst [vmem:[#allocation34_spill] sm:$0xff] %v14972_v54  ;;  %v12773_v5 = vld [vmem:[%s16761_s4 + $0x2d0] sm:$0xff]   ;;  %v12778_v54 = vld [vmem:[%s16761_s4 + $0x280] sm:$0xff]  }
 0x1eb   :  { %12142 = vmatpush3.bf16.msra.mxu0 %v12759_v32  ;;  %12117 = vmatprep.subr.bf16.mxu1 %v12760_v15  ;;  %v3173_v32 = vsel %vm1313_vm9, %v3171_v57, %v16771_v17  ;;  %v2544_v0 = vsel %vm1313_vm9, %v2541_v51, %v2543_v2  ;;  %v14975_v57 = vpop.permute.xlu0 %1660  ;;  %v12772_v22 = vld [vmem:[%s16761_s4 + $0x298] sm:$0xff]   ;;  %v12774_v2 = vld [vmem:[%s16761_s4 + $0x290] sm:$0xff]  }
 0x1ec   :  { %12143 = vmatprep.subr.bf16.mxu0 %v12762_v27  ;;  %16816 = vst [vmem:[#allocation35_spill] sm:$0xff] %v14975_v57  ;;  %4540 = vperm.xlu0 %12585, %v14938_v37   ;;  %v10340_v57 = vcombine.low %v14757_v55, %v14867_v34 }
 0x1ed   :  { %4325 = vperm.xlu1 %12583, %v14957_v4   ;;  %v14985_v51 = vpop.permute.xlu1 %2902 }
 0x1ee   :  { %12112 = vmatmul.mubr.bf16.gmra.mxu0 %v2767_v59  ;;  %12118 = vmatpush3.bf16.msra.mxu1 %v12760_v15  ;;  %v12771_v15 = vld [vmem:[%s16761_s4 + $0x2d8] sm:$0xff]   ;;  %16817 = vst [vmem:[#allocation36_spill] sm:$0xff] %v14985_v51  ;;  %v14997_v59 = vld [vmem:[#allocation2 + $0x28] sm:$0xf]  ;;  %v13276_v51 = vmov 18  }
 0x1ef   :  { %12144 = vmatpush3.bf16.msra.mxu0 %v12762_v27  ;;  %12155 = vmatprep.mubr.bf16.mxu0 %v3173_v32  ;;  %v16815_v27 = vmov 17   ;;  %v12776_v32 = vld [vmem:[%s16761_s4 + $0x288] sm:$0xff]  }
 0x1f0   :  { %12119 = vmatprep.subr.bf16.mxu1 %v12767_v52  ;;  %12145 = vmatprep.subr.bf16.mxu0 %v12769_v25 }
 0x1f1   :  { %12088 = vmatmul.mubr.bf16.gmra.mxu1 %v2544_v0  ;;  %12586 = vset.pattern.permute.xlu1 %v16815_v27  ;;  %v15004_v0 = vld [vmem:[#allocation2 + $0x30] sm:$0xf] }
 0x1f2   :  { %12120 = vmatpush3.bf16.msra.mxu1 %v12767_v52  ;;  %12131 = vmatprep.mubr.bf16.mxu1 %v10339_v12  ;;  %v12775_v52 = vld [vmem:[%s16761_s4 + $0x2c8] sm:$0xff]   ;;  %v15006_v12 = vld [vmem:[#allocation2 + $0x24] sm:$0xf] }
 0x1f3   :  { %12146 = vmatpush3.bf16.msra.mxu0 %v12769_v25  ;;  %12121 = vmatprep.subr.bf16.mxu1 %v12770_v60  ;;  %v14993_v25 = vpop.permute.xlu0 %1668  ;;  %v15023_v17 = vcombine.low %v15006_v12, %v14997_v59 }
 0x1f4   :  { %12147 = vmatprep.subr.bf16.mxu0 %v12771_v15  ;;  %4524 = vperm.xlu1 %12586, %v14840_v13  }
 0x1f5   :  { %4548 = vperm.xlu0 %12585, %v14957_v4   ;;  %v3174_v14 = vrot.slane %v15023_v17, 1 }
 0x1f6   :  { %12122 = vmatpush3.bf16.msra.mxu1 %v12770_v60  ;;  %v15002_v60 = vld [vmem:[#allocation2 + $0x2c] sm:$0xf] }
 0x1f7   :  { %12148 = vmatpush3.bf16.msra.mxu0 %v12771_v15  ;;  %12123 = vmatprep.subr.bf16.mxu1 %v12772_v22  ;;  %v12777_v15 = vld [vmem:[%s16761_s4 + $0x2c0] sm:$0xff]   ;;  %v15011_v27 = vpop.permute.xlu0 %1833  ;;  %v15027_v61 = vcombine.low %v15002_v60, %v15004_v0 }
 0x1f8   :  { %12149 = vmatprep.subr.bf16.mxu0 %v12773_v5  ;;  %4528 = vperm.xlu1 %12586, %v14808_v24   ;;  %16818 = vst [vmem:[#allocation37_spill] sm:$0xff] %v15011_v27  ;;  %v12782_v27 = vld [vmem:[%s16761_s4 + $0x338] sm:$0xff]  }
 0x1f9   :  { %12588 = vset.pattern.permute.xlu0 %v13276_v51 }
 0x1fa   :  { %12124 = vmatpush3.bf16.msra.mxu1 %v12772_v22  ;;  %v15016_v22 = vld [vmem:[%s16760_s3 + $0x20] sm:$0xff]  ;;  %4747 = vperm.xlu0 %12588, %v14840_v13  }
 0x1fb   :  { %12150 = vmatpush3.bf16.msra.mxu0 %v12773_v5  ;;  %12125 = vmatprep.subr.bf16.mxu1 %v12774_v2  ;;  %v15019_v5 = vpop.permute.xlu1 %2910  ;;  %v15044_v11 = vpop.permute.xlu0 %1845 }
 0x1fc   :  { %12151 = vmatprep.subr.bf16.mxu0 %v12775_v52  ;;  %4536 = vperm.xlu1 %12586, %v15016_v22   ;;  %16819 = vst [vmem:[#allocation38_spill] sm:$0xff] %v15019_v5  ;;  %v12780_v5 = vld [vmem:[%s16761_s4 + $0x378] sm:$0xff]   ;;  %16820 = vst [vmem:[#allocation39_spill] sm:$0xff] %v15044_v11 }
 0x1fe   :  { %12126 = vmatpush3.bf16.msra.mxu1 %v12774_v2  ;;  %v15039_v2 = vld [vmem:[%s16760_s3 + $0x30] sm:$0xff]  ;;  %4759 = vperm.xlu0 %12588, %v15016_v22  }
 0x1ff   :  { %12152 = vmatpush3.bf16.msra.mxu0 %v12775_v52  ;;  %12127 = vmatprep.subr.bf16.mxu1 %v12776_v32  ;;  %v3176_v52 = vrot.slane %v15027_v61, 1  ;;  %v15046_v42 = vpop.permute.xlu1 %3075  ;;  %v15073_v34 = vpop.permute.xlu0 %1853 }
 0x200   :  { %12153 = vmatprep.subr.bf16.mxu0 %v12777_v15  ;;  %4544 = vperm.xlu1 %12586, %v15039_v2   ;;  %16821 = vst [vmem:[#allocation40_spill] sm:$0xff] %v15046_v42  ;;  %v3345_v42 = vld [vmem:[#allocation2 + $0x14] sm:$0x8]  ;;  %16824 = vst [vmem:[#allocation42_spill] sm:$0xff] %v15073_v34 }
 0x201   :  { %v10396_v55 = vcombine.low %v3345_v42, %v14899_v40 }
 0x202   :  { %12128 = vmatpush3.bf16.msra.mxu1 %v12776_v32  ;;  %v16822_v32 = vrot.slane %v14921_v18, 1  ;;  %4767 = vperm.xlu0 %12588, %v15039_v2  }
 0x203   :  { %12154 = vmatpush3.bf16.msra.mxu0 %v12777_v15  ;;  %12129 = vmatprep.subr.bf16.mxu1 %v12778_v54  ;;  %v3177_v15 = vsel %vm1313_vm9, %v3174_v14, %v3176_v52 }
 0x204   :  { %12187 = vmatprep.subr.bf16.mxu0 %v12780_v5  ;;  %12587 = vset.pattern.permute.xlu1 %v13276_v51  ;;  %v3175_v11 = vsel %vm1313_vm9, %v16822_v32, %v3174_v14  ;;  %v12785_v51 = vld [vmem:[%s16761_s4 + $0x330] sm:$0xff]   ;;  %v10341_v32 = vcombine.low %v14872_v29, %v14863_v19  ;;  %v15070_v14 = vpop.permute.xlu1 %3083  ;;  %v12790_v29 = vld [vmem:[%s16761_s4 + $0x328] sm:$0xff]  }
 0x205   :  { %4743 = vperm.xlu1 %12587, %v14855_v3   ;;  %16823 = vst [vmem:[#allocation41_spill] sm:$0xff] %v15070_v14  ;;  %v2933_v19 = vld [vmem:[#allocation2 + $0x30] sm:$0xf] }
 0x206   :  { %12130 = vmatpush3.bf16.msra.mxu1 %v12778_v54  ;;  %12156 = vmatmul.mubr.bf16.vlgmr.msra.gmra.mxu0 %v3175_v11  ;;  %v12787_v11 = vld [vmem:[%s16761_s4 + $0x368] sm:$0xff]   ;;  %v3178_v54 = vrot.slane %v12786_v1, 1  ;;  %v12792_v1 = vld [vmem:[%s16761_s4 + $0x360] sm:$0xff]  }
 0x207   :  { %12159 = vmatprep.mubr.bf16.mxu0 %v3177_v15  ;;  %12188 = vmatpush3.bf16.msra.mxu0 %v12780_v5  ;;  %v10342_v15 = vcombine.low %v14865_v47, %v2933_v19  ;;  %v12795_v47 = vld [vmem:[%s16761_s4 + $0x318] sm:$0xff]   ;;  %v12797_v19 = vld [vmem:[%s16761_s4 + $0x310] sm:$0xff]  }
 0x208   :  { %12163 = vmatprep.subr.bf16.mxu1 %v12782_v27  ;;  %12189 = vmatprep.subr.bf16.mxu0 %v12784_v43  ;;  %v3179_v42 = vsel %vm1313_vm9, %v3176_v52, %v3178_v54  ;;  %v15088_v5 = vpop.permute.xlu1 %3087  ;;  %v12793_v52 = vld [vmem:[%s16761_s4 + $0x320] sm:$0xff]   ;;  %v13277_v54 = vmov 19  }
 0x209   :  { %12132 = vmatmul.mubr.bf16.vlgmr.msra.gmra.mxu1 %v10340_v57  ;;  %4751 = vperm.xlu1 %12587, %v14808_v24   ;;  %v10422_v57 = vcombine.low %v14899_v40, %v14901_v7  ;;  %16825 = vst [vmem:[#allocation43_spill] sm:$0xff] %v15088_v5  ;;  %v12794_v40 = vld [vmem:[%s16761_s4 + $0x358] sm:$0xff]   ;;  %v12806_v5 = vld [vmem:[%s16761_s4 + $0x3b0] sm:$0xff]  }
 0x20a   :  { %12135 = vmatprep.mubr.bf16.mxu1 %v10341_v32  ;;  %12164 = vmatpush3.bf16.msra.mxu1 %v12782_v27  ;;  %v3370_v27 = vrot.slane %v10396_v55, 3  ;;  %v15094_v32 = vpop.permute.xlu0 %2052 }
 0x20b   :  { %12190 = vmatpush3.bf16.msra.mxu0 %v12784_v43  ;;  %12165 = vmatprep.subr.bf16.mxu1 %v12785_v51  ;;  %v16772_v43 = vrot.slane %v14921_v18, 3  ;;  %16826 = vst [vmem:[#allocation44_spill] sm:$0xff] %v15094_v32  ;;  %v12833_v32 = vld [vmem:[#allocation2 + $0x1c] sm:$0xfe]  }
 0x20c   :  { %12191 = vmatprep.subr.bf16.mxu0 %v12787_v11  ;;  %12589 = vset.pattern.permute.xlu0 %v13277_v54 }
 0x20d   :  { %4755 = vperm.xlu1 %12587, %v14896_v8   ;;  %v3372_v7 = vsel %vm892_vm0, %v3370_v27, %v16772_v43  ;;  %4932 = vperm.xlu0 %12589, %v14855_v3   ;;  %v12800_v27 = vld [vmem:[%s16761_s4 + $0x340] sm:$0xff]  }
 0x20e   :  { %12160 = vmatmul.mubr.bf16.gmra.mxu0 %v3179_v42  ;;  %12166 = vmatpush3.bf16.msra.mxu1 %v12785_v51  ;;  %v12796_v51 = vld [vmem:[%s16761_s4 + $0x350] sm:$0xff]   ;;  %v15111_v55 = vpop.permute.xlu0 %2064  ;;  %v12799_v42 = vld [vmem:[%s16761_s4 + $0x308] sm:$0xff]  }
 0x20f   :  { %12192 = vmatpush3.bf16.msra.mxu0 %v12787_v11  ;;  %12203 = vmatprep.mubr.bf16.mxu0 %v10422_v57  ;;  %v15109_v11 = vpop.permute.xlu1 %3095  ;;  %16828 = vst [vmem:[#allocation46_spill] sm:$0xff] %v15111_v55 }
 0x210   :  { %12167 = vmatprep.subr.bf16.mxu1 %v12790_v29  ;;  %12193 = vmatprep.subr.bf16.mxu0 %v12792_v1  ;;  %16827 = vst [vmem:[#allocation45_spill] sm:$0xff] %v15109_v11  ;;  %v3375_v11 = vrot.slane %v15027_v61, 3 }
 0x211   :  { %12136 = vmatmul.mubr.bf16.gmra.mxu1 %v10342_v15  ;;  %4763 = vperm.xlu1 %12587, %v14938_v37  }
 0x212   :  { %12168 = vmatpush3.bf16.msra.mxu1 %v12790_v29  ;;  %12179 = vmatprep.mubr.bf16.mxu1 %v3372_v7  ;;  %v12798_v29 = vld [vmem:[%s16761_s4 + $0x348] sm:$0xff]   ;;  %v15128_v57 = vpop.permute.xlu0 %2072 }
 0x213   :  { %12194 = vmatpush3.bf16.msra.mxu0 %v12792_v1  ;;  %12169 = vmatprep.subr.bf16.mxu1 %v12793_v52  ;;  %v15122_v1 = vpop.permute.xlu1 %3103  ;;  %16830 = vst [vmem:[#allocation48_spill] sm:$0xff] %v15128_v57 }
 0x214   :  { %12195 = vmatprep.subr.bf16.mxu0 %v12794_v40  ;;  %4944 = vperm.xlu0 %12589, %v14896_v8   ;;  %16829 = vst [vmem:[#allocation47_spill] sm:$0xff] %v15122_v1  ;;  %v15163_v1 = vld [vmem:[#allocation2 + $0x20] sm:$0xf] }
 0x215   :  { %4771 = vperm.xlu1 %12587, %v14957_v4  }
 0x216   :  { %12170 = vmatpush3.bf16.msra.mxu1 %v12793_v52  ;;  %v12801_v52 = vld [vmem:[%s16761_s4 + $0x300] sm:$0xff]   ;;  %v15143_v7 = vpop.permute.xlu0 %2080 }
 0x217   :  { %12196 = vmatpush3.bf16.msra.mxu0 %v12794_v40  ;;  %12171 = vmatprep.subr.bf16.mxu1 %v12795_v47  ;;  %v15134_v15 = vpop.permute.xlu1 %3302  ;;  %v12802_v40 = vld [vmem:[%s16761_s4 + $0x3f8] sm:$0xff]   ;;  %16832 = vst [vmem:[#allocation50_spill] sm:$0xff] %v15143_v7 }
 0x218   :  { %12197 = vmatprep.subr.bf16.mxu0 %v12796_v51  ;;  %4952 = vperm.xlu0 %12589, %v14938_v37   ;;  %16831 = vst [vmem:[#allocation49_spill] sm:$0xff] %v15134_v15  ;;  %v3733_v15 = vld [vmem:[#allocation2 + $0x18] sm:$0xe] }
 0x219   :  { %12590 = vset.pattern.permute.xlu1 %v13277_v54  ;;  %v10423_v54 = vcombine.low %v14915_v44, %v15006_v12  ;;  %v15165_v44 = vld [vmem:[#allocation2 + $0x24] sm:$0xf] }
 0x21a   :  { %12172 = vmatpush3.bf16.msra.mxu1 %v12795_v47  ;;  %4936 = vperm.xlu1 %12590, %v14840_v13   ;;  %v15147_v47 = vld [vmem:[#allocation2 + $0x1c] sm:$0xf] }
 0x21b   :  { %12198 = vmatpush3.bf16.msra.mxu0 %v12796_v51  ;;  %12173 = vmatprep.subr.bf16.mxu1 %v12797_v19  ;;  %v3956_v51 = vld [vmem:[#allocation2 + $0x18] sm:$0x8]  ;;  %v15158_v43 = vpop.permute.xlu1 %3306 }
 0x21c   :  { %12199 = vmatprep.subr.bf16.mxu0 %v12798_v29  ;;  %4960 = vperm.xlu0 %12589, %v14957_v4   ;;  %16833 = vst [vmem:[#allocation51_spill] sm:$0xff] %v15158_v43  ;;  %v10479_v12 = vcombine.low %v3956_v51, %v15147_v47  ;;  %v12812_v51 = vld [vmem:[#allocation2 + $0x34] ss:$0 sps:$4 sm:$0x77]  }
 0x21e   :  { %12174 = vmatpush3.bf16.msra.mxu1 %v12797_v19  ;;  %4940 = vperm.xlu1 %12590, %v14808_v24   ;;  %v3373_v19 = vrot.slane %v15023_v17, 3  ;;  %v13278_v17 = vmov 20  }
 0x21f   :  { %12200 = vmatpush3.bf16.msra.mxu0 %v12798_v29  ;;  %12175 = vmatprep.subr.bf16.mxu1 %v12799_v42  ;;  %v12804_v29 = vld [vmem:[%s16761_s4 + $0x3b8] sm:$0xff]   ;;  %v15186_v43 = vpop.permute.xlu1 %3314 }
 0x220   :  { %12201 = vmatprep.subr.bf16.mxu0 %v12800_v27  ;;  %12592 = vset.pattern.permute.xlu0 %v13278_v17  ;;  %16836 = vst [vmem:[#allocation53_spill] sm:$0xff] %v15186_v43 }
 0x222   :  { %12176 = vmatpush3.bf16.msra.mxu1 %v12799_v42  ;;  %4948 = vperm.xlu1 %12590, %v15016_v22   ;;  %v12805_v42 = vld [vmem:[%s16761_s4 + $0x3f0] sm:$0xff]  }
 0x223   :  { %12202 = vmatpush3.bf16.msra.mxu0 %v12800_v27  ;;  %12177 = vmatprep.subr.bf16.mxu1 %v12801_v52  ;;  %v10424_v27 = vcombine.low %v14997_v59, %v15002_v60  ;;  %v16834_v59 = vrot.slane %v14921_v18, 3  ;;  %v12808_v60 = vld [vmem:[%s16761_s4 + $0x3e8] sm:$0xff]   ;;  %v15183_v18 = vpop.permute.xlu0 %2255 }
 0x224   :  { %12235 = vmatprep.subr.bf16.mxu0 %v12802_v40  ;;  %16835 = vst [vmem:[#allocation52_spill] sm:$0xff] %v15183_v18  ;;  %5159 = vperm.xlu0 %12592, %v14840_v13  }
 0x225   :  { %v3374_v61 = vsel %vm892_vm0, %v16834_v59, %v3373_v19  ;;  %v3981_v59 = vrot.slane %v10479_v12, 3  ;;  %v12816_v12 = vld [vmem:[%s16761_s4 + $0x3a0] sm:$0xff]  }
 0x226   :  { %12178 = vmatpush3.bf16.msra.mxu1 %v12801_v52  ;;  %12204 = vmatmul.mubr.bf16.vlgmr.msra.gmra.mxu0 %v10423_v54  ;;  %v15179_v52 = vcombine.low %v15163_v1, %v15165_v44  ;;  %v3544_v54 = vld [vmem:[#allocation2 + $0x34] sm:$0xf] }
 0x227   :  { %12207 = vmatprep.mubr.bf16.mxu0 %v10424_v27  ;;  %12236 = vmatpush3.bf16.msra.mxu0 %v12802_v40  ;;  %v3376_v40 = vsel %vm892_vm0, %v3373_v19, %v3375_v11  ;;  %v10450_v27 = vcombine.low %v3733_v15, %v15147_v47  ;;  %v10425_v14 = vcombine.low %v15004_v0, %v3544_v54  ;;  %v3377_v19 = vrot.slane %v12812_v51, 3  ;;  %v12813_v15 = vld [vmem:[%s16761_s4 + $0x3a8] sm:$0xff]   ;;  %v15204_v51 = vpop.permute.xlu0 %2267 }
 0x228   :  { %12211 = vmatprep.subr.bf16.mxu1 %v12804_v29  ;;  %12237 = vmatprep.subr.bf16.mxu0 %v12805_v42  ;;  %16837 = vst [vmem:[#allocation54_spill] sm:$0xff] %v15204_v51  ;;  %v12826_v51 = vld [vmem:[%s16761_s4 + $0x478] sm:$0xff]  }
 0x229   :  { %12180 = vmatmul.mubr.bf16.vlgmr.msra.gmra.mxu1 %v3374_v61  ;;  %4956 = vperm.xlu1 %12590, %v15039_v2   ;;  %v16774_v61 = vrot.slane %v15179_v52, 3  ;;  %v3378_v54 = vsel %vm892_vm0, %v3375_v11, %v3377_v19  ;;  %v12818_v11 = vld [vmem:[%s16761_s4 + $0x398] sm:$0xff]   ;;  %v12820_v19 = vld [vmem:[%s16761_s4 + $0x390] sm:$0xff]  }
 0x22a   :  { %12183 = vmatprep.mubr.bf16.mxu1 %v3376_v40  ;;  %12212 = vmatpush3.bf16.msra.mxu1 %v12804_v29  ;;  %v12815_v40 = vld [vmem:[%s16761_s4 + $0x3e0] sm:$0xff]   ;;  %v3782_v29 = vrot.slane %v10450_v27, 1 }
 0x22b   :  { %12238 = vmatpush3.bf16.msra.mxu0 %v12805_v42  ;;  %12213 = vmatprep.subr.bf16.mxu1 %v12806_v5  ;;  %v3983_v0 = vsel %vm892_vm0, %v3981_v59, %v16774_v61  ;;  %v16773_v42 = vrot.slane %v15179_v52, 1  ;;  %v15223_v27 = vpop.permute.xlu0 %2275  ;;  %v16775_v61 = vmov 21  }
 0x22c   :  { %12239 = vmatprep.subr.bf16.mxu0 %v12808_v60  ;;  %5171 = vperm.xlu0 %12592, %v15016_v22   ;;  %16839 = vst [vmem:[#allocation56_spill] sm:$0xff] %v15223_v27 }
 0x22d   :  { %12591 = vset.pattern.permute.xlu1 %v13278_v17  ;;  %v3784_v17 = vsel %vm1313_vm9, %v3782_v29, %v16773_v42  ;;  %v15238_v29 = vld [vmem:[#allocation2 + $0x2c] sm:$0xf] }
 0x22e   :  { %12208 = vmatmul.mubr.bf16.gmra.mxu0 %v10425_v14  ;;  %12214 = vmatpush3.bf16.msra.mxu1 %v12806_v5  ;;  %v12817_v14 = vld [vmem:[%s16761_s4 + $0x3d8] sm:$0xff]   ;;  %v15210_v5 = vpop.permute.xlu1 %3322 }
 0x22f   :  { %12240 = vmatpush3.bf16.msra.mxu0 %v12808_v60  ;;  %12251 = vmatprep.mubr.bf16.mxu0 %v3983_v0  ;;  %16838 = vst [vmem:[#allocation55_spill] sm:$0xff] %v15210_v5  ;;  %v12819_v60 = vld [vmem:[%s16761_s4 + $0x3d0] sm:$0xff]   ;;  %v991_v5 = vpop.f32.mrf.mxu1 }
 0x230   :  { %12215 = vmatprep.subr.bf16.mxu1 %v12813_v15  ;;  %12241 = vmatprep.subr.bf16.mxu0 %v12815_v40  ;;  %v15240_v0 = vld [vmem:[#allocation2 + $0x30] sm:$0xf] }
 0x231   :  { %12184 = vmatmul.mubr.bf16.gmra.mxu1 %v3378_v54  ;;  %5155 = vperm.xlu1 %12591, %v14855_v3   ;;  %v12822_v54 = vld [vmem:[%s16761_s4 + $0x388] sm:$0xff]  }
 0x232   :  { %12216 = vmatpush3.bf16.msra.mxu1 %v12813_v15  ;;  %12227 = vmatprep.mubr.bf16.mxu1 %v3784_v17  ;;  %v15226_v59 = vpop.permute.xlu1 %3497  ;;  %v12821_v15 = vld [vmem:[%s16761_s4 + $0x3c8] sm:$0xff]   ;;  %v15249_v17 = vpop.f32.mrf.mxu0 }
 0x233   :  { %12242 = vmatpush3.bf16.msra.mxu0 %v12815_v40  ;;  %12217 = vmatprep.subr.bf16.mxu1 %v12816_v12  ;;  %16840 = vst [vmem:[#allocation57_spill] sm:$0xff] %v15226_v59  ;;  %v15235_v40 = vld [vmem:[#allocation2 + $0x28] sm:$0xf] }
 0x234   :  { %12243 = vmatprep.subr.bf16.mxu0 %v12817_v14  ;;  %5179 = vperm.xlu0 %12592, %v15039_v2  }
 0x235   :  { %5163 = vperm.xlu1 %12591, %v14808_v24  }
 0x236   :  { %12218 = vmatpush3.bf16.msra.mxu1 %v12816_v12  ;;  %v15242_v12 = vld [vmem:[#allocation2 + $0x34] sm:$0xf]  ;;  %v15254_v42 = vpop.permute.xlu1 %3505 }
 0x237   :  { %12244 = vmatpush3.bf16.msra.mxu0 %v12817_v14  ;;  %12219 = vmatprep.subr.bf16.mxu1 %v12818_v11  ;;  %16841 = vst [vmem:[#allocation58_spill] sm:$0xff] %v15242_v12  ;;  %v15247_v14 = vpop.permute.xlu0 %2440  ;;  %16843 = vst [vmem:[#allocation60_spill] sm:$0xff] %v15254_v42  ;;  %v15263_v59 = vcombine.low %v15240_v0, %v15242_v12 }
 0x238   :  { %12245 = vmatprep.subr.bf16.mxu0 %v12819_v60  ;;  %16842 = vst [vmem:[#allocation59_spill] sm:$0xff] %v15247_v14  ;;  %12593 = vset.pattern.permute.xlu0 %v16775_v61  ;;  %v12824_v61 = vld [vmem:[%s16761_s4 + $0x380] sm:$0xff]  }
 0x239   :  { %5167 = vperm.xlu1 %12591, %v14896_v8   ;;  %5354 = vperm.xlu0 %12593, %v14855_v3  }
 0x23a   :  { %12220 = vmatpush3.bf16.msra.mxu1 %v12818_v11  ;;  %v12823_v11 = vld [vmem:[%s16761_s4 + $0x3c0] sm:$0xff]   ;;  %v15281_v7 = vpop.permute.xlu1 %3509 }
 0x23b   :  { %12246 = vmatpush3.bf16.msra.mxu0 %v12819_v60  ;;  %12221 = vmatprep.subr.bf16.mxu1 %v12820_v19  ;;  %v15259_v60 = vcombine.low %v15235_v40, %v15238_v29  ;;  %16845 = vst [vmem:[#allocation62_spill] sm:$0xff] %v15281_v7 }
 0x23c   :  { %12247 = vmatprep.subr.bf16.mxu0 %v12821_v15 }
 0x23d   :  { %5175 = vperm.xlu1 %12591, %v14938_v37   ;;  %v3984_v37 = vrot.slane %v15259_v60, 3  ;;  %v3785_v12 = vrot.slane %v15259_v60, 1  ;;  %v16778_v60 = vmov 24  }
 0x23e   :  { %12222 = vmatpush3.bf16.msra.mxu1 %v12820_v19  ;;  %v11921_v43 = vpop.f32.mrf.mxu0  ;;  %v15275_v19 = vpop.permute.xlu0 %2452  ;;  %5366 = vperm.xlu0 %12593, %v14896_v8  }
 0x23f   :  { %12248 = vmatpush3.bf16.msra.mxu0 %v12821_v15  ;;  %12223 = vmatprep.subr.bf16.mxu1 %v12822_v54  ;;  %16844 = vst [vmem:[#allocation61_spill] sm:$0xff] %v15275_v19  ;;  %v1254_v15 = vmul.f32 %v11921_v43, %v14433_v30  ;;  %v12828_v30 = vld [vmem:[%s16761_s4 + $0x438] sm:$0xff]  }
 0x240   :  { %v1201_v42 = vpop.f32.mrf.mxu0  ;;  %12249 = vmatprep.subr.bf16.mxu0 %v12823_v11  ;;  %v12831_v43 = vld [vmem:[#allocation2 + $0x38] ss:$0 sps:$4 sm:$0x77]  }
 0x241   :  { %v11897_v27 = vpop.f32.mrf.mxu1  ;;  %5183 = vperm.xlu1 %12591, %v14957_v4   ;;  %v1252_v18 = vmul.f32 %v14424_v28, %v1201_v42  ;;  %v16847_v42 = vrot.slane %v15263_v59, 3 }
 0x242   :  { %v1065_v14 = vmul.f32 %v11897_v27, %v14513_v6  ;;  %12224 = vmatpush3.bf16.msra.mxu1 %v12822_v54  ;;  %v11922_v57 = vpop.f32.mrf.mxu0  ;;  %v12829_v6 = vld [vmem:[%s16761_s4 + $0x470] sm:$0xff]   ;;  %v16846_v54 = vrot.slane %v15179_v52, 3  ;;  %12600 = vset.pattern.permute.xlu0 %v16778_v60 }
 0x243   :  { %12250 = vmatpush3.bf16.msra.mxu0 %v12823_v11  ;;  %v1004_v34 = vpop.f32.mrf.mxu1  ;;  %12225 = vmatprep.subr.bf16.mxu1 %v12824_v61  ;;  %v16848_v11 = vmov 21   ;;  %v12830_v60 = vld [vmem:[%s16761_s4 + $0x430] sm:$0xff]  }
 0x244   :  { %v15285_v19 = vadd.f32 %v1254_v15, %v1065_v14  ;;  %v1063_v4 = vmul.f32 %v14494_v48, %v1004_v34  ;;  %v1204_v8 = vpop.f32.mrf.mxu0  ;;  %12283 = vmatprep.subr.bf16.mxu0 %v12826_v51  ;;  %v3985_v28 = vsel %vm892_vm0, %v16846_v54, %v3984_v37  ;;  %v3987_v48 = vsel %vm892_vm0, %v3984_v37, %v16847_v42  ;;  %v15301_v14 = vld [vmem:[#allocation2 + $0x24] sm:$0xff]  }
 0x245   :  { %v11898_v27 = vpop.f32.mrf.mxu1  ;;  %12594 = vset.pattern.permute.xlu1 %v16848_v11  ;;  %v1255_v15 = vmul.f32 %v11922_v57, %v14794_v45  ;;  %v16849_v42 = vrot.slane %v15179_v52, 1  ;;  %v12835_v45 = vld [vmem:[#allocation2 + $0x38] ss:$0 sps:$4 sm:$0x11]   ;;  %v1253_v57 = vmul.f32 %v14770_v56, %v1204_v8  ;;  %v12832_v52 = vld [vmem:[%s16761_s4 + $0x468] sm:$0xff]   ;;  %v4394_v8 = vrot.slane %v15301_v14, 1 }
 0x246   :  { %v15306_v7 = vadd.f32 %v1252_v18, %v1063_v4  ;;  %v1066_v55 = vmul.f32 %v11898_v27, %v14397_v21  ;;  %12226 = vmatpush3.bf16.msra.mxu1 %v12824_v61  ;;  %12252 = vmatmul.mubr.bf16.vlgmr.msra.gmra.mxu0 %v3985_v28  ;;  %v11965_v54 = vpop.f32.mrf.mxu0  ;;  %v15322_v4 = vpop.permute.xlu1 %3517  ;;  %v1060_v27 = vmul.f32 %v14480_v62, %v991_v5  ;;  %v12854_v14 = vld [vmem:[%s16761_s4 + $0x4b0] sm:$0xff]  }
 0x247   :  { %12255 = vmatprep.mubr.bf16.mxu0 %v3987_v48  ;;  %12284 = vmatpush3.bf16.msra.mxu0 %v12826_v51  ;;  %v1007_v37 = vpop.f32.mrf.mxu1  ;;  %v3786_v34 = vsel %vm1313_vm9, %v16849_v42, %v3785_v12  ;;  %v3988_v51 = vrot.slane %v12831_v43, 3  ;;  %16850 = vst [vmem:[#allocation63_spill] sm:$0xff] %v15322_v4  ;;  %v1249_v28 = vmul.f32 %v14406_v23, %v15249_v17  ;;  %v4393_v23 = vrot.slane %v12833_v32, 1 }
 0x248   :  { %v15316_v18 = vadd.f32 %v1255_v15, %v1066_v55  ;;  %v1064_v21 = vmul.f32 %v14392_v20, %v1007_v37  ;;  %v1608_v61 = vpop.f32.mrf.mxu0  ;;  %12259 = vmatprep.subr.bf16.mxu1 %v12828_v30  ;;  %12285 = vmatprep.subr.bf16.mxu0 %v12829_v6  ;;  %v16851_v55 = vrot.slane %v15263_v59, 1  ;;  %v3789_v17 = vrot.slane %v12835_v45, 1 }
 0x249   :  { %12228 = vmatmul.mubr.bf16.vlgmr.msra.gmra.mxu1 %v3786_v34  ;;  %v11941_v56 = vpop.f32.mrf.mxu1  ;;  %5358 = vperm.xlu1 %12594, %v14840_v13   ;;  %v1673_v34 = vmul.f32 %v11965_v54, %v14474_v50  ;;  %v1257_v32 = vadd.f32 %v1249_v28, %v1060_v27  ;;  %v1671_v50 = vmul.f32 %v14909_v26, %v1608_v61 }
 0x24a   :  { %v3788_v20 = vsel %vm1313_vm9, %v3785_v12, %v16851_v55  ;;  %v15332_v43 = vadd.f32 %v1253_v57, %v1064_v21  ;;  %v1474_v48 = vmul.f32 %v11941_v56, %v14440_v33  ;;  %12260 = vmatpush3.bf16.msra.mxu1 %v12828_v30  ;;  %v11966_v62 = vpop.f32.mrf.mxu0  ;;  %v12836_v33 = vld [vmem:[%s16761_s4 + $0x428] sm:$0xff]   ;;  %v12838_v30 = vld [vmem:[%s16761_s4 + $0x460] sm:$0xff]   ;;  %v4395_v42 = vsel %vm1313_vm9, %v4393_v23, %v4394_v8  ;;  %v15359_v26 = vpop.permute.xlu1 %3525 }
 0x24b   :  { %12231 = vmatprep.mubr.bf16.mxu1 %v3788_v20  ;;  %12286 = vmatpush3.bf16.msra.mxu0 %v12829_v6  ;;  %v1409_v5 = vpop.f32.mrf.mxu1  ;;  %v15344_v6 = vpop.permute.xlu0 %2460  ;;  %16853 = vst [vmem:[#allocation64_spill] sm:$0xff] %v15359_v26  ;;  %v1674_v61 = vmul.f32 %v11966_v62, %v14950_v49  ;;  %v16854_v28 = vmov %v16851_v55  ;;  %v12840_v49 = vld [vmem:[%s16761_s4 + $0x458] sm:$0xff]  }
 0x24c   :  { %12261 = vmatprep.subr.bf16.mxu1 %v12830_v60  ;;  %v1482_v12 = vadd.f32 %v1474_v48, %v14572_v63  ;;  %v1472_v15 = vmul.f32 %v14437_v31, %v1409_v5  ;;  %v1611_v37 = vpop.f32.mrf.mxu0  ;;  %12287 = vmatprep.subr.bf16.mxu0 %v12832_v52  ;;  %v16852_v31 = vrot.slane %v15263_v59, 3 }
 0x24d   :  { %5969 = vperm.xlu0 %12600, %v14840_v13   ;;  %v11942_v63 = vpop.f32.mrf.mxu1  ;;  %5362 = vperm.xlu1 %12594, %v14808_v24   ;;  %v3790_v24 = vsel %vm1313_vm9, %v16854_v28, %v3789_v17 }
 0x24e   :  { %v3989_v54 = vsel %vm892_vm0, %v16852_v31, %v3988_v51  ;;  %v1480_v45 = vadd.f32 %v1472_v15, %v14577_v53  ;;  %v1475_v57 = vmul.f32 %v11942_v63, %v14449_v36  ;;  %12262 = vmatpush3.bf16.msra.mxu1 %v12830_v60  ;;  %v11969_v21 = vpop.f32.mrf.mxu0  ;;  %v15357_v27 = vadd.f32 %v1673_v34, %v1482_v12  ;;  %v12839_v36 = vld [vmem:[%s16761_s4 + $0x420] sm:$0xff]   ;;  %v15395_v12 = vpop.permute.xlu1 %3690  ;;  %v15421_v63 = vld [vmem:[%s16760_s3 + $0x10] sm:$0xff] }
 0x24f   :  { %12256 = vmatmul.mubr.bf16.gmra.mxu0 %v3989_v54  ;;  %v1412_v51 = vpop.f32.mrf.mxu1  ;;  %v10505_v53 = vcombine.low %v15147_v47, %v15163_v1  ;;  %12263 = vmatprep.subr.bf16.mxu1 %v12836_v33  ;;  %v16784_v47 = vmov 22   ;;  %v1677_v48 = vmul.f32 %v11969_v21, %v14486_v9  ;;  %v15393_v9 = vpop.permute.xlu0 %2468  ;;  %16855 = vst [vmem:[#allocation65_spill] sm:$0xff] %v15395_v12  ;;  %v16856_v31 = vld [vmem:[#allocation35_spill] sm:$0xff] }
 0x250   :  { %12288 = vmatpush3.bf16.msra.mxu0 %v12832_v52  ;;  %12299 = vmatprep.mubr.bf16.mxu0 %v4395_v42  ;;  %v1483_v60 = vadd.f32 %v1475_v57, %v14588_v10  ;;  %v1473_v56 = vmul.f32 %v14825_v46, %v1412_v51  ;;  %v1624_v55 = vpop.f32.mrf.mxu0  ;;  %v15375_v59 = vadd.f32 %v1671_v50, %v1480_v45  ;;  %v12845_v45 = vld [vmem:[%s16761_s4 + $0x408] sm:$0xff]   ;;  %v12846_v57 = vld [vmem:[%s16761_s4 + $0x440] sm:$0xff]   ;;  %v15446_v51 = vld [vmem:[#allocation2 + $0x34] sm:$0xff]  }
 0x251   :  { %12289 = vmatprep.subr.bf16.mxu0 %v12838_v30  ;;  %v1672_v52 = vmul.f32 %v14468_v41, %v1611_v37  ;;  %12232 = vmatmul.mubr.bf16.gmra.mxu1 %v3790_v24  ;;  %v11945_v1 = vpop.f32.mrf.mxu1  ;;  %v12841_v41 = vld [vmem:[%s16761_s4 + $0x418] sm:$0xff]   ;;  %v1675_v15 = vmul.f32 %v14478_v58, %v1624_v55  ;;  %v12843_v58 = vld [vmem:[%s16761_s4 + $0x410] sm:$0xff]   ;;  %v12847_v24 = vld [vmem:[%s16761_s4 + $0x400] sm:$0xff]   ;;  %v4398_v55 = vrot.slane %v15446_v51, 1 }
 0x252   :  { %12595 = vset.pattern.permute.xlu1 %v16784_v47  ;;  %v1481_v20 = vadd.f32 %v1473_v56, %v1257_v32  ;;  %v1478_v10 = vmul.f32 %v11945_v1, %v14874_v35  ;;  %12264 = vmatpush3.bf16.msra.mxu1 %v12836_v33  ;;  %v15380_v46 = vadd.f32 %v1674_v61, %v1483_v60  ;;  %v11970_v62 = vpop.f32.mrf.mxu0  ;;  %v12842_v35 = vld [vmem:[%s16761_s4 + $0x450] sm:$0xff]   ;;  %v15428_v42 = vpop.permute.xlu1 %3694  ;;  %v15462_v60 = vld [vmem:[%s16760_s3 + $0x8] sm:$0xff]  ;;  %v15514_v51 = vld [vmem:[%s16760_s3 + $0x18] sm:$0xff] }
 0x253   :  { %12275 = vmatprep.mubr.bf16.mxu1 %v10505_v53  ;;  %v1425_v5 = vpop.f32.mrf.mxu1  ;;  %12265 = vmatprep.subr.bf16.mxu1 %v12839_v36  ;;  %16857 = vst [vmem:[#allocation35_spill] sm:$0xff] %v15428_v42  ;;  %v12848_v61 = vld [vmem:[#allocation2 + $0x2c] sm:$0xff]   ;;  %v12849_v53 = vld [vmem:[%s16761_s4 + $0x4f8] sm:$0xff]  }
 0x254   :  { %12290 = vmatpush3.bf16.msra.mxu0 %v12838_v30  ;;  %v1486_v23 = vadd.f32 %v1478_v10, %v15285_v19  ;;  %v1476_v17 = vmul.f32 %v14846_v16, %v1425_v5  ;;  %v15391_v34 = vadd.f32 %v1672_v52, %v1481_v20  ;;  %5543 = vperm.xlu1 %12595, %v14855_v3   ;;  %v1627_v32 = vpop.f32.mrf.mxu0  ;;  %v4396_v56 = vrot.slane %v12848_v61, 1  ;;  %v12853_v52 = vld [vmem:[%s16761_s4 + $0x4f0] sm:$0xff]   ;;  %v15481_v5 = vld [vmem:[#allocation2 + $0x2c] sm:$0xf] }
 0x255   :  { %12291 = vmatprep.subr.bf16.mxu0 %v12840_v49  ;;  %v11946_v37 = vpop.f32.mrf.mxu1  ;;  %12601 = vset.pattern.permute.xlu0 %v16784_v47  ;;  %v1678_v30 = vmul.f32 %v11970_v62, %v14993_v25  ;;  %v15416_v25 = vpop.permute.xlu0 %2667  ;;  %v4569_v62 = vld [vmem:[#allocation2 + $0x28] sm:$0xf] }
 0x256   :  { %v1484_v16 = vadd.f32 %v1476_v17, %v15306_v7  ;;  %v1479_v19 = vmul.f32 %v11946_v37, %v14462_v39  ;;  %12266 = vmatpush3.bf16.msra.mxu1 %v12839_v36  ;;  %v15402_v33 = vadd.f32 %v1677_v48, %v1486_v23  ;;  %5547 = vperm.xlu0 %12601, %v14840_v13   ;;  %v12844_v39 = vld [vmem:[%s16761_s4 + $0x448] sm:$0xff]   ;;  %v15457_v36 = vpop.permute.xlu1 %3702  ;;  %v4568_v37 = vld [vmem:[#allocation2 + $0x24] sm:$0xf] }
 0x257   :  { %v1428_v50 = vpop.f32.mrf.mxu1  ;;  %12267 = vmatprep.subr.bf16.mxu1 %v12841_v41  ;;  %16858 = vst [vmem:[#allocation66_spill] sm:$0xff] %v15457_v36  ;;  %v4397_v20 = vsel %vm1313_vm9, %v4394_v8, %v4396_v56  ;;  %v4399_v48 = vsel %vm1313_vm9, %v4396_v56, %v4398_v55  ;;  %v10506_v23 = vcombine.low %v15165_v44, %v15235_v40 }
 0x258   :  { %12292 = vmatpush3.bf16.msra.mxu0 %v12840_v49  ;;  %v1487_v3 = vadd.f32 %v1479_v19, %v15316_v18  ;;  %v1477_v7 = vmul.f32 %v14458_v38, %v1428_v50  ;;  %v15414_v13 = vadd.f32 %v1675_v15, %v1484_v16  ;;  %5551 = vperm.xlu1 %12595, %v15421_v63   ;;  %v12851_v49 = vld [vmem:[%s16761_s4 + $0x4b8] sm:$0xff]   ;;  %v4567_v15 = vld [vmem:[#allocation2 + $0x20] sm:$0x8] }
 0x259   :  { %12293 = vmatprep.subr.bf16.mxu0 %v12842_v35  ;;  %v1676_v18 = vmul.f32 %v16856_v31, %v1627_v32  ;;  %v15448_v28 = vpop.permute.xlu0 %2679  ;;  %v10507_v17 = vcombine.low %v15238_v29, %v15240_v0  ;;  %v10563_v40 = vcombine.low %v4569_v62, %v15481_v5  ;;  %v16860_v19 = vld [vmem:[#allocation11_spill] sm:$0xff]  ;;  %v10562_v0 = vcombine.low %v4567_v15, %v4568_v37 }
 0x25a   :  { %v1485_v38 = vadd.f32 %v1477_v7, %v15332_v43  ;;  %12268 = vmatpush3.bf16.msra.mxu1 %v12841_v41  ;;  %v15426_v54 = vadd.f32 %v1678_v30, %v1487_v3  ;;  %5567 = vperm.xlu0 %12601, %v15039_v2   ;;  %v16780_v43 = vmov 23   ;;  %v15443_v2 = vld [vmem:[%s16760_s3] sm:$0xff]  ;;  %v15483_v41 = vpop.permute.xlu1 %3710 }
 0x25b   :  { %12269 = vmatprep.subr.bf16.mxu1 %v12843_v58  ;;  %16859 = vst [vmem:[#allocation67_spill] sm:$0xff] %v15483_v41  ;;  %v16910_v41 = vmov 26  }
 0x25c   :  { %12294 = vmatpush3.bf16.msra.mxu0 %v12842_v35  ;;  %v15437_v21 = vadd.f32 %v1676_v18, %v1485_v38  ;;  %12596 = vset.pattern.permute.xlu1 %v16780_v43  ;;  %v12856_v35 = vld [vmem:[%s16761_s4 + $0x4e8] sm:$0xff]   ;;  %v4155_v38 = vld [vmem:[#allocation2 + $0x38] sm:$0xf] }
 0x25d   :  { %12295 = vmatprep.subr.bf16.mxu0 %v12844_v39  ;;  %5766 = vperm.xlu1 %12596, %v15443_v2   ;;  %v15474_v1 = vpop.permute.xlu0 %2687 }
 0x25e   :  { %12270 = vmatpush3.bf16.msra.mxu1 %v12843_v58  ;;  %12612 = vset.pattern.permute.xlu0 %v16780_v43  ;;  %v16861_v58 = vld [vmem:[#allocation16_spill] sm:$0xff]  ;;  %v15509_v61 = vpop.permute.xlu1 %3909 }
 0x25f   :  { %12271 = vmatprep.subr.bf16.mxu1 %v12845_v45  ;;  %5770 = vperm.xlu0 %12612, %v15462_v60   ;;  %16863 = vst [vmem:[#allocation11_spill] sm:$0xff] %v15509_v61 }
 0x260   :  { %12296 = vmatpush3.bf16.msra.mxu0 %v12844_v39  ;;  %v16862_v39 = vld [vmem:[#allocation10_spill] sm:$0xff] }
 0x261   :  { %12297 = vmatprep.subr.bf16.mxu0 %v12846_v57  ;;  %12597 = vset.pattern.permute.xlu1 %v16848_v11  ;;  %v15498_v50 = vpop.permute.xlu0 %2886 }
 0x262   :  { %12272 = vmatpush3.bf16.msra.mxu1 %v12845_v45  ;;  %5370 = vperm.xlu1 %12597, %v15016_v22   ;;  %v12855_v22 = vld [vmem:[#allocation2 + $0x3c] ss:$0 sps:$4 sm:$0x11]   ;;  %v12862_v45 = vld [vmem:[%s16761_s4 + $0x4a8] sm:$0xff]  }
 0x263   :  { %12273 = vmatprep.subr.bf16.mxu1 %v12847_v24  ;;  %5774 = vperm.xlu0 %12612, %v15421_v63   ;;  %v4400_v44 = vrot.slane %v12855_v22, 1  ;;  %v16865_v22 = vld [vmem:[#allocation12_spill] sm:$0xff] }
 0x264   :  { %12298 = vmatpush3.bf16.msra.mxu0 %v12846_v57  ;;  %v12863_v57 = vld [vmem:[%s16761_s4 + $0x4e0] sm:$0xff]  }
 0x265   :  { %12331 = vmatprep.subr.bf16.mxu0 %v12849_v53  ;;  %v4401_v56 = vsel %vm1313_vm9, %v4398_v55, %v4400_v44  ;;  %v16867_v55 = vld [vmem:[#allocation58_spill] sm:$0xff]  ;;  %v16868_v44 = vld [vmem:[#allocation37_spill] sm:$0xff] }
 0x266   :  { %v12013_v10 = vpop.f32.mrf.mxu0  ;;  %12274 = vmatpush3.bf16.msra.mxu1 %v12847_v24  ;;  %12598 = vset.pattern.permute.xlu1 %v16784_v47 }
 0x267   :  { %12300 = vmatmul.mubr.bf16.vlgmr.msra.gmra.mxu0 %v4397_v20  ;;  %12307 = vmatprep.subr.bf16.mxu1 %v12851_v49  ;;  %v2085_v3 = vmul.f32 %v12013_v10, %v16861_v58  ;;  %v16870_v58 = vmov 24  }
 0x268   :  { %12303 = vmatprep.mubr.bf16.mxu0 %v4399_v48  ;;  %12332 = vmatpush3.bf16.msra.mxu0 %v12849_v53  ;;  %v2020_v8 = vpop.f32.mrf.mxu0 }
 0x269   :  { %12333 = vmatprep.subr.bf16.mxu0 %v12853_v52  ;;  %v11989_v16 = vpop.f32.mrf.mxu1  ;;  %12276 = vmatmul.mubr.bf16.vlgmr.msra.gmra.mxu1 %v10506_v23 }
 0x26a   :  { %v1862_v30 = vmul.f32 %v11989_v16, %v16860_v19  ;;  %v12014_v32 = vpop.f32.mrf.mxu0  ;;  %12279 = vmatprep.mubr.bf16.mxu1 %v10507_v17  ;;  %12308 = vmatpush3.bf16.msra.mxu1 %v12851_v49  ;;  %v10591_v49 = vcombine.low %v4568_v37, %v4569_v62  ;;  %v16866_v17 = vld [vmem:[#allocation46_spill] sm:$0xff]  ;;  %v10508_v62 = vcombine.low %v16867_v55, %v4155_v38  ;;  %v4616_v37 = vrot.slane %v10562_v0, 3  ;;  %v12864_v16 = vld [vmem:[%s16761_s4 + $0x4a0] sm:$0xff]   ;;  %v15548_v38 = vpop.permute.xlu1 %3917 }
 0x26b   :  { %v1797_v29 = vpop.f32.mrf.mxu1  ;;  %12309 = vmatprep.subr.bf16.mxu1 %v12854_v14  ;;  %5555 = vperm.xlu1 %12598, %v15514_v51   ;;  %v2086_v15 = vmul.f32 %v12014_v32, %v16866_v17  ;;  %16872 = vst [vmem:[#allocation16_spill] sm:$0xff] %v15548_v38 }
 0x26c   :  { %12334 = vmatpush3.bf16.msra.mxu0 %v12853_v52  ;;  %v1870_v7 = vadd.f32 %v1862_v30, %v15357_v27  ;;  %v1860_v31 = vmul.f32 %v16862_v39, %v1797_v29  ;;  %v2023_v18 = vpop.f32.mrf.mxu0  ;;  %v16864_v27 = vld [vmem:[#allocation44_spill] sm:$0xff]  ;;  %v15519_v52 = vrot.slane %v10563_v40, 3  ;;  %5778 = vperm.xlu0 %12612, %v15514_v51   ;;  %v16869_v30 = vld [vmem:[#allocation15_spill] sm:$0xff] }
 0x26d   :  { %12335 = vmatprep.subr.bf16.mxu0 %v12856_v35  ;;  %v2083_v24 = vmul.f32 %v16864_v27, %v2020_v8  ;;  %v11990_v53 = vpop.f32.mrf.mxu1  ;;  %v2084_v32 = vmul.f32 %v16869_v30, %v2023_v18  ;;  %v16873_v18 = vld [vmem:[#allocation18_spill] sm:$0xff] }
 0x26e   :  { %v1868_v20 = vadd.f32 %v1860_v31, %v15375_v59  ;;  %v1863_v10 = vmul.f32 %v11990_v53, %v16865_v22  ;;  %v12017_v48 = vpop.f32.mrf.mxu0  ;;  %12310 = vmatpush3.bf16.msra.mxu1 %v12854_v14  ;;  %v15524_v23 = vadd.f32 %v2085_v3, %v1870_v7  ;;  %v12865_v14 = vld [vmem:[%s16761_s4 + $0x4d8] sm:$0xff]   ;;  %v4618_v0 = vsel %vm892_vm0, %v4616_v37, %v15519_v52  ;;  %v15546_v31 = vpop.permute.xlu0 %2898 }
 0x26f   :  { %12304 = vmatmul.mubr.bf16.gmra.mxu0 %v4401_v56  ;;  %v1800_v8 = vpop.f32.mrf.mxu1  ;;  %12311 = vmatprep.subr.bf16.mxu1 %v12862_v45  ;;  %v16871_v3 = vld [vmem:[#allocation42_spill] sm:$0xff]  ;;  %v2089_v27 = vmul.f32 %v12017_v48, %v16873_v18 }
 0x270   :  { %12336 = vmatpush3.bf16.msra.mxu0 %v12856_v35  ;;  %12347 = vmatprep.mubr.bf16.mxu0 %v10591_v49  ;;  %v1871_v59 = vadd.f32 %v1863_v10, %v15380_v46  ;;  %v1861_v40 = vmul.f32 %v16868_v44, %v1800_v8  ;;  %v2036_v19 = vpop.f32.mrf.mxu0  ;;  %v15536_v35 = vadd.f32 %v2083_v24, %v1868_v20  ;;  %v12867_v20 = vld [vmem:[%s16761_s4 + $0x4d0] sm:$0xff]  }
 0x271   :  { %12337 = vmatprep.subr.bf16.mxu0 %v12863_v57  ;;  %v11993_v29 = vpop.f32.mrf.mxu1  ;;  %12280 = vmatmul.mubr.bf16.gmra.mxu1 %v10508_v62  ;;  %v16877_v62 = vld [vmem:[#allocation50_spill] sm:$0xff] }
 0x272   :  { %12599 = vset.pattern.permute.xlu1 %v16870_v58  ;;  %v1869_v46 = vadd.f32 %v1861_v40, %v15391_v34  ;;  %v1866_v7 = vmul.f32 %v11993_v29, %v16871_v3  ;;  %12312 = vmatpush3.bf16.msra.mxu1 %v12862_v45  ;;  %v15544_v39 = vadd.f32 %v2086_v15, %v1871_v59  ;;  %v12018_v24 = vpop.f32.mrf.mxu0  ;;  %v12866_v34 = vld [vmem:[%s16761_s4 + $0x498] sm:$0xff]   ;;  %v12868_v40 = vld [vmem:[%s16761_s4 + $0x490] sm:$0xff]   ;;  %v15584_v29 = vpop.permute.xlu1 %3921 }
 0x273   :  { %12323 = vmatprep.mubr.bf16.mxu1 %v4618_v0  ;;  %v1813_v53 = vpop.f32.mrf.mxu1  ;;  %12313 = vmatprep.subr.bf16.mxu1 %v12864_v16  ;;  %v16874_v45 = vld [vmem:[#allocation39_spill] sm:$0xff]  ;;  %v16876_v15 = vld [vmem:[#allocation14_spill] sm:$0xff]  ;;  %v2090_v37 = vmul.f32 %v12018_v24, %v16877_v62  ;;  %16879 = vst [vmem:[#allocation10_spill] sm:$0xff] %v15584_v29  ;;  %v15592_v0 = vld [vmem:[%s16760_s3 + $0x28] sm:$0xff] }
 0x274   :  { %12338 = vmatpush3.bf16.msra.mxu0 %v12863_v57  ;;  %v1874_v56 = vadd.f32 %v1866_v7, %v15402_v33  ;;  %v1864_v49 = vmul.f32 %v16874_v45, %v1813_v53  ;;  %v15559_v22 = vadd.f32 %v2084_v32, %v1869_v46  ;;  %5965 = vperm.xlu1 %12599, %v15443_v2   ;;  %v15565_v57 = vld [vmem:[%s16760_s3 + $0x20] sm:$0xff]  ;;  %v16875_v33 = vld [vmem:[#allocation17_spill] sm:$0xff]  ;;  %v2039_v59 = vpop.f32.mrf.mxu0  ;;  %v4573_v53 = vld [vmem:[#allocation2 + $0x38] sm:$0xf] }
 0x275   :  { %12339 = vmatprep.subr.bf16.mxu0 %v12865_v14  ;;  %v11994_v10 = vpop.f32.mrf.mxu1  ;;  %5782 = vperm.xlu0 %12612, %v15565_v57   ;;  %v2087_v48 = vmul.f32 %v16875_v33, %v2036_v19  ;;  %v16878_v19 = vld [vmem:[#allocation13_spill] sm:$0xff]  ;;  %v16881_v46 = vld [vmem:[#allocation48_spill] sm:$0xff]  ;;  %v12873_v33 = vld [vmem:[%s16761_s4 + $0x578] sm:$0xff]  }
 0x276   :  { %v1872_v17 = vadd.f32 %v1864_v49, %v15414_v13  ;;  %v1867_v8 = vmul.f32 %v11994_v10, %v16876_v15  ;;  %12314 = vmatpush3.bf16.msra.mxu1 %v12864_v16  ;;  %v15571_v55 = vadd.f32 %v2089_v27, %v1874_v56  ;;  %v12869_v13 = vld [vmem:[%s16761_s4 + $0x4c8] sm:$0xff]   ;;  %v2088_v3 = vmul.f32 %v16881_v46, %v2039_v59  ;;  %v12871_v24 = vld [vmem:[%s16761_s4 + $0x4c0] sm:$0xff]   ;;  %v4571_v45 = vld [vmem:[#allocation2 + $0x30] sm:$0xf] }
 0x277   :  { %v1816_v44 = vpop.f32.mrf.mxu1  ;;  %12315 = vmatprep.subr.bf16.mxu1 %v12866_v34  ;;  %v12870_v27 = vld [vmem:[%s16761_s4 + $0x488] sm:$0xff]   ;;  %v4572_v49 = vld [vmem:[#allocation2 + $0x34] sm:$0xf]  ;;  %v12872_v10 = vld [vmem:[%s16761_s4 + $0x480] sm:$0xff]   ;;  %v10592_v59 = vcombine.low %v15481_v5, %v4571_v45 }
 0x278   :  { %12340 = vmatpush3.bf16.msra.mxu0 %v12865_v14  ;;  %v1875_v30 = vadd.f32 %v1867_v8, %v15426_v54  ;;  %v1865_v32 = vmul.f32 %v16878_v19, %v1816_v44  ;;  %v15582_v16 = vadd.f32 %v2087_v48, %v1872_v17  ;;  %12602 = vset.pattern.permute.xlu1 %v16848_v11  ;;  %v15587_v14 = vpop.permute.xlu0 %2906  ;;  %v15598_v54 = vld [vmem:[%s16760_s3 + $0x30] sm:$0xff]  ;;  %v15630_v8 = vld [vmem:[#allocation2 + $0x28] sm:$0xf]  ;;  %v15632_v62 = vld [vmem:[#allocation2 + $0x2c] sm:$0xf] }
 0x279   :  { %12341 = vmatprep.subr.bf16.mxu0 %v12867_v20  ;;  %5374 = vperm.xlu1 %12602, %v15592_v0   ;;  %16880 = vst [vmem:[#allocation44_spill] sm:$0xff] %v15598_v54  ;;  %v10564_v48 = vcombine.low %v4571_v45, %v4572_v49  ;;  %v12878_v19 = vld [vmem:[%s16761_s4 + $0x570] sm:$0xff]   ;;  %v10593_v46 = vcombine.low %v4572_v49, %v4573_v53  ;;  %v4790_v45 = vld [vmem:[#allocation2 + $0x40] sm:$0xf] }
 0x27a   :  { %5790 = vperm.xlu0 %12612, %v15598_v54   ;;  %v1873_v7 = vadd.f32 %v1865_v32, %v15437_v21  ;;  %12316 = vmatpush3.bf16.msra.mxu1 %v12866_v34  ;;  %v15603_v18 = vadd.f32 %v2090_v37, %v1875_v30  ;;  %v15613_v21 = vld [vmem:[#allocation2 + $0x3c] sm:$0xf]  ;;  %v16782_v34 = vmov 26   ;;  %v15634_v37 = vld [vmem:[#allocation2 + $0x30] sm:$0xf] }
 0x27b   :  { %12317 = vmatprep.subr.bf16.mxu1 %v12868_v40  ;;  %v10565_v17 = vcombine.low %v4573_v53, %v15613_v21  ;;  %v4619_v44 = vrot.slane %v10564_v48, 3  ;;  %v5202_v32 = vld [vmem:[#allocation2 + $0x24] sm:$0x8]  ;;  %v15649_v5 = vcombine.low %v15632_v62, %v15634_v37  ;;  %v12879_v53 = vld [vmem:[%s16761_s4 + $0x530] sm:$0xff]  }
 0x27c   :  { %12342 = vmatpush3.bf16.msra.mxu0 %v12867_v20  ;;  %v15611_v56 = vadd.f32 %v2088_v3, %v1873_v7  ;;  %v15617_v20 = vpop.permute.xlu1 %3929  ;;  %v15627_v15 = vpop.permute.xlu0 %2914  ;;  %v10648_v3 = vcombine.low %v5202_v32, %v15630_v8  ;;  %v12885_v7 = vld [vmem:[#allocation2 + $0x40] ss:$0 sps:$4 sm:$0x77]  }
 0x27d   :  { %12343 = vmatprep.subr.bf16.mxu0 %v12869_v13  ;;  %12603 = vset.pattern.permute.xlu1 %v16784_v47  ;;  %16882 = vst [vmem:[#allocation12_spill] sm:$0xff] %v15617_v20  ;;  %v4621_v30 = vrot.slane %v10565_v17, 3  ;;  %v4620_v48 = vsel %vm892_vm0, %v15519_v52, %v4619_v44  ;;  %v4623_v43 = vrot.slane %v12885_v7, 3  ;;  %v16786_v47 = vmov 25   ;;  %v16884_v52 = vld [vmem:[#allocation20_spill] sm:$0xff] }
 0x27e   :  { %12617 = vset.pattern.permute.xlu0 %v16782_v34  ;;  %12318 = vmatpush3.bf16.msra.mxu1 %v12868_v40  ;;  %v12877_v40 = vld [vmem:[%s16761_s4 + $0x538] sm:$0xff]  }
 0x27f   :  { %5559 = vperm.xlu1 %12603, %v15565_v57   ;;  %12319 = vmatprep.subr.bf16.mxu1 %v12870_v27  ;;  %v4622_v17 = vsel %vm892_vm0, %v4619_v44, %v4621_v30 }
 0x280   :  { %12344 = vmatpush3.bf16.msra.mxu0 %v12869_v13  ;;  %6377 = vperm.xlu0 %12617, %v15443_v2   ;;  %v15644_v13 = vpop.permute.xlu1 %3937 }
 0x281   :  { %12345 = vmatprep.subr.bf16.mxu0 %v12871_v24  ;;  %16883 = vst [vmem:[#allocation46_spill] sm:$0xff] %v15644_v13  ;;  %v10594_v13 = vcombine.low %v15613_v21, %v4790_v45  ;;  %v12888_v21 = vld [vmem:[%s16761_s4 + $0x560] sm:$0xff]  }
 0x282   :  { %12320 = vmatpush3.bf16.msra.mxu1 %v12870_v27  ;;  %v15652_v27 = vpop.permute.xlu0 %3079 }
 0x283   :  { %12604 = vset.pattern.permute.xlu1 %v16870_v58  ;;  %12321 = vmatprep.subr.bf16.mxu1 %v12872_v10 }
 0x284   :  { %12346 = vmatpush3.bf16.msra.mxu0 %v12871_v24  ;;  %5973 = vperm.xlu1 %12604, %v15421_v63   ;;  %v15669_v29 = vpop.permute.xlu1 %4112 }
 0x285   :  { %12379 = vmatprep.subr.bf16.mxu0 %v12873_v33  ;;  %6389 = vperm.xlu0 %12617, %v15514_v51   ;;  %16885 = vst [vmem:[#allocation58_spill] sm:$0xff] %v15669_v29 }
 0x286   :  { %v12061_v24 = vpop.f32.mrf.mxu0  ;;  %12322 = vmatpush3.bf16.msra.mxu1 %v12872_v10  ;;  %v12881_v10 = vld [vmem:[%s16761_s4 + $0x568] sm:$0xff]  }
 0x287   :  { %12348 = vmatmul.mubr.bf16.vlgmr.msra.gmra.mxu0 %v10592_v59  ;;  %12355 = vmatprep.subr.bf16.mxu1 %v12877_v40  ;;  %v4979_v59 = vld [vmem:[#allocation2 + $0x24] sm:$0xe] }
 0x288   :  { %12351 = vmatprep.mubr.bf16.mxu0 %v10593_v46  ;;  %12380 = vmatpush3.bf16.msra.mxu0 %v12873_v33  ;;  %v2408_v49 = vpop.f32.mrf.mxu0  ;;  %v5227_v33 = vrot.slane %v10648_v3, 3  ;;  %v10619_v34 = vcombine.low %v4979_v59, %v15630_v8  ;;  %v16886_v3 = vld [vmem:[#allocation25_spill] sm:$0xff]  ;;  %v16887_v59 = vld [vmem:[#allocation19_spill] sm:$0xff] }
 0x289   :  { %12381 = vmatprep.subr.bf16.mxu0 %v12878_v19  ;;  %v12037_v32 = vpop.f32.mrf.mxu1  ;;  %12324 = vmatmul.mubr.bf16.vlgmr.msra.gmra.mxu1 %v4620_v48  ;;  %v2473_v48 = vmul.f32 %v12061_v24, %v16886_v3  ;;  %v16888_v24 = vld [vmem:[#allocation59_spill] sm:$0xff] }
 0x28a   :  { %12605 = vset.pattern.permute.xlu1 %v16786_v47  ;;  %v2284_v20 = vmul.f32 %v12037_v32, %v16884_v52  ;;  %v12062_v44 = vpop.f32.mrf.mxu0  ;;  %12327 = vmatprep.mubr.bf16.mxu1 %v4622_v17  ;;  %v12886_v17 = vld [vmem:[%s16761_s4 + $0x528] sm:$0xff]   ;;  %v4624_v32 = vsel %vm892_vm0, %v4621_v30, %v4623_v43  ;;  %v5028_v52 = vrot.slane %v10619_v34, 1  ;;  %v12889_v43 = vld [vmem:[%s16761_s4 + $0x520] sm:$0xff]  }
 0x28b   :  { %12356 = vmatpush3.bf16.msra.mxu1 %v12877_v40  ;;  %v2219_v61 = vpop.f32.mrf.mxu1  ;;  %6154 = vperm.xlu1 %12605, %v15443_v2   ;;  %v16892_v30 = vld [vmem:[#allocation52_spill] sm:$0xff] }
 0x28c   :  { %12382 = vmatpush3.bf16.msra.mxu0 %v12878_v19  ;;  %12357 = vmatprep.subr.bf16.mxu1 %v12879_v53  ;;  %v2292_v7 = vadd.f32 %v2284_v20, %v15524_v23  ;;  %v2282_v46 = vmul.f32 %v16887_v59, %v2219_v61  ;;  %v2411_v38 = vpop.f32.mrf.mxu0  ;;  %v15681_v19 = vpop.permute.xlu0 %3091  ;;  %v2471_v23 = vmul.f32 %v16888_v24, %v2408_v49  ;;  %v16889_v61 = vrot.slane %v15649_v5, 3  ;;  %v16890_v59 = vld [vmem:[#allocation21_spill] sm:$0xff] }
 0x28d   :  { %12383 = vmatprep.subr.bf16.mxu0 %v12881_v10  ;;  %v12038_v20 = vpop.f32.mrf.mxu1  ;;  %12620 = vset.pattern.permute.xlu0 %v16786_v47  ;;  %v16891_v49 = vld [vmem:[#allocation61_spill] sm:$0xff] }
 0x28e   :  { %v5229_v45 = vsel %vm892_vm0, %v5227_v33, %v16889_v61  ;;  %v2290_v3 = vadd.f32 %v2282_v46, %v15536_v35  ;;  %v2285_v40 = vmul.f32 %v12038_v20, %v16890_v59  ;;  %v12065_v29 = vpop.f32.mrf.mxu0  ;;  %v15692_v2 = vadd.f32 %v2473_v48, %v2292_v7  ;;  %v15705_v46 = vpop.permute.xlu1 %4116  ;;  %v16898_v59 = vld [vmem:[#allocation54_spill] sm:$0xff]  ;;  %6158 = vperm.xlu0 %12620, %v15462_v60  }
 0x28f   :  { %12352 = vmatmul.mubr.bf16.gmra.mxu0 %v10594_v13  ;;  %12358 = vmatpush3.bf16.msra.mxu1 %v12879_v53  ;;  %v2474_v24 = vmul.f32 %v12062_v44, %v16891_v49  ;;  %v2222_v4 = vpop.f32.mrf.mxu1  ;;  %v12890_v13 = vld [vmem:[%s16761_s4 + $0x558] sm:$0xff]   ;;  %16893 = vst [vmem:[#allocation37_spill] sm:$0xff] %v15705_v46  ;;  %v16895_v7 = vrot.slane %v15649_v5, 1  ;;  %v16908_v46 = vrot.slane %v15649_v5, 1 }
 0x290   :  { %12384 = vmatpush3.bf16.msra.mxu0 %v12881_v10  ;;  %12395 = vmatprep.mubr.bf16.mxu0 %v5229_v45  ;;  %v2293_v34 = vadd.f32 %v2285_v40, %v15544_v39  ;;  %v2283_v35 = vmul.f32 %v16892_v30, %v2222_v4  ;;  %v2424_v33 = vpop.f32.mrf.mxu0  ;;  %v15703_v53 = vadd.f32 %v2471_v23, %v2290_v3  ;;  %v16894_v10 = vld [vmem:[#allocation24_spill] sm:$0xff]  ;;  %v15716_v61 = vpop.permute.xlu0 %3099  ;;  %v16897_v45 = vld [vmem:[#allocation27_spill] sm:$0xff] }
 0x291   :  { %12359 = vmatprep.subr.bf16.mxu1 %v12886_v17  ;;  %12385 = vmatprep.subr.bf16.mxu0 %v12888_v21  ;;  %v2472_v44 = vmul.f32 %v16894_v10, %v2411_v38  ;;  %v12041_v48 = vpop.f32.mrf.mxu1  ;;  %v5030_v39 = vsel %vm1313_vm9, %v5028_v52, %v16895_v7  ;;  %v16896_v40 = vld [vmem:[#allocation56_spill] sm:$0xff]  ;;  %v2477_v38 = vmul.f32 %v12065_v29, %v16897_v45  ;;  %v12891_v52 = vld [vmem:[%s16761_s4 + $0x518] sm:$0xff]  }
 0x292   :  { %12328 = vmatmul.mubr.bf16.gmra.mxu1 %v4624_v32  ;;  %12606 = vset.pattern.permute.xlu1 %v16848_v11  ;;  %v2291_v4 = vadd.f32 %v2283_v35, %v15559_v22  ;;  %v2288_v20 = vmul.f32 %v12041_v48, %v16896_v40  ;;  %v15714_v23 = vadd.f32 %v2474_v24, %v2293_v34  ;;  %v12066_v3 = vpop.f32.mrf.mxu0  ;;  %v16900_v35 = vld [vmem:[#allocation23_spill] sm:$0xff]  ;;  %v15736_v48 = vpop.permute.xlu1 %4124 }
 0x293   :  { %12360 = vmatpush3.bf16.msra.mxu1 %v12886_v17  ;;  %12371 = vmatprep.mubr.bf16.mxu1 %v5030_v39  ;;  %v2235_v32 = vpop.f32.mrf.mxu1  ;;  %v12892_v17 = vld [vmem:[%s16761_s4 + $0x550] sm:$0xff]   ;;  %16901 = vst [vmem:[#allocation15_spill] sm:$0xff] %v15736_v48  ;;  %v2478_v7 = vmul.f32 %v12066_v3, %v15393_v9  ;;  %v16903_v9 = vmov 22   ;;  %v15758_v3 = vld [vmem:[#allocation2 + $0x38] sm:$0xf] }
 0x294   :  { %12386 = vmatpush3.bf16.msra.mxu0 %v12888_v21  ;;  %12361 = vmatprep.subr.bf16.mxu1 %v12889_v43  ;;  %v2296_v22 = vadd.f32 %v2288_v20, %v15571_v55  ;;  %v2286_v49 = vmul.f32 %v16898_v59, %v2235_v32  ;;  %v15727_v24 = vadd.f32 %v2472_v44, %v2291_v4  ;;  %v16899_v21 = vld [vmem:[#allocation26_spill] sm:$0xff]  ;;  %v2427_v44 = vpop.f32.mrf.mxu0  ;;  %v15750_v45 = vpop.permute.xlu0 %3298  ;;  %v15765_v59 = vld [vmem:[#allocation2 + $0x3c] sm:$0xf] }
 0x295   :  { %12387 = vmatprep.subr.bf16.mxu0 %v12890_v13  ;;  %5378 = vperm.xlu1 %12606, %v15598_v54   ;;  %v12042_v29 = vpop.f32.mrf.mxu1  ;;  %v2475_v34 = vmul.f32 %v16899_v21, %v2424_v33  ;;  %v12893_v4 = vld [vmem:[%s16761_s4 + $0x510] sm:$0xff]   ;;  %v12897_v21 = vld [vmem:[%s16761_s4 + $0x500] sm:$0xff]  }
 0x296   :  { %v2294_v30 = vadd.f32 %v2286_v49, %v15582_v16  ;;  %v2289_v55 = vmul.f32 %v12042_v29, %v16900_v35  ;;  %v15734_v10 = vadd.f32 %v2477_v38, %v2296_v22  ;;  %v16902_v16 = vld [vmem:[#allocation22_spill] sm:$0xff]  ;;  %6166 = vperm.xlu0 %12620, %v15514_v51   ;;  %v12895_v22 = vld [vmem:[%s16761_s4 + $0x508] sm:$0xff]   ;;  %v15767_v49 = vld [vmem:[#allocation2 + $0x40] sm:$0xf] }
 0x297   :  { %12362 = vmatpush3.bf16.msra.mxu1 %v12889_v43  ;;  %v2238_v39 = vpop.f32.mrf.mxu1  ;;  %v12894_v43 = vld [vmem:[%s16761_s4 + $0x548] sm:$0xff]   ;;  %v15782_v29 = vcombine.low %v15765_v59, %v15767_v49 }
 0x298   :  { %12388 = vmatpush3.bf16.msra.mxu0 %v12890_v13  ;;  %12363 = vmatprep.subr.bf16.mxu1 %v12891_v52  ;;  %v2297_v33 = vadd.f32 %v2289_v55, %v15603_v18  ;;  %v2287_v40 = vmul.f32 %v16902_v16, %v2238_v39  ;;  %v15747_v20 = vadd.f32 %v2475_v34, %v2294_v30  ;;  %v15754_v13 = vld [vmem:[#allocation2 + $0x34] sm:$0xf]  ;;  %v15788_v34 = vpop.permute.xlu0 %3310  ;;  %v12899_v30 = vld [vmem:[%s16761_s4 + $0x5f8] sm:$0xff]   ;;  %v5590_v55 = vld [vmem:[#allocation2 + $0x28] sm:$0xe] }
 0x299   :  { %12389 = vmatprep.subr.bf16.mxu0 %v12892_v17  ;;  %12607 = vset.pattern.permute.xlu1 %v16903_v9  ;;  %v2476_v18 = vmul.f32 %v15344_v6, %v2427_v44  ;;  %v12896_v6 = vld [vmem:[%s16761_s4 + $0x540] sm:$0xff]   ;;  %v15797_v44 = vld [vmem:[#allocation2 + $0x30] sm:$0xf]  ;;  %v15799_v39 = vld [vmem:[#allocation2 + $0x34] sm:$0xf] }
 0x29a   :  { %5563 = vperm.xlu1 %12607, %v15592_v0   ;;  %v2295_v38 = vadd.f32 %v2287_v40, %v15611_v56  ;;  %v15760_v32 = vadd.f32 %v2478_v7, %v2297_v33  ;;  %6174 = vperm.xlu0 %12620, %v15592_v0   ;;  %v15793_v7 = vld [vmem:[#allocation2 + $0x2c] sm:$0xf]  ;;  %16905 = vst [vmem:[#allocation18_spill] sm:$0xff] %v15799_v39  ;;  %v12904_v33 = vld [vmem:[#allocation2 + $0x44] ss:$0 sps:$4 sm:$0x77]  }
 0x29b   :  { %12364 = vmatpush3.bf16.msra.mxu1 %v12891_v52  ;;  %v15774_v52 = vpop.permute.xlu1 %4132  ;;  %v12901_v40 = vld [vmem:[%s16761_s4 + $0x5b8] sm:$0xff]  }
 0x29c   :  { %12390 = vmatpush3.bf16.msra.mxu0 %v12892_v17  ;;  %12365 = vmatprep.subr.bf16.mxu1 %v12893_v4  ;;  %v15772_v56 = vadd.f32 %v2476_v18, %v2295_v38  ;;  %16904 = vst [vmem:[#allocation42_spill] sm:$0xff] %v15774_v52  ;;  %v10621_v17 = vcombine.low %v15754_v13, %v15758_v3  ;;  %v16907_v18 = vrot.slane %v15649_v5, 3  ;;  %v15820_v48 = vpop.permute.xlu0 %3318  ;;  %v16911_v5 = vld [vmem:[#allocation29_spill] sm:$0xff] }
 0x29d   :  { %12391 = vmatprep.subr.bf16.mxu0 %v12894_v43 }
 0x29e   :  { %12608 = vset.pattern.permute.xlu1 %v16870_v58  ;;  %v5230_v35 = vrot.slane %v10621_v17, 3  ;;  %6178 = vperm.xlu0 %12620, %v15598_v54   ;;  %v5031_v16 = vrot.slane %v10621_v17, 1  ;;  %v15818_v17 = vcombine.low %v15797_v44, %v15799_v39  ;;  %v16912_v54 = vld [vmem:[#allocation34_spill] sm:$0xff] }
 0x29f   :  { %12366 = vmatpush3.bf16.msra.mxu1 %v12893_v4  ;;  %5977 = vperm.xlu1 %12608, %v15514_v51   ;;  %v5232_v51 = vrot.slane %v15782_v29, 3  ;;  %v15801_v4 = vpop.permute.xlu1 %4297 }
 0x2a0   :  { %12392 = vmatpush3.bf16.msra.mxu0 %v12894_v43  ;;  %12367 = vmatprep.subr.bf16.mxu1 %v12895_v22  ;;  %16906 = vst [vmem:[#allocation39_spill] sm:$0xff] %v15801_v4  ;;  %v12902_v43 = vld [vmem:[%s16761_s4 + $0x5f0] sm:$0xff]   ;;  %v5231_v38 = vsel %vm892_vm0, %v16907_v18, %v5230_v35  ;;  %v15825_v4 = vld [vmem:[%s16760_s3 + $0x38] sm:$0xff]  ;;  %v5234_v18 = vrot.slane %v12904_v33, 3  ;;  %v5032_v26 = vsel %vm1313_vm9, %v16908_v46, %v5031_v16 }
 0x2a1   :  { %12393 = vmatprep.subr.bf16.mxu0 %v12896_v6 }
 0x2a2   :  { %6182 = vperm.xlu0 %12620, %v15825_v4  }
 0x2a3   :  { %12368 = vmatpush3.bf16.msra.mxu1 %v12895_v22  ;;  %12609 = vset.pattern.permute.xlu1 %v16786_v47  ;;  %v5033_v22 = vrot.slane %v15782_v29, 1  ;;  %v12909_v47 = vld [vmem:[#allocation2 + $0x44] ss:$0 sps:$4 sm:$0x11]   ;;  %v5233_v29 = vsel %vm892_vm0, %v5230_v35, %v5232_v51 }
 0x2a4   :  { %12394 = vmatpush3.bf16.msra.mxu0 %v12896_v6  ;;  %12369 = vmatprep.subr.bf16.mxu1 %v12897_v21  ;;  %v10702_v6 = vcombine.low %v5590_v55, %v15793_v7  ;;  %v12903_v55 = vld [vmem:[%s16761_s4 + $0x5b0] sm:$0xff]   ;;  %v5035_v36 = vrot.slane %v12909_v47, 1  ;;  %v12910_v47 = vld [vmem:[%s16761_s4 + $0x5a8] sm:$0xff]  }
 0x2a5   :  { %12427 = vmatprep.subr.bf16.mxu0 %v12899_v30  ;;  %6162 = vperm.xlu1 %12609, %v15421_v63  }
 0x2a6   :  { %v12109_v63 = vpop.f32.mrf.mxu0  ;;  %12626 = vset.pattern.permute.xlu0 %v16910_v41 }
 0x2a7   :  { %12370 = vmatpush3.bf16.msra.mxu1 %v12897_v21  ;;  %12396 = vmatmul.mubr.bf16.vlgmr.msra.gmra.mxu0 %v5231_v38  ;;  %v12905_v21 = vld [vmem:[%s16761_s4 + $0x5e8] sm:$0xff]   ;;  %v15838_v38 = vpop.permute.xlu1 %4305 }
 0x2a8   :  { %12399 = vmatprep.mubr.bf16.mxu0 %v5233_v29  ;;  %12428 = vmatpush3.bf16.msra.mxu0 %v12899_v30  ;;  %v2854_v52 = vpop.f32.mrf.mxu0  ;;  %16909 = vst [vmem:[#allocation17_spill] sm:$0xff] %v15838_v38  ;;  %v5034_v30 = vsel %vm1313_vm9, %v5031_v16, %v5033_v22  ;;  %v5639_v29 = vrot.slane %v10702_v6, 1  ;;  %v5235_v38 = vsel %vm892_vm0, %v5232_v51, %v5234_v18  ;;  %v16913_v6 = vld [vmem:[#allocation28_spill] sm:$0xff]  ;;  %v16915_v18 = vld [vmem:[#allocation30_spill] sm:$0xff] }
 0x2a9   :  { %12403 = vmatprep.subr.bf16.mxu1 %v12901_v40  ;;  %12429 = vmatprep.subr.bf16.mxu0 %v12902_v43  ;;  %v12085_v35 = vpop.f32.mrf.mxu1  ;;  %v2917_v51 = vmul.f32 %v15498_v50, %v2854_v52 }
 0x2aa   :  { %12372 = vmatmul.mubr.bf16.vlgmr.msra.gmra.mxu1 %v5032_v26  ;;  %12610 = vset.pattern.permute.xlu1 %v16910_v41  ;;  %v2696_v46 = vmul.f32 %v12085_v35, %v16911_v5  ;;  %v12110_v12 = vpop.f32.mrf.mxu0  ;;  %v2919_v26 = vmul.f32 %v12109_v63, %v16912_v54  ;;  %v16914_v54 = vrot.slane %v15818_v17, 1 }
 0x2ab   :  { %12375 = vmatprep.mubr.bf16.mxu1 %v5034_v30  ;;  %12404 = vmatpush3.bf16.msra.mxu1 %v12901_v40  ;;  %v2631_v42 = vpop.f32.mrf.mxu1  ;;  %v12912_v40 = vld [vmem:[%s16761_s4 + $0x5e0] sm:$0xff]   ;;  %v2920_v50 = vmul.f32 %v12110_v12, %v15546_v31  ;;  %v12914_v12 = vld [vmem:[%s16761_s4 + $0x5d8] sm:$0xff]  }
 0x2ac   :  { %12430 = vmatpush3.bf16.msra.mxu0 %v12902_v43  ;;  %12405 = vmatprep.subr.bf16.mxu1 %v12903_v55  ;;  %v2704_v16 = vadd.f32 %v2696_v46, %v15692_v2  ;;  %v2694_v39 = vmul.f32 %v16913_v6, %v2631_v42  ;;  %v2857_v33 = vpop.f32.mrf.mxu0  ;;  %v5641_v2 = vsel %vm1313_vm9, %v5639_v29, %v16914_v54  ;;  %v16917_v29 = vld [vmem:[#allocation38_spill] sm:$0xff]  ;;  %v16919_v54 = vld [vmem:[#allocation32_spill] sm:$0xff] }
 0x2ad   :  { %12431 = vmatprep.subr.bf16.mxu0 %v12905_v21  ;;  %6381 = vperm.xlu1 %12610, %v15462_v60   ;;  %v12086_v43 = vpop.f32.mrf.mxu1  ;;  %v5036_v42 = vsel %vm1313_vm9, %v5033_v22, %v5035_v36  ;;  %v15865_v60 = vpop.permute.xlu1 %4309  ;;  %v10674_v36 = vcombine.low %v15630_v8, %v15632_v62 }
 0x2ae   :  { %v2702_v63 = vadd.f32 %v2694_v39, %v15703_v53  ;;  %v2697_v35 = vmul.f32 %v12086_v43, %v16915_v18  ;;  %v12113_v30 = vpop.f32.mrf.mxu0  ;;  %v15863_v5 = vadd.f32 %v2919_v26, %v2704_v16  ;;  %v12913_v53 = vld [vmem:[%s16761_s4 + $0x5a0] sm:$0xff]  }
 0x2af   :  { %12400 = vmatmul.mubr.bf16.gmra.mxu0 %v5235_v38  ;;  %12406 = vmatpush3.bf16.msra.mxu1 %v12903_v55  ;;  %v2634_v52 = vpop.f32.mrf.mxu1  ;;  %v2923_v46 = vmul.f32 %v12113_v30, %v16917_v29  ;;  %v16918_v43 = vld [vmem:[#allocation36_spill] sm:$0xff]  ;;  %v12917_v30 = vld [vmem:[%s16761_s4 + $0x590] sm:$0xff]  }
 0x2b0   :  { %12432 = vmatpush3.bf16.msra.mxu0 %v12905_v21  ;;  %12443 = vmatprep.mubr.bf16.mxu0 %v5641_v2  ;;  %v2705_v39 = vadd.f32 %v2697_v35, %v15714_v23  ;;  %v2695_v22 = vmul.f32 %v15416_v25, %v2634_v52  ;;  %v2870_v55 = vpop.f32.mrf.mxu0  ;;  %v15878_v31 = vadd.f32 %v2917_v51, %v2702_v63  ;;  %v16916_v21 = vld [vmem:[#allocation33_spill] sm:$0xff]  ;;  %v15900_v51 = vpop.permute.xlu0 %3326  ;;  %v16920_v52 = vld [vmem:[#allocation31_spill] sm:$0xff] }
 0x2b1   :  { %12407 = vmatprep.subr.bf16.mxu1 %v12910_v47  ;;  %12433 = vmatprep.subr.bf16.mxu0 %v12912_v40  ;;  %v2918_v38 = vmul.f32 %v16916_v21, %v2857_v33  ;;  %v12089_v8 = vpop.f32.mrf.mxu1  ;;  %v12915_v33 = vld [vmem:[%s16761_s4 + $0x598] sm:$0xff]   ;;  %v15929_v21 = vld [vmem:[#allocation2 + $0x44] sm:$0xf] }
 0x2b2   :  { %12376 = vmatmul.mubr.bf16.gmra.mxu1 %v5036_v42  ;;  %12611 = vset.pattern.permute.xlu1 %v16848_v11  ;;  %v2703_v62 = vadd.f32 %v2695_v22, %v15727_v24  ;;  %v2700_v23 = vmul.f32 %v12089_v8, %v15474_v1  ;;  %v15884_v25 = vadd.f32 %v2920_v50, %v2705_v39  ;;  %v12114_v26 = vpop.f32.mrf.mxu0  ;;  %v12916_v1 = vld [vmem:[%s16761_s4 + $0x5d0] sm:$0xff]   ;;  %v15920_v39 = vld [vmem:[#allocation2 + $0x38] sm:$0xf] }
 0x2b3   :  { %12408 = vmatpush3.bf16.msra.mxu1 %v12910_v47  ;;  %12419 = vmatprep.mubr.bf16.mxu1 %v10674_v36  ;;  %v2647_v16 = vpop.f32.mrf.mxu1  ;;  %v15897_v47 = vpop.permute.xlu1 %4317  ;;  %v2924_v63 = vmul.f32 %v12114_v26, %v15627_v15  ;;  %v16921_v15 = vmov 23   ;;  %v12923_v26 = vld [vmem:[%s16761_s4 + $0x678] sm:$0xff]  }
 0x2b4   :  { %12434 = vmatpush3.bf16.msra.mxu0 %v12912_v40  ;;  %12409 = vmatprep.subr.bf16.mxu1 %v12913_v53  ;;  %v2708_v11 = vadd.f32 %v2700_v23, %v15734_v10  ;;  %v2698_v24 = vmul.f32 %v15448_v28, %v2647_v16  ;;  %v15895_v6 = vadd.f32 %v2918_v38, %v2703_v62  ;;  %v2873_v18 = vpop.f32.mrf.mxu0  ;;  %v12919_v62 = vld [vmem:[%s16761_s4 + $0x588] sm:$0xff]  }
 0x2b5   :  { %12435 = vmatprep.subr.bf16.mxu0 %v12914_v12  ;;  %5382 = vperm.xlu1 %12611, %v15825_v4   ;;  %v12090_v40 = vpop.f32.mrf.mxu1  ;;  %v2921_v10 = vmul.f32 %v16918_v43, %v2870_v55  ;;  %v2922_v22 = vmul.f32 %v15587_v14, %v2873_v18  ;;  %v12920_v14 = vld [vmem:[%s16761_s4 + $0x5c0] sm:$0xff]   ;;  %v15970_v43 = vpop.permute.xlu0 %3501  ;;  %v10676_v18 = vcombine.low %v15758_v3, %v15765_v59  ;;  %v12929_v3 = vld [vmem:[%s16761_s4 + $0x668] sm:$0xff]  }
 0x2b6   :  { %6405 = vperm.xlu0 %12626, %v15825_v4   ;;  %v2706_v28 = vadd.f32 %v2698_v24, %v15747_v20  ;;  %v2701_v2 = vmul.f32 %v12090_v40, %v16919_v54  ;;  %v15906_v42 = vadd.f32 %v2923_v46, %v2708_v11  ;;  %v12918_v20 = vld [vmem:[%s16761_s4 + $0x5c8] sm:$0xff]   ;;  %v12921_v46 = vld [vmem:[%s16761_s4 + $0x580] sm:$0xff]   ;;  %v12924_v24 = vld [vmem:[%s16761_s4 + $0x638] sm:$0xff]  }
 0x2b7   :  { %12410 = vmatpush3.bf16.msra.mxu1 %v12913_v53  ;;  %v2650_v35 = vpop.f32.mrf.mxu1  ;;  %v15933_v8 = vpop.permute.xlu1 %4325  ;;  %v12925_v40 = vld [vmem:[%s16761_s4 + $0x670] sm:$0xff]  }
 0x2b8   :  { %12436 = vmatpush3.bf16.msra.mxu0 %v12914_v12  ;;  %12411 = vmatprep.subr.bf16.mxu1 %v12915_v33  ;;  %v2709_v50 = vadd.f32 %v2701_v2, %v15760_v32  ;;  %v2699_v36 = vmul.f32 %v16920_v52, %v2650_v35  ;;  %v15917_v53 = vadd.f32 %v2921_v10, %v2706_v28  ;;  %v15925_v32 = vld [vmem:[#allocation2 + $0x3c] sm:$0xf]  ;;  %v15927_v12 = vld [vmem:[#allocation2 + $0x40] sm:$0xf]  ;;  %v12988_v10 = vld [vmem:[%s16760_s3 + $0x10] sm:$0xff]  ;;  %v16922_v28 = vrot.slane %v15818_v17, 1 }
 0x2b9   :  { %12437 = vmatprep.subr.bf16.mxu0 %v12916_v1  ;;  %12613 = vset.pattern.permute.xlu1 %v16921_v15  ;;  %v15945_v23 = vcombine.low %v15920_v39, %v15925_v32  ;;  %v15949_v29 = vcombine.low %v15927_v12, %v15929_v21  ;;  %v5813_v35 = vld [vmem:[#allocation2 + $0x28] sm:$0x8]  ;;  %v12927_v52 = vld [vmem:[%s16761_s4 + $0x630] sm:$0xff]  }
 0x2ba   :  { %5786 = vperm.xlu1 %12613, %v15592_v0   ;;  %v2707_v55 = vadd.f32 %v2699_v36, %v15772_v56  ;;  %v15931_v38 = vadd.f32 %v2924_v63, %v2709_v50  ;;  %v10675_v50 = vcombine.low %v15634_v37, %v15754_v13  ;;  %v16923_v37 = vld [vmem:[#allocation41_spill] sm:$0xff] }
 0x2bb   :  { %12412 = vmatpush3.bf16.msra.mxu1 %v12915_v33  ;;  %v15959_v16 = vpop.permute.xlu1 %4524  ;;  %v5642_v33 = vrot.slane %v15945_v23, 1  ;;  %v5644_v11 = vrot.slane %v15949_v29, 1 }
 0x2bc   :  { %12438 = vmatpush3.bf16.msra.mxu0 %v12916_v1  ;;  %12413 = vmatprep.subr.bf16.mxu1 %v12917_v30  ;;  %v15941_v56 = vadd.f32 %v2922_v22, %v2707_v55  ;;  %v12928_v1 = vld [vmem:[#allocation2 + $0x48] ss:$0 sps:$4 sm:$0x11]   ;;  %v10731_v22 = vcombine.low %v5813_v35, %v15793_v7 }
 0x2bd   :  { %12439 = vmatprep.subr.bf16.mxu0 %v12918_v20  ;;  %v5643_v54 = vsel %vm1313_vm9, %v16922_v28, %v5642_v33  ;;  %v5645_v2 = vsel %vm1313_vm9, %v5642_v33, %v5644_v11  ;;  %v5646_v36 = vrot.slane %v12928_v1, 1  ;;  %v10757_v33 = vcombine.low %v15793_v7, %v15797_v44  ;;  %v16924_v1 = vld [vmem:[#allocation51_spill] sm:$0xff]  ;;  %v16925_v28 = vld [vmem:[#allocation40_spill] sm:$0xff] }
 0x2be   :  { %12614 = vset.pattern.permute.xlu1 %v16870_v58 }
 0x2bf   :  { %12414 = vmatpush3.bf16.msra.mxu1 %v12917_v30  ;;  %5981 = vperm.xlu1 %12614, %v15565_v57   ;;  %v15981_v30 = vpop.permute.xlu1 %4528 }
 0x2c0   :  { %12440 = vmatpush3.bf16.msra.mxu0 %v12918_v20  ;;  %12415 = vmatprep.subr.bf16.mxu1 %v12919_v62 }
 0x2c1   :  { %12441 = vmatprep.subr.bf16.mxu0 %v12920_v14 }
 0x2c3   :  { %12416 = vmatpush3.bf16.msra.mxu1 %v12919_v62  ;;  %12615 = vset.pattern.permute.xlu1 %v16910_v41  ;;  %v5401_v62 = vld [vmem:[#allocation2 + $0x44] sm:$0xf] }
 0x2c4   :  { %12442 = vmatpush3.bf16.msra.mxu0 %v12920_v14  ;;  %12417 = vmatprep.subr.bf16.mxu1 %v12921_v46  ;;  %v15994_v14 = vpop.permute.xlu0 %3513 }
 0x2c5   :  { %12475 = vmatprep.subr.bf16.mxu0 %v12923_v26  ;;  %6385 = vperm.xlu1 %12615, %v12988_v10  }
 0x2c6   :  { %v12157_v63 = vpop.f32.mrf.mxu0 }
 0x2c7   :  { %12418 = vmatpush3.bf16.msra.mxu1 %v12921_v46  ;;  %12444 = vmatmul.mubr.bf16.vlgmr.msra.gmra.mxu0 %v5643_v54  ;;  %v3331_v10 = vmul.f32 %v12157_v63, %v16924_v1  ;;  %v5838_v63 = vrot.slane %v10731_v22, 3 }
 0x2c8   :  { %12476 = vmatpush3.bf16.msra.mxu0 %v12923_v26  ;;  %12451 = vmatprep.subr.bf16.mxu1 %v12924_v24  ;;  %v3266_v20 = vpop.f32.mrf.mxu0  ;;  %v5647_v26 = vsel %vm1313_vm9, %v5644_v11, %v5646_v36  ;;  %v16008_v11 = vpop.permute.xlu1 %4536 }
 0x2c9   :  { %12477 = vmatprep.subr.bf16.mxu0 %v12925_v40  ;;  %12447 = vmatprep.mubr.bf16.mxu0 %v5645_v2  ;;  %v12133_v59 = vpop.f32.mrf.mxu1  ;;  %v3329_v7 = vmul.f32 %v15750_v45, %v3266_v20  ;;  %v12936_v45 = vld [vmem:[%s16761_s4 + $0x620] sm:$0xff]   ;;  %v16027_v22 = vpop.permute.xlu0 %3521 }
 0x2ca   :  { %12420 = vmatmul.mubr.bf16.vlgmr.msra.gmra.mxu1 %v10675_v50  ;;  %12616 = vset.pattern.permute.xlu1 %v16903_v9  ;;  %v3108_v13 = vmul.f32 %v12133_v59, %v16923_v37  ;;  %v12158_v55 = vpop.f32.mrf.mxu0  ;;  %v16926_v50 = vld [vmem:[#allocation43_spill] sm:$0xff] }
 0x2cb   :  { %12452 = vmatpush3.bf16.msra.mxu1 %v12924_v24  ;;  %12423 = vmatprep.mubr.bf16.mxu1 %v10676_v18  ;;  %v3043_v46 = vpop.f32.mrf.mxu1  ;;  %v12933_v24 = vld [vmem:[%s16761_s4 + $0x628] sm:$0xff]   ;;  %v5839_v18 = vrot.slane %v15818_v17, 3 }
 0x2cc   :  { %12478 = vmatpush3.bf16.msra.mxu0 %v12925_v40  ;;  %12453 = vmatprep.subr.bf16.mxu1 %v12927_v52  ;;  %v3116_v9 = vadd.f32 %v3108_v13, %v15863_v5  ;;  %v3106_v54 = vmul.f32 %v16925_v28, %v3043_v46  ;;  %v3269_v2 = vpop.f32.mrf.mxu0  ;;  %v12935_v40 = vld [vmem:[%s16761_s4 + $0x660] sm:$0xff]   ;;  %v10677_v5 = vcombine.low %v15767_v49, %v5401_v62  ;;  %v16040_v1 = vpop.permute.xlu1 %4544 }
 0x2cd   :  { %12479 = vmatprep.subr.bf16.mxu0 %v12929_v3  ;;  %5571 = vperm.xlu1 %12616, %v15825_v4   ;;  %v12134_v44 = vpop.f32.mrf.mxu1  ;;  %v3332_v13 = vmul.f32 %v12158_v55, %v15788_v34 }
 0x2ce   :  { %v3114_v35 = vadd.f32 %v3106_v54, %v15878_v31  ;;  %v3109_v36 = vmul.f32 %v12134_v44, %v16926_v50  ;;  %v12161_v59 = vpop.f32.mrf.mxu0  ;;  %v16016_v37 = vadd.f32 %v3331_v10, %v3116_v9  ;;  %v16928_v10 = vld [vmem:[#allocation55_spill] sm:$0xff] }
 0x2cf   :  { %12448 = vmatmul.mubr.bf16.gmra.mxu0 %v5647_v26  ;;  %12454 = vmatpush3.bf16.msra.mxu1 %v12927_v52  ;;  %v3046_v46 = vpop.f32.mrf.mxu1  ;;  %v12937_v52 = vld [vmem:[%s16761_s4 + $0x658] sm:$0xff]   ;;  %v3335_v9 = vmul.f32 %v12161_v59, %v16928_v10  ;;  %v10759_v10 = vcombine.low %v15925_v32, %v15927_v12  ;;  %v6012_v12 = vld [vmem:[#allocation2 + $0x48] sm:$0xf] }
 0x2d0   :  { %12480 = vmatpush3.bf16.msra.mxu0 %v12929_v3  ;;  %12491 = vmatprep.mubr.bf16.mxu0 %v10757_v33  ;;  %v3117_v49 = vadd.f32 %v3109_v36, %v15884_v25  ;;  %v3107_v31 = vmul.f32 %v15652_v27, %v3046_v46  ;;  %v3282_v20 = vpop.f32.mrf.mxu0  ;;  %v16029_v34 = vadd.f32 %v3329_v7, %v3114_v35  ;;  %v16927_v3 = vld [vmem:[#allocation49_spill] sm:$0xff]  ;;  %v16930_v35 = vld [vmem:[#allocation47_spill] sm:$0xff] }
 0x2d1   :  { %12455 = vmatprep.subr.bf16.mxu1 %v12933_v24  ;;  %12481 = vmatprep.subr.bf16.mxu0 %v12935_v40  ;;  %v3330_v55 = vmul.f32 %v16927_v3, %v3269_v2  ;;  %v12137_v62 = vpop.f32.mrf.mxu1  ;;  %v5840_v25 = vsel %vm892_vm0, %v5838_v63, %v5839_v18  ;;  %v12938_v2 = vld [vmem:[%s16761_s4 + $0x618] sm:$0xff]  }
 0x2d2   :  { %12424 = vmatmul.mubr.bf16.gmra.mxu1 %v10677_v5  ;;  %12618 = vset.pattern.permute.xlu1 %v16870_v58  ;;  %v3115_v27 = vadd.f32 %v3107_v31, %v15895_v6  ;;  %v3112_v26 = vmul.f32 %v12137_v62, %v15716_v61  ;;  %v16038_v33 = vadd.f32 %v3332_v13, %v3117_v49  ;;  %v12162_v28 = vpop.f32.mrf.mxu0  ;;  %v12943_v62 = vld [vmem:[%s16761_s4 + $0x640] sm:$0xff]  }
 0x2d3   :  { %12456 = vmatpush3.bf16.msra.mxu1 %v12933_v24  ;;  %12467 = vmatprep.mubr.bf16.mxu1 %v5840_v25  ;;  %v3059_v54 = vpop.f32.mrf.mxu1  ;;  %v12939_v24 = vld [vmem:[%s16761_s4 + $0x650] sm:$0xff]   ;;  %v3336_v36 = vmul.f32 %v12162_v28, %v15900_v51  ;;  %v16072_v51 = vpop.permute.xlu1 %4743 }
 0x2d4   :  { %12482 = vmatpush3.bf16.msra.mxu0 %v12935_v40  ;;  %12457 = vmatprep.subr.bf16.mxu1 %v12936_v45  ;;  %v3120_v6 = vadd.f32 %v3112_v26, %v15906_v42  ;;  %v3110_v61 = vmul.f32 %v15681_v19, %v3059_v54  ;;  %v16051_v7 = vadd.f32 %v3330_v55, %v3115_v27  ;;  %v16929_v40 = vld [vmem:[#allocation53_spill] sm:$0xff]  ;;  %v16057_v42 = vpop.permute.xlu0 %3686  ;;  %v3285_v59 = vpop.f32.mrf.mxu0  ;;  %v5843_v26 = vrot.slane %v15949_v29, 3 }
 0x2d5   :  { %12483 = vmatprep.subr.bf16.mxu0 %v12937_v52  ;;  %5985 = vperm.xlu1 %12618, %v15592_v0   ;;  %v12138_v44 = vpop.f32.mrf.mxu1  ;;  %v3333_v5 = vmul.f32 %v16929_v40, %v3282_v20  ;;  %v12940_v0 = vld [vmem:[%s16761_s4 + $0x610] sm:$0xff]   ;;  %v16932_v20 = vmov 25   ;;  %v12942_v55 = vld [vmem:[%s16761_s4 + $0x608] sm:$0xff]   ;;  %v5841_v54 = vrot.slane %v15945_v23, 3 }
 0x2d6   :  { %v3118_v63 = vadd.f32 %v3110_v61, %v15917_v53  ;;  %v3113_v50 = vmul.f32 %v12138_v44, %v16930_v35  ;;  %v16059_v19 = vadd.f32 %v3335_v9, %v3120_v6  ;;  %v16931_v53 = vld [vmem:[#allocation45_spill] sm:$0xff]  ;;  %v16933_v9 = vld [vmem:[#allocation18_spill] sm:$0xff]  ;;  %v16934_v6 = vld [vmem:[#allocation44_spill] sm:$0xff] }
 0x2d7   :  { %12458 = vmatpush3.bf16.msra.mxu1 %v12936_v45  ;;  %v3062_v13 = vpop.f32.mrf.mxu1  ;;  %v12941_v45 = vld [vmem:[%s16761_s4 + $0x648] sm:$0xff]   ;;  %v10758_v28 = vcombine.low %v16933_v9, %v15920_v39  ;;  %v12946_v29 = vld [vmem:[%s16761_s4 + $0x6b0] sm:$0xff]   ;;  %v5844_v32 = vsel %vm892_vm0, %v5841_v54, %v5843_v26  ;;  %v5842_v23 = vsel %vm892_vm0, %v5839_v18, %v5841_v54  ;;  %v10760_v18 = vcombine.low %v15929_v21, %v6012_v12 }
 0x2d8   :  { %12484 = vmatpush3.bf16.msra.mxu0 %v12937_v52  ;;  %12459 = vmatprep.subr.bf16.mxu1 %v12938_v2  ;;  %v3121_v46 = vadd.f32 %v3113_v50, %v15931_v38  ;;  %v3111_v49 = vmul.f32 %v16931_v53, %v3062_v13  ;;  %v16070_v31 = vadd.f32 %v3333_v5, %v3118_v63  ;;  %v16086_v25 = vpop.permute.xlu0 %3698  ;;  %v12947_v61 = vld [vmem:[#allocation2 + $0x48] ss:$0 sps:$4 sm:$0x77]   ;;  %v12950_v63 = vld [vmem:[#allocation2 + $0x2c] sm:$0xfe]   ;;  %v16122_v35 = vld [vmem:[#allocation2 + $0x34] sm:$0xff]  }
 0x2d9   :  { %12485 = vmatprep.subr.bf16.mxu0 %v12939_v24  ;;  %12619 = vset.pattern.permute.xlu1 %v16932_v20  ;;  %v3334_v52 = vmul.f32 %v15820_v48, %v3285_v59  ;;  %v16091_v48 = vpop.permute.xlu1 %4751  ;;  %v5845_v5 = vrot.slane %v12947_v61, 3  ;;  %v12989_v50 = vld [vmem:[%s16760_s3 + $0x20] sm:$0xff]  ;;  %v16938_v20 = vld [vmem:[#allocation57_spill] sm:$0xff] }
 0x2da   :  { %6170 = vperm.xlu1 %12619, %v15565_v57   ;;  %v3119_v3 = vadd.f32 %v3111_v49, %v15941_v56  ;;  %v16078_v38 = vadd.f32 %v3336_v36, %v3121_v46  ;;  %v12944_v56 = vld [vmem:[%s16761_s4 + $0x600] sm:$0xff]   ;;  %v12948_v46 = vld [vmem:[%s16761_s4 + $0x6a8] sm:$0xff]  }
 0x2db   :  { %12460 = vmatpush3.bf16.msra.mxu1 %v12938_v2  ;;  %v16935_v36 = vld [vmem:[#allocation60_spill] sm:$0xff]  ;;  %v16937_v53 = vld [vmem:[#allocation35_spill] sm:$0xff]  ;;  %v16941_v12 = vld [vmem:[#allocation65_spill] sm:$0xff] }
 0x2dc   :  { %12486 = vmatpush3.bf16.msra.mxu0 %v12939_v24  ;;  %12461 = vmatprep.subr.bf16.mxu1 %v12940_v0  ;;  %v16088_v57 = vadd.f32 %v3334_v52, %v3119_v3  ;;  %v16097_v27 = vpop.permute.xlu0 %3706 }
 0x2dd   :  { %12487 = vmatprep.subr.bf16.mxu0 %v12941_v45  ;;  %v16109_v2 = vpop.permute.xlu1 %4755 }
 0x2de   :  { %12621 = vset.pattern.permute.xlu1 %v16921_v15  ;;  %v12945_v15 = vld [vmem:[%s16761_s4 + $0x6b8] sm:$0xff]  }
 0x2df   :  { %12462 = vmatpush3.bf16.msra.mxu1 %v12940_v0  ;;  %5794 = vperm.xlu1 %12621, %v15825_v4  }
 0x2e0   :  { %12488 = vmatpush3.bf16.msra.mxu0 %v12941_v45  ;;  %12463 = vmatprep.subr.bf16.mxu1 %v12942_v55  ;;  %v16119_v44 = vpop.permute.xlu0 %3714 }
 0x2e1   :  { %12489 = vmatprep.subr.bf16.mxu0 %v12943_v62  ;;  %v16129_v13 = vpop.permute.xlu1 %4763 }
 0x2e2   :  { %16936 = vst [vmem:[#allocation14_spill] sm:$0xff] %v16129_v13 }
 0x2e3   :  { %12464 = vmatpush3.bf16.msra.mxu1 %v12942_v55  ;;  %12622 = vset.pattern.permute.xlu1 %v16870_v58 }
 0x2e4   :  { %12490 = vmatpush3.bf16.msra.mxu0 %v12943_v62  ;;  %12465 = vmatprep.subr.bf16.mxu1 %v12944_v56  ;;  %v16137_v55 = vpop.permute.xlu0 %3913 }
 0x2e5   :  { %5989 = vperm.xlu1 %12622, %v16934_v6  }
 0x2e6   :  { %v12205_v24 = vpop.f32.mrf.mxu0 }
 0x2e7   :  { %12466 = vmatpush3.bf16.msra.mxu1 %v12944_v56  ;;  %12492 = vmatmul.mubr.bf16.vlgmr.msra.gmra.mxu0 %v10758_v28  ;;  %v3719_v49 = vmul.f32 %v12205_v24, %v16937_v53  ;;  %v5846_v56 = vsel %vm892_vm0, %v5843_v26, %v5845_v5  ;;  %v16939_v28 = vld [vmem:[#allocation62_spill] sm:$0xff] }
 0x2e8   :  { %12499 = vmatprep.subr.bf16.mxu1 %v12945_v15  ;;  %12495 = vmatprep.mubr.bf16.mxu0 %v10759_v10  ;;  %v3654_v39 = vpop.f32.mrf.mxu0  ;;  %v6251_v10 = vrot.slane %v16122_v35, 1 }
 0x2e9   :  { %12623 = vset.pattern.permute.xlu1 %v16910_v41  ;;  %v12181_v40 = vpop.f32.mrf.mxu1  ;;  %v3717_v62 = vmul.f32 %v16057_v42, %v3654_v39  ;;  %v12953_v42 = vld [vmem:[%s16761_s4 + $0x6a0] sm:$0xff]  }
 0x2ea   :  { %12468 = vmatmul.mubr.bf16.vlgmr.msra.gmra.mxu1 %v5842_v23  ;;  %6393 = vperm.xlu1 %12623, %v12989_v50   ;;  %v3530_v59 = vmul.f32 %v12181_v40, %v16935_v36  ;;  %v12206_v17 = vpop.f32.mrf.mxu0  ;;  %v12954_v50 = vld [vmem:[%s16761_s4 + $0x698] sm:$0xff]  }
 0x2eb   :  { %12500 = vmatpush3.bf16.msra.mxu1 %v12945_v15  ;;  %12471 = vmatprep.mubr.bf16.mxu1 %v5844_v32  ;;  %v3465_v0 = vpop.f32.mrf.mxu1  ;;  %v6250_v15 = vrot.slane %v12950_v63, 1  ;;  %v3720_v26 = vmul.f32 %v12206_v17, %v16086_v25  ;;  %v16154_v32 = vpop.permute.xlu1 %4771  ;;  %v16942_v36 = vld [vmem:[#allocation67_spill] sm:$0xff] }
 0x2ec   :  { %12501 = vmatprep.subr.bf16.mxu1 %v12946_v29  ;;  %v3538_v45 = vadd.f32 %v3530_v59, %v16016_v37  ;;  %v3528_v52 = vmul.f32 %v16938_v20, %v3465_v0  ;;  %v3657_v3 = vpop.f32.mrf.mxu0  ;;  %16940 = vst [vmem:[#allocation50_spill] sm:$0xff] %v16154_v32 }
 0x2ed   :  { %v12182_v21 = vpop.f32.mrf.mxu1  ;;  %v3718_v39 = vmul.f32 %v16941_v12, %v3657_v3  ;;  %v6252_v40 = vsel %vm1313_vm9, %v6250_v15, %v6251_v10  ;;  %v12955_v3 = vld [vmem:[%s16761_s4 + $0x690] sm:$0xff]  }
 0x2ee   :  { %12624 = vset.pattern.permute.xlu1 %v16870_v58  ;;  %v3536_v9 = vadd.f32 %v3528_v52, %v16029_v34  ;;  %v3531_v54 = vmul.f32 %v12182_v21, %v16939_v28  ;;  %v12209_v37 = vpop.f32.mrf.mxu0  ;;  %v16145_v6 = vadd.f32 %v3719_v49, %v3538_v45  ;;  %v16944_v45 = vld [vmem:[#allocation64_spill] sm:$0xff]  ;;  %v12991_v28 = vld [vmem:[%s16760_s3 + $0x30] sm:$0xff] }
 0x2ef   :  { %12502 = vmatpush3.bf16.msra.mxu1 %v12946_v29  ;;  %12496 = vmatmul.mubr.bf16.gmra.mxu0 %v10760_v18  ;;  %v3468_v61 = vpop.f32.mrf.mxu1  ;;  %v3723_v59 = vmul.f32 %v12209_v37, %v16942_v36  ;;  %v12990_v18 = vld [vmem:[%s16760_s3 + $0x28] sm:$0xff]  ;;  %v16183_v20 = vpop.permute.xlu1 %4936 }
 0x2f0   :  { %12503 = vmatprep.subr.bf16.mxu1 %v12948_v46  ;;  %5993 = vperm.xlu1 %12624, %v15825_v4   ;;  %v3539_v58 = vadd.f32 %v3531_v54, %v16038_v33  ;;  %v3529_v34 = vmul.f32 %v15970_v43, %v3468_v61  ;;  %v3670_v24 = vpop.f32.mrf.mxu0  ;;  %v16156_v29 = vadd.f32 %v3717_v62, %v3536_v9  ;;  %v16164_v43 = vpop.permute.xlu0 %3925 }
 0x2f1   :  { %v12185_v23 = vpop.f32.mrf.mxu1  ;;  %16945 = vst [vmem:[#allocation13_spill] sm:$0xff] %v16183_v20 }
 0x2f2   :  { %12472 = vmatmul.mubr.bf16.gmra.mxu1 %v5846_v56  ;;  %v3537_v4 = vadd.f32 %v3529_v34, %v16051_v7  ;;  %v3534_v25 = vmul.f32 %v12185_v23, %v16027_v22  ;;  %v16166_v33 = vadd.f32 %v3720_v26, %v3539_v58  ;;  %v12210_v5 = vpop.f32.mrf.mxu0  ;;  %v16946_v56 = vld [vmem:[#allocation63_spill] sm:$0xff]  ;;  %v12960_v23 = vld [vmem:[#allocation2 + $0x4c] ss:$0 sps:$4 sm:$0x11]  }
 0x2f3   :  { %12504 = vmatpush3.bf16.msra.mxu1 %v12948_v46  ;;  %12515 = vmatprep.mubr.bf16.mxu1 %v6252_v40  ;;  %v3481_v63 = vpop.f32.mrf.mxu1  ;;  %v16943_v46 = vld [vmem:[#allocation66_spill] sm:$0xff]  ;;  %v3724_v62 = vmul.f32 %v12210_v5, %v16119_v44  ;;  %v16205_v44 = vpop.permute.xlu1 %4940  ;;  %v12958_v58 = vld [vmem:[#allocation2 + $0x3c] sm:$0xff]   ;;  %v6257_v36 = vrot.slane %v12960_v23, 1 }
 0x2f4   :  { %12505 = vmatprep.subr.bf16.mxu1 %v12953_v42  ;;  %12625 = vset.pattern.permute.xlu1 %v16910_v41  ;;  %v3542_v7 = vadd.f32 %v3534_v25, %v16059_v19  ;;  %v3532_v22 = vmul.f32 %v15994_v14, %v3481_v63  ;;  %v16175_v17 = vadd.f32 %v3718_v39, %v3537_v4  ;;  %v3673_v14 = vpop.f32.mrf.mxu0  ;;  %v3934_v15 = vpop.permute.xlu0 %3933  ;;  %v6253_v12 = vrot.slane %v12958_v58, 1 }
 0x2f5   :  { %6397 = vperm.xlu1 %12625, %v12990_v18   ;;  %v12186_v0 = vpop.f32.mrf.mxu1  ;;  %v3721_v53 = vmul.f32 %v16943_v46, %v3670_v24  ;;  %v3722_v54 = vmul.f32 %v16097_v27, %v3673_v14  ;;  %v12957_v27 = vld [vmem:[%s16761_s4 + $0x680] sm:$0xff]   ;;  %v16950_v46 = vld [vmem:[#allocation37_spill] sm:$0xff] }
 0x2f6   :  { %v3540_v49 = vadd.f32 %v3532_v22, %v16070_v31  ;;  %v3535_v41 = vmul.f32 %v12186_v0, %v16944_v45  ;;  %v16185_v19 = vadd.f32 %v3723_v59, %v3542_v7  ;;  %v6254_v5 = vsel %vm1313_vm9, %v6251_v10, %v6253_v12  ;;  %v16949_v59 = vld [vmem:[#allocation16_spill] sm:$0xff]  ;;  %v16951_v45 = vld [vmem:[#allocation11_spill] sm:$0xff] }
 0x2f7   :  { %12506 = vmatpush3.bf16.msra.mxu1 %v12953_v42  ;;  %v3484_v52 = vpop.f32.mrf.mxu1  ;;  %v16212_v34 = vpop.permute.xlu1 %4948 }
 0x2f8   :  { %12507 = vmatprep.subr.bf16.mxu1 %v12954_v50  ;;  %v3543_v21 = vadd.f32 %v3535_v41, %v16078_v38  ;;  %v3533_v31 = vmul.f32 %v16946_v56, %v3484_v52  ;;  %v16193_v9 = vadd.f32 %v3721_v53, %v3540_v49  ;;  %v12956_v38 = vld [vmem:[%s16761_s4 + $0x688] sm:$0xff]   ;;  %v4109_v26 = vpop.permute.xlu0 %4108  ;;  %16947 = vst [vmem:[#allocation48_spill] sm:$0xff] %v16212_v34 }
 0x2f9   :  { %6401 = vperm.xlu1 %12625, %v12991_v28  }
 0x2fa   :  { %v3541_v37 = vadd.f32 %v3533_v31, %v16088_v57  ;;  %v16200_v61 = vadd.f32 %v3724_v62, %v3543_v21  ;;  %v12959_v57 = vld [vmem:[#allocation2 + $0x44] sm:$0xff]   ;;  %v16952_v62 = vld [vmem:[#allocation10_spill] sm:$0xff] }
 0x2fb   :  { %12508 = vmatpush3.bf16.msra.mxu1 %v12954_v50  ;;  %v6255_v24 = vrot.slane %v12959_v57, 1  ;;  %v16218_v63 = vpop.permute.xlu1 %4956 }
 0x2fc   :  { %12509 = vmatprep.subr.bf16.mxu1 %v12955_v3  ;;  %v16207_v42 = vadd.f32 %v3722_v54, %v3541_v37  ;;  %v4121_v39 = vpop.permute.xlu0 %4120  ;;  %16948 = vst [vmem:[#allocation20_spill] sm:$0xff] %v16218_v63 }
 0x2fd   :  { %v6256_v4 = vsel %vm1313_vm9, %v6253_v12, %v6255_v24  ;;  %v6258_v14 = vsel %vm1313_vm9, %v6255_v24, %v6257_v36 }
 0x2ff   :  { %12510 = vmatpush3.bf16.msra.mxu1 %v12955_v3  ;;  %v16231_v31 = vpop.permute.xlu1 %5155 }
 0x300   :  { %12511 = vmatprep.subr.bf16.mxu1 %v12956_v38  ;;  %v16221_v18 = vpop.permute.xlu0 %4128  ;;  %16953 = vst [vmem:[#allocation25_spill] sm:$0xff] %v16231_v31 }
 0x303   :  { %12512 = vmatpush3.bf16.msra.mxu1 %v12956_v38 }
 0x304   :  { %12513 = vmatprep.subr.bf16.mxu1 %v12957_v27 }
 0x306   :  { %v12253_v40 = vpop.f32.mrf.mxu0 }
 0x307   :  { %12514 = vmatpush3.bf16.msra.mxu1 %v12957_v27  ;;  %v4141_v53 = vmul.f32 %v12253_v40, %v16950_v46  ;;  %v4137_v27 = vpop.permute.xlu0 %4136  ;;  %v16954_v40 = vld [vmem:[#allocation42_spill] sm:$0xff]  ;;  %v16956_v46 = vld [vmem:[#allocation12_spill] sm:$0xff] }
 0x308   :  { %v4076_v25 = vpop.f32.mrf.mxu0 }
 0x309   :  { %v12229_v50 = vpop.f32.mrf.mxu1  ;;  %v4139_v52 = vmul.f32 %v4109_v26, %v4076_v25 }
 0x30a   :  { %12516 = vmatmul.mubr.bf16.vlgmr.msra.gmra.mxu1 %v6254_v5  ;;  %v3942_v7 = vmul.f32 %v12229_v50, %v16949_v59  ;;  %v12254_v22 = vpop.f32.mrf.mxu0 }
 0x30b   :  { %12519 = vmatprep.mubr.bf16.mxu1 %v6256_v4  ;;  %v3877_v0 = vpop.f32.mrf.mxu1  ;;  %v4142_v37 = vmul.f32 %v12254_v22, %v4121_v39  ;;  %v16243_v25 = vpop.permute.xlu0 %4301 }
 0x30c   :  { %v3950_v49 = vadd.f32 %v3942_v7, %v16145_v6  ;;  %v3940_v35 = vmul.f32 %v16951_v45, %v3877_v0  ;;  %v16226_v41 = vpop.f32.mrf.mxu0 }
 0x30d   :  { %v12230_v10 = vpop.f32.mrf.mxu1 }
 0x30e   :  { %v3948_v3 = vadd.f32 %v3940_v35, %v16156_v29  ;;  %v3943_v21 = vmul.f32 %v12230_v10, %v16952_v62  ;;  %v4149_v28 = vadd.f32 %v4141_v53, %v3950_v49 }
 0x30f   :  { %v12257_v56 = vpop.f32.mrf.mxu0  ;;  %v3880_v54 = vpop.f32.mrf.mxu1 }
 0x310   :  { %v3951_v6 = vadd.f32 %v3943_v21, %v16166_v33  ;;  %v3941_v38 = vmul.f32 %v16137_v55, %v3880_v54  ;;  %v4147_v57 = vadd.f32 %v4139_v52, %v3948_v3  ;;  %v4145_v4 = vmul.f32 %v12257_v56, %v16954_v40  ;;  %v16245_v55 = vpop.permute.xlu1 %5163  ;;  %v16256_v53 = vpop.permute.xlu0 %4313  ;;  %v16960_v3 = vld [vmem:[#allocation17_spill] sm:$0xff]  ;;  %v16961_v56 = vld [vmem:[#allocation39_spill] sm:$0xff] }
 0x311   :  { %v16235_v58 = vpop.f32.mrf.mxu0  ;;  %v12233_v24 = vpop.f32.mrf.mxu1 }
 0x312   :  { %12520 = vmatmul.mubr.bf16.gmra.mxu1 %v6258_v14  ;;  %v16238_v29 = vadd.f32 %v3941_v38, %v16175_v17  ;;  %v3946_v26 = vmul.f32 %v12233_v24, %v3934_v15  ;;  %v4150_v12 = vadd.f32 %v4142_v37, %v3951_v6  ;;  %v16955_v17 = vld [vmem:[#allocation46_spill] sm:$0xff] }
 0x313   :  { %v3893_v23 = vpop.f32.mrf.mxu1  ;;  %v12258_v5 = vpop.f32.mrf.mxu0 }
 0x314   :  { %v3954_v39 = vadd.f32 %v3946_v26, %v16185_v19  ;;  %v3944_v33 = vmul.f32 %v16164_v43, %v3893_v23  ;;  %v4146_v22 = vmul.f32 %v12258_v5, %v4137_v27  ;;  %v16258_v45 = vpop.permute.xlu1 %5167  ;;  %v4322_v35 = vpop.permute.xlu0 %4321 }
 0x315   :  { %v12234_v50 = vpop.f32.mrf.mxu1  ;;  %16957 = vst [vmem:[#allocation19_spill] sm:$0xff] %v16258_v45 }
 0x316   :  { %v16248_v36 = vadd.f32 %v3944_v33, %v16193_v9  ;;  %v3947_v59 = vmul.f32 %v12234_v50, %v16955_v17  ;;  %v4153_v15 = vadd.f32 %v4145_v4, %v3954_v39 }
 0x317   :  { %v3896_v7 = vpop.f32.mrf.mxu1 }
 0x318   :  { %v3955_v0 = vadd.f32 %v3947_v59, %v16200_v61  ;;  %v3945_v19 = vmul.f32 %v16956_v46, %v3896_v7  ;;  %v16260_v9 = vpop.permute.xlu1 %5175  ;;  %v16262_v10 = vpop.permute.xlu0 %4520 }
 0x319   :  { %16958 = vst [vmem:[#allocation59_spill] sm:$0xff] %v16260_v9  ;;  %v16300_v7 = vpop.f32.mrf.mxu0 }
 0x31a   :  { %v16254_v43 = vadd.f32 %v3945_v19, %v16207_v42  ;;  %v4154_v49 = vadd.f32 %v4146_v22, %v3955_v0 }
 0x31c   :  { %v16264_v14 = vpop.permute.xlu1 %5183  ;;  %v16269_v42 = vpop.permute.xlu0 %4532 }
 0x31d   :  { %16959 = vst [vmem:[#allocation21_spill] sm:$0xff] %v16264_v14 }
 0x320   :  { %v16272_v6 = vpop.permute.xlu1 %5358  ;;  %v16281_v40 = vpop.permute.xlu0 %4540 }
 0x321   :  { %16962 = vst [vmem:[#allocation61_spill] sm:$0xff] %v16272_v6 }
 0x324   :  { %v16285_v39 = vpop.permute.xlu1 %5362  ;;  %v16290_v50 = vpop.permute.xlu0 %4548 }
 0x327   :  { %v16302_v22 = vpop.f32.mrf.mxu0 }
 0x328   :  { %v16294_v17 = vpop.permute.xlu1 %5543 }
 0x329   :  { %v12277_v52 = vpop.f32.mrf.mxu1  ;;  %16964 = vst [vmem:[#allocation24_spill] sm:$0xff] %v16294_v17  ;;  %v16308_v46 = vpop.f32.mrf.mxu0 }
 0x32a   :  { %v4330_v61 = vmul.f32 %v12277_v52, %v16960_v3 }
 0x32b   :  { %v4265_v62 = vpop.f32.mrf.mxu1  ;;  %v16312_v19 = vpop.f32.mrf.mxu0 }
 0x32c   :  { %v16267_v21 = vadd.f32 %v4330_v61, %v4149_v28  ;;  %v4328_v54 = vmul.f32 %v16961_v56, %v4265_v62  ;;  %v16298_v59 = vpop.permute.xlu1 %5551 }
 0x32d   :  { %v12278_v37 = vpop.f32.mrf.mxu1  ;;  %v16318_v52 = vpop.f32.mrf.mxu0 }
 0x32e   :  { %v16274_v38 = vadd.f32 %v4328_v54, %v4147_v57  ;;  %v4331_v27 = vmul.f32 %v12278_v37, %v15865_v60 }
 0x32f   :  { %v16277_v24 = vpop.f32.mrf.mxu1  ;;  %v16326_v56 = vpop.f32.mrf.mxu0 }
 0x330   :  { %v16279_v26 = vadd.f32 %v4331_v27, %v4150_v12  ;;  %v16296_v12 = vpop.permute.xlu0 %4747 }
 0x331   :  { %v12281_v23 = vpop.f32.mrf.mxu1  ;;  %v16332_v27 = vpop.f32.mrf.mxu0 }
 0x332   :  { %v4334_v28 = vmul.f32 %v12281_v23, %v4322_v35 }
 0x333   :  { %v16283_v4 = vpop.f32.mrf.mxu1 }
 0x334   :  { %v16287_v33 = vadd.f32 %v4334_v28, %v4153_v15  ;;  %v16304_v0 = vpop.permute.xlu0 %4759  ;;  %v16306_v15 = vpop.permute.xlu1 %5766 }
 0x335   :  { %v12282_v5 = vpop.f32.mrf.mxu1  ;;  %16965 = vst [vmem:[#allocation56_spill] sm:$0xff] %v16304_v0  ;;  %16966 = vst [vmem:[#allocation27_spill] sm:$0xff] %v16306_v15 }
 0x336   :  { %v4335_v57 = vmul.f32 %v12282_v5, %v15933_v8 }
 0x337   :  { %v16316_v35 = vpop.f32.mrf.mxu1 }
 0x338   :  { %v16292_v60 = vadd.f32 %v4335_v57, %v4154_v49  ;;  %v16310_v8 = vpop.permute.xlu0 %4767  ;;  %v16314_v49 = vpop.permute.xlu1 %5370 }
 0x339   :  { %16967 = vst [vmem:[#allocation54_spill] sm:$0xff] %v16314_v49  ;;  %v16340_v57 = vpop.f32.mrf.mxu0 }
 0x33a   :  { %16963 = vst [vmem:[#allocation52_spill] sm:$0xff] %v16292_v60 }
 0x33c   :  { %v16320_v3 = vpop.permute.xlu0 %4932  ;;  %v16324_v62 = vpop.permute.xlu1 %5555 }
 0x33d   :  { %16968 = vst [vmem:[#allocation26_spill] sm:$0xff] %v16320_v3  ;;  %16969 = vst [vmem:[#allocation23_spill] sm:$0xff] %v16324_v62  ;;  %v16346_v62 = vpop.f32.mrf.mxu0 }
 0x340   :  { %v16330_v37 = vpop.permute.xlu0 %4944  ;;  %v16336_v28 = vpop.permute.xlu1 %5965 }
 0x341   :  { %16970 = vst [vmem:[#allocation22_spill] sm:$0xff] %v16330_v37  ;;  %16971 = vst [vmem:[#allocation29_spill] sm:$0xff] %v16336_v28 }
 0x344   :  { %v16338_v5 = vpop.permute.xlu0 %4952  ;;  %v16344_v49 = vpop.permute.xlu1 %5374 }
 0x345   :  { %16972 = vst [vmem:[#allocation34_spill] sm:$0xff] %v16338_v5  ;;  %16973 = vst [vmem:[#allocation28_spill] sm:$0xff] %v16344_v49 }
 0x347   :  { %v12349_v6 = vpop.f32.mrf.mxu0 }
 0x348   :  { %v16348_v17 = vpop.permute.xlu0 %4960  ;;  %v16354_v34 = vpop.permute.xlu1 %5559 }
 0x349   :  { %v16322_v61 = vpop.f32.mrf.mxu1  ;;  %16974 = vst [vmem:[#allocation30_spill] sm:$0xff] %v16348_v17  ;;  %16975 = vst [vmem:[#allocation33_spill] sm:$0xff] %v16354_v34  ;;  %v16356_v28 = vpop.f32.mrf.mxu0 }
 0x34a   :  { %16976 = vst [vmem:[#allocation38_spill] sm:$0xff] %v16356_v28 }
 0x34b   :  { %v16328_v54 = vpop.f32.mrf.mxu1  ;;  %v16362_v63 = vpop.f32.mrf.mxu0 }
 0x34c   :  { %v16358_v45 = vpop.permute.xlu0 %5159  ;;  %16979 = vst [vmem:[#allocation31_spill] sm:$0xff] %v16362_v63  ;;  %v16364_v49 = vpop.permute.xlu1 %5973 }
 0x34d   :  { %v16334_v23 = vpop.f32.mrf.mxu1  ;;  %16977 = vst [vmem:[#allocation36_spill] sm:$0xff] %v16358_v45  ;;  %v16370_v20 = vpop.f32.mrf.mxu0 }
 0x34e   :  { %16982 = vst [vmem:[#allocation40_spill] sm:$0xff] %v16370_v20 }
 0x34f   :  { %v16342_v15 = vpop.f32.mrf.mxu1  ;;  %v16374_v34 = vpop.f32.mrf.mxu0 }
 0x350   :  { %v16366_v31 = vpop.permute.xlu0 %5171  ;;  %v16372_v3 = vpop.permute.xlu1 %6154  ;;  %16984 = vst [vmem:[#allocation49_spill] sm:$0xff] %v16374_v34 }
 0x351   :  { %16980 = vst [vmem:[#allocation41_spill] sm:$0xff] %v16366_v31  ;;  %16983 = vst [vmem:[#allocation43_spill] sm:$0xff] %v16372_v3  ;;  %v16380_v13 = vpop.f32.mrf.mxu0 }
 0x352   :  { %v16350_v14 = vpop.f32.mrf.mxu1  ;;  %16987 = vst [vmem:[#allocation47_spill] sm:$0xff] %v16380_v13 }
 0x353   :  { %v16386_v31 = vpop.f32.mrf.mxu0 }
 0x354   :  { %v16352_v9 = vpop.f32.mrf.mxu1  ;;  %v16376_v28 = vpop.permute.xlu0 %5179  ;;  %16990 = vst [vmem:[#allocation44_spill] sm:$0xff] %v16386_v31 }
 0x355   :  { %16985 = vst [vmem:[#allocation55_spill] sm:$0xff] %v16376_v28  ;;  %v16382_v63 = vpop.permute.xlu1 %5378 }
 0x356   :  { %v16360_v5 = vpop.f32.mrf.mxu1  ;;  %16988 = vst [vmem:[#allocation45_spill] sm:$0xff] %v16382_v63 }
 0x357   :  { %16978 = vst [vmem:[#allocation32_spill] sm:$0xff] %v16360_v5  ;;  %v16392_v5 = vpop.f32.mrf.mxu0 }
 0x358   :  { %v16368_v17 = vpop.f32.mrf.mxu1  ;;  %16993 = vst [vmem:[#allocation57_spill] sm:$0xff] %v16392_v5 }
 0x359   :  { %16981 = vst [vmem:[#allocation51_spill] sm:$0xff] %v16368_v17  ;;  %v16388_v17 = vpop.permute.xlu0 %5354  ;;  %v16394_v3 = vpop.permute.xlu1 %5563 }
 0x35a   :  { %16991 = vst [vmem:[#allocation60_spill] sm:$0xff] %v16388_v17  ;;  %16994 = vst [vmem:[#allocation62_spill] sm:$0xff] %v16394_v3 }
 0x35d   :  { %v16396_v28 = vpop.permute.xlu0 %5366 }
 0x35e   :  { %16995 = vst [vmem:[#allocation65_spill] sm:$0xff] %v16396_v28 }
 0x361   :  { %v16402_v63 = vpop.permute.xlu0 %5969 }
 0x362   :  { %16998 = vst [vmem:[#allocation64_spill] sm:$0xff] %v16402_v63 }
 0x365   :  { %v16412_v5 = vpop.permute.xlu0 %5547 }
 0x366   :  { %17003 = vst [vmem:[#allocation10_spill] sm:$0xff] %v16412_v5 }
 0x367   :  { %v12397_v34 = vpop.f32.mrf.mxu0 }
 0x369   :  { %v16400_v13 = vpop.f32.mrf.mxu0  ;;  %v16422_v63 = vpop.permute.xlu0 %5567 }
 0x36a   :  { %v12373_v37 = vpop.f32.mrf.mxu1  ;;  %16997 = vst [vmem:[#allocation66_spill] sm:$0xff] %v16400_v13  ;;  %17008 = vst [vmem:[#allocation39_spill] sm:$0xff] %v16422_v63  ;;  %v4776_v63 = vmul.f32 %v16322_v61, %v16091_v48 }
 0x36b   :  { %v16408_v17 = vpop.f32.mrf.mxu0 }
 0x36c   :  { %v16378_v45 = vpop.f32.mrf.mxu1  ;;  %17001 = vst [vmem:[#allocation37_spill] sm:$0xff] %v16408_v17 }
 0x36d   :  { %16986 = vst [vmem:[#allocation53_spill] sm:$0xff] %v16378_v45  ;;  %v16416_v32 = vpop.f32.mrf.mxu0 }
 0x36e   :  { %v16384_v60 = vpop.f32.mrf.mxu1  ;;  %17005 = vst [vmem:[#allocation46_spill] sm:$0xff] %v16416_v32 }
 0x36f   :  { %16989 = vst [vmem:[#allocation18_spill] sm:$0xff] %v16384_v60  ;;  %v16404_v60 = vpop.permute.xlu1 %5977  ;;  %v16420_v13 = vpop.f32.mrf.mxu0 }
 0x370   :  { %v16390_v20 = vpop.f32.mrf.mxu1  ;;  %16999 = vst [vmem:[#allocation63_spill] sm:$0xff] %v16404_v60  ;;  %17007 = vst [vmem:[#allocation17_spill] sm:$0xff] %v16420_v13 }
 0x371   :  { %16992 = vst [vmem:[#allocation35_spill] sm:$0xff] %v16390_v20  ;;  %v16428_v17 = vpop.f32.mrf.mxu0 }
 0x372   :  { %v16398_v45 = vpop.f32.mrf.mxu1  ;;  %17011 = vst [vmem:[#allocation70_spill] sm:$0xff] %v16428_v17 }
 0x373   :  { %16996 = vst [vmem:[#allocation67_spill] sm:$0xff] %v16398_v45  ;;  %v16414_v3 = vpop.permute.xlu1 %6162  ;;  %v16436_v32 = vpop.f32.mrf.mxu0 }
 0x374   :  { %v16406_v31 = vpop.f32.mrf.mxu1  ;;  %17004 = vst [vmem:[#allocation42_spill] sm:$0xff] %v16414_v3  ;;  %17015 = vst [vmem:[#allocation74_spill] sm:$0xff] %v16436_v32  ;;  %v4965_v32 = vmul.f32 %v12349_v6, %v16205_v44 }
 0x375   :  { %17000 = vst [vmem:[#allocation16_spill] sm:$0xff] %v16406_v31 }
 0x376   :  { %v16410_v20 = vpop.f32.mrf.mxu1 }
 0x377   :  { %17002 = vst [vmem:[#allocation11_spill] sm:$0xff] %v16410_v20  ;;  %v16424_v60 = vpop.permute.xlu1 %6381  ;;  %v16430_v20 = vpop.permute.xlu0 %5770 }
 0x378   :  { %v16418_v28 = vpop.f32.mrf.mxu1  ;;  %17009 = vst [vmem:[#allocation68_spill] sm:$0xff] %v16424_v60  ;;  %17012 = vst [vmem:[#allocation71_spill] sm:$0xff] %v16430_v20 }
 0x379   :  { %17006 = vst [vmem:[#allocation12_spill] sm:$0xff] %v16418_v28  ;;  %v4553_v28 = vmul.f32 %v16302_v22, %v15981_v30  ;;  %v5188_v30 = vmul.f32 %v12373_v37, %v16245_v55 }
 0x37b   :  { %v16432_v5 = vpop.permute.xlu1 %5382  ;;  %v4561_v17 = vadd.f32 %v4553_v28, %v16267_v21  ;;  %v5775_v20 = vpop.permute.xlu0 %5774  ;;  %v5387_v28 = vmul.f32 %v12397_v34, %v16285_v39 }
 0x37c   :  { %17013 = vst [vmem:[#allocation72_spill] sm:$0xff] %v16432_v5 }
 0x37d   :  { %v4784_v5 = vadd.f32 %v4776_v63, %v4561_v17 }
 0x37f   :  { %v16442_v13 = vpop.permute.xlu1 %5786  ;;  %v4973_v48 = vadd.f32 %v4965_v32, %v4784_v5 }
 0x380   :  { %17016 = vst [vmem:[#allocation75_spill] sm:$0xff] %v16442_v13  ;;  %v16457_v13 = vpop.permute.xlu0 %5778 }
 0x381   :  { %v5196_v21 = vadd.f32 %v5188_v30, %v4973_v48 }
 0x383   :  { %v16453_v22 = vpop.permute.xlu1 %5981  ;;  %v5395_v55 = vadd.f32 %v5387_v28, %v5196_v21 }
 0x384   :  { %17019 = vst [vmem:[#allocation78_spill] sm:$0xff] %v16453_v22  ;;  %v16469_v6 = vpop.permute.xlu0 %5782 }
 0x388   :  { %v16479_v39 = vpop.permute.xlu0 %5790 }
 0x389   :  { %17022 = vst [vmem:[#allocation81_spill] sm:$0xff] %v16479_v39 }
 0x38a   :  { %v12421_v45 = vpop.f32.mrf.mxu1 }
 0x38b   :  { %v5576_v63 = vmul.f32 %v12421_v45, %v16298_v59 }
 0x38c   :  { %v16426_v31 = vpop.f32.mrf.mxu1  ;;  %v16486_v28 = vpop.permute.xlu0 %6377 }
 0x38d   :  { %17010 = vst [vmem:[#allocation69_spill] sm:$0xff] %v16426_v31  ;;  %v16447_v31 = vpop.f32.mrf.mxu0  ;;  %v5584_v32 = vadd.f32 %v5576_v63, %v5395_v55 }
 0x38e   :  { %v16434_v3 = vpop.f32.mrf.mxu1 }
 0x38f   :  { %17014 = vst [vmem:[#allocation73_spill] sm:$0xff] %v16434_v3  ;;  %v12445_v0 = vpop.f32.mrf.mxu0 }
 0x390   :  { %v16444_v60 = vpop.f32.mrf.mxu1  ;;  %v5799_v22 = vmul.f32 %v12445_v0, %v5775_v20  ;;  %v17024_v20 = vld [vmem:[#allocation58_spill] sm:$0xff] }
 0x391   :  { %17017 = vst [vmem:[#allocation76_spill] sm:$0xff] %v16444_v60  ;;  %v16455_v61 = vpop.f32.mrf.mxu0  ;;  %v4140_v0 = vmul.f32 %v17024_v20, %v16226_v41  ;;  %v4551_v41 = vmul.f32 %v16262_v10, %v16308_v46 }
 0x392   :  { %v16449_v3 = vpop.f32.mrf.mxu1  ;;  %v5807_v59 = vadd.f32 %v5799_v22, %v5584_v32  ;;  %v4144_v32 = vmul.f32 %v16221_v18, %v16300_v7  ;;  %v4554_v18 = vmul.f32 %v16312_v19, %v16269_v42  ;;  %v4555_v42 = vmul.f32 %v16008_v11, %v16332_v27  ;;  %v17029_v27 = vld [vmem:[#allocation32_spill] sm:$0xff] }
 0x393   :  { %17018 = vst [vmem:[#allocation77_spill] sm:$0xff] %v16449_v3  ;;  %v16463_v17 = vpop.f32.mrf.mxu0  ;;  %v16465_v3 = vpop.permute.xlu1 %6385  ;;  %v4775_v19 = vmul.f32 %v16296_v12, %v16342_v15  ;;  %v4780_v11 = vmul.f32 %v16350_v14, %v16310_v8  ;;  %v17027_v12 = vld [vmem:[#allocation56_spill] sm:$0xff]  ;;  %v17034_v14 = vld [vmem:[#allocation26_spill] sm:$0xff] }
 0x394   :  { %v16459_v60 = vpop.f32.mrf.mxu1  ;;  %17020 = vst [vmem:[#allocation79_spill] sm:$0xff] %v16465_v3  ;;  %v4562_v46 = vadd.f32 %v4554_v18, %v16279_v26  ;;  %v4778_v15 = vmul.f32 %v17027_v12, %v16352_v9  ;;  %v17044_v12 = vld [vmem:[#allocation36_spill] sm:$0xff] }
 0x395   :  { %v16471_v37 = vpop.f32.mrf.mxu0 }
 0x396   :  { %v16467_v44 = vpop.f32.mrf.mxu1 }
 0x397   :  { %v16475_v30 = vpop.f32.mrf.mxu0  ;;  %v16477_v34 = vpop.permute.xlu1 %5571 }
 0x398   :  { %v16473_v5 = vpop.f32.mrf.mxu1  ;;  %17021 = vst [vmem:[#allocation80_spill] sm:$0xff] %v16475_v30  ;;  %v4329_v30 = vmul.f32 %v16243_v25, %v16277_v24  ;;  %v4152_v24 = vadd.f32 %v4144_v32, %v16254_v43  ;;  %v4559_v43 = vadd.f32 %v4551_v41, %v16274_v38  ;;  %v4556_v38 = vmul.f32 %v16281_v40, %v16346_v62  ;;  %v17036_v32 = vld [vmem:[#allocation31_spill] sm:$0xff]  ;;  %v17037_v41 = vld [vmem:[#allocation40_spill] sm:$0xff] }
 0x399   :  { %v16482_v3 = vpop.f32.mrf.mxu0 }
 0x39b   :  { %v16488_v63 = vpop.permute.xlu1 %5985  ;;  %v16496_v39 = vpop.f32.mrf.mxu0 }
 0x39f   :  { %v16524_v7 = vpop.permute.xlu1 %6170 }
 0x3aa   :  { %v12469_v45 = vpop.f32.mrf.mxu1 }
 0x3ab   :  { %v5998_v48 = vmul.f32 %v12469_v45, %v16364_v49  ;;  %v17025_v49 = vld [vmem:[#allocation15_spill] sm:$0xff]  ;;  %v4332_v45 = vmul.f32 %v16256_v53, %v16283_v4  ;;  %v16517_v4 = vpop.f32.mrf.mxu0 }
 0x3ac   :  { %v16490_v55 = vpop.f32.mrf.mxu1  ;;  %v4143_v22 = vmul.f32 %v17025_v49, %v16235_v58  ;;  %v4552_v58 = vmul.f32 %v15959_v16, %v16318_v52  ;;  %v4774_v16 = vmul.f32 %v16072_v51, %v16328_v54  ;;  %v4777_v52 = vmul.f32 %v16334_v23, %v16109_v2  ;;  %v17028_v54 = vld [vmem:[#allocation50_spill] sm:$0xff] }
 0x3ad   :  { %v16484_v21 = vadd.f32 %v5998_v48, %v5807_v59  ;;  %v4333_v59 = vmul.f32 %v15897_v47, %v16316_v35  ;;  %v4148_v48 = vadd.f32 %v4140_v0, %v16238_v29  ;;  %v16519_v47 = vpop.permute.xlu0 %6389  ;;  %v4557_v29 = vmul.f32 %v16326_v56, %v16040_v1  ;;  %v16533_v35 = vpop.f32.mrf.mxu0  ;;  %v17031_v0 = vld [vmem:[#allocation51_spill] sm:$0xff]  ;;  %v17032_v2 = vld [vmem:[#allocation14_spill] sm:$0xff] }
 0x3ae   :  { %v4151_v25 = vadd.f32 %v4143_v22, %v16248_v36  ;;  %v16511_v20 = vpop.f32.mrf.mxu1  ;;  %17026 = vst [vmem:[#allocation58_spill] sm:$0xff] %v16519_v47  ;;  %v4558_v1 = vmul.f32 %v16340_v57, %v16290_v50  ;;  %v4781_v50 = vmul.f32 %v17029_v27, %v17028_v54  ;;  %v4779_v23 = vmul.f32 %v17032_v2, %v17031_v0  ;;  %v17033_v49 = vld [vmem:[#allocation38_spill] sm:$0xff]  ;;  %v17045_v27 = vld [vmem:[#allocation20_spill] sm:$0xff]  ;;  %v17049_v2 = vld [vmem:[#allocation19_spill] sm:$0xff] }
 0x3af   :  { %17023 = vst [vmem:[#allocation82_spill] sm:$0xff] %v16484_v21  ;;  %v4337_v53 = vadd.f32 %v4329_v30, %v4148_v48  ;;  %v4341_v36 = vadd.f32 %v4333_v59, %v4152_v24  ;;  %v4565_v56 = vadd.f32 %v4557_v29, %v16287_v33  ;;  %v17030_v30 = vld [vmem:[#allocation52_spill] sm:$0xff]  ;;  %v4963_v8 = vmul.f32 %v17034_v14, %v17033_v49  ;;  %v17035_v22 = vld [vmem:[#allocation22_spill] sm:$0xff]  ;;  %v16559_v9 = vpop.f32.mrf.mxu0 }
 0x3b0   :  { %v4340_v10 = vadd.f32 %v4332_v45, %v4151_v25  ;;  %v16543_v51 = vpop.f32.mrf.mxu1  ;;  %v4566_v40 = vadd.f32 %v4558_v1, %v17030_v30  ;;  %v4966_v45 = vmul.f32 %v17036_v32, %v17035_v22  ;;  %v4782_v33 = vadd.f32 %v4774_v16, %v4559_v43  ;;  %v17038_v25 = vld [vmem:[#allocation13_spill] sm:$0xff]  ;;  %v17040_v29 = vld [vmem:[#allocation44_spill] sm:$0xff]  ;;  %v17050_v49 = vld [vmem:[#allocation18_spill] sm:$0xff] }
 0x3b1   :  { %v4560_v26 = vadd.f32 %v4552_v58, %v4337_v53  ;;  %v4564_v62 = vadd.f32 %v4556_v38, %v4341_v36  ;;  %v16557_v48 = vpop.permute.xlu0 %6158  ;;  %v4964_v24 = vmul.f32 %v17038_v25, %v17037_v41  ;;  %v4785_v18 = vadd.f32 %v4777_v52, %v4562_v46  ;;  %v17039_v53 = vld [vmem:[#allocation30_spill] sm:$0xff]  ;;  %v16565_v36 = vpop.permute.xlu1 %5794  ;;  %v17041_v43 = vld [vmem:[#allocation53_spill] sm:$0xff]  ;;  %v17051_v22 = vld [vmem:[#allocation47_spill] sm:$0xff] }
 0x3b2   :  { %v4563_v57 = vadd.f32 %v4555_v42, %v4340_v10  ;;  %v4788_v58 = vadd.f32 %v4780_v11, %v4565_v56  ;;  %v4970_v10 = vmul.f32 %v17040_v29, %v17039_v53  ;;  %v16567_v42 = vpop.f32.mrf.mxu1  ;;  %v4789_v38 = vadd.f32 %v4781_v50, %v4566_v40  ;;  %v17042_v16 = vld [vmem:[#allocation25_spill] sm:$0xff]  ;;  %v17048_v11 = vld [vmem:[#allocation34_spill] sm:$0xff]  ;;  %v17052_v32 = vld [vmem:[#allocation48_spill] sm:$0xff]  ;;  %v16581_v40 = vpop.f32.mrf.mxu0 }
 0x3b3   :  { %v4783_v59 = vadd.f32 %v4775_v19, %v4560_v26  ;;  %v5186_v19 = vmul.f32 %v17042_v16, %v17041_v43  ;;  %v17043_v26 = vld [vmem:[#allocation35_spill] sm:$0xff]  ;;  %v17046_v30 = vld [vmem:[#allocation49_spill] sm:$0xff]  ;;  %v4787_v46 = vadd.f32 %v4779_v23, %v4564_v62  ;;  %v5189_v14 = vmul.f32 %v17050_v49, %v17049_v2  ;;  %v17053_v53 = vld [vmem:[#allocation16_spill] sm:$0xff] }
 0x3b4   :  { %v4786_v1 = vadd.f32 %v4778_v15, %v4563_v57  ;;  %v5187_v54 = vmul.f32 %v17044_v12, %v17043_v26  ;;  %v4969_v0 = vmul.f32 %v17046_v30, %v17045_v27  ;;  %v17047_v52 = vld [vmem:[#allocation57_spill] sm:$0xff]  ;;  %v4967_v15 = vmul.f32 %v17052_v32, %v17051_v22  ;;  %v17055_v16 = vld [vmem:[#allocation12_spill] sm:$0xff]  ;;  %v17056_v62 = vld [vmem:[#allocation59_spill] sm:$0xff]  ;;  %v16589_v12 = vpop.f32.mrf.mxu1 }
 0x3b5   :  { %v4968_v56 = vmul.f32 %v17048_v11, %v17047_v52  ;;  %v4971_v50 = vadd.f32 %v4963_v8, %v4782_v33  ;;  %v4972_v57 = vadd.f32 %v4964_v24, %v4783_v59  ;;  %v4974_v41 = vadd.f32 %v4966_v45, %v4785_v18  ;;  %v17054_v29 = vld [vmem:[#allocation41_spill] sm:$0xff]  ;;  %v16587_v26 = vpop.permute.xlu1 %5989  ;;  %v17057_v33 = vld [vmem:[#allocation66_spill] sm:$0xff]  ;;  %v17058_v59 = vld [vmem:[#allocation60_spill] sm:$0xff]  ;;  %v16595_v2 = vpop.permute.xlu0 %6166 }
 0x3b6   :  { %v4977_v25 = vadd.f32 %v4969_v0, %v4788_v58  ;;  %v5190_v43 = vmul.f32 %v17054_v29, %v17053_v53  ;;  %v5191_v23 = vmul.f32 %v17056_v62, %v17055_v16  ;;  %v4978_v27 = vadd.f32 %v4970_v10, %v4789_v38  ;;  %v17059_v45 = vld [vmem:[#allocation46_spill] sm:$0xff]  ;;  %v17060_v18 = vld [vmem:[#allocation61_spill] sm:$0xff]  ;;  %v17061_v49 = vld [vmem:[#allocation55_spill] sm:$0xff] }
 0x3b7   :  { %v5194_v30 = vadd.f32 %v5186_v19, %v4971_v50  ;;  %v5195_v52 = vadd.f32 %v5187_v54, %v4972_v57  ;;  %v4975_v11 = vadd.f32 %v4967_v15, %v4786_v1  ;;  %v4976_v8 = vadd.f32 %v4968_v56, %v4787_v46  ;;  %v17062_v22 = vld [vmem:[#allocation67_spill] sm:$0xff]  ;;  %v17063_v53 = vld [vmem:[#allocation21_spill] sm:$0xff]  ;;  %v17066_v38 = vld [vmem:[#allocation24_spill] sm:$0xff]  ;;  %v6125_v56 = vpop.f32.mrf.mxu0 }
 0x3b8   :  { %v5385_v24 = vmul.f32 %v17058_v59, %v17057_v33  ;;  %v5386_v58 = vmul.f32 %v17060_v18, %v17059_v45  ;;  %v5197_v0 = vadd.f32 %v5189_v14, %v4974_v41  ;;  %v5192_v32 = vmul.f32 %v17062_v22, %v17061_v49  ;;  %v17064_v29 = vld [vmem:[#allocation11_spill] sm:$0xff]  ;;  %v17065_v10 = vld [vmem:[#allocation69_spill] sm:$0xff]  ;;  %v17067_v1 = vld [vmem:[#allocation76_spill] sm:$0xff]  ;;  %v16609_v45 = vpop.f32.mrf.mxu1 }
 0x3b9   :  { %v5193_v16 = vmul.f32 %v17064_v29, %v17063_v53  ;;  %v5574_v19 = vmul.f32 %v17066_v38, %v17065_v10  ;;  %v17068_v54 = vld [vmem:[#allocation10_spill] sm:$0xff]  ;;  %v17069_v15 = vld [vmem:[#allocation65_spill] sm:$0xff]  ;;  %v5198_v33 = vadd.f32 %v5190_v43, %v4975_v11  ;;  %v5199_v59 = vadd.f32 %v5191_v23, %v4976_v8  ;;  %v17075_v29 = vld [vmem:[#allocation23_spill] sm:$0xff]  ;;  %v16623_v8 = vpop.permute.xlu1 %6393 }
 0x3ba   :  { %v5575_v46 = vmul.f32 %v17068_v54, %v17067_v1  ;;  %v17070_v50 = vld [vmem:[#allocation37_spill] sm:$0xff]  ;;  %v17073_v18 = vld [vmem:[#allocation70_spill] sm:$0xff]  ;;  %v5393_v53 = vadd.f32 %v5385_v24, %v5194_v30  ;;  %v5394_v47 = vadd.f32 %v5386_v58, %v5195_v52  ;;  %v16615_v1 = vpop.f32.mrf.mxu0  ;;  %v17077_v54 = vld [vmem:[#allocation28_spill] sm:$0xff] }
 0x3bb   :  { %v5388_v57 = vmul.f32 %v17070_v50, %v17069_v15  ;;  %v17071_v62 = vld [vmem:[#allocation45_spill] sm:$0xff]  ;;  %v17074_v49 = vld [vmem:[#allocation54_spill] sm:$0xff]  ;;  %v5390_v15 = vmul.f32 %v17077_v54, %v16447_v31  ;;  %v17078_v50 = vld [vmem:[#allocation72_spill] sm:$0xff]  ;;  %v5201_v30 = vadd.f32 %v5193_v16, %v4978_v27  ;;  %v6175_v54 = vpop.permute.xlu0 %6174 }
 0x3bc   :  { %v17072_v14 = vld [vmem:[#allocation17_spill] sm:$0xff]  ;;  %v5389_v22 = vmul.f32 %v17074_v49, %v17073_v18  ;;  %v17079_v21 = vld [vmem:[#allocation74_spill] sm:$0xff]  ;;  %v5582_v24 = vadd.f32 %v5574_v19, %v5393_v53  ;;  %v5583_v18 = vadd.f32 %v5575_v46, %v5394_v47  ;;  %v17081_v52 = vld [vmem:[#allocation27_spill] sm:$0xff] }
 0x3bd   :  { %v5391_v41 = vmul.f32 %v17072_v14, %v17071_v62  ;;  %v17076_v10 = vld [vmem:[#allocation73_spill] sm:$0xff]  ;;  %v5392_v62 = vmul.f32 %v17079_v21, %v17078_v50  ;;  %v5396_v43 = vadd.f32 %v5388_v57, %v5197_v0  ;;  %v5200_v14 = vadd.f32 %v5192_v32, %v4977_v25  ;;  %v17082_v31 = vld [vmem:[#allocation62_spill] sm:$0xff]  ;;  %v5952_v21 = vpop.f32.mrf.mxu1  ;;  %v17083_v0 = vld [vmem:[#allocation71_spill] sm:$0xff]  ;;  %v6138_v32 = vpop.f32.mrf.mxu0 }
 0x3be   :  { %v5577_v38 = vmul.f32 %v17076_v10, %v17075_v29  ;;  %v17080_v23 = vld [vmem:[#allocation33_spill] sm:$0xff]  ;;  %v5797_v58 = vmul.f32 %v17081_v52, %v16455_v61  ;;  %v5397_v49 = vadd.f32 %v5389_v22, %v5198_v33  ;;  %v5398_v29 = vadd.f32 %v5390_v15, %v5199_v59  ;;  %v17085_v27 = vld [vmem:[#allocation64_spill] sm:$0xff]  ;;  %v17086_v16 = vld [vmem:[#allocation39_spill] sm:$0xff]  ;;  %v5994_v52 = vpop.permute.xlu1 %5993 }
 0x3bf   :  { %v5578_v11 = vmul.f32 %v17080_v23, %v16459_v60  ;;  %v5579_v10 = vmul.f32 %v17082_v31, %v16473_v5  ;;  %v5798_v57 = vmul.f32 %v17083_v0, %v16471_v37  ;;  %v17084_v50 = vld [vmem:[#allocation29_spill] sm:$0xff]  ;;  %v5997_v47 = vmul.f32 %v17085_v27, %v16543_v51  ;;  %v17088_v15 = vld [vmem:[#allocation75_spill] sm:$0xff] }
 0x3c0   :  { %v5585_v60 = vadd.f32 %v5577_v38, %v5396_v43  ;;  %v5996_v25 = vmul.f32 %v17084_v50, %v16490_v55  ;;  %v17087_v61 = vld [vmem:[#allocation77_spill] sm:$0xff]  ;;  %v5581_v5 = vmul.f32 %v16467_v44, %v16477_v34  ;;  %v5801_v33 = vmul.f32 %v16469_v6, %v16482_v3  ;;  %v17089_v23 = vld [vmem:[#allocation63_spill] sm:$0xff] }
 0x3c1   :  { %v5580_v19 = vmul.f32 %v17087_v61, %v17086_v16  ;;  %v5586_v46 = vadd.f32 %v5578_v11, %v5397_v49  ;;  %v5800_v37 = vmul.f32 %v16463_v17, %v16457_v13  ;;  %v5399_v22 = vadd.f32 %v5391_v41, %v5200_v14  ;;  %v17090_v34 = vld [vmem:[#allocation81_spill] sm:$0xff]  ;;  %v17091_v49 = vld [vmem:[#allocation80_spill] sm:$0xff]  ;;  %v12498_v13 = vpop.f32.mrf.mxu0  ;;  %v17095_v16 = vld [vmem:[#allocation79_spill] sm:$0xff] }
 0x3c2   :  { %v5805_v55 = vadd.f32 %v5797_v58, %v5582_v24  ;;  %v5806_v53 = vadd.f32 %v5798_v57, %v5583_v18  ;;  %v5400_v38 = vadd.f32 %v5392_v62, %v5201_v30  ;;  %v5587_v51 = vadd.f32 %v5579_v10, %v5398_v29  ;;  %v6179_v30 = vpop.permute.xlu0 %6178  ;;  %v17092_v24 = vld [vmem:[#allocation43_spill] sm:$0xff]  ;;  %v17093_v58 = vld [vmem:[#allocation78_spill] sm:$0xff] }
 0x3c3   :  { %v5802_v43 = vmul.f32 %v17088_v15, %v16517_v4  ;;  %v5999_v11 = vmul.f32 %v16511_v20, %v17089_v23  ;;  %v5803_v3 = vmul.f32 %v17091_v49, %v17090_v34  ;;  %v5808_v31 = vadd.f32 %v5800_v37, %v5585_v60  ;;  %v17094_v60 = vld [vmem:[#allocation42_spill] sm:$0xff] }
 0x3c4   :  { %v6004_v6 = vadd.f32 %v5996_v25, %v5805_v55  ;;  %v6005_v0 = vadd.f32 %v5997_v47, %v5806_v53  ;;  %v5588_v17 = vadd.f32 %v5580_v19, %v5399_v22  ;;  %v5589_v41 = vadd.f32 %v5581_v5, %v5400_v38  ;;  %v6141_v47 = vpop.f32.mrf.mxu0  ;;  %v17098_v37 = vld [vmem:[#allocation58_spill] sm:$0xff] }
 0x3c5   :  { %v5809_v14 = vadd.f32 %v5801_v33, %v5586_v46  ;;  %v5804_v62 = vmul.f32 %v16496_v39, %v16565_v36  ;;  %v6185_v20 = vmul.f32 %v17092_v24, %v16559_v9  ;;  %v6186_v18 = vmul.f32 %v16557_v48, %v6125_v56  ;;  %v6398_v39 = vpop.permute.xlu1 %6397  ;;  %v17096_v48 = vld [vmem:[#allocation68_spill] sm:$0xff]  ;;  %v17097_v46 = vld [vmem:[#allocation82_spill] sm:$0xff] }
 0x3c6   :  { %v6000_v29 = vmul.f32 %v17093_v58, %v16589_v12  ;;  %v5810_v57 = vadd.f32 %v5802_v43, %v5587_v51  ;;  %v6187_v50 = vmul.f32 %v16533_v35, %v17094_v60  ;;  %v6007_v25 = vadd.f32 %v5999_v11, %v5808_v31  ;;  %v6183_v38 = vpop.permute.xlu0 %6182 }
 0x3c7   :  { %v6001_v27 = vmul.f32 %v16488_v63, %v5952_v21  ;;  %v6193_v9 = vadd.f32 %v6185_v20, %v6004_v6  ;;  %v6194_v19 = vadd.f32 %v6186_v18, %v6005_v0  ;;  %v6188_v12 = vmul.f32 %v16581_v40, %v16595_v2 }
 0x3c8   :  { %v6189_v35 = vmul.f32 %v16524_v7, %v6138_v32  ;;  %v6195_v5 = vadd.f32 %v6187_v50, %v17097_v46  ;;  %v6008_v21 = vadd.f32 %v6000_v29, %v5809_v14  ;;  %v5811_v55 = vadd.f32 %v5803_v3, %v5588_v17 }
 0x3c9   :  { %v6003_v53 = vmul.f32 %v16609_v45, %v5994_v52  ;;  %v6009_v51 = vadd.f32 %v6001_v27, %v5810_v57  ;;  %v6190_v15 = vmul.f32 %v6175_v54, %v6141_v47  ;;  %v6196_v43 = vadd.f32 %v6188_v12, %v6007_v25  ;;  %v6402_v23 = vpop.permute.xlu1 %6401 }
 0x3ca   :  { %v12517_v59 = vpop.f32.mrf.mxu1  ;;  %v6191_v32 = vmul.f32 %v16615_v1, %v6179_v30  ;;  %v6197_v34 = vadd.f32 %v6189_v35, %v6008_v21  ;;  %v6192_v45 = vmul.f32 %v12498_v13, %v6183_v38  ;;  %v6406_v31 = vpop.permute.xlu0 %6405 }
 0x3cb   :  { %v6410_v61 = vmul.f32 %v12517_v59, %v17095_v16  ;;  %v6198_v52 = vadd.f32 %v6190_v15, %v6009_v51 }
 0x3cc   :  { %v6345_v44 = vpop.f32.mrf.mxu1 }
 0x3cd   :  { %v6408_v10 = vmul.f32 %v16486_v28, %v6345_v44  ;;  %v6002_v28 = vmul.f32 %v16567_v42, %v16587_v26  ;;  %v6418_v2 = vadd.f32 %v6410_v61, %v6195_v5  ;;  %v5812_v26 = vadd.f32 %v5804_v62, %v5589_v41 }
 0x3ce   :  { %v12518_v4 = vpop.f32.mrf.mxu1 }
 0x3cf   :  { %v6416_v33 = vadd.f32 %v6408_v10, %v6193_v9  ;;  %v6411_v22 = vmul.f32 %v12518_v4, %v17098_v37  ;;  %v6010_v44 = vadd.f32 %v6002_v28, %v5811_v55  ;;  %v6011_v6 = vadd.f32 %v6003_v53, %v5812_v26 }
 0x3d0   :  { %v6348_v36 = vpop.f32.mrf.mxu1 }
 0x3d1   :  { %v6409_v56 = vmul.f32 %v17096_v48, %v6348_v36  ;;  %v6419_v49 = vadd.f32 %v6411_v22, %v6196_v43  ;;  %v6199_v24 = vadd.f32 %v6191_v32, %v6010_v44  ;;  %v6200_v1 = vadd.f32 %v6192_v45, %v6011_v6 }
 0x3d2   :  { %v12521_v63 = vpop.f32.mrf.mxu1 }
 0x3d3   :  { %v6417_v59 = vadd.f32 %v6409_v56, %v6194_v19  ;;  %v6414_v0 = vmul.f32 %v12521_v63, %v6402_v23  ;;  %v10798_v23 = vld [vmem:[%s16762_s5] ss:$0 sm:$0xff] }
 0x3d4   :  { %v6361_v40 = vpop.f32.mrf.mxu1 }
 0x3d5   :  { %v6424_v42 = vadd.f32 %v6417_v59, %v6416_v33  ;;  %v6412_v7 = vmul.f32 %v16623_v8, %v6361_v40  ;;  %v6422_v30 = vadd.f32 %v6414_v0, %v6199_v24 }
 0x3d6   :  { %v12522_v11 = vpop.f32.mrf.mxu1 }
 0x3d7   :  { %v6425_v3 = vadd.f32 %v6424_v42, %v6418_v2  ;;  %v6420_v17 = vadd.f32 %v6412_v7, %v6197_v34  ;;  %v6415_v41 = vmul.f32 %v12522_v11, %v6406_v31  ;;  %v10799_v31 = vld [vmem:[%s16763_s6] ss:$0 sm:$0xff] }
 0x3d8   :  { %v6364_v54 = vpop.f32.mrf.mxu1 }
 0x3d9   :  { %v6426_v14 = vadd.f32 %v6425_v3, %v6419_v49  ;;  %v6413_v4 = vmul.f32 %v6398_v39, %v6364_v54  ;;  %v6423_v18 = vadd.f32 %v6415_v41, %v6200_v1 }
 0x3db   :  { %v6427_v8 = vadd.f32 %v6426_v14, %v6420_v17  ;;  %v6421_v62 = vadd.f32 %v6413_v4, %v6198_v52 }
 0x3dd   :  { %v6428_v20 = vadd.f32 %v6427_v8, %v6421_v62 }
 0x3df   :  { %v6429_v58 = vadd.f32 %v6428_v20, %v6422_v30 }
 0x3e1   :  { %v6430_v29 = vadd.f32 %v6429_v58, %v6423_v18 }
 0x3e3   :  { %v6431_v10 = vrot.slane %v6430_v29, 4 }
 0x3e5   :  { %v6432_v57 = vadd.f32 %v6431_v10, %v6430_v29 }
 0x3e7   :  { %v6433_v13 = vrot.slane %v6432_v57, 2 }
 0x3e9   :  { %v6434_v60 = vadd.f32 %v6433_v13, %v6432_v57 }
 0x3eb   :  { %v6435_v50 = vrot.slane %v6434_v60, 1 }
 0x3ed   :  { %v6436_v25 = vadd.f32 %v6435_v50, %v6434_v60  ;;  %v13285_v50 = vmov 1966171168  }
 0x3ef   :  { %v6438_v27 = vmul.f32 0.015625, %v6436_v25  ;;  %v6604_v25 = vunpack.c.l.s4 %v13285_v50 }
 0x3f1   :  { %v6439_v36 = vsub.f32 %v6416_v33, %v6438_v27  ;;  %v6440_v47 = vsub.f32 %v6417_v59, %v6438_v27  ;;  %v6441_v39 = vsub.f32 %v6418_v2, %v6438_v27  ;;  %v6442_v16 = vsub.f32 %v6419_v49, %v6438_v27 }
 0x3f2   :  { %v6443_v61 = vsub.f32 %v6420_v17, %v6438_v27  ;;  %v6444_v9 = vsub.f32 %v6421_v62, %v6438_v27  ;;  %v6445_v19 = vsub.f32 %v6422_v30, %v6438_v27  ;;  %v6446_v48 = vsub.f32 %v6423_v18, %v6438_v27 }
 0x3f3   :  { %v6447_v56 = vmul.f32 %v6439_v36, %v6439_v36  ;;  %v6448_v12 = vmul.f32 %v6440_v47, %v6440_v47  ;;  %v6449_v28 = vmul.f32 %v6441_v39, %v6441_v39  ;;  %v6450_v46 = vmul.f32 %v6442_v16, %v6442_v16 }
 0x3f4   :  { %v6451_v63 = vmul.f32 %v6443_v61, %v6443_v61  ;;  %v6452_v37 = vmul.f32 %v6444_v9, %v6444_v9  ;;  %v6453_v55 = vmul.f32 %v6445_v19, %v6445_v19  ;;  %v6454_v33 = vmul.f32 %v6446_v48, %v6446_v48 }
 0x3f5   :  { %v6455_v35 = vadd.f32 %v6448_v12, %v6447_v56 }
 0x3f7   :  { %v6456_v5 = vadd.f32 %v6455_v35, %v6449_v28 }
 0x3f9   :  { %v6457_v21 = vadd.f32 %v6456_v5, %v6450_v46 }
 0x3fb   :  { %v6458_v22 = vadd.f32 %v6457_v21, %v6451_v63 }
 0x3fd   :  { %v6459_v53 = vadd.f32 %v6458_v22, %v6452_v37  ;;  %v6605_v22 = vunpack.c.0.s8 %v6604_v25 }
 0x3ff   :  { %v6460_v59 = vadd.f32 %v6459_v53, %v6453_v55 }
 0x401   :  { %v6461_v38 = vadd.f32 %v6460_v59, %v6454_v33 }
 0x403   :  { %v6462_v51 = vrot.slane %v6461_v38, 4 }
 0x405   :  { %v6463_v15 = vadd.f32 %v6462_v51, %v6461_v38 }
 0x407   :  { %v6464_v40 = vrot.slane %v6463_v15, 2 }
 0x409   :  { %v6465_v2 = vadd.f32 %v6464_v40, %v6463_v15 }
 0x40b   :  { %v6466_v43 = vrot.slane %v6465_v2, 1 }
 0x40d   :  { %v6467_v42 = vadd.f32 %v6466_v43, %v6465_v2 }
 0x40f   :  { %v6468_v7 = vmul.f32 0.015625, %v6467_v42 }
 0x411   :  { %v6469_v26 = vadd.f32 1e-05, %v6468_v7 }
 0x413   :  { %12961 = vrsqrt.f32 %v6469_v26 }
 0x420   :  { %v12962_v32 = vpop.eup %12961 }
 0x421   :  { %v6471_v11 = vmul.f32 %v12962_v32, %v6439_v36  ;;  %v6472_v44 = vmul.f32 %v12962_v32, %v6440_v47  ;;  %v6473_v34 = vmul.f32 %v12962_v32, %v6441_v39  ;;  %v6474_v49 = vmul.f32 %v12962_v32, %v6442_v16 }
 0x422   :  { %v6475_v3 = vmul.f32 %v12962_v32, %v6443_v61  ;;  %v6476_v6 = vmul.f32 %v12962_v32, %v6444_v9  ;;  %v6477_v45 = vmul.f32 %v12962_v32, %v6445_v19  ;;  %v6478_v52 = vmul.f32 %v12962_v32, %v6446_v48 }
 0x423   :  { %v6486_v54 = vmul.f32 %v10798_v23, %v6471_v11  ;;  %v6487_v0 = vmul.f32 %v10798_v23, %v6472_v44  ;;  %v6488_v17 = vmul.f32 %v10798_v23, %v6473_v34  ;;  %v6489_v14 = vmul.f32 %v10798_v23, %v6474_v49 }
 0x424   :  { %v6490_v4 = vmul.f32 %v10798_v23, %v6475_v3  ;;  %v6491_v24 = vmul.f32 %v10798_v23, %v6476_v6  ;;  %v6492_v8 = vmul.f32 %v10798_v23, %v6477_v45  ;;  %v6493_v41 = vmul.f32 %v10798_v23, %v6478_v52 }
 0x425   :  { %v6501_v62 = vadd.f32 %v10799_v31, %v6486_v54  ;;  %v6502_v1 = vadd.f32 %v10799_v31, %v6487_v0  ;;  %v6503_v30 = vadd.f32 %v10799_v31, %v6488_v17  ;;  %v6504_v20 = vadd.f32 %v10799_v31, %v6489_v14 }
 0x426   :  { %v6505_v18 = vadd.f32 %v10799_v31, %v6490_v4  ;;  %v6506_v58 = vadd.f32 %v10799_v31, %v6491_v24  ;;  %v6507_v29 = vadd.f32 %v10799_v31, %v6492_v8  ;;  %v6508_v10 = vadd.f32 %v10799_v31, %v6493_v41 }
 0x427   :  { %vm6509_vm10 = vcmp.ge.f32.partialorder %v6501_v62, 0.0  ;;  %vm6510_vm11 = vcmp.ge.f32.partialorder %v6502_v1, 0.0  ;;  %vm6511_vm12 = vcmp.ge.f32.partialorder %v6503_v30, 0.0  ;;  %vm6512_vm13 = vcmp.ge.f32.partialorder %v6504_v20, 0.0 }
 0x428   :  { %vm6513_vm14 = vcmp.ge.f32.partialorder %v6505_v18, 0.0  ;;  %vm6514_vm15 = vcmp.ge.f32.partialorder %v6506_v58, 0.0  ;;  %vm6515_vm0 = vcmp.ge.f32.partialorder %v6507_v29, 0.0  ;;  %vm6516_vm1 = vcmp.ge.f32.partialorder %v6508_v10, 0.0 }
 0x429   :  { %v6517_v57 = vmul.f32 0.2, %v6501_v62  ;;  %v6518_v13 = vmul.f32 0.2, %v6502_v1  ;;  %v6519_v60 = vmul.f32 0.2, %v6503_v30  ;;  %v6606_v39 = vlaneseq }
 0x42a   :  { %v6520_v27 = vmul.f32 0.2, %v6504_v20  ;;  %v6521_v36 = vmul.f32 0.2, %v6505_v18  ;;  %v6522_v47 = vmul.f32 0.2, %v6506_v58 }
 0x42b   :  { %v6523_v16 = vmul.f32 0.2, %v6507_v29  ;;  %v6524_v61 = vmul.f32 0.2, %v6508_v10  ;;  %v6525_v9 = vsel %vm6509_vm10, %v6501_v62, %v6517_v57  ;;  %v6526_v19 = vsel %vm6510_vm11, %v6502_v1, %v6518_v13 }
 0x42c   :  { %v6527_v48 = vsel %vm6511_vm12, %v6503_v30, %v6519_v60  ;;  %v6528_v56 = vsel %vm6512_vm13, %v6504_v20, %v6520_v27  ;;  %v6529_v12 = vsel %vm6513_vm14, %v6505_v18, %v6521_v36  ;;  %v6530_v28 = vsel %vm6514_vm15, %v6506_v58, %v6522_v47 }
 0x42d   :  { %v6531_v35 = vsel %vm6515_vm0, %v6507_v29, %v6523_v16  ;;  %v6532_v46 = vsel %vm6516_vm1, %v6508_v10, %v6524_v61  ;;  %v11139_v5 = vpack.c.bf16 %v6526_v19, %v6525_v9  ;;  %v11144_v63 = vpack.c.bf16 %v6528_v56, %v6527_v48 }
 0x42e   :  { %v11149_v21 = vpack.c.bf16 %v6530_v28, %v6529_v12  ;;  %v11154_v37 = vpack.c.bf16 %v6532_v46, %v6531_v35  ;;  %v6607_v55 = vshrl.u32 %v6606_v39, 7 }
 0x42f   :  { %11140 = vst [vmem:[#allocation3] sm:$0xff] %v11139_v5   ;;  %11160 = vst [vmem:[#allocation3 + $0x8] sm:$0xff] %v11144_v63  }
 0x430   :  { %11161 = vst [vmem:[#allocation3 + $0x10] sm:$0xff] %v11149_v21   ;;  %11162 = vst [vmem:[#allocation3 + $0x18] sm:$0xff] %v11154_v37   ;;  %v16686_v53 = vsub.s32 %v6605_v22, %v6607_v55 }
 0x436   :  { %v6573_v33 = vld [vmem:[#allocation3] sm:$0x1]  ;;  %v10808_v59 = vld.sshfl [vmem:[#allocation3] sm:$0x10 pattern:$0x75316420] }
 0x437   :  { %6574 = vst [vmem:[#allocation4] sm:$0x1] %v6573_v33  ;;  %v6584_v38 = vcombine.high %v10808_v59, %v10808_v59  ;;  %v10810_v51 = vld.sshfl [vmem:[#allocation3] sm:$0x2 pattern:$0x75316420] }
 0x438   :  { %v6633_v15 = vld [vmem:[#allocation3 + $0x4] sm:$0x1]  ;;  %v6609_v40 = vrot.slane %v10810_v51, %v16686_v53  ;;  %v10811_v2 = vld.sshfl [vmem:[#allocation3] sm:$0x20 pattern:$0x75316420] }
 0x439   :  { %6634 = vst [vmem:[#allocation4 + $0x4] sm:$0x1] %v6633_v15  ;;  %v6693_v43 = vld [vmem:[#allocation3 + $0x8] sm:$0x1]  ;;  %v6622_v42 = vcombine.high %v10811_v2, %v10811_v2  ;;  %v6753_v26 = vld [vmem:[#allocation3 + $0xc] sm:$0x1] }
 0x43a   :  { %10809 = vst.sshfl [vmem:[#allocation4 + $0x1] sm:$0x1 pattern:$0x73625140] %v6584_v38  ;;  %6694 = vst [vmem:[#allocation4 + $0x8] sm:$0x1] %v6693_v43  ;;  %v6610_v32 = vcombine.high %v6609_v40, %v6609_v40 }
 0x43b   :  { %v10812_v7 = vld.sshfl [vmem:[#allocation3 + $0x4] sm:$0x10 pattern:$0x75316420]  ;;  %6754 = vst [vmem:[#allocation4 + $0xc] sm:$0x1] %v6753_v26  ;;  %v6629_v34 = vrot.slane %v6622_v42, %v16686_v53 }
 0x43c   :  { %v6644_v23 = vcombine.high %v10812_v7, %v10812_v7  ;;  %v10814_v11 = vld.sshfl [vmem:[#allocation3 + $0x4] sm:$0x2 pattern:$0x75316420]  ;;  %v6813_v44 = vld [vmem:[#allocation3 + $0x10] sm:$0x1] }
 0x43d   :  { %v6669_v49 = vrot.slane %v10814_v11, %v16686_v53  ;;  %v10815_v3 = vld.sshfl [vmem:[#allocation3 + $0x4] sm:$0x20 pattern:$0x75316420]  ;;  %6814 = vst [vmem:[#allocation4 + $0x10] sm:$0x1] %v6813_v44  ;;  %v6630_v54 = vcombine.high %v6629_v34, %v6629_v34 }
 0x43e   :  { %v6873_v6 = vld [vmem:[#allocation3 + $0x14] sm:$0x1]  ;;  %6612 = vst [vmem:[#allocation4 + $0x2] sm:$0x1] %v6610_v32  ;;  %v6682_v45 = vcombine.high %v10815_v3, %v10815_v3  ;;  %v6933_v31 = vld [vmem:[#allocation3 + $0x18] sm:$0x1] }
 0x43f   :  { %10813 = vst.sshfl [vmem:[#allocation4 + $0x5] sm:$0x1 pattern:$0x73625140] %v6644_v23  ;;  %6874 = vst [vmem:[#allocation4 + $0x14] sm:$0x1] %v6873_v6  ;;  %v6670_v0 = vcombine.high %v6669_v49, %v6669_v49 }
 0x440   :  { %v10816_v52 = vld.sshfl [vmem:[#allocation3 + $0x8] sm:$0x10 pattern:$0x75316420]  ;;  %6934 = vst [vmem:[#allocation4 + $0x18] sm:$0x1] %v6933_v31  ;;  %v6689_v24 = vrot.slane %v6682_v45, %v16686_v53 }
 0x441   :  { %v6704_v17 = vcombine.high %v10816_v52, %v10816_v52  ;;  %v10818_v14 = vld.sshfl [vmem:[#allocation3 + $0x8] sm:$0x2 pattern:$0x75316420]  ;;  %v6993_v4 = vld [vmem:[#allocation3 + $0x1c] sm:$0x1] }
 0x442   :  { %v6729_v8 = vrot.slane %v10818_v14, %v16686_v53  ;;  %v10819_v41 = vld.sshfl [vmem:[#allocation3 + $0x8] sm:$0x20 pattern:$0x75316420]  ;;  %6994 = vst [vmem:[#allocation4 + $0x1c] sm:$0x1] %v6993_v4  ;;  %v6690_v30 = vcombine.high %v6689_v24, %v6689_v24 }
 0x443   :  { %6632 = vst [vmem:[#allocation4 + $0x3] sm:$0x1] %v6630_v54  ;;  %6672 = vst [vmem:[#allocation4 + $0x6] sm:$0x1] %v6670_v0  ;;  %v6742_v62 = vcombine.high %v10819_v41, %v10819_v41 }
 0x444   :  { %10817 = vst.sshfl [vmem:[#allocation4 + $0x9] sm:$0x1 pattern:$0x73625140] %v6704_v17  ;;  %v6730_v20 = vcombine.high %v6729_v8, %v6729_v8  ;;  %6692 = vst [vmem:[#allocation4 + $0x7] sm:$0x1] %v6690_v30 }
 0x445   :  { %v10820_v1 = vld.sshfl [vmem:[#allocation3 + $0xc] sm:$0x10 pattern:$0x75316420]  ;;  %v6749_v29 = vrot.slane %v6742_v62, %v16686_v53 }
 0x446   :  { %v6764_v18 = vcombine.high %v10820_v1, %v10820_v1  ;;  %v10822_v58 = vld.sshfl [vmem:[#allocation3 + $0xc] sm:$0x2 pattern:$0x75316420]  ;;  %6732 = vst [vmem:[#allocation4 + $0xa] sm:$0x1] %v6730_v20 }
 0x447   :  { %v6789_v10 = vrot.slane %v10822_v58, %v16686_v53  ;;  %v10823_v57 = vld.sshfl [vmem:[#allocation3 + $0xc] sm:$0x20 pattern:$0x75316420]  ;;  %v6750_v50 = vcombine.high %v6749_v29, %v6749_v29 }
 0x448   :  { %10821 = vst.sshfl [vmem:[#allocation4 + $0xd] sm:$0x1 pattern:$0x73625140] %v6764_v18  ;;  %v6802_v13 = vcombine.high %v10823_v57, %v10823_v57 }
 0x449   :  { %v10824_v60 = vld.sshfl [vmem:[#allocation3 + $0x10] sm:$0x10 pattern:$0x75316420]  ;;  %v6790_v25 = vcombine.high %v6789_v10, %v6789_v10  ;;  %6752 = vst [vmem:[#allocation4 + $0xb] sm:$0x1] %v6750_v50 }
 0x44a   :  { %v6824_v27 = vcombine.high %v10824_v60, %v10824_v60  ;;  %v10826_v36 = vld.sshfl [vmem:[#allocation3 + $0x10] sm:$0x2 pattern:$0x75316420]  ;;  %v6809_v47 = vrot.slane %v6802_v13, %v16686_v53 }
 0x44b   :  { %v6849_v39 = vrot.slane %v10826_v36, %v16686_v53  ;;  %v10827_v16 = vld.sshfl [vmem:[#allocation3 + $0x10] sm:$0x20 pattern:$0x75316420]  ;;  %6792 = vst [vmem:[#allocation4 + $0xe] sm:$0x1] %v6790_v25 }
 0x44c   :  { %10825 = vst.sshfl [vmem:[#allocation4 + $0x11] sm:$0x1 pattern:$0x73625140] %v6824_v27  ;;  %v6862_v61 = vcombine.high %v10827_v16, %v10827_v16  ;;  %v6810_v19 = vcombine.high %v6809_v47, %v6809_v47 }
 0x44d   :  { %v10828_v9 = vld.sshfl [vmem:[#allocation3 + $0x14] sm:$0x10 pattern:$0x75316420]  ;;  %v6850_v48 = vcombine.high %v6849_v39, %v6849_v39 }
 0x44e   :  { %v6884_v56 = vcombine.high %v10828_v9, %v10828_v9  ;;  %v10830_v12 = vld.sshfl [vmem:[#allocation3 + $0x14] sm:$0x2 pattern:$0x75316420]  ;;  %v6869_v28 = vrot.slane %v6862_v61, %v16686_v53  ;;  %6812 = vst [vmem:[#allocation4 + $0xf] sm:$0x1] %v6810_v19 }
 0x44f   :  { %v6909_v35 = vrot.slane %v10830_v12, %v16686_v53  ;;  %v10831_v46 = vld.sshfl [vmem:[#allocation3 + $0x14] sm:$0x20 pattern:$0x75316420]  ;;  %6852 = vst [vmem:[#allocation4 + $0x12] sm:$0x1] %v6850_v48 }
 0x450   :  { %10829 = vst.sshfl [vmem:[#allocation4 + $0x15] sm:$0x1 pattern:$0x73625140] %v6884_v56  ;;  %v6922_v5 = vcombine.high %v10831_v46, %v10831_v46  ;;  %v6870_v21 = vcombine.high %v6869_v28, %v6869_v28 }
 0x451   :  { %v10832_v63 = vld.sshfl [vmem:[#allocation3 + $0x18] sm:$0x10 pattern:$0x75316420]  ;;  %v6910_v37 = vcombine.high %v6909_v35, %v6909_v35 }
 0x452   :  { %v6944_v22 = vcombine.high %v10832_v63, %v10832_v63  ;;  %v10834_v55 = vld.sshfl [vmem:[#allocation3 + $0x18] sm:$0x2 pattern:$0x75316420]  ;;  %v6929_v33 = vrot.slane %v6922_v5, %v16686_v53  ;;  %6872 = vst [vmem:[#allocation4 + $0x13] sm:$0x1] %v6870_v21 }
 0x453   :  { %v6969_v59 = vrot.slane %v10834_v55, %v16686_v53  ;;  %v10835_v38 = vld.sshfl [vmem:[#allocation3 + $0x18] sm:$0x20 pattern:$0x75316420]  ;;  %6912 = vst [vmem:[#allocation4 + $0x16] sm:$0x1] %v6910_v37 }
 0x454   :  { %10833 = vst.sshfl [vmem:[#allocation4 + $0x19] sm:$0x1 pattern:$0x73625140] %v6944_v22  ;;  %v6982_v51 = vcombine.high %v10835_v38, %v10835_v38  ;;  %v6930_v40 = vcombine.high %v6929_v33, %v6929_v33 }
 0x455   :  { %v10836_v15 = vld.sshfl [vmem:[#allocation3 + $0x1c] sm:$0x10 pattern:$0x75316420]  ;;  %v6970_v2 = vcombine.high %v6969_v59, %v6969_v59 }
 0x456   :  { %v7004_v43 = vcombine.high %v10836_v15, %v10836_v15  ;;  %v10838_v42 = vld.sshfl [vmem:[#allocation3 + $0x1c] sm:$0x2 pattern:$0x75316420]  ;;  %v6989_v7 = vrot.slane %v6982_v51, %v16686_v53  ;;  %6932 = vst [vmem:[#allocation4 + $0x17] sm:$0x1] %v6930_v40 }
 0x457   :  { %v7029_v26 = vrot.slane %v10838_v42, %v16686_v53  ;;  %v10839_v32 = vld.sshfl [vmem:[#allocation3 + $0x1c] sm:$0x20 pattern:$0x75316420]  ;;  %6972 = vst [vmem:[#allocation4 + $0x1a] sm:$0x1] %v6970_v2 }
 0x458   :  { %10837 = vst.sshfl [vmem:[#allocation4 + $0x1d] sm:$0x1 pattern:$0x73625140] %v7004_v43  ;;  %v7042_v23 = vcombine.high %v10839_v32, %v10839_v32  ;;  %v6990_v11 = vcombine.high %v6989_v7, %v6989_v7 }
 0x459   :  { %v7030_v44 = vcombine.high %v7029_v26, %v7029_v26 }
 0x45a   :  { %v7049_v34 = vrot.slane %v7042_v23, %v16686_v53  ;;  %6992 = vst [vmem:[#allocation4 + $0x1b] sm:$0x1] %v6990_v11 }
 0x45b   :  { %7032 = vst [vmem:[#allocation4 + $0x1e] sm:$0x1] %v7030_v44 }
 0x45c   :  { %v7050_v49 = vcombine.high %v7049_v34, %v7049_v34 }
 0x45e   :  { %7052 = vst [vmem:[#allocation4 + $0x1f] sm:$0x1] %v7050_v49 }
 0x45f   :  { %13256 = dma.done.wait [#allocation6], 32768 }
 0x460   :  { %13257 = vsyncadd [#allocation6], 4294934528  ;;  %v12992_v3 = vld [vmem:[#allocation5 + $0x78] sm:$0xff]   ;;  %v12996_v31 = vld [vmem:[#allocation5 + $0x70] sm:$0xff]   ;;  %vm9999_vm3 = vcmask 1041408   ;;  %vm10017_vm4 = vcmask 1024  }
 0x461   :  { %v12993_v6 = vld [vmem:[#allocation5 + $0xf8] sm:$0xff]   ;;  %11499 = vmatprep.subr.bf16.mxu0 %v12992_v3  ;;  %v12997_v54 = vld [vmem:[#allocation5 + $0xf0] sm:$0xff]   ;;  %v13000_v14 = vld [vmem:[#allocation5 + $0x68] sm:$0xff]  }
 0x462   :  { %v12994_v45 = vld [vmem:[#allocation5 + $0x38] sm:$0xff]   ;;  %11521 = vmatprep.subr.bf16.mxu1 %v12993_v6  ;;  %v12998_v0 = vld [vmem:[#allocation5 + $0x30] sm:$0xff]   ;;  %v13001_v4 = vld [vmem:[#allocation5 + $0xe8] sm:$0xff]  }
 0x463   :  { %v12995_v52 = vld [vmem:[#allocation5 + $0xb8] sm:$0xff]   ;;  %11500 = vmatpush3.bf16.msra.mxu0 %v12994_v45  ;;  %v12999_v17 = vld [vmem:[#allocation5 + $0xb0] sm:$0xff]   ;;  %v13002_v24 = vld [vmem:[#allocation5 + $0x28] sm:$0xff]  }
 0x464   :  { %11522 = vmatpush3.bf16.msra.mxu1 %v12995_v52  ;;  %11501 = vmatprep.subr.bf16.mxu0 %v12996_v31  ;;  %v13003_v8 = vld [vmem:[#allocation5 + $0xa8] sm:$0xff]   ;;  %v13004_v41 = vld [vmem:[#allocation5 + $0x60] sm:$0xff]   ;;  %v13008_v20 = vld [vmem:[#allocation5 + $0x58] sm:$0xff]  }
 0x465   :  { %11523 = vmatprep.subr.bf16.mxu1 %v12997_v54  ;;  %v13005_v62 = vld [vmem:[#allocation5 + $0xe0] sm:$0xff]   ;;  %v13009_v18 = vld [vmem:[#allocation5 + $0xd8] sm:$0xff]   ;;  %v13012_v10 = vld [vmem:[#allocation5 + $0x50] sm:$0xff]  }
 0x466   :  { %v13006_v1 = vld [vmem:[#allocation5 + $0x20] sm:$0xff]   ;;  %v13010_v58 = vld [vmem:[#allocation5 + $0x18] sm:$0xff]   ;;  %v13013_v57 = vld [vmem:[#allocation5 + $0xd0] sm:$0xff]  }
 0x467   :  { %11502 = vmatpush3.bf16.msra.mxu0 %v12998_v0  ;;  %v13007_v30 = vld [vmem:[#allocation5 + $0xa0] sm:$0xff]   ;;  %v13011_v29 = vld [vmem:[#allocation5 + $0x98] sm:$0xff]   ;;  %v13014_v13 = vld [vmem:[#allocation5 + $0x10] sm:$0xff]  }
 0x468   :  { %11524 = vmatpush3.bf16.msra.mxu1 %v12999_v17  ;;  %11503 = vmatprep.subr.bf16.mxu0 %v13000_v14  ;;  %v13015_v60 = vld [vmem:[#allocation5 + $0x90] sm:$0xff]   ;;  %v13016_v50 = vld [vmem:[#allocation5 + $0x48] sm:$0xff]   ;;  %v13020_v47 = vld [vmem:[#allocation5 + $0x40] sm:$0xff]  }
 0x469   :  { %11525 = vmatprep.subr.bf16.mxu1 %v13001_v4  ;;  %v13017_v25 = vld [vmem:[#allocation5 + $0xc8] sm:$0xff]   ;;  %v13021_v39 = vld [vmem:[#allocation5 + $0xc0] sm:$0xff]   ;;  %v13025_v56 = vld [vmem:[#allocation5 + $0x178] sm:$0xff]  }
 0x46a   :  { %v13018_v27 = vld [vmem:[#allocation5 + $0x8] sm:$0xff]   ;;  %v13022_v16 = vld [vmem:[#allocation5] sm:$0xff]   ;;  %v13026_v12 = vld [vmem:[#allocation5 + $0x1f8] sm:$0xff]  }
 0x46b   :  { %11504 = vmatpush3.bf16.msra.mxu0 %v13002_v24  ;;  %v13019_v36 = vld [vmem:[#allocation5 + $0x88] sm:$0xff]   ;;  %v13023_v61 = vld [vmem:[#allocation5 + $0x80] sm:$0xff]   ;;  %v13027_v5 = vld [vmem:[#allocation5 + $0x138] sm:$0xff]  }
 0x46c   :  { %11526 = vmatpush3.bf16.msra.mxu1 %v13003_v8  ;;  %11505 = vmatprep.subr.bf16.mxu0 %v13004_v41  ;;  %v7057_v9 = vld [vmem:[#allocation4] sm:$0xff]  ;;  %v13028_v21 = vld [vmem:[#allocation5 + $0x1b8] sm:$0xff]   ;;  %v13029_v55 = vld [vmem:[#allocation5 + $0x170] sm:$0xff]  }
 0x46d   :  { %11527 = vmatprep.subr.bf16.mxu1 %v13005_v62  ;;  %v7584_v19 = vcombine.high %v7057_v9, %v7057_v9  ;;  %v7591_v48 = vrot.slane %v7057_v9, %v16686_v53  ;;  %v13030_v59 = vld [vmem:[#allocation5 + $0x1f0] sm:$0xff]   ;;  %v13033_v2 = vld [vmem:[#allocation5 + $0x168] sm:$0xff]   ;;  %v13037_v26 = vld [vmem:[#allocation5 + $0x160] sm:$0xff]  }
 0x46e   :  { %v13031_v51 = vld [vmem:[#allocation5 + $0x130] sm:$0xff]   ;;  %v13034_v43 = vld [vmem:[#allocation5 + $0x1e8] sm:$0xff]   ;;  %v13038_v32 = vld [vmem:[#allocation5 + $0x1e0] sm:$0xff]  }
 0x46f   :  { %11506 = vmatpush3.bf16.msra.mxu0 %v13006_v1  ;;  %v7599_v28 = vcombine.high %v7591_v48, %v7591_v48  ;;  %v7607_v35 = vrot.slane %v7591_v48, %v16686_v53  ;;  %v16707_v46 = vrot.slane %v7584_v19, %v16686_v53  ;;  %v13032_v15 = vld [vmem:[#allocation5 + $0x1b0] sm:$0xff]   ;;  %v13035_v42 = vld [vmem:[#allocation5 + $0x128] sm:$0xff]   ;;  %v13039_v23 = vld [vmem:[#allocation5 + $0x120] sm:$0xff]  }
 0x470   :  { %11528 = vmatpush3.bf16.msra.mxu1 %v13007_v30  ;;  %11507 = vmatprep.subr.bf16.mxu0 %v13008_v20  ;;  %v13036_v7 = vld [vmem:[#allocation5 + $0x1a8] sm:$0xff]   ;;  %v13040_v11 = vld [vmem:[#allocation5 + $0x1a0] sm:$0xff]   ;;  %v13041_v44 = vld [vmem:[#allocation5 + $0x158] sm:$0xff]  }
 0x471   :  { %11529 = vmatprep.subr.bf16.mxu1 %v13009_v18  ;;  %v7621_v63 = vrot.slane %v7599_v28, %v16686_v53  ;;  %v7600_v37 = vcombine.high %v16707_v46, %v16707_v46  ;;  %v7629_v22 = vcombine.high %v7607_v35, %v7607_v35  ;;  %v13042_v34 = vld [vmem:[#allocation5 + $0x1d8] sm:$0xff]   ;;  %v13045_v6 = vld [vmem:[#allocation5 + $0x150] sm:$0xff]   ;;  %v13049_v54 = vld [vmem:[#allocation5 + $0x148] sm:$0xff]   ;;  %v7614_v62 = vrot.slane %v16707_v46, %v16686_v53 }
 0x472   :  { %v13043_v49 = vld [vmem:[#allocation5 + $0x118] sm:$0xff]   ;;  %v13046_v45 = vld [vmem:[#allocation5 + $0x1d0] sm:$0xff]   ;;  %v13050_v0 = vld [vmem:[#allocation5 + $0x1c8] sm:$0xff]  }
 0x473   :  { %11508 = vmatpush3.bf16.msra.mxu0 %v13010_v58  ;;  %9380 = vmatprep.mubr.bf16.mxu0 %v7621_v63  ;;  %v7631_v33 = vcombine.high %v7621_v63, %v7621_v63  ;;  %v7628_v38 = vrot.slane %v7600_v37, %v16686_v53  ;;  %v13044_v3 = vld [vmem:[#allocation5 + $0x198] sm:$0xff]   ;;  %v13047_v52 = vld [vmem:[#allocation5 + $0x110] sm:$0xff]   ;;  %v13051_v17 = vld [vmem:[#allocation5 + $0x108] sm:$0xff]   ;;  %v7630_v58 = vcombine.high %v7614_v62, %v7614_v62 }
 0x474   :  { %11530 = vmatpush3.bf16.msra.mxu1 %v13011_v29  ;;  %11509 = vmatprep.subr.bf16.mxu0 %v13012_v10  ;;  %v13048_v31 = vld [vmem:[#allocation5 + $0x190] sm:$0xff]   ;;  %v13052_v14 = vld [vmem:[#allocation5 + $0x188] sm:$0xff]   ;;  %v13053_v4 = vld [vmem:[#allocation5 + $0x140] sm:$0xff]  }
 0x475   :  { %11531 = vmatprep.subr.bf16.mxu1 %v13013_v57  ;;  %9420 = vmatprep.mubr.bf16.mxu1 %v7631_v33  ;;  %v7632_v40 = vcombine.high %v7628_v38, %v7628_v38  ;;  %v13054_v24 = vld [vmem:[#allocation5 + $0x1c0] sm:$0xff]   ;;  %v13057_v1 = vld [vmem:[#allocation5 + $0x278] sm:$0xff]   ;;  %v13061_v29 = vld [vmem:[#allocation5 + $0x270] sm:$0xff]  }
 0x476   :  { %v13055_v8 = vld [vmem:[#allocation5 + $0x100] sm:$0xff]   ;;  %v13058_v30 = vld [vmem:[#allocation5 + $0x2f8] sm:$0xff]   ;;  %v13062_v10 = vld [vmem:[#allocation5 + $0x2f0] sm:$0xff]  }
 0x477   :  { %11510 = vmatpush3.bf16.msra.mxu0 %v13014_v13  ;;  %v13056_v41 = vld [vmem:[#allocation5 + $0x180] sm:$0xff]   ;;  %v13059_v20 = vld [vmem:[#allocation5 + $0x238] sm:$0xff]   ;;  %v13063_v57 = vld [vmem:[#allocation5 + $0x230] sm:$0xff]  }
 0x478   :  { %11532 = vmatpush3.bf16.msra.mxu1 %v13015_v60  ;;  %11511 = vmatprep.subr.bf16.mxu0 %v13016_v50  ;;  %v13060_v18 = vld [vmem:[#allocation5 + $0x2b8] sm:$0xff]   ;;  %v13064_v13 = vld [vmem:[#allocation5 + $0x2b0] sm:$0xff]   ;;  %v13065_v60 = vld [vmem:[#allocation5 + $0x268] sm:$0xff]  }
 0x479   :  { %11533 = vmatprep.subr.bf16.mxu1 %v13017_v25  ;;  %v13066_v50 = vld [vmem:[#allocation5 + $0x2e8] sm:$0xff]   ;;  %v13074_v9 = vld [vmem:[#allocation5 + $0x2d8] sm:$0xff]   ;;  %v13079_v28 = vld [vmem:[#allocation5 + $0x210] sm:$0xff]  }
 0x47a   :  { %v13067_v25 = vld [vmem:[#allocation5 + $0x228] sm:$0xff]   ;;  %v13075_v19 = vld [vmem:[#allocation5 + $0x218] sm:$0xff]   ;;  %v13085_v37 = vld [vmem:[#allocation5 + $0x240] sm:$0xff]  }
 0x47b   :  { %11512 = vmatpush3.bf16.msra.mxu0 %v13018_v27  ;;  %v13068_v27 = vld [vmem:[#allocation5 + $0x2a8] sm:$0xff]   ;;  %v13076_v48 = vld [vmem:[#allocation5 + $0x298] sm:$0xff]  }
 0x47c   :  { %11534 = vmatpush3.bf16.msra.mxu1 %v13019_v36  ;;  %11513 = vmatprep.subr.bf16.mxu0 %v13020_v47  ;;  %v13069_v36 = vld [vmem:[#allocation5 + $0x260] sm:$0xff]   ;;  %v13081_v46 = vld [vmem:[#allocation5 + $0x248] sm:$0xff]  }
 0x47d   :  { %11535 = vmatprep.subr.bf16.mxu1 %v13021_v39  ;;  %v13070_v47 = vld [vmem:[#allocation5 + $0x2e0] sm:$0xff]   ;;  %v13083_v63 = vld [vmem:[#allocation5 + $0x208] sm:$0xff]  }
 0x47e   :  { %v13071_v39 = vld [vmem:[#allocation5 + $0x220] sm:$0xff]   ;;  %v7058_v33 = vld [vmem:[#allocation4 + $0x8] sm:$0xff] }
 0x47f   :  { %11514 = vmatpush3.bf16.msra.mxu0 %v13022_v16  ;;  %v13072_v16 = vld [vmem:[#allocation5 + $0x2a0] sm:$0xff]  }
 0x480   :  { %11536 = vmatpush3.bf16.msra.mxu1 %v13023_v61  ;;  %11543 = vmatprep.subr.bf16.mxu0 %v13025_v56  ;;  %v13073_v61 = vld [vmem:[#allocation5 + $0x258] sm:$0xff]   ;;  %v13077_v56 = vld [vmem:[#allocation5 + $0x250] sm:$0xff]  }
 0x481   :  { %11565 = vmatprep.subr.bf16.mxu1 %v13026_v12  ;;  %v13078_v12 = vld [vmem:[#allocation5 + $0x2d0] sm:$0xff]  }
 0x482   :  { %9381 = vmatmul.mubr.bf16.vlgmr.msra.gmra.mxu0 %v7607_v35  ;;  %v13080_v35 = vld [vmem:[#allocation5 + $0x290] sm:$0xff]  }
 0x483   :  { %11544 = vmatpush3.bf16.msra.mxu0 %v13027_v5  ;;  %9421 = vmatmul.mubr.bf16.vlgmr.msra.gmra.mxu1 %v7629_v22  ;;  %v13082_v5 = vld [vmem:[#allocation5 + $0x2c8] sm:$0xff]   ;;  %v13086_v22 = vld [vmem:[#allocation5 + $0x2c0] sm:$0xff]  }
 0x484   :  { %11545 = vmatprep.subr.bf16.mxu0 %v13029_v55  ;;  %11566 = vmatpush3.bf16.msra.mxu1 %v13028_v21  ;;  %v13084_v21 = vld [vmem:[#allocation5 + $0x288] sm:$0xff]   ;;  %v13087_v55 = vld [vmem:[#allocation5 + $0x200] sm:$0xff]  }
 0x485   :  { %9460 = vmatprep.mubr.bf16.mxu0 %v7628_v38  ;;  %11567 = vmatprep.subr.bf16.mxu1 %v13030_v59  ;;  %v13088_v59 = vld [vmem:[#allocation5 + $0x280] sm:$0xff]   ;;  %v7640_v38 = vrot.slane %v7058_v33, %v16686_v53 }
 0x486   :  { %9500 = vmatprep.mubr.bf16.mxu1 %v7632_v40 }
 0x487   :  { %11546 = vmatpush3.bf16.msra.mxu0 %v13031_v51  ;;  %v7633_v51 = vcombine.high %v7058_v33, %v7058_v33  ;;  %v7648_v40 = vcombine.high %v7640_v38, %v7640_v38  ;;  %v13138_v33 = vld [vmem:[#allocation5 + $0x458] sm:$0xff]  }
 0x488   :  { %11547 = vmatprep.subr.bf16.mxu0 %v13033_v2  ;;  %11568 = vmatpush3.bf16.msra.mxu1 %v13032_v15  ;;  %v13089_v15 = vld [vmem:[#allocation5 + $0x378] sm:$0xff]   ;;  %v7656_v2 = vrot.slane %v7640_v38, %v16686_v53 }
 0x489   :  { %11569 = vmatprep.subr.bf16.mxu1 %v13034_v43  ;;  %v13090_v43 = vld [vmem:[#allocation5 + $0x3f8] sm:$0xff]  }
 0x48a   :  { %v13140_v38 = vld [vmem:[#allocation5 + $0x418] sm:$0xff]  }
 0x48b   :  { %11548 = vmatpush3.bf16.msra.mxu0 %v13035_v42  ;;  %v16718_v42 = vrot.slane %v7633_v51, %v16686_v53  ;;  %v13141_v51 = vld [vmem:[#allocation5 + $0x498] sm:$0xff]  }
 0x48c   :  { %11549 = vmatprep.subr.bf16.mxu0 %v13037_v26  ;;  %11570 = vmatpush3.bf16.msra.mxu1 %v13036_v7  ;;  %v13091_v7 = vld [vmem:[#allocation5 + $0x338] sm:$0xff]   ;;  %v7670_v26 = vrot.slane %v7648_v40, %v16686_v53  ;;  %v13143_v40 = vld [vmem:[#allocation5 + $0x4d0] sm:$0xff]  }
 0x48d   :  { %11571 = vmatprep.subr.bf16.mxu1 %v13038_v32  ;;  %v13092_v32 = vld [vmem:[#allocation5 + $0x3b8] sm:$0xff]  }
 0x48f   :  { %11550 = vmatpush3.bf16.msra.mxu0 %v13039_v23  ;;  %v7649_v23 = vcombine.high %v16718_v42, %v16718_v42 }
 0x490   :  { %11551 = vmatprep.subr.bf16.mxu0 %v13041_v44  ;;  %11572 = vmatpush3.bf16.msra.mxu1 %v13040_v11  ;;  %v7678_v11 = vcombine.high %v7656_v2, %v7656_v2  ;;  %v13093_v44 = vld [vmem:[#allocation5 + $0x370] sm:$0xff]  }
 0x491   :  { %11573 = vmatprep.subr.bf16.mxu1 %v13042_v34  ;;  %v7680_v34 = vcombine.high %v7670_v26, %v7670_v26 }
 0x493   :  { %11552 = vmatpush3.bf16.msra.mxu0 %v13043_v49  ;;  %v13094_v49 = vld [vmem:[#allocation5 + $0x3f0] sm:$0xff]  }
 0x494   :  { %11553 = vmatprep.subr.bf16.mxu0 %v13045_v6  ;;  %11574 = vmatpush3.bf16.msra.mxu1 %v13044_v3  ;;  %v7677_v3 = vrot.slane %v7649_v23, %v16686_v53  ;;  %v13095_v6 = vld [vmem:[#allocation5 + $0x330] sm:$0xff]   ;;  %v13150_v23 = vld [vmem:[#allocation5 + $0x440] sm:$0xff]  }
 0x495   :  { %11575 = vmatprep.subr.bf16.mxu1 %v13046_v45  ;;  %v13096_v45 = vld [vmem:[#allocation5 + $0x3b0] sm:$0xff]  }
 0x497   :  { %11554 = vmatpush3.bf16.msra.mxu0 %v13047_v52  ;;  %v7681_v52 = vcombine.high %v7677_v3, %v7677_v3 }
 0x498   :  { %11555 = vmatprep.subr.bf16.mxu0 %v13049_v54  ;;  %11576 = vmatpush3.bf16.msra.mxu1 %v13048_v31  ;;  %v13097_v31 = vld [vmem:[#allocation5 + $0x368] sm:$0xff]  }
 0x499   :  { %11577 = vmatprep.subr.bf16.mxu1 %v13050_v0  ;;  %v13098_v54 = vld [vmem:[#allocation5 + $0x3e8] sm:$0xff]  }
 0x49a   :  { %v13099_v0 = vld [vmem:[#allocation5 + $0x328] sm:$0xff]  }
 0x49b   :  { %11556 = vmatpush3.bf16.msra.mxu0 %v13051_v17  ;;  %v13100_v17 = vld [vmem:[#allocation5 + $0x3a8] sm:$0xff]  }
 0x49c   :  { %11557 = vmatprep.subr.bf16.mxu0 %v13053_v4  ;;  %11578 = vmatpush3.bf16.msra.mxu1 %v13052_v14  ;;  %v13101_v14 = vld [vmem:[#allocation5 + $0x360] sm:$0xff]  }
 0x49d   :  { %11579 = vmatprep.subr.bf16.mxu1 %v13054_v24  ;;  %v13102_v4 = vld [vmem:[#allocation5 + $0x3e0] sm:$0xff]  }
 0x49e   :  { %v13103_v24 = vld [vmem:[#allocation5 + $0x320] sm:$0xff]  }
 0x49f   :  { %11558 = vmatpush3.bf16.msra.mxu0 %v13055_v8  ;;  %v13104_v8 = vld [vmem:[#allocation5 + $0x3a0] sm:$0xff]  }
 0x4a0   :  { %11587 = vmatprep.subr.bf16.mxu0 %v13057_v1  ;;  %11580 = vmatpush3.bf16.msra.mxu1 %v13056_v41  ;;  %v13105_v41 = vld [vmem:[#allocation5 + $0x358] sm:$0xff]  }
 0x4a1   :  { %11609 = vmatprep.subr.bf16.mxu1 %v13058_v30  ;;  %v13107_v1 = vld [vmem:[#allocation5 + $0x318] sm:$0xff]  }
 0x4a2   :  { %9461 = vmatmul.mubr.bf16.vlgmr.msra.gmra.mxu0 %v7614_v62  ;;  %v13106_v62 = vld [vmem:[#allocation5 + $0x3d8] sm:$0xff]  }
 0x4a3   :  { %11588 = vmatpush3.bf16.msra.mxu0 %v13059_v20  ;;  %9501 = vmatmul.mubr.bf16.vlgmr.msra.gmra.mxu1 %v7630_v58  ;;  %v13108_v30 = vld [vmem:[#allocation5 + $0x398] sm:$0xff]   ;;  %v13109_v20 = vld [vmem:[#allocation5 + $0x350] sm:$0xff]  }
 0x4a4   :  { %11589 = vmatprep.subr.bf16.mxu0 %v13061_v29  ;;  %11610 = vmatpush3.bf16.msra.mxu1 %v13060_v18  ;;  %v13110_v18 = vld [vmem:[#allocation5 + $0x3d0] sm:$0xff]  }
 0x4a5   :  { %11611 = vmatprep.subr.bf16.mxu1 %v13062_v10  ;;  %9540 = vmatprep.mubr.bf16.mxu0 %v7670_v26  ;;  %v13111_v58 = vld [vmem:[#allocation5 + $0x310] sm:$0xff]   ;;  %v13113_v10 = vld [vmem:[#allocation5 + $0x348] sm:$0xff]  }
 0x4a6   :  { %9580 = vmatprep.mubr.bf16.mxu1 %v7680_v34  ;;  %v13112_v29 = vld [vmem:[#allocation5 + $0x390] sm:$0xff]   ;;  %v13148_v26 = vld [vmem:[#allocation5 + $0x408] sm:$0xff]  }
 0x4a7   :  { %11590 = vmatpush3.bf16.msra.mxu0 %v13063_v57  ;;  %v13114_v57 = vld [vmem:[#allocation5 + $0x3c8] sm:$0xff]   ;;  %v7059_v34 = vld [vmem:[#allocation4 + $0x10] sm:$0xff] }
 0x4a8   :  { %11591 = vmatprep.subr.bf16.mxu0 %v13065_v60  ;;  %11612 = vmatpush3.bf16.msra.mxu1 %v13064_v13  ;;  %v13115_v13 = vld [vmem:[#allocation5 + $0x308] sm:$0xff]  }
 0x4a9   :  { %11613 = vmatprep.subr.bf16.mxu1 %v13066_v50  ;;  %v13116_v60 = vld [vmem:[#allocation5 + $0x388] sm:$0xff]   ;;  %v13117_v50 = vld [vmem:[#allocation5 + $0x340] sm:$0xff]  }
 0x4ab   :  { %11592 = vmatpush3.bf16.msra.mxu0 %v13067_v25  ;;  %v13118_v25 = vld [vmem:[#allocation5 + $0x3c0] sm:$0xff]  }
 0x4ac   :  { %11593 = vmatprep.subr.bf16.mxu0 %v13069_v36  ;;  %11614 = vmatpush3.bf16.msra.mxu1 %v13068_v27  ;;  %v13119_v27 = vld [vmem:[#allocation5 + $0x300] sm:$0xff]  }
 0x4ad   :  { %11615 = vmatprep.subr.bf16.mxu1 %v13070_v47  ;;  %v13120_v36 = vld [vmem:[#allocation5 + $0x380] sm:$0xff]   ;;  %v7663_v47 = vrot.slane %v16718_v42, %v16686_v53  ;;  %v13146_v42 = vld [vmem:[#allocation5 + $0x448] sm:$0xff]  }
 0x4af   :  { %11594 = vmatpush3.bf16.msra.mxu0 %v13071_v39  ;;  %v13122_v39 = vld [vmem:[#allocation5 + $0x478] sm:$0xff]  }
 0x4b0   :  { %11595 = vmatprep.subr.bf16.mxu0 %v13073_v61  ;;  %11616 = vmatpush3.bf16.msra.mxu1 %v13072_v16  ;;  %v13123_v16 = vld [vmem:[#allocation5 + $0x4f8] sm:$0xff]  }
 0x4b1   :  { %11617 = vmatprep.subr.bf16.mxu1 %v13074_v9  ;;  %v13124_v61 = vld [vmem:[#allocation5 + $0x438] sm:$0xff]  }
 0x4b2   :  { %v13125_v9 = vld [vmem:[#allocation5 + $0x4b8] sm:$0xff]  }
 0x4b3   :  { %11596 = vmatpush3.bf16.msra.mxu0 %v13075_v19  ;;  %v7679_v19 = vcombine.high %v7663_v47, %v7663_v47 }
 0x4b4   :  { %11597 = vmatprep.subr.bf16.mxu0 %v13077_v56  ;;  %11618 = vmatpush3.bf16.msra.mxu1 %v13076_v48  ;;  %v13126_v48 = vld [vmem:[#allocation5 + $0x470] sm:$0xff]  }
 0x4b5   :  { %11619 = vmatprep.subr.bf16.mxu1 %v13078_v12  ;;  %v13127_v56 = vld [vmem:[#allocation5 + $0x4f0] sm:$0xff]  }
 0x4b6   :  { %v13128_v12 = vld [vmem:[#allocation5 + $0x430] sm:$0xff]  }
 0x4b7   :  { %11598 = vmatpush3.bf16.msra.mxu0 %v13079_v28  ;;  %v13129_v28 = vld [vmem:[#allocation5 + $0x4b0] sm:$0xff]  }
 0x4b8   :  { %11599 = vmatprep.subr.bf16.mxu0 %v13081_v46  ;;  %11620 = vmatpush3.bf16.msra.mxu1 %v13080_v35  ;;  %v13130_v35 = vld [vmem:[#allocation5 + $0x468] sm:$0xff]  }
 0x4b9   :  { %11621 = vmatprep.subr.bf16.mxu1 %v13082_v5  ;;  %v13131_v46 = vld [vmem:[#allocation5 + $0x4e8] sm:$0xff]  }
 0x4ba   :  { %v13132_v5 = vld [vmem:[#allocation5 + $0x428] sm:$0xff]  }
 0x4bb   :  { %11600 = vmatpush3.bf16.msra.mxu0 %v13083_v63  ;;  %v13133_v63 = vld [vmem:[#allocation5 + $0x4a8] sm:$0xff]  }
 0x4bc   :  { %11601 = vmatprep.subr.bf16.mxu0 %v13085_v37  ;;  %11622 = vmatpush3.bf16.msra.mxu1 %v13084_v21  ;;  %v13134_v21 = vld [vmem:[#allocation5 + $0x460] sm:$0xff]  }
 0x4bd   :  { %11623 = vmatprep.subr.bf16.mxu1 %v13086_v22  ;;  %v13135_v37 = vld [vmem:[#allocation5 + $0x4e0] sm:$0xff]  }
 0x4be   :  { %v13136_v22 = vld [vmem:[#allocation5 + $0x420] sm:$0xff]  }
 0x4bf   :  { %11602 = vmatpush3.bf16.msra.mxu0 %v13087_v55  ;;  %v13137_v55 = vld [vmem:[#allocation5 + $0x4a0] sm:$0xff]  }
 0x4c0   :  { %11631 = vmatprep.subr.bf16.mxu0 %v13089_v15  ;;  %11624 = vmatpush3.bf16.msra.mxu1 %v13088_v59  ;;  %v13139_v59 = vld [vmem:[#allocation5 + $0x4d8] sm:$0xff]   ;;  %v13142_v15 = vld [vmem:[#allocation5 + $0x450] sm:$0xff]  }
 0x4c1   :  { %11653 = vmatprep.subr.bf16.mxu1 %v13090_v43  ;;  %v13145_v43 = vld [vmem:[#allocation5 + $0x490] sm:$0xff]  }
 0x4c2   :  { %9541 = vmatmul.mubr.bf16.vlgmr.msra.gmra.mxu0 %v7656_v2  ;;  %v13144_v2 = vld [vmem:[#allocation5 + $0x410] sm:$0xff]  }
 0x4c3   :  { %11632 = vmatpush3.bf16.msra.mxu0 %v13091_v7  ;;  %9581 = vmatmul.mubr.bf16.vlgmr.msra.gmra.mxu1 %v7678_v11  ;;  %v13147_v7 = vld [vmem:[#allocation5 + $0x4c8] sm:$0xff]   ;;  %v13151_v11 = vld [vmem:[#allocation5 + $0x4c0] sm:$0xff]  }
 0x4c4   :  { %11633 = vmatprep.subr.bf16.mxu0 %v13093_v44  ;;  %11654 = vmatpush3.bf16.msra.mxu1 %v13092_v32  ;;  %v13149_v32 = vld [vmem:[#allocation5 + $0x488] sm:$0xff]   ;;  %v13152_v44 = vld [vmem:[#allocation5 + $0x400] sm:$0xff]  }
 0x4c5   :  { %9620 = vmatprep.mubr.bf16.mxu0 %v7677_v3  ;;  %11655 = vmatprep.subr.bf16.mxu1 %v13094_v49  ;;  %v13153_v49 = vld [vmem:[#allocation5 + $0x480] sm:$0xff]   ;;  %v7689_v3 = vrot.slane %v7059_v34, %v16686_v53 }
 0x4c6   :  { %9660 = vmatprep.mubr.bf16.mxu1 %v7681_v52 }
 0x4c7   :  { %11634 = vmatpush3.bf16.msra.mxu0 %v13095_v6  ;;  %v7682_v6 = vcombine.high %v7059_v34, %v7059_v34  ;;  %v7697_v52 = vcombine.high %v7689_v3, %v7689_v3  ;;  %v13203_v34 = vld [vmem:[#allocation5 + $0x658] sm:$0xff]  }
 0x4c8   :  { %11635 = vmatprep.subr.bf16.mxu0 %v13097_v31  ;;  %11656 = vmatpush3.bf16.msra.mxu1 %v13096_v45  ;;  %v13154_v45 = vld [vmem:[#allocation5 + $0x578] sm:$0xff]   ;;  %v7705_v31 = vrot.slane %v7689_v3, %v16686_v53 }
 0x4c9   :  { %11657 = vmatprep.subr.bf16.mxu1 %v13098_v54  ;;  %v13155_v54 = vld [vmem:[#allocation5 + $0x5f8] sm:$0xff]  }
 0x4ca   :  { %v13205_v3 = vld [vmem:[#allocation5 + $0x618] sm:$0xff]  }
 0x4cb   :  { %11636 = vmatpush3.bf16.msra.mxu0 %v13099_v0  ;;  %v16729_v0 = vrot.slane %v7682_v6, %v16686_v53  ;;  %v13206_v6 = vld [vmem:[#allocation5 + $0x698] sm:$0xff]  }
 0x4cc   :  { %11637 = vmatprep.subr.bf16.mxu0 %v13101_v14  ;;  %11658 = vmatpush3.bf16.msra.mxu1 %v13100_v17  ;;  %v13156_v17 = vld [vmem:[#allocation5 + $0x538] sm:$0xff]   ;;  %v7719_v14 = vrot.slane %v7697_v52, %v16686_v53  ;;  %v13208_v52 = vld [vmem:[#allocation5 + $0x6d0] sm:$0xff]  }
 0x4cd   :  { %11659 = vmatprep.subr.bf16.mxu1 %v13102_v4  ;;  %v13157_v4 = vld [vmem:[#allocation5 + $0x5b8] sm:$0xff]  }
 0x4cf   :  { %11638 = vmatpush3.bf16.msra.mxu0 %v13103_v24  ;;  %v7698_v24 = vcombine.high %v16729_v0, %v16729_v0 }
 0x4d0   :  { %11639 = vmatprep.subr.bf16.mxu0 %v13105_v41  ;;  %11660 = vmatpush3.bf16.msra.mxu1 %v13104_v8  ;;  %v7727_v8 = vcombine.high %v7705_v31, %v7705_v31  ;;  %v13158_v41 = vld [vmem:[#allocation5 + $0x570] sm:$0xff]  }
 0x4d1   :  { %11661 = vmatprep.subr.bf16.mxu1 %v13106_v62  ;;  %v7729_v62 = vcombine.high %v7719_v14, %v7719_v14 }
 0x4d3   :  { %11640 = vmatpush3.bf16.msra.mxu0 %v13107_v1  ;;  %v13159_v1 = vld [vmem:[#allocation5 + $0x5f0] sm:$0xff]  }
 0x4d4   :  { %11641 = vmatprep.subr.bf16.mxu0 %v13109_v20  ;;  %11662 = vmatpush3.bf16.msra.mxu1 %v13108_v30  ;;  %v7726_v30 = vrot.slane %v7698_v24, %v16686_v53  ;;  %v13160_v20 = vld [vmem:[#allocation5 + $0x530] sm:$0xff]   ;;  %v13215_v24 = vld [vmem:[#allocation5 + $0x640] sm:$0xff]  }
 0x4d5   :  { %11663 = vmatprep.subr.bf16.mxu1 %v13110_v18  ;;  %v13161_v18 = vld [vmem:[#allocation5 + $0x5b0] sm:$0xff]  }
 0x4d7   :  { %11642 = vmatpush3.bf16.msra.mxu0 %v13111_v58  ;;  %v7730_v58 = vcombine.high %v7726_v30, %v7726_v30 }
 0x4d8   :  { %11643 = vmatprep.subr.bf16.mxu0 %v13113_v10  ;;  %11664 = vmatpush3.bf16.msra.mxu1 %v13112_v29  ;;  %v13162_v29 = vld [vmem:[#allocation5 + $0x568] sm:$0xff]  }
 0x4d9   :  { %11665 = vmatprep.subr.bf16.mxu1 %v13114_v57  ;;  %v13163_v10 = vld [vmem:[#allocation5 + $0x5e8] sm:$0xff]  }
 0x4da   :  { %v13164_v57 = vld [vmem:[#allocation5 + $0x528] sm:$0xff]  }
 0x4db   :  { %11644 = vmatpush3.bf16.msra.mxu0 %v13115_v13  ;;  %v13165_v13 = vld [vmem:[#allocation5 + $0x5a8] sm:$0xff]  }
 0x4dc   :  { %11645 = vmatprep.subr.bf16.mxu0 %v13117_v50  ;;  %11666 = vmatpush3.bf16.msra.mxu1 %v13116_v60  ;;  %v13166_v60 = vld [vmem:[#allocation5 + $0x560] sm:$0xff]  }
 0x4dd   :  { %11667 = vmatprep.subr.bf16.mxu1 %v13118_v25  ;;  %v13167_v50 = vld [vmem:[#allocation5 + $0x5e0] sm:$0xff]  }
 0x4de   :  { %v13168_v25 = vld [vmem:[#allocation5 + $0x520] sm:$0xff]  }
 0x4df   :  { %11646 = vmatpush3.bf16.msra.mxu0 %v13119_v27  ;;  %v13169_v27 = vld [vmem:[#allocation5 + $0x5a0] sm:$0xff]  }
 0x4e0   :  { %11675 = vmatprep.subr.bf16.mxu0 %v13122_v39  ;;  %11668 = vmatpush3.bf16.msra.mxu1 %v13120_v36  ;;  %v13170_v36 = vld [vmem:[#allocation5 + $0x558] sm:$0xff]  }
 0x4e1   :  { %11697 = vmatprep.subr.bf16.mxu1 %v13123_v16  ;;  %v13172_v39 = vld [vmem:[#allocation5 + $0x518] sm:$0xff]  }
 0x4e2   :  { %9621 = vmatmul.mubr.bf16.vlgmr.msra.gmra.mxu0 %v7663_v47  ;;  %v13171_v47 = vld [vmem:[#allocation5 + $0x5d8] sm:$0xff]  }
 0x4e3   :  { %11676 = vmatpush3.bf16.msra.mxu0 %v13124_v61  ;;  %9661 = vmatmul.mubr.bf16.vlgmr.msra.gmra.mxu1 %v7679_v19  ;;  %v13173_v16 = vld [vmem:[#allocation5 + $0x598] sm:$0xff]   ;;  %v13174_v61 = vld [vmem:[#allocation5 + $0x550] sm:$0xff]  }
 0x4e4   :  { %11677 = vmatprep.subr.bf16.mxu0 %v13126_v48  ;;  %11698 = vmatpush3.bf16.msra.mxu1 %v13125_v9  ;;  %v13175_v9 = vld [vmem:[#allocation5 + $0x5d0] sm:$0xff]  }
 0x4e5   :  { %11699 = vmatprep.subr.bf16.mxu1 %v13127_v56  ;;  %9700 = vmatprep.mubr.bf16.mxu0 %v7719_v14  ;;  %v13176_v19 = vld [vmem:[#allocation5 + $0x510] sm:$0xff]   ;;  %v13178_v56 = vld [vmem:[#allocation5 + $0x548] sm:$0xff]  }
 0x4e6   :  { %9740 = vmatprep.mubr.bf16.mxu1 %v7729_v62  ;;  %v13177_v48 = vld [vmem:[#allocation5 + $0x590] sm:$0xff]   ;;  %v13213_v14 = vld [vmem:[#allocation5 + $0x608] sm:$0xff]   ;;  %v7060_v62 = vld [vmem:[#allocation4 + $0x18] sm:$0xff] }
 0x4e7   :  { %11678 = vmatpush3.bf16.msra.mxu0 %v13128_v12  ;;  %v13179_v12 = vld [vmem:[#allocation5 + $0x5c8] sm:$0xff]  }
 0x4e8   :  { %11679 = vmatprep.subr.bf16.mxu0 %v13130_v35  ;;  %11700 = vmatpush3.bf16.msra.mxu1 %v13129_v28  ;;  %v13180_v28 = vld [vmem:[#allocation5 + $0x508] sm:$0xff]  }
 0x4e9   :  { %11701 = vmatprep.subr.bf16.mxu1 %v13131_v46  ;;  %v13181_v35 = vld [vmem:[#allocation5 + $0x588] sm:$0xff]   ;;  %v13182_v46 = vld [vmem:[#allocation5 + $0x540] sm:$0xff]  }
 0x4eb   :  { %11680 = vmatpush3.bf16.msra.mxu0 %v13132_v5  ;;  %v13183_v5 = vld [vmem:[#allocation5 + $0x5c0] sm:$0xff]  }
 0x4ec   :  { %11681 = vmatprep.subr.bf16.mxu0 %v13134_v21  ;;  %11702 = vmatpush3.bf16.msra.mxu1 %v13133_v63  ;;  %v13184_v63 = vld [vmem:[#allocation5 + $0x500] sm:$0xff]  }
 0x4ed   :  { %11703 = vmatprep.subr.bf16.mxu1 %v13135_v37  ;;  %v13185_v21 = vld [vmem:[#allocation5 + $0x580] sm:$0xff]   ;;  %v7712_v37 = vrot.slane %v16729_v0, %v16686_v53  ;;  %v13211_v0 = vld [vmem:[#allocation5 + $0x648] sm:$0xff]  }
 0x4ef   :  { %11682 = vmatpush3.bf16.msra.mxu0 %v13136_v22  ;;  %v13187_v22 = vld [vmem:[#allocation5 + $0x678] sm:$0xff]  }
 0x4f0   :  { %11683 = vmatprep.subr.bf16.mxu0 %v13138_v33  ;;  %11704 = vmatpush3.bf16.msra.mxu1 %v13137_v55  ;;  %v13188_v55 = vld [vmem:[#allocation5 + $0x6f8] sm:$0xff]  }
 0x4f1   :  { %11705 = vmatprep.subr.bf16.mxu1 %v13139_v59  ;;  %v13189_v33 = vld [vmem:[#allocation5 + $0x638] sm:$0xff]  }
 0x4f2   :  { %v13190_v59 = vld [vmem:[#allocation5 + $0x6b8] sm:$0xff]  }
 0x4f3   :  { %11684 = vmatpush3.bf16.msra.mxu0 %v13140_v38  ;;  %v7728_v38 = vcombine.high %v7712_v37, %v7712_v37 }
 0x4f4   :  { %11685 = vmatprep.subr.bf16.mxu0 %v13142_v15  ;;  %11706 = vmatpush3.bf16.msra.mxu1 %v13141_v51  ;;  %v13191_v51 = vld [vmem:[#allocation5 + $0x670] sm:$0xff]  }
 0x4f5   :  { %11707 = vmatprep.subr.bf16.mxu1 %v13143_v40  ;;  %v13192_v15 = vld [vmem:[#allocation5 + $0x6f0] sm:$0xff]  }
 0x4f6   :  { %v13193_v40 = vld [vmem:[#allocation5 + $0x630] sm:$0xff]  }
 0x4f7   :  { %11686 = vmatpush3.bf16.msra.mxu0 %v13144_v2  ;;  %v13194_v2 = vld [vmem:[#allocation5 + $0x6b0] sm:$0xff]  }
 0x4f8   :  { %11687 = vmatprep.subr.bf16.mxu0 %v13146_v42  ;;  %11708 = vmatpush3.bf16.msra.mxu1 %v13145_v43  ;;  %v13195_v43 = vld [vmem:[#allocation5 + $0x668] sm:$0xff]  }
 0x4f9   :  { %11709 = vmatprep.subr.bf16.mxu1 %v13147_v7  ;;  %v13196_v42 = vld [vmem:[#allocation5 + $0x6e8] sm:$0xff]  }
 0x4fa   :  { %v13197_v7 = vld [vmem:[#allocation5 + $0x628] sm:$0xff]  }
 0x4fb   :  { %11688 = vmatpush3.bf16.msra.mxu0 %v13148_v26  ;;  %v13198_v26 = vld [vmem:[#allocation5 + $0x6a8] sm:$0xff]  }
 0x4fc   :  { %11689 = vmatprep.subr.bf16.mxu0 %v13150_v23  ;;  %11710 = vmatpush3.bf16.msra.mxu1 %v13149_v32  ;;  %v13199_v32 = vld [vmem:[#allocation5 + $0x660] sm:$0xff]  }
 0x4fd   :  { %11711 = vmatprep.subr.bf16.mxu1 %v13151_v11  ;;  %v13200_v23 = vld [vmem:[#allocation5 + $0x6e0] sm:$0xff]  }
 0x4fe   :  { %v13201_v11 = vld [vmem:[#allocation5 + $0x620] sm:$0xff]  }
 0x4ff   :  { %11690 = vmatpush3.bf16.msra.mxu0 %v13152_v44  ;;  %v13202_v44 = vld [vmem:[#allocation5 + $0x6a0] sm:$0xff]  }
 0x500   :  { %11719 = vmatprep.subr.bf16.mxu0 %v13154_v45  ;;  %11712 = vmatpush3.bf16.msra.mxu1 %v13153_v49  ;;  %v13204_v49 = vld [vmem:[#allocation5 + $0x6d8] sm:$0xff]   ;;  %v13207_v45 = vld [vmem:[#allocation5 + $0x650] sm:$0xff]  }
 0x501   :  { %11741 = vmatprep.subr.bf16.mxu1 %v13155_v54  ;;  %v13210_v54 = vld [vmem:[#allocation5 + $0x690] sm:$0xff]  }
 0x502   :  { %9701 = vmatmul.mubr.bf16.vlgmr.msra.gmra.mxu0 %v7705_v31  ;;  %v13209_v31 = vld [vmem:[#allocation5 + $0x610] sm:$0xff]  }
 0x503   :  { %11720 = vmatpush3.bf16.msra.mxu0 %v13156_v17  ;;  %9741 = vmatmul.mubr.bf16.vlgmr.msra.gmra.mxu1 %v7727_v8  ;;  %v13212_v17 = vld [vmem:[#allocation5 + $0x6c8] sm:$0xff]   ;;  %v13216_v8 = vld [vmem:[#allocation5 + $0x6c0] sm:$0xff]  }
 0x504   :  { %11721 = vmatprep.subr.bf16.mxu0 %v13158_v41  ;;  %11742 = vmatpush3.bf16.msra.mxu1 %v13157_v4  ;;  %v13214_v4 = vld [vmem:[#allocation5 + $0x688] sm:$0xff]   ;;  %v13217_v41 = vld [vmem:[#allocation5 + $0x600] sm:$0xff]  }
 0x505   :  { %9780 = vmatprep.mubr.bf16.mxu0 %v7726_v30  ;;  %11743 = vmatprep.subr.bf16.mxu1 %v13159_v1  ;;  %v7738_v1 = vrot.slane %v7060_v62, %v16686_v53  ;;  %v13219_v30 = vld [vmem:[#allocation5 + $0x778] sm:$0xff]  }
 0x506   :  { %9820 = vmatprep.mubr.bf16.mxu1 %v7730_v58 }
 0x507   :  { %11722 = vmatpush3.bf16.msra.mxu0 %v13160_v20  ;;  %v7731_v20 = vcombine.high %v7060_v62, %v7060_v62  ;;  %v7746_v58 = vcombine.high %v7738_v1, %v7738_v1 }
 0x508   :  { %11723 = vmatprep.subr.bf16.mxu0 %v13162_v29  ;;  %11744 = vmatpush3.bf16.msra.mxu1 %v13161_v18  ;;  %v13218_v18 = vld [vmem:[#allocation5 + $0x680] sm:$0xff]   ;;  %v7754_v29 = vrot.slane %v7738_v1, %v16686_v53 }
 0x509   :  { %11745 = vmatprep.subr.bf16.mxu1 %v13163_v10  ;;  %v13220_v10 = vld [vmem:[#allocation5 + $0x7f8] sm:$0xff]  }
 0x50b   :  { %11724 = vmatpush3.bf16.msra.mxu0 %v13164_v57  ;;  %v16740_v57 = vrot.slane %v7731_v20, %v16686_v53 }
 0x50c   :  { %11725 = vmatprep.subr.bf16.mxu0 %v13166_v60  ;;  %11746 = vmatpush3.bf16.msra.mxu1 %v13165_v13  ;;  %v13221_v13 = vld [vmem:[#allocation5 + $0x738] sm:$0xff]   ;;  %v7768_v60 = vrot.slane %v7746_v58, %v16686_v53 }
 0x50d   :  { %11747 = vmatprep.subr.bf16.mxu1 %v13167_v50  ;;  %v13222_v50 = vld [vmem:[#allocation5 + $0x7b8] sm:$0xff]  }
 0x50f   :  { %11726 = vmatpush3.bf16.msra.mxu0 %v13168_v25  ;;  %v7747_v25 = vcombine.high %v16740_v57, %v16740_v57 }
 0x510   :  { %11727 = vmatprep.subr.bf16.mxu0 %v13170_v36  ;;  %11748 = vmatpush3.bf16.msra.mxu1 %v13169_v27  ;;  %v7776_v27 = vcombine.high %v7754_v29, %v7754_v29  ;;  %v13223_v36 = vld [vmem:[#allocation5 + $0x770] sm:$0xff]  }
 0x511   :  { %11749 = vmatprep.subr.bf16.mxu1 %v13171_v47  ;;  %v7778_v47 = vcombine.high %v7768_v60, %v7768_v60 }
 0x513   :  { %11728 = vmatpush3.bf16.msra.mxu0 %v13172_v39 }
 0x514   :  { %11729 = vmatprep.subr.bf16.mxu0 %v13174_v61  ;;  %11750 = vmatpush3.bf16.msra.mxu1 %v13173_v16  ;;  %v10840_v16 = vld [vmem:[%s16764_s8] ss:$0 sm:$0xff]  ;;  %v7775_v61 = vrot.slane %v7747_v25, %v16686_v53 }
 0x515   :  { %11751 = vmatprep.subr.bf16.mxu1 %v13175_v9  ;;  %v13224_v9 = vld [vmem:[#allocation5 + $0x7f0] sm:$0xff]  }
 0x517   :  { %11730 = vmatpush3.bf16.msra.mxu0 %v13176_v19 }
 0x518   :  { %11731 = vmatprep.subr.bf16.mxu0 %v13178_v56  ;;  %11752 = vmatpush3.bf16.msra.mxu1 %v13177_v48  ;;  %v13225_v56 = vld [vmem:[#allocation5 + $0x730] sm:$0xff]  }
 0x519   :  { %11753 = vmatprep.subr.bf16.mxu1 %v13179_v12  ;;  %v7779_v12 = vcombine.high %v7775_v61, %v7775_v61 }
 0x51b   :  { %11732 = vmatpush3.bf16.msra.mxu0 %v13180_v28 }
 0x51c   :  { %11733 = vmatprep.subr.bf16.mxu0 %v13182_v46  ;;  %11754 = vmatpush3.bf16.msra.mxu1 %v13181_v35  ;;  %v13227_v35 = vld [vmem:[#allocation5 + $0x768] sm:$0xff]  }
 0x51d   :  { %11755 = vmatprep.subr.bf16.mxu1 %v13183_v5 }
 0x51f   :  { %11734 = vmatpush3.bf16.msra.mxu0 %v13184_v63  ;;  %v13226_v63 = vld [vmem:[#allocation5 + $0x7b0] sm:$0xff]  }
 0x520   :  { %11763 = vmatprep.subr.bf16.mxu0 %v13187_v22  ;;  %11756 = vmatpush3.bf16.msra.mxu1 %v13185_v21  ;;  %v13228_v22 = vld [vmem:[#allocation5 + $0x7e8] sm:$0xff]  }
 0x521   :  { %11785 = vmatprep.subr.bf16.mxu1 %v13188_v55 }
 0x522   :  { %9781 = vmatmul.mubr.bf16.vlgmr.msra.gmra.mxu0 %v7712_v37 }
 0x523   :  { %11764 = vmatpush3.bf16.msra.mxu0 %v13189_v33  ;;  %9821 = vmatmul.mubr.bf16.vlgmr.msra.gmra.mxu1 %v7728_v38 }
 0x524   :  { %11765 = vmatprep.subr.bf16.mxu0 %v13191_v51  ;;  %11786 = vmatpush3.bf16.msra.mxu1 %v13190_v59  ;;  %v13229_v59 = vld [vmem:[#allocation5 + $0x728] sm:$0xff]   ;;  %v13231_v51 = vld [vmem:[#allocation5 + $0x760] sm:$0xff]  }
 0x525   :  { %11787 = vmatprep.subr.bf16.mxu1 %v13192_v15  ;;  %9860 = vmatprep.mubr.bf16.mxu0 %v7768_v60 }
 0x526   :  { %9900 = vmatprep.mubr.bf16.mxu1 %v7778_v47 }
 0x527   :  { %11766 = vmatpush3.bf16.msra.mxu0 %v13193_v40  ;;  %v13230_v40 = vld [vmem:[#allocation5 + $0x7a8] sm:$0xff]  }
 0x528   :  { %11767 = vmatprep.subr.bf16.mxu0 %v13195_v43  ;;  %11788 = vmatpush3.bf16.msra.mxu1 %v13194_v2  ;;  %v13232_v2 = vld [vmem:[#allocation5 + $0x7e0] sm:$0xff]  }
 0x529   :  { %11789 = vmatprep.subr.bf16.mxu1 %v13196_v42  ;;  %v13233_v43 = vld [vmem:[#allocation5 + $0x720] sm:$0xff]   ;;  %v13235_v42 = vld [vmem:[#allocation5 + $0x758] sm:$0xff]  }
 0x52b   :  { %11768 = vmatpush3.bf16.msra.mxu0 %v13197_v7  ;;  %v13234_v7 = vld [vmem:[#allocation5 + $0x7a0] sm:$0xff]  }
 0x52c   :  { %11769 = vmatprep.subr.bf16.mxu0 %v13199_v32  ;;  %11790 = vmatpush3.bf16.msra.mxu1 %v13198_v26  ;;  %v13236_v26 = vld [vmem:[#allocation5 + $0x7d8] sm:$0xff]  }
 0x52d   :  { %11791 = vmatprep.subr.bf16.mxu1 %v13200_v23  ;;  %v13237_v32 = vld [vmem:[#allocation5 + $0x718] sm:$0xff]   ;;  %v13239_v23 = vld [vmem:[#allocation5 + $0x750] sm:$0xff]  }
 0x52f   :  { %11770 = vmatpush3.bf16.msra.mxu0 %v13201_v11  ;;  %v13238_v11 = vld [vmem:[#allocation5 + $0x798] sm:$0xff]  }
 0x530   :  { %11771 = vmatprep.subr.bf16.mxu0 %v13203_v34  ;;  %11792 = vmatpush3.bf16.msra.mxu1 %v13202_v44  ;;  %v13240_v44 = vld [vmem:[#allocation5 + $0x7d0] sm:$0xff]  }
 0x531   :  { %11793 = vmatprep.subr.bf16.mxu1 %v13204_v49  ;;  %v13241_v34 = vld [vmem:[#allocation5 + $0x710] sm:$0xff]   ;;  %v13243_v49 = vld [vmem:[#allocation5 + $0x748] sm:$0xff]  }
 0x533   :  { %11772 = vmatpush3.bf16.msra.mxu0 %v13205_v3  ;;  %v13242_v3 = vld [vmem:[#allocation5 + $0x790] sm:$0xff]  }
 0x534   :  { %11773 = vmatprep.subr.bf16.mxu0 %v13207_v45  ;;  %11794 = vmatpush3.bf16.msra.mxu1 %v13206_v6  ;;  %v13244_v6 = vld [vmem:[#allocation5 + $0x7c8] sm:$0xff]  }
 0x535   :  { %11795 = vmatprep.subr.bf16.mxu1 %v13208_v52  ;;  %v13245_v45 = vld [vmem:[#allocation5 + $0x708] sm:$0xff]   ;;  %v13247_v52 = vld [vmem:[#allocation5 + $0x740] sm:$0xff]  }
 0x537   :  { %11774 = vmatpush3.bf16.msra.mxu0 %v13209_v31  ;;  %v13246_v31 = vld [vmem:[#allocation5 + $0x788] sm:$0xff]  }
 0x538   :  { %11775 = vmatprep.subr.bf16.mxu0 %v13211_v0  ;;  %11796 = vmatpush3.bf16.msra.mxu1 %v13210_v54  ;;  %v13248_v54 = vld [vmem:[#allocation5 + $0x7c0] sm:$0xff]  }
 0x539   :  { %11797 = vmatprep.subr.bf16.mxu1 %v13212_v17  ;;  %v13249_v0 = vld [vmem:[#allocation5 + $0x700] sm:$0xff]   ;;  %v7761_v17 = vrot.slane %v16740_v57, %v16686_v53 }
 0x53b   :  { %11776 = vmatpush3.bf16.msra.mxu0 %v13213_v14  ;;  %v13250_v14 = vld [vmem:[#allocation5 + $0x780] sm:$0xff]  }
 0x53c   :  { %11777 = vmatprep.subr.bf16.mxu0 %v13215_v24  ;;  %11798 = vmatpush3.bf16.msra.mxu1 %v13214_v4  ;;  %v7777_v4 = vcombine.high %v7761_v17, %v7761_v17 }
 0x53d   :  { %11799 = vmatprep.subr.bf16.mxu1 %v13216_v8 }
 0x53f   :  { %11778 = vmatpush3.bf16.msra.mxu0 %v13217_v41 }
 0x540   :  { %11807 = vmatprep.subr.bf16.mxu0 %v13219_v30  ;;  %11800 = vmatpush3.bf16.msra.mxu1 %v13218_v18 }
 0x541   :  { %11829 = vmatprep.subr.bf16.mxu1 %v13220_v10 }
 0x542   :  { %v11515_v39 = vpop.f32.mrf.mxu0  ;;  %9861 = vmatmul.mubr.bf16.vlgmr.msra.gmra.mxu0 %v7754_v29 }
 0x543   :  { %v11537_v19 = vpop.f32.mrf.mxu1  ;;  %11808 = vmatpush3.bf16.msra.mxu0 %v13221_v13  ;;  %9901 = vmatmul.mubr.bf16.vlgmr.msra.gmra.mxu1 %v7776_v27 }
 0x544   :  { %v11516_v48 = vpop.f32.mrf.mxu0  ;;  %11809 = vmatprep.subr.bf16.mxu0 %v13223_v36  ;;  %11830 = vmatpush3.bf16.msra.mxu1 %v13222_v50 }
 0x545   :  { %v11517_v28 = vadd.f32 %v11516_v48, %v11515_v39  ;;  %v11538_v46 = vpop.f32.mrf.mxu1  ;;  %9940 = vmatprep.mubr.bf16.mxu0 %v7775_v61  ;;  %11831 = vmatprep.subr.bf16.mxu1 %v13224_v9 }
 0x546   :  { %v11518_v5 = vpop.f32.mrf.mxu0  ;;  %v11539_v37 = vadd.f32 %v11538_v46, %v11537_v19  ;;  %9980 = vmatprep.mubr.bf16.mxu1 %v7779_v12 }
 0x547   :  { %v9383_v21 = vadd.f32 %v11517_v28, %v10840_v16  ;;  %v11540_v55 = vpop.f32.mrf.mxu1  ;;  %11810 = vmatpush3.bf16.msra.mxu0 %v13225_v56 }
 0x548   :  { %v11519_v33 = vpop.f32.mrf.mxu0  ;;  %11811 = vmatprep.subr.bf16.mxu0 %v13227_v35  ;;  %11832 = vmatpush3.bf16.msra.mxu1 %v13226_v63 }
 0x549   :  { %v9423_v38 = vadd.f32 %v11539_v37, %v9383_v21  ;;  %v11541_v15 = vpop.f32.mrf.mxu1  ;;  %11833 = vmatprep.subr.bf16.mxu1 %v13228_v22 }
 0x54b   :  { %11812 = vmatpush3.bf16.msra.mxu0 %v13229_v59 }
 0x54c   :  { %11813 = vmatprep.subr.bf16.mxu0 %v13231_v51  ;;  %11834 = vmatpush3.bf16.msra.mxu1 %v13230_v40 }
 0x54d   :  { %11835 = vmatprep.subr.bf16.mxu1 %v13232_v2 }
 0x54f   :  { %11814 = vmatpush3.bf16.msra.mxu0 %v13233_v43 }
 0x550   :  { %11815 = vmatprep.subr.bf16.mxu0 %v13235_v42  ;;  %11836 = vmatpush3.bf16.msra.mxu1 %v13234_v7 }
 0x551   :  { %11837 = vmatprep.subr.bf16.mxu1 %v13236_v26 }
 0x553   :  { %11816 = vmatpush3.bf16.msra.mxu0 %v13237_v32 }
 0x554   :  { %11817 = vmatprep.subr.bf16.mxu0 %v13239_v23  ;;  %11838 = vmatpush3.bf16.msra.mxu1 %v13238_v11 }
 0x555   :  { %11839 = vmatprep.subr.bf16.mxu1 %v13240_v44 }
 0x557   :  { %11818 = vmatpush3.bf16.msra.mxu0 %v13241_v34 }
 0x558   :  { %11819 = vmatprep.subr.bf16.mxu0 %v13243_v49  ;;  %11840 = vmatpush3.bf16.msra.mxu1 %v13242_v3 }
 0x559   :  { %11841 = vmatprep.subr.bf16.mxu1 %v13244_v6 }
 0x55b   :  { %11820 = vmatpush3.bf16.msra.mxu0 %v13245_v45 }
 0x55c   :  { %11821 = vmatprep.subr.bf16.mxu0 %v13247_v52  ;;  %11842 = vmatpush3.bf16.msra.mxu1 %v13246_v31 }
 0x55d   :  { %11843 = vmatprep.subr.bf16.mxu1 %v13248_v54 }
 0x55f   :  { %11822 = vmatpush3.bf16.msra.mxu0 %v13249_v0 }
 0x560   :  { %11844 = vmatpush3.bf16.msra.mxu1 %v13250_v14 }
 0x562   :  { %v11559_v24 = vpop.f32.mrf.mxu0  ;;  %9941 = vmatmul.mubr.bf16.vlgmr.msra.gmra.mxu0 %v7761_v17 }
 0x563   :  { %v11581_v8 = vpop.f32.mrf.mxu1  ;;  %9981 = vmatmul.mubr.bf16.vlgmr.msra.gmra.mxu1 %v7777_v4 }
 0x564   :  { %v11560_v41 = vpop.f32.mrf.mxu0 }
 0x565   :  { %v11561_v62 = vadd.f32 %v11560_v41, %v11559_v24  ;;  %v11582_v1 = vpop.f32.mrf.mxu1 }
 0x566   :  { %v11562_v30 = vpop.f32.mrf.mxu0  ;;  %v11583_v18 = vadd.f32 %v11582_v1, %v11581_v8 }
 0x567   :  { %v9463_v20 = vadd.f32 %v11561_v62, %v9423_v38  ;;  %v11584_v58 = vpop.f32.mrf.mxu1 }
 0x568   :  { %v11563_v29 = vpop.f32.mrf.mxu0 }
 0x569   :  { %v9503_v10 = vadd.f32 %v11583_v18, %v9463_v20  ;;  %v11585_v53 = vpop.f32.mrf.mxu1 }
 0x582   :  { %v11603_v57 = vpop.f32.mrf.mxu0 }
 0x583   :  { %v11625_v13 = vpop.f32.mrf.mxu1 }
 0x584   :  { %v11604_v60 = vpop.f32.mrf.mxu0 }
 0x585   :  { %v11605_v50 = vadd.f32 %v11604_v60, %v11603_v57  ;;  %v11626_v25 = vpop.f32.mrf.mxu1 }
 0x586   :  { %v11606_v27 = vpop.f32.mrf.mxu0  ;;  %v11627_v47 = vadd.f32 %v11626_v25, %v11625_v13 }
 0x587   :  { %v9543_v36 = vadd.f32 %v11605_v50, %v9503_v10  ;;  %v11628_v39 = vpop.f32.mrf.mxu1 }
 0x588   :  { %v11607_v16 = vpop.f32.mrf.mxu0 }
 0x589   :  { %v9583_v61 = vadd.f32 %v11627_v47, %v9543_v36  ;;  %v11629_v9 = vpop.f32.mrf.mxu1  ;;  %v11097_v16 = vld [vmem:[%s16765_s9] ss:$0 sm:$0xff] }
 0x5a2   :  { %v11647_v19 = vpop.f32.mrf.mxu0 }
 0x5a3   :  { %v11669_v48 = vpop.f32.mrf.mxu1 }
 0x5a4   :  { %v11648_v56 = vpop.f32.mrf.mxu0 }
 0x5a5   :  { %v11649_v12 = vadd.f32 %v11648_v56, %v11647_v19  ;;  %v11670_v28 = vpop.f32.mrf.mxu1 }
 0x5a6   :  { %v11650_v35 = vpop.f32.mrf.mxu0  ;;  %v11671_v5 = vadd.f32 %v11670_v28, %v11669_v48  ;;  %v11098_v48 = vld [vmem:[#allocation7] ss:$0 sm:$0xff] }
 0x5a7   :  { %v9623_v46 = vadd.f32 %v11649_v12, %v9583_v61  ;;  %v11672_v63 = vpop.f32.mrf.mxu1 }
 0x5a8   :  { %v11651_v21 = vpop.f32.mrf.mxu0 }
 0x5a9   :  { %v9663_v37 = vadd.f32 %v11671_v5, %v9623_v46  ;;  %v11673_v22 = vpop.f32.mrf.mxu1 }
 0x5c2   :  { %v11691_v55 = vpop.f32.mrf.mxu0 }
 0x5c3   :  { %v11713_v33 = vpop.f32.mrf.mxu1 }
 0x5c4   :  { %v11692_v59 = vpop.f32.mrf.mxu0 }
 0x5c5   :  { %v11693_v38 = vadd.f32 %v11692_v59, %v11691_v55  ;;  %v11714_v51 = vpop.f32.mrf.mxu1 }
 0x5c6   :  { %v11694_v15 = vpop.f32.mrf.mxu0  ;;  %v11715_v2 = vadd.f32 %v11714_v51, %v11713_v33 }
 0x5c7   :  { %v9703_v40 = vadd.f32 %v11693_v38, %v9663_v37  ;;  %v11716_v43 = vpop.f32.mrf.mxu1 }
 0x5c8   :  { %v11695_v42 = vpop.f32.mrf.mxu0 }
 0x5c9   :  { %v9743_v7 = vadd.f32 %v11715_v2, %v9703_v40  ;;  %v11717_v26 = vpop.f32.mrf.mxu1 }
 0x5e2   :  { %v11735_v32 = vpop.f32.mrf.mxu0 }
 0x5e3   :  { %v11757_v23 = vpop.f32.mrf.mxu1 }
 0x5e4   :  { %v11736_v11 = vpop.f32.mrf.mxu0 }
 0x5e5   :  { %v11758_v44 = vpop.f32.mrf.mxu1  ;;  %v11737_v24 = vadd.f32 %v11736_v11, %v11735_v32 }
 0x5e6   :  { %v11738_v34 = vpop.f32.mrf.mxu0  ;;  %v11759_v41 = vadd.f32 %v11758_v44, %v11757_v23 }
 0x5e7   :  { %v11760_v49 = vpop.f32.mrf.mxu1  ;;  %v9783_v8 = vadd.f32 %v11737_v24, %v9743_v7 }
 0x5e8   :  { %v11739_v3 = vpop.f32.mrf.mxu0 }
 0x5e9   :  { %v11761_v6 = vpop.f32.mrf.mxu1  ;;  %v9823_v1 = vadd.f32 %v11759_v41, %v9783_v8 }
 0x602   :  { %v11779_v45 = vpop.f32.mrf.mxu0 }
 0x603   :  { %v11801_v52 = vpop.f32.mrf.mxu1 }
 0x604   :  { %v11780_v31 = vpop.f32.mrf.mxu0 }
 0x605   :  { %v11802_v54 = vpop.f32.mrf.mxu1  ;;  %v11781_v62 = vadd.f32 %v11780_v31, %v11779_v45 }
 0x606   :  { %v11782_v0 = vpop.f32.mrf.mxu0  ;;  %v11803_v20 = vadd.f32 %v11802_v54, %v11801_v52 }
 0x607   :  { %v11804_v17 = vpop.f32.mrf.mxu1  ;;  %v9863_v30 = vadd.f32 %v11781_v62, %v9823_v1 }
 0x608   :  { %v11783_v14 = vpop.f32.mrf.mxu0 }
 0x609   :  { %v11805_v4 = vpop.f32.mrf.mxu1  ;;  %v9903_v10 = vadd.f32 %v11803_v20, %v9863_v30 }
 0x622   :  { %v11823_v18 = vpop.f32.mrf.mxu0 }
 0x623   :  { %v11845_v58 = vpop.f32.mrf.mxu1 }
 0x624   :  { %v11824_v29 = vpop.f32.mrf.mxu0 }
 0x625   :  { %v11825_v53 = vadd.f32 %v11824_v29, %v11823_v18  ;;  %v11846_v57 = vpop.f32.mrf.mxu1 }
 0x626   :  { %v11826_v13 = vpop.f32.mrf.mxu0  ;;  %v11847_v50 = vadd.f32 %v11846_v57, %v11845_v58 }
 0x627   :  { %v9943_v60 = vadd.f32 %v11825_v53, %v9903_v10  ;;  %v11848_v25 = vpop.f32.mrf.mxu1 }
 0x628   :  { %v11827_v27 = vpop.f32.mrf.mxu0 }
 0x629   :  { %v9983_v36 = vadd.f32 %v11847_v50, %v9943_v60  ;;  %v11849_v47 = vpop.f32.mrf.mxu1 }
 0x62b   :  { %v9989_v39 = vmul.f32 0.2, %v9983_v36  ;;  %vm9988_vm2 = vcmp.ge.f32.partialorder %v9983_v36, 0.0 }
 0x62d   :  { %v9990_v61 = vsel %vm9988_vm2, %v9983_v36, %v9989_v39 }
 0x62e   :  { %v9998_v9 = vmul.f32 %v11097_v16, %v9990_v61 }
 0x630   :  { %v10000_v19 = vsel %vm9999_vm3, %v9998_v9, 0.0 }
 0x631   :  { %10001 = vadd.xlane.f32.xlu0 %v10000_v19 }
 0x6ba   :  { %v10002_v56 = vpop.xlane.xlu0 %10001 }
 0x6bb   :  { %v10010_v12 = vadd.f32 %v11098_v48, %v10002_v56 }
 0x6bd   :  { %v10011_v28 = vsub.f32 0.0, %v10010_v12 }
 0x6bf   :  { %v10012_v35 = vmul.f32 1.442695, %v10011_v28 }
 0x6c1   :  { %13252 = vpow2.f32 %v10012_v35 }
 0x6ce   :  { %v13253_v46 = vpop.eup %13252 }
 0x6cf   :  { %v10014_v5 = vadd.f32 1.0, %v13253_v46 }
 0x6d1   :  { %13254 = vrcp.f32 %v10014_v5 }
 0x6de   :  { %v13255_v63 = vpop.eup %13254 }
 0x6df   :  { %10018 = vst.msk [vmem:[%s16767_s11] sm:$0x3] %vm10017_vm4, %v13255_v63 }
 0x6e0   :  { %10023 = vsyncmov [#allocation6] }
 0x6e3   :  { %s10024_s9 = vpop.sfrf %10023 }
 0x6e4   :  { %p11099_p0 = scmp.ne.s32.totalorder %s10024_s9, 0 }
 0x6e6   :  { %10028 = shalt.err (%p11099_p0)  }

</bundles_post_ra>
